<compile_context>
chip_gen: v7x
topology: tpu7x:2x2x1
jax: 0.10.0
libtpu: 0.0.40
codegen_flags: <defaults>
</compile_context>

<pallas_src>
import functools

import jax
import jax.numpy as jnp
from jax.experimental import pallas as pl
from jax.experimental.pallas import tpu as pltpu

K = 3  # conv kernel_size (both convs), stride=1, padding=0


def net1d_kernel(x_ref, bits_ref, w1_ref, b1_ref, gamma_ref, beta_ref,
                 w2_ref, b2_ref, fw1_ref, fb1_ref, fw2_ref, fb2_ref,
                 out_ref, flat_ref, *, keep_threshold):
    """Training-mode forward with batch on the 128-lane axis.

    x_ref    : (L, B)   f32  input, pre-transposed (batch on lanes)
    bits_ref : (C2, L2, B) u32 raw PRNG bits for the dropout keep-mask
    w1_ref   : (K, H)   f32  conv1 weights (SMEM scalar table)
    w2_ref   : (K*C2, H) f32 conv2 weights, row = k*C2 + c (SMEM scalar table)
    fw1_ref  : (512, num_pad) bf16  fc1 weight, 1/(1-p) folded in, zero-pad cols
    fw2_ref  : (out, 512) bf16      fc2 weight
    out_ref  : (out, B) f32
    flat_ref : (num_pad, B) f32 VMEM scratch = flattened conv2 output (padded)
    """
    L, B = x_ref.shape
    Kk, H = w1_ref.shape
    C2 = b2_ref.shape[0]
    L1 = L - (Kk - 1)
    L2 = L1 - (Kk - 1)

    x = x_ref[...]                                         # (L, B)

    # ---- conv1 (1 -> H) + bias + ReLU + BatchNorm1d (training stats) -------
    # Per-channel (L1, B) slabs; tap windows slice the sublane (length) axis
    # only, so the lane (batch) axis never needs realignment.
    inv_n = 1.0 / float(B * L1)
    h1n = []
    for h in range(H):
        acc = w1_ref[0, h] * x[0:L1, :]
        for k in range(1, Kk):
            acc = acc + w1_ref[k, h] * x[k:k + L1, :]
        acc = jnp.maximum(acc + b1_ref[h], 0.0)
        # biased variance, mean-subtracted for numerical stability
        mean = jnp.sum(acc, keepdims=True) * inv_n         # (1, 1)
        cent = acc - mean
        var = jnp.sum(cent * cent, keepdims=True) * inv_n
        scale = gamma_ref[h] * jax.lax.rsqrt(var + 1e-5)
        h1n.append(cent * scale + beta_ref[h])             # (L1, B)

    # ---- conv2 (H -> C2) + bias + ReLU + dropout ----------------------------
    # Loop over output channels: only one (L2, B) accumulator is live (no
    # C2-replicated broadcast product).  Flatten straight into the fc1 scratch
    # (row c*L2 + l == PyTorch's .view(-1, num) ordering).
    flat_ref[...] = jnp.zeros_like(flat_ref)   # also zeroes the num->num_pad pad rows
    for c in range(C2):
        acc = None
        for k in range(Kk):
            for h in range(H):
                term = w2_ref[k * C2 + c, h] * h1n[h][k:k + L2, :]
                acc = term if acc is None else acc + term
        acc = jnp.maximum(acc + b2_ref[c], 0.0)
        if keep_threshold > 0:
            # inverted dropout: P(drop) = keep_threshold / 2^32; the 1/(1-p)
            # rescale is already folded into fw1 host-side.
            acc = jnp.where(bits_ref[c] >= jnp.uint32(keep_threshold), acc, 0.0)
        flat_ref[c * L2:(c + 1) * L2, :] = acc

    # ---- fc1 + ReLU, fc2 on the MXU (bf16 operands, f32 accumulation) -------
    flat_bf = flat_ref[...].astype(jnp.bfloat16)            # cast once, post-dropout
    z1 = jnp.dot(fw1_ref[...], flat_bf,
                 preferred_element_type=jnp.float32) + fb1_ref[...]
    z1 = jnp.maximum(z1, 0.0)
    out_ref[...] = jnp.dot(fw2_ref[...], z1.astype(jnp.bfloat16),
                           preferred_element_type=jnp.float32) + fb2_ref[...]


def net1d_forward(x, params, dropout_bits, dropout_p):
    """x: (B, L) float32; returns (B, out_size) float32 (training-mode forward)."""
    B, L = x.shape
    Kk, H = params["w1"].shape
    C2 = params["b2"].shape[0]
    L1 = L - (Kk - 1)
    L2 = L1 - (Kk - 1)
    num_pad = params["fc1_w"].shape[1]
    out_size = params["fc2_w"].shape[0]

    # P(drop) = keep_threshold / 2^32 (unsigned compare against raw PRNG bits)
    keep_threshold = min(int(round(float(dropout_p) * 2.0 ** 32)), 2 ** 32 - 1)
    kernel = functools.partial(net1d_kernel, keep_threshold=keep_threshold)

    # VMEM plan derived from actual shapes; capped at 48 MiB so it also fits
    # v7x's 64 MiB VMEM.  TODO(synk): batch-tile the grid instead of relying on
    # the cap once B*L grows.
    vmem_args = (x, dropout_bits, params["fc1_w"], params["fc1_b"],
                 params["fc2_w"], params["fc2_b"])
    operand_bytes = sum(int(a.size) * a.dtype.itemsize for a in vmem_args)
    inter_bytes = (H * L1 + C2 * L2 + num_pad + 512 + out_size) * B * 4
    vmem_limit = min(max(2 * operand_bytes + 2 * inter_bytes + (8 << 20),
                         32 << 20), 48 << 20)

    smem = lambda: pl.BlockSpec(memory_space=pltpu.MemorySpace.SMEM)
    vmem = lambda: pl.BlockSpec(memory_space=pltpu.MemorySpace.VMEM)

    out_t = pl.pallas_call(
        kernel,
        out_shape=jax.ShapeDtypeStruct((out_size, B), jnp.float32),
        in_specs=[vmem(), vmem(),                  # x^T, dropout bits
                  smem(), smem(), smem(), smem(),  # w1, b1, gamma, beta
                  smem(), smem(),                  # w2, b2
                  vmem(), vmem(), vmem(), vmem()], # fc1_w, fc1_b, fc2_w, fc2_b
        out_specs=vmem(),
        scratch_shapes=[pltpu.VMEM((num_pad, B), jnp.float32)],
        compiler_params=pltpu.CompilerParams(vmem_limit_bytes=vmem_limit),
    )(x.T, dropout_bits,
      params["w1"], params["b1"], params["gamma"], params["beta"],
      params["w2"], params["b2"],
      params["fc1_w"], params["fc1_b"], params["fc2_w"], params["fc2_b"])
    # back to (B, out_size); the kernel keeps batch on lanes for density
    return out_t.T


# --------------- deterministic synthetic Bayesian parameters ----------------
def _softplus(x):
    return jnp.log1p(jnp.exp(x))


def _sample_bayes(key, shape, scale=0.1, rho0=-3.0):
    """W = W_mu + softplus(W_rho) * eps  (BBB reparameterization, fixed eps)."""
    kmu, keps = jax.random.split(key)
    mu = scale * jax.random.normal(kmu, shape, jnp.float32)
    eps = jax.random.normal(keps, shape, jnp.float32)
    return mu + _softplus(jnp.full(shape, rho0, jnp.float32)) * eps


if __name__ == "__main__":
    # small shapes consistent with the module
    B, L = 2, 16
    input_dim, hidden_dim, out_size, dropout_p = 1, 8, 4, 0.1
    C2 = 10
    L1, L2 = L - (K - 1), L - 2 * (K - 1)
    num = C2 * L2                      # self.num = 10 * (L - 4) = 120
    num_pad = ((num + 127) // 128) * 128

    key = jax.random.PRNGKey(0)
    ks = jax.random.split(key, 10)

    # conv1: torch weight (H, 1, 3) -> scalar table (K, H)
    w1_t = _sample_bayes(ks[0], (hidden_dim, input_dim, K)).reshape(hidden_dim, K)
    w1 = jnp.transpose(w1_t, (1, 0))                         # (K, H)
    b1 = _sample_bayes(ks[1], (hidden_dim,))
    # BatchNorm1d default affine init
    gamma = jnp.ones((hidden_dim,), jnp.float32)
    beta = jnp.zeros((hidden_dim,), jnp.float32)
    # conv2: torch weight (10, H, 3) -> scalar table (K*10, H), row = k*10 + c
    w2_t = _sample_bayes(ks[2], (C2, hidden_dim, K))
    w2 = jnp.transpose(w2_t, (2, 0, 1)).reshape(K * C2, hidden_dim)
    b2 = _sample_bayes(ks[3], (C2,))
    # fc1: torch weight (512, num); fold dropout 1/(1-p), zero-pad num->128, bf16
    fc1_w = _sample_bayes(ks[4], (512, num), scale=0.05) / (1.0 - dropout_p)
    fc1_w = jnp.pad(fc1_w, ((0, 0), (0, num_pad - num))).astype(jnp.bfloat16)
    fc1_b = _sample_bayes(ks[5], (512,)).reshape(512, 1)
    # fc2: torch weight (out_size, 512), used as-is (out^T = W2 @ z1^T)
    fc2_w = _sample_bayes(ks[6], (out_size, 512), scale=0.05).astype(jnp.bfloat16)
    fc2_b = _sample_bayes(ks[7], (out_size,)).reshape(out_size, 1)

    params = dict(w1=w1, b1=b1, gamma=gamma, beta=beta, w2=w2, b2=b2,
                  fc1_w=fc1_w, fc1_b=fc1_b, fc2_w=fc2_w, fc2_b=fc2_b)

    x = jax.random.normal(ks[8], (B, L), jnp.float32)
    # host-side raw PRNG bits for the dropout keep-mask (i.i.d. per element)
    bits = jax.random.bits(ks[9], (C2, L2, B), dtype=jnp.uint32)

    out = net1d_forward(x, params, bits, dropout_p)
    jax.block_until_ready(out)
    assert out.shape == (B, out_size)
    print("KERNEL_OK")
</pallas_src>

<mosaic_0001>
module attributes {stable_mosaic.version = 11 : i64} {
  func.func @net1d_kernel(%arg0: memref<16x2xf32, #tpu.memory_space<vmem>>, %arg1: memref<10x12x2xi32, #tpu.memory_space<vmem>>, %arg2: memref<3x8xf32, #tpu.memory_space<smem>>, %arg3: memref<8xf32, #tpu.memory_space<smem>>, %arg4: memref<8xf32, #tpu.memory_space<smem>>, %arg5: memref<8xf32, #tpu.memory_space<smem>>, %arg6: memref<30x8xf32, #tpu.memory_space<smem>>, %arg7: memref<10xf32, #tpu.memory_space<smem>>, %arg8: memref<512x128xbf16, #tpu.memory_space<vmem>>, %arg9: memref<512x1xf32, #tpu.memory_space<vmem>>, %arg10: memref<4x512xbf16, #tpu.memory_space<vmem>>, %arg11: memref<4x1xf32, #tpu.memory_space<vmem>>, %arg12: memref<4x2xf32, #tpu.memory_space<vmem>>, %arg13: memref<128x2xf32, #tpu.memory_space<vmem>>) attributes {dimension_semantics = [], scalar_prefetch = 0 : i64, scratch_operands = 1 : i64, tpu.core_type = #tpu.core_type<tc>} {
    %c0 = arith.constant 0 : index
    %c0_0 = arith.constant 0 : index
    %0 = vector.load %arg0[%c0, %c0_0] : memref<16x2xf32, #tpu.memory_space<vmem>>, vector<16x2xf32>
    %c0_1 = arith.constant 0 : index
    %c0_2 = arith.constant 0 : index
    %1 = memref.load %arg2[%c0_1, %c0_2] : memref<3x8xf32, #tpu.memory_space<smem>>
    %2 = vector.extract_strided_slice %0 {offsets = [0, 0], sizes = [14, 2], strides = [1, 1]} : vector<16x2xf32> to vector<14x2xf32>
    %3 = vector.broadcast %1 : f32 to vector<14x2xf32>
    %4 = arith.mulf %3, %2 : vector<14x2xf32>
    %c1 = arith.constant 1 : index
    %c0_3 = arith.constant 0 : index
    %5 = memref.load %arg2[%c1, %c0_3] : memref<3x8xf32, #tpu.memory_space<smem>>
    %6 = vector.extract_strided_slice %0 {offsets = [1, 0], sizes = [14, 2], strides = [1, 1]} : vector<16x2xf32> to vector<14x2xf32>
    %7 = vector.broadcast %5 : f32 to vector<14x2xf32>
    %8 = arith.mulf %7, %6 : vector<14x2xf32>
    %9 = arith.addf %4, %8 : vector<14x2xf32>
    %c2 = arith.constant 2 : index
    %c0_4 = arith.constant 0 : index
    %10 = memref.load %arg2[%c2, %c0_4] : memref<3x8xf32, #tpu.memory_space<smem>>
    %11 = vector.extract_strided_slice %0 {offsets = [2, 0], sizes = [14, 2], strides = [1, 1]} : vector<16x2xf32> to vector<14x2xf32>
    %12 = vector.broadcast %10 : f32 to vector<14x2xf32>
    %13 = arith.mulf %12, %11 : vector<14x2xf32>
    %14 = arith.addf %9, %13 : vector<14x2xf32>
    %c0_5 = arith.constant 0 : index
    %15 = memref.load %arg3[%c0_5] : memref<8xf32, #tpu.memory_space<smem>>
    %16 = vector.broadcast %15 : f32 to vector<14x2xf32>
    %17 = arith.addf %14, %16 : vector<14x2xf32>
    %cst = arith.constant 0.000000e+00 : f32
    %18 = vector.broadcast %cst : f32 to vector<14x2xf32>
    %19 = arith.maximumf %17, %18 : vector<14x2xf32>
    %20 = vector.shape_cast %19 : vector<14x2xf32> to vector<1x14x2xf32>
    %cst_6 = arith.constant dense<0.000000e+00> : vector<1xf32>
    %21 = vector.multi_reduction <add>, %20, %cst_6 [1, 2] : vector<1x14x2xf32> to vector<1xf32>
    %22 = vector.shape_cast %21 : vector<1xf32> to vector<1x1x1xf32>
    %23 = vector.extract %22[0, 0, 0] : f32 from vector<1x1x1xf32>
    %24 = vector.broadcast %23 : f32 to vector<1x1xf32>
    %cst_7 = arith.constant 0.0357142873 : f32
    %25 = vector.broadcast %cst_7 : f32 to vector<1x1xf32>
    %26 = arith.mulf %24, %25 : vector<1x1xf32>
    %27 = vector.broadcast %26 : vector<1x1xf32> to vector<14x2xf32>
    %28 = arith.subf %19, %27 : vector<14x2xf32>
    %29 = arith.mulf %28, %28 : vector<14x2xf32>
    %30 = vector.shape_cast %29 : vector<14x2xf32> to vector<1x14x2xf32>
    %cst_8 = arith.constant dense<0.000000e+00> : vector<1xf32>
    %31 = vector.multi_reduction <add>, %30, %cst_8 [1, 2] : vector<1x14x2xf32> to vector<1xf32>
    %32 = vector.shape_cast %31 : vector<1xf32> to vector<1x1x1xf32>
    %33 = vector.extract %32[0, 0, 0] : f32 from vector<1x1x1xf32>
    %34 = vector.broadcast %33 : f32 to vector<1x1xf32>
    %cst_9 = arith.constant 0.0357142873 : f32
    %35 = vector.broadcast %cst_9 : f32 to vector<1x1xf32>
    %36 = arith.mulf %34, %35 : vector<1x1xf32>
    %c0_10 = arith.constant 0 : index
    %37 = memref.load %arg4[%c0_10] : memref<8xf32, #tpu.memory_space<smem>>
    %cst_11 = arith.constant 9.99999974E-6 : f32
    %38 = vector.broadcast %cst_11 : f32 to vector<1x1xf32>
    %39 = arith.addf %36, %38 : vector<1x1xf32>
    %40 = math.rsqrt %39 : vector<1x1xf32>
    %41 = vector.broadcast %37 : f32 to vector<1x1xf32>
    %42 = arith.mulf %41, %40 : vector<1x1xf32>
    %43 = vector.broadcast %42 : vector<1x1xf32> to vector<14x2xf32>
    %44 = arith.mulf %28, %43 : vector<14x2xf32>
    %c0_12 = arith.constant 0 : index
    %45 = memref.load %arg5[%c0_12] : memref<8xf32, #tpu.memory_space<smem>>
    %46 = vector.broadcast %45 : f32 to vector<14x2xf32>
    %47 = arith.addf %44, %46 : vector<14x2xf32>
    %c0_13 = arith.constant 0 : index
    %c1_14 = arith.constant 1 : index
    %48 = memref.load %arg2[%c0_13, %c1_14] : memref<3x8xf32, #tpu.memory_space<smem>>
    %49 = vector.extract_strided_slice %0 {offsets = [0, 0], sizes = [14, 2], strides = [1, 1]} : vector<16x2xf32> to vector<14x2xf32>
    %50 = vector.broadcast %48 : f32 to vector<14x2xf32>
    %51 = arith.mulf %50, %49 : vector<14x2xf32>
    %c1_15 = arith.constant 1 : index
    %c1_16 = arith.constant 1 : index
    %52 = memref.load %arg2[%c1_15, %c1_16] : memref<3x8xf32, #tpu.memory_space<smem>>
    %53 = vector.extract_strided_slice %0 {offsets = [1, 0], sizes = [14, 2], strides = [1, 1]} : vector<16x2xf32> to vector<14x2xf32>
    %54 = vector.broadcast %52 : f32 to vector<14x2xf32>
    %55 = arith.mulf %54, %53 : vector<14x2xf32>
    %56 = arith.addf %51, %55 : vector<14x2xf32>
    %c2_17 = arith.constant 2 : index
    %c1_18 = arith.constant 1 : index
    %57 = memref.load %arg2[%c2_17, %c1_18] : memref<3x8xf32, #tpu.memory_space<smem>>
    %58 = vector.extract_strided_slice %0 {offsets = [2, 0], sizes = [14, 2], strides = [1, 1]} : vector<16x2xf32> to vector<14x2xf32>
    %59 = vector.broadcast %57 : f32 to vector<14x2xf32>
    %60 = arith.mulf %59, %58 : vector<14x2xf32>
    %61 = arith.addf %56, %60 : vector<14x2xf32>
    %c1_19 = arith.constant 1 : index
    %62 = memref.load %arg3[%c1_19] : memref<8xf32, #tpu.memory_space<smem>>
    %63 = vector.broadcast %62 : f32 to vector<14x2xf32>
    %64 = arith.addf %61, %63 : vector<14x2xf32>
    %cst_20 = arith.constant 0.000000e+00 : f32
    %65 = vector.broadcast %cst_20 : f32 to vector<14x2xf32>
    %66 = arith.maximumf %64, %65 : vector<14x2xf32>
    %67 = vector.shape_cast %66 : vector<14x2xf32> to vector<1x14x2xf32>
    %cst_21 = arith.constant dense<0.000000e+00> : vector<1xf32>
    %68 = vector.multi_reduction <add>, %67, %cst_21 [1, 2] : vector<1x14x2xf32> to vector<1xf32>
    %69 = vector.shape_cast %68 : vector<1xf32> to vector<1x1x1xf32>
    %70 = vector.extract %69[0, 0, 0] : f32 from vector<1x1x1xf32>
    %71 = vector.broadcast %70 : f32 to vector<1x1xf32>
    %cst_22 = arith.constant 0.0357142873 : f32
    %72 = vector.broadcast %cst_22 : f32 to vector<1x1xf32>
    %73 = arith.mulf %71, %72 : vector<1x1xf32>
    %74 = vector.broadcast %73 : vector<1x1xf32> to vector<14x2xf32>
    %75 = arith.subf %66, %74 : vector<14x2xf32>
    %76 = arith.mulf %75, %75 : vector<14x2xf32>
    %77 = vector.shape_cast %76 : vector<14x2xf32> to vector<1x14x2xf32>
    %cst_23 = arith.constant dense<0.000000e+00> : vector<1xf32>
    %78 = vector.multi_reduction <add>, %77, %cst_23 [1, 2] : vector<1x14x2xf32> to vector<1xf32>
    %79 = vector.shape_cast %78 : vector<1xf32> to vector<1x1x1xf32>
    %80 = vector.extract %79[0, 0, 0] : f32 from vector<1x1x1xf32>
    %81 = vector.broadcast %80 : f32 to vector<1x1xf32>
    %cst_24 = arith.constant 0.0357142873 : f32
    %82 = vector.broadcast %cst_24 : f32 to vector<1x1xf32>
    %83 = arith.mulf %81, %82 : vector<1x1xf32>
    %c1_25 = arith.constant 1 : index
    %84 = memref.load %arg4[%c1_25] : memref<8xf32, #tpu.memory_space<smem>>
    %cst_26 = arith.constant 9.99999974E-6 : f32
    %85 = vector.broadcast %cst_26 : f32 to vector<1x1xf32>
    %86 = arith.addf %83, %85 : vector<1x1xf32>
    %87 = math.rsqrt %86 : vector<1x1xf32>
    %88 = vector.broadcast %84 : f32 to vector<1x1xf32>
    %89 = arith.mulf %88, %87 : vector<1x1xf32>
    %90 = vector.broadcast %89 : vector<1x1xf32> to vector<14x2xf32>
    %91 = arith.mulf %75, %90 : vector<14x2xf32>
    %c1_27 = arith.constant 1 : index
    %92 = memref.load %arg5[%c1_27] : memref<8xf32, #tpu.memory_space<smem>>
    %93 = vector.broadcast %92 : f32 to vector<14x2xf32>
    %94 = arith.addf %91, %93 : vector<14x2xf32>
    %c0_28 = arith.constant 0 : index
    %c2_29 = arith.constant 2 : index
    %95 = memref.load %arg2[%c0_28, %c2_29] : memref<3x8xf32, #tpu.memory_space<smem>>
    %96 = vector.extract_strided_slice %0 {offsets = [0, 0], sizes = [14, 2], strides = [1, 1]} : vector<16x2xf32> to vector<14x2xf32>
    %97 = vector.broadcast %95 : f32 to vector<14x2xf32>
    %98 = arith.mulf %97, %96 : vector<14x2xf32>
    %c1_30 = arith.constant 1 : index
    %c2_31 = arith.constant 2 : index
    %99 = memref.load %arg2[%c1_30, %c2_31] : memref<3x8xf32, #tpu.memory_space<smem>>
    %100 = vector.extract_strided_slice %0 {offsets = [1, 0], sizes = [14, 2], strides = [1, 1]} : vector<16x2xf32> to vector<14x2xf32>
    %101 = vector.broadcast %99 : f32 to vector<14x2xf32>
    %102 = arith.mulf %101, %100 : vector<14x2xf32>
    %103 = arith.addf %98, %102 : vector<14x2xf32>
    %c2_32 = arith.constant 2 : index
    %c2_33 = arith.constant 2 : index
    %104 = memref.load %arg2[%c2_32, %c2_33] : memref<3x8xf32, #tpu.memory_space<smem>>
    %105 = vector.extract_strided_slice %0 {offsets = [2, 0], sizes = [14, 2], strides = [1, 1]} : vector<16x2xf32> to vector<14x2xf32>
    %106 = vector.broadcast %104 : f32 to vector<14x2xf32>
    %107 = arith.mulf %106, %105 : vector<14x2xf32>
    %108 = arith.addf %103, %107 : vector<14x2xf32>
    %c2_34 = arith.constant 2 : index
    %109 = memref.load %arg3[%c2_34] : memref<8xf32, #tpu.memory_space<smem>>
    %110 = vector.broadcast %109 : f32 to vector<14x2xf32>
    %111 = arith.addf %108, %110 : vector<14x2xf32>
    %cst_35 = arith.constant 0.000000e+00 : f32
    %112 = vector.broadcast %cst_35 : f32 to vector<14x2xf32>
    %113 = arith.maximumf %111, %112 : vector<14x2xf32>
    %114 = vector.shape_cast %113 : vector<14x2xf32> to vector<1x14x2xf32>
    %cst_36 = arith.constant dense<0.000000e+00> : vector<1xf32>
    %115 = vector.multi_reduction <add>, %114, %cst_36 [1, 2] : vector<1x14x2xf32> to vector<1xf32>
    %116 = vector.shape_cast %115 : vector<1xf32> to vector<1x1x1xf32>
    %117 = vector.extract %116[0, 0, 0] : f32 from vector<1x1x1xf32>
    %118 = vector.broadcast %117 : f32 to vector<1x1xf32>
    %cst_37 = arith.constant 0.0357142873 : f32
    %119 = vector.broadcast %cst_37 : f32 to vector<1x1xf32>
    %120 = arith.mulf %118, %119 : vector<1x1xf32>
    %121 = vector.broadcast %120 : vector<1x1xf32> to vector<14x2xf32>
    %122 = arith.subf %113, %121 : vector<14x2xf32>
    %123 = arith.mulf %122, %122 : vector<14x2xf32>
    %124 = vector.shape_cast %123 : vector<14x2xf32> to vector<1x14x2xf32>
    %cst_38 = arith.constant dense<0.000000e+00> : vector<1xf32>
    %125 = vector.multi_reduction <add>, %124, %cst_38 [1, 2] : vector<1x14x2xf32> to vector<1xf32>
    %126 = vector.shape_cast %125 : vector<1xf32> to vector<1x1x1xf32>
    %127 = vector.extract %126[0, 0, 0] : f32 from vector<1x1x1xf32>
    %128 = vector.broadcast %127 : f32 to vector<1x1xf32>
    %cst_39 = arith.constant 0.0357142873 : f32
    %129 = vector.broadcast %cst_39 : f32 to vector<1x1xf32>
    %130 = arith.mulf %128, %129 : vector<1x1xf32>
    %c2_40 = arith.constant 2 : index
    %131 = memref.load %arg4[%c2_40] : memref<8xf32, #tpu.memory_space<smem>>
    %cst_41 = arith.constant 9.99999974E-6 : f32
    %132 = vector.broadcast %cst_41 : f32 to vector<1x1xf32>
    %133 = arith.addf %130, %132 : vector<1x1xf32>
    %134 = math.rsqrt %133 : vector<1x1xf32>
    %135 = vector.broadcast %131 : f32 to vector<1x1xf32>
    %136 = arith.mulf %135, %134 : vector<1x1xf32>
    %137 = vector.broadcast %136 : vector<1x1xf32> to vector<14x2xf32>
    %138 = arith.mulf %122, %137 : vector<14x2xf32>
    %c2_42 = arith.constant 2 : index
    %139 = memref.load %arg5[%c2_42] : memref<8xf32, #tpu.memory_space<smem>>
    %140 = vector.broadcast %139 : f32 to vector<14x2xf32>
    %141 = arith.addf %138, %140 : vector<14x2xf32>
    %c0_43 = arith.constant 0 : index
    %c3 = arith.constant 3 : index
    %142 = memref.load %arg2[%c0_43, %c3] : memref<3x8xf32, #tpu.memory_space<smem>>
    %143 = vector.extract_strided_slice %0 {offsets = [0, 0], sizes = [14, 2], strides = [1, 1]} : vector<16x2xf32> to vector<14x2xf32>
    %144 = vector.broadcast %142 : f32 to vector<14x2xf32>
    %145 = arith.mulf %144, %143 : vector<14x2xf32>
    %c1_44 = arith.constant 1 : index
    %c3_45 = arith.constant 3 : index
    %146 = memref.load %arg2[%c1_44, %c3_45] : memref<3x8xf32, #tpu.memory_space<smem>>
    %147 = vector.extract_strided_slice %0 {offsets = [1, 0], sizes = [14, 2], strides = [1, 1]} : vector<16x2xf32> to vector<14x2xf32>
    %148 = vector.broadcast %146 : f32 to vector<14x2xf32>
    %149 = arith.mulf %148, %147 : vector<14x2xf32>
    %150 = arith.addf %145, %149 : vector<14x2xf32>
    %c2_46 = arith.constant 2 : index
    %c3_47 = arith.constant 3 : index
    %151 = memref.load %arg2[%c2_46, %c3_47] : memref<3x8xf32, #tpu.memory_space<smem>>
    %152 = vector.extract_strided_slice %0 {offsets = [2, 0], sizes = [14, 2], strides = [1, 1]} : vector<16x2xf32> to vector<14x2xf32>
    %153 = vector.broadcast %151 : f32 to vector<14x2xf32>
    %154 = arith.mulf %153, %152 : vector<14x2xf32>
    %155 = arith.addf %150, %154 : vector<14x2xf32>
    %c3_48 = arith.constant 3 : index
    %156 = memref.load %arg3[%c3_48] : memref<8xf32, #tpu.memory_space<smem>>
    %157 = vector.broadcast %156 : f32 to vector<14x2xf32>
    %158 = arith.addf %155, %157 : vector<14x2xf32>
    %cst_49 = arith.constant 0.000000e+00 : f32
    %159 = vector.broadcast %cst_49 : f32 to vector<14x2xf32>
    %160 = arith.maximumf %158, %159 : vector<14x2xf32>
    %161 = vector.shape_cast %160 : vector<14x2xf32> to vector<1x14x2xf32>
    %cst_50 = arith.constant dense<0.000000e+00> : vector<1xf32>
    %162 = vector.multi_reduction <add>, %161, %cst_50 [1, 2] : vector<1x14x2xf32> to vector<1xf32>
    %163 = vector.shape_cast %162 : vector<1xf32> to vector<1x1x1xf32>
    %164 = vector.extract %163[0, 0, 0] : f32 from vector<1x1x1xf32>
    %165 = vector.broadcast %164 : f32 to vector<1x1xf32>
    %cst_51 = arith.constant 0.0357142873 : f32
    %166 = vector.broadcast %cst_51 : f32 to vector<1x1xf32>
    %167 = arith.mulf %165, %166 : vector<1x1xf32>
    %168 = vector.broadcast %167 : vector<1x1xf32> to vector<14x2xf32>
    %169 = arith.subf %160, %168 : vector<14x2xf32>
    %170 = arith.mulf %169, %169 : vector<14x2xf32>
    %171 = vector.shape_cast %170 : vector<14x2xf32> to vector<1x14x2xf32>
    %cst_52 = arith.constant dense<0.000000e+00> : vector<1xf32>
    %172 = vector.multi_reduction <add>, %171, %cst_52 [1, 2] : vector<1x14x2xf32> to vector<1xf32>
    %173 = vector.shape_cast %172 : vector<1xf32> to vector<1x1x1xf32>
    %174 = vector.extract %173[0, 0, 0] : f32 from vector<1x1x1xf32>
    %175 = vector.broadcast %174 : f32 to vector<1x1xf32>
    %cst_53 = arith.constant 0.0357142873 : f32
    %176 = vector.broadcast %cst_53 : f32 to vector<1x1xf32>
    %177 = arith.mulf %175, %176 : vector<1x1xf32>
    %c3_54 = arith.constant 3 : index
    %178 = memref.load %arg4[%c3_54] : memref<8xf32, #tpu.memory_space<smem>>
    %cst_55 = arith.constant 9.99999974E-6 : f32
    %179 = vector.broadcast %cst_55 : f32 to vector<1x1xf32>
    %180 = arith.addf %177, %179 : vector<1x1xf32>
    %181 = math.rsqrt %180 : vector<1x1xf32>
    %182 = vector.broadcast %178 : f32 to vector<1x1xf32>
    %183 = arith.mulf %182, %181 : vector<1x1xf32>
    %184 = vector.broadcast %183 : vector<1x1xf32> to vector<14x2xf32>
    %185 = arith.mulf %169, %184 : vector<14x2xf32>
    %c3_56 = arith.constant 3 : index
    %186 = memref.load %arg5[%c3_56] : memref<8xf32, #tpu.memory_space<smem>>
    %187 = vector.broadcast %186 : f32 to vector<14x2xf32>
    %188 = arith.addf %185, %187 : vector<14x2xf32>
    %c0_57 = arith.constant 0 : index
    %c4 = arith.constant 4 : index
    %189 = memref.load %arg2[%c0_57, %c4] : memref<3x8xf32, #tpu.memory_space<smem>>
    %190 = vector.extract_strided_slice %0 {offsets = [0, 0], sizes = [14, 2], strides = [1, 1]} : vector<16x2xf32> to vector<14x2xf32>
    %191 = vector.broadcast %189 : f32 to vector<14x2xf32>
    %192 = arith.mulf %191, %190 : vector<14x2xf32>
    %c1_58 = arith.constant 1 : index
    %c4_59 = arith.constant 4 : index
    %193 = memref.load %arg2[%c1_58, %c4_59] : memref<3x8xf32, #tpu.memory_space<smem>>
    %194 = vector.extract_strided_slice %0 {offsets = [1, 0], sizes = [14, 2], strides = [1, 1]} : vector<16x2xf32> to vector<14x2xf32>
    %195 = vector.broadcast %193 : f32 to vector<14x2xf32>
    %196 = arith.mulf %195, %194 : vector<14x2xf32>
    %197 = arith.addf %192, %196 : vector<14x2xf32>
    %c2_60 = arith.constant 2 : index
    %c4_61 = arith.constant 4 : index
    %198 = memref.load %arg2[%c2_60, %c4_61] : memref<3x8xf32, #tpu.memory_space<smem>>
    %199 = vector.extract_strided_slice %0 {offsets = [2, 0], sizes = [14, 2], strides = [1, 1]} : vector<16x2xf32> to vector<14x2xf32>
    %200 = vector.broadcast %198 : f32 to vector<14x2xf32>
    %201 = arith.mulf %200, %199 : vector<14x2xf32>
    %202 = arith.addf %197, %201 : vector<14x2xf32>
    %c4_62 = arith.constant 4 : index
    %203 = memref.load %arg3[%c4_62] : memref<8xf32, #tpu.memory_space<smem>>
    %204 = vector.broadcast %203 : f32 to vector<14x2xf32>
    %205 = arith.addf %202, %204 : vector<14x2xf32>
    %cst_63 = arith.constant 0.000000e+00 : f32
    %206 = vector.broadcast %cst_63 : f32 to vector<14x2xf32>
    %207 = arith.maximumf %205, %206 : vector<14x2xf32>
    %208 = vector.shape_cast %207 : vector<14x2xf32> to vector<1x14x2xf32>
    %cst_64 = arith.constant dense<0.000000e+00> : vector<1xf32>
    %209 = vector.multi_reduction <add>, %208, %cst_64 [1, 2] : vector<1x14x2xf32> to vector<1xf32>
    %210 = vector.shape_cast %209 : vector<1xf32> to vector<1x1x1xf32>
    %211 = vector.extract %210[0, 0, 0] : f32 from vector<1x1x1xf32>
    %212 = vector.broadcast %211 : f32 to vector<1x1xf32>
    %cst_65 = arith.constant 0.0357142873 : f32
    %213 = vector.broadcast %cst_65 : f32 to vector<1x1xf32>
    %214 = arith.mulf %212, %213 : vector<1x1xf32>
    %215 = vector.broadcast %214 : vector<1x1xf32> to vector<14x2xf32>
    %216 = arith.subf %207, %215 : vector<14x2xf32>
    %217 = arith.mulf %216, %216 : vector<14x2xf32>
    %218 = vector.shape_cast %217 : vector<14x2xf32> to vector<1x14x2xf32>
    %cst_66 = arith.constant dense<0.000000e+00> : vector<1xf32>
    %219 = vector.multi_reduction <add>, %218, %cst_66 [1, 2] : vector<1x14x2xf32> to vector<1xf32>
    %220 = vector.shape_cast %219 : vector<1xf32> to vector<1x1x1xf32>
    %221 = vector.extract %220[0, 0, 0] : f32 from vector<1x1x1xf32>
    %222 = vector.broadcast %221 : f32 to vector<1x1xf32>
    %cst_67 = arith.constant 0.0357142873 : f32
    %223 = vector.broadcast %cst_67 : f32 to vector<1x1xf32>
    %224 = arith.mulf %222, %223 : vector<1x1xf32>
    %c4_68 = arith.constant 4 : index
    %225 = memref.load %arg4[%c4_68] : memref<8xf32, #tpu.memory_space<smem>>
    %cst_69 = arith.constant 9.99999974E-6 : f32
    %226 = vector.broadcast %cst_69 : f32 to vector<1x1xf32>
    %227 = arith.addf %224, %226 : vector<1x1xf32>
    %228 = math.rsqrt %227 : vector<1x1xf32>
    %229 = vector.broadcast %225 : f32 to vector<1x1xf32>
    %230 = arith.mulf %229, %228 : vector<1x1xf32>
    %231 = vector.broadcast %230 : vector<1x1xf32> to vector<14x2xf32>
    %232 = arith.mulf %216, %231 : vector<14x2xf32>
    %c4_70 = arith.constant 4 : index
    %233 = memref.load %arg5[%c4_70] : memref<8xf32, #tpu.memory_space<smem>>
    %234 = vector.broadcast %233 : f32 to vector<14x2xf32>
    %235 = arith.addf %232, %234 : vector<14x2xf32>
    %c0_71 = arith.constant 0 : index
    %c5 = arith.constant 5 : index
    %236 = memref.load %arg2[%c0_71, %c5] : memref<3x8xf32, #tpu.memory_space<smem>>
    %237 = vector.extract_strided_slice %0 {offsets = [0, 0], sizes = [14, 2], strides = [1, 1]} : vector<16x2xf32> to vector<14x2xf32>
    %238 = vector.broadcast %236 : f32 to vector<14x2xf32>
    %239 = arith.mulf %238, %237 : vector<14x2xf32>
    %c1_72 = arith.constant 1 : index
    %c5_73 = arith.constant 5 : index
    %240 = memref.load %arg2[%c1_72, %c5_73] : memref<3x8xf32, #tpu.memory_space<smem>>
    %241 = vector.extract_strided_slice %0 {offsets = [1, 0], sizes = [14, 2], strides = [1, 1]} : vector<16x2xf32> to vector<14x2xf32>
    %242 = vector.broadcast %240 : f32 to vector<14x2xf32>
    %243 = arith.mulf %242, %241 : vector<14x2xf32>
    %244 = arith.addf %239, %243 : vector<14x2xf32>
    %c2_74 = arith.constant 2 : index
    %c5_75 = arith.constant 5 : index
    %245 = memref.load %arg2[%c2_74, %c5_75] : memref<3x8xf32, #tpu.memory_space<smem>>
    %246 = vector.extract_strided_slice %0 {offsets = [2, 0], sizes = [14, 2], strides = [1, 1]} : vector<16x2xf32> to vector<14x2xf32>
    %247 = vector.broadcast %245 : f32 to vector<14x2xf32>
    %248 = arith.mulf %247, %246 : vector<14x2xf32>
    %249 = arith.addf %244, %248 : vector<14x2xf32>
    %c5_76 = arith.constant 5 : index
    %250 = memref.load %arg3[%c5_76] : memref<8xf32, #tpu.memory_space<smem>>
    %251 = vector.broadcast %250 : f32 to vector<14x2xf32>
    %252 = arith.addf %249, %251 : vector<14x2xf32>
    %cst_77 = arith.constant 0.000000e+00 : f32
    %253 = vector.broadcast %cst_77 : f32 to vector<14x2xf32>
    %254 = arith.maximumf %252, %253 : vector<14x2xf32>
    %255 = vector.shape_cast %254 : vector<14x2xf32> to vector<1x14x2xf32>
    %cst_78 = arith.constant dense<0.000000e+00> : vector<1xf32>
    %256 = vector.multi_reduction <add>, %255, %cst_78 [1, 2] : vector<1x14x2xf32> to vector<1xf32>
    %257 = vector.shape_cast %256 : vector<1xf32> to vector<1x1x1xf32>
    %258 = vector.extract %257[0, 0, 0] : f32 from vector<1x1x1xf32>
    %259 = vector.broadcast %258 : f32 to vector<1x1xf32>
    %cst_79 = arith.constant 0.0357142873 : f32
    %260 = vector.broadcast %cst_79 : f32 to vector<1x1xf32>
    %261 = arith.mulf %259, %260 : vector<1x1xf32>
    %262 = vector.broadcast %261 : vector<1x1xf32> to vector<14x2xf32>
    %263 = arith.subf %254, %262 : vector<14x2xf32>
    %264 = arith.mulf %263, %263 : vector<14x2xf32>
    %265 = vector.shape_cast %264 : vector<14x2xf32> to vector<1x14x2xf32>
    %cst_80 = arith.constant dense<0.000000e+00> : vector<1xf32>
    %266 = vector.multi_reduction <add>, %265, %cst_80 [1, 2] : vector<1x14x2xf32> to vector<1xf32>
    %267 = vector.shape_cast %266 : vector<1xf32> to vector<1x1x1xf32>
    %268 = vector.extract %267[0, 0, 0] : f32 from vector<1x1x1xf32>
    %269 = vector.broadcast %268 : f32 to vector<1x1xf32>
    %cst_81 = arith.constant 0.0357142873 : f32
    %270 = vector.broadcast %cst_81 : f32 to vector<1x1xf32>
    %271 = arith.mulf %269, %270 : vector<1x1xf32>
    %c5_82 = arith.constant 5 : index
    %272 = memref.load %arg4[%c5_82] : memref<8xf32, #tpu.memory_space<smem>>
    %cst_83 = arith.constant 9.99999974E-6 : f32
    %273 = vector.broadcast %cst_83 : f32 to vector<1x1xf32>
    %274 = arith.addf %271, %273 : vector<1x1xf32>
    %275 = math.rsqrt %274 : vector<1x1xf32>
    %276 = vector.broadcast %272 : f32 to vector<1x1xf32>
    %277 = arith.mulf %276, %275 : vector<1x1xf32>
    %278 = vector.broadcast %277 : vector<1x1xf32> to vector<14x2xf32>
    %279 = arith.mulf %263, %278 : vector<14x2xf32>
    %c5_84 = arith.constant 5 : index
    %280 = memref.load %arg5[%c5_84] : memref<8xf32, #tpu.memory_space<smem>>
    %281 = vector.broadcast %280 : f32 to vector<14x2xf32>
    %282 = arith.addf %279, %281 : vector<14x2xf32>
    %c0_85 = arith.constant 0 : index
    %c6 = arith.constant 6 : index
    %283 = memref.load %arg2[%c0_85, %c6] : memref<3x8xf32, #tpu.memory_space<smem>>
    %284 = vector.extract_strided_slice %0 {offsets = [0, 0], sizes = [14, 2], strides = [1, 1]} : vector<16x2xf32> to vector<14x2xf32>
    %285 = vector.broadcast %283 : f32 to vector<14x2xf32>
    %286 = arith.mulf %285, %284 : vector<14x2xf32>
    %c1_86 = arith.constant 1 : index
    %c6_87 = arith.constant 6 : index
    %287 = memref.load %arg2[%c1_86, %c6_87] : memref<3x8xf32, #tpu.memory_space<smem>>
    %288 = vector.extract_strided_slice %0 {offsets = [1, 0], sizes = [14, 2], strides = [1, 1]} : vector<16x2xf32> to vector<14x2xf32>
    %289 = vector.broadcast %287 : f32 to vector<14x2xf32>
    %290 = arith.mulf %289, %288 : vector<14x2xf32>
    %291 = arith.addf %286, %290 : vector<14x2xf32>
    %c2_88 = arith.constant 2 : index
    %c6_89 = arith.constant 6 : index
    %292 = memref.load %arg2[%c2_88, %c6_89] : memref<3x8xf32, #tpu.memory_space<smem>>
    %293 = vector.extract_strided_slice %0 {offsets = [2, 0], sizes = [14, 2], strides = [1, 1]} : vector<16x2xf32> to vector<14x2xf32>
    %294 = vector.broadcast %292 : f32 to vector<14x2xf32>
    %295 = arith.mulf %294, %293 : vector<14x2xf32>
    %296 = arith.addf %291, %295 : vector<14x2xf32>
    %c6_90 = arith.constant 6 : index
    %297 = memref.load %arg3[%c6_90] : memref<8xf32, #tpu.memory_space<smem>>
    %298 = vector.broadcast %297 : f32 to vector<14x2xf32>
    %299 = arith.addf %296, %298 : vector<14x2xf32>
    %cst_91 = arith.constant 0.000000e+00 : f32
    %300 = vector.broadcast %cst_91 : f32 to vector<14x2xf32>
    %301 = arith.maximumf %299, %300 : vector<14x2xf32>
    %302 = vector.shape_cast %301 : vector<14x2xf32> to vector<1x14x2xf32>
    %cst_92 = arith.constant dense<0.000000e+00> : vector<1xf32>
    %303 = vector.multi_reduction <add>, %302, %cst_92 [1, 2] : vector<1x14x2xf32> to vector<1xf32>
    %304 = vector.shape_cast %303 : vector<1xf32> to vector<1x1x1xf32>
    %305 = vector.extract %304[0, 0, 0] : f32 from vector<1x1x1xf32>
    %306 = vector.broadcast %305 : f32 to vector<1x1xf32>
    %cst_93 = arith.constant 0.0357142873 : f32
    %307 = vector.broadcast %cst_93 : f32 to vector<1x1xf32>
    %308 = arith.mulf %306, %307 : vector<1x1xf32>
    %309 = vector.broadcast %308 : vector<1x1xf32> to vector<14x2xf32>
    %310 = arith.subf %301, %309 : vector<14x2xf32>
    %311 = arith.mulf %310, %310 : vector<14x2xf32>
    %312 = vector.shape_cast %311 : vector<14x2xf32> to vector<1x14x2xf32>
    %cst_94 = arith.constant dense<0.000000e+00> : vector<1xf32>
    %313 = vector.multi_reduction <add>, %312, %cst_94 [1, 2] : vector<1x14x2xf32> to vector<1xf32>
    %314 = vector.shape_cast %313 : vector<1xf32> to vector<1x1x1xf32>
    %315 = vector.extract %314[0, 0, 0] : f32 from vector<1x1x1xf32>
    %316 = vector.broadcast %315 : f32 to vector<1x1xf32>
    %cst_95 = arith.constant 0.0357142873 : f32
    %317 = vector.broadcast %cst_95 : f32 to vector<1x1xf32>
    %318 = arith.mulf %316, %317 : vector<1x1xf32>
    %c6_96 = arith.constant 6 : index
    %319 = memref.load %arg4[%c6_96] : memref<8xf32, #tpu.memory_space<smem>>
    %cst_97 = arith.constant 9.99999974E-6 : f32
    %320 = vector.broadcast %cst_97 : f32 to vector<1x1xf32>
    %321 = arith.addf %318, %320 : vector<1x1xf32>
    %322 = math.rsqrt %321 : vector<1x1xf32>
    %323 = vector.broadcast %319 : f32 to vector<1x1xf32>
    %324 = arith.mulf %323, %322 : vector<1x1xf32>
    %325 = vector.broadcast %324 : vector<1x1xf32> to vector<14x2xf32>
    %326 = arith.mulf %310, %325 : vector<14x2xf32>
    %c6_98 = arith.constant 6 : index
    %327 = memref.load %arg5[%c6_98] : memref<8xf32, #tpu.memory_space<smem>>
    %328 = vector.broadcast %327 : f32 to vector<14x2xf32>
    %329 = arith.addf %326, %328 : vector<14x2xf32>
    %c0_99 = arith.constant 0 : index
    %c7 = arith.constant 7 : index
    %330 = memref.load %arg2[%c0_99, %c7] : memref<3x8xf32, #tpu.memory_space<smem>>
    %331 = vector.extract_strided_slice %0 {offsets = [0, 0], sizes = [14, 2], strides = [1, 1]} : vector<16x2xf32> to vector<14x2xf32>
    %332 = vector.broadcast %330 : f32 to vector<14x2xf32>
    %333 = arith.mulf %332, %331 : vector<14x2xf32>
    %c1_100 = arith.constant 1 : index
    %c7_101 = arith.constant 7 : index
    %334 = memref.load %arg2[%c1_100, %c7_101] : memref<3x8xf32, #tpu.memory_space<smem>>
    %335 = vector.extract_strided_slice %0 {offsets = [1, 0], sizes = [14, 2], strides = [1, 1]} : vector<16x2xf32> to vector<14x2xf32>
    %336 = vector.broadcast %334 : f32 to vector<14x2xf32>
    %337 = arith.mulf %336, %335 : vector<14x2xf32>
    %338 = arith.addf %333, %337 : vector<14x2xf32>
    %c2_102 = arith.constant 2 : index
    %c7_103 = arith.constant 7 : index
    %339 = memref.load %arg2[%c2_102, %c7_103] : memref<3x8xf32, #tpu.memory_space<smem>>
    %340 = vector.extract_strided_slice %0 {offsets = [2, 0], sizes = [14, 2], strides = [1, 1]} : vector<16x2xf32> to vector<14x2xf32>
    %341 = vector.broadcast %339 : f32 to vector<14x2xf32>
    %342 = arith.mulf %341, %340 : vector<14x2xf32>
    %343 = arith.addf %338, %342 : vector<14x2xf32>
    %c7_104 = arith.constant 7 : index
    %344 = memref.load %arg3[%c7_104] : memref<8xf32, #tpu.memory_space<smem>>
    %345 = vector.broadcast %344 : f32 to vector<14x2xf32>
    %346 = arith.addf %343, %345 : vector<14x2xf32>
    %cst_105 = arith.constant 0.000000e+00 : f32
    %347 = vector.broadcast %cst_105 : f32 to vector<14x2xf32>
    %348 = arith.maximumf %346, %347 : vector<14x2xf32>
    %349 = vector.shape_cast %348 : vector<14x2xf32> to vector<1x14x2xf32>
    %cst_106 = arith.constant dense<0.000000e+00> : vector<1xf32>
    %350 = vector.multi_reduction <add>, %349, %cst_106 [1, 2] : vector<1x14x2xf32> to vector<1xf32>
    %351 = vector.shape_cast %350 : vector<1xf32> to vector<1x1x1xf32>
    %352 = vector.extract %351[0, 0, 0] : f32 from vector<1x1x1xf32>
    %353 = vector.broadcast %352 : f32 to vector<1x1xf32>
    %cst_107 = arith.constant 0.0357142873 : f32
    %354 = vector.broadcast %cst_107 : f32 to vector<1x1xf32>
    %355 = arith.mulf %353, %354 : vector<1x1xf32>
    %356 = vector.broadcast %355 : vector<1x1xf32> to vector<14x2xf32>
    %357 = arith.subf %348, %356 : vector<14x2xf32>
    %358 = arith.mulf %357, %357 : vector<14x2xf32>
    %359 = vector.shape_cast %358 : vector<14x2xf32> to vector<1x14x2xf32>
    %cst_108 = arith.constant dense<0.000000e+00> : vector<1xf32>
    %360 = vector.multi_reduction <add>, %359, %cst_108 [1, 2] : vector<1x14x2xf32> to vector<1xf32>
    %361 = vector.shape_cast %360 : vector<1xf32> to vector<1x1x1xf32>
    %362 = vector.extract %361[0, 0, 0] : f32 from vector<1x1x1xf32>
    %363 = vector.broadcast %362 : f32 to vector<1x1xf32>
    %cst_109 = arith.constant 0.0357142873 : f32
    %364 = vector.broadcast %cst_109 : f32 to vector<1x1xf32>
    %365 = arith.mulf %363, %364 : vector<1x1xf32>
    %c7_110 = arith.constant 7 : index
    %366 = memref.load %arg4[%c7_110] : memref<8xf32, #tpu.memory_space<smem>>
    %cst_111 = arith.constant 9.99999974E-6 : f32
    %367 = vector.broadcast %cst_111 : f32 to vector<1x1xf32>
    %368 = arith.addf %365, %367 : vector<1x1xf32>
    %369 = math.rsqrt %368 : vector<1x1xf32>
    %370 = vector.broadcast %366 : f32 to vector<1x1xf32>
    %371 = arith.mulf %370, %369 : vector<1x1xf32>
    %372 = vector.broadcast %371 : vector<1x1xf32> to vector<14x2xf32>
    %373 = arith.mulf %357, %372 : vector<14x2xf32>
    %c7_112 = arith.constant 7 : index
    %374 = memref.load %arg5[%c7_112] : memref<8xf32, #tpu.memory_space<smem>>
    %375 = vector.broadcast %374 : f32 to vector<14x2xf32>
    %376 = arith.addf %373, %375 : vector<14x2xf32>
    %cst_113 = arith.constant 0.000000e+00 : f32
    %377 = vector.broadcast %cst_113 : f32 to vector<128x2xf32>
    %c0_114 = arith.constant 0 : index
    %c0_115 = arith.constant 0 : index
    %378 = vector.load %arg13[%c0_114, %c0_115] : memref<128x2xf32, #tpu.memory_space<vmem>>, vector<128x2xf32>
    tpu.vector_store %arg13[%c0_114, %c0_115], %377 {strides = array<i32>} : memref<128x2xf32, #tpu.memory_space<vmem>>, vector<128x2xf32>,
    %c0_116 = arith.constant 0 : index
    %c0_117 = arith.constant 0 : index
    %379 = memref.load %arg6[%c0_116, %c0_117] : memref<30x8xf32, #tpu.memory_space<smem>>
    %380 = vector.extract_strided_slice %47 {offsets = [0, 0], sizes = [12, 2], strides = [1, 1]} : vector<14x2xf32> to vector<12x2xf32>
    %381 = vector.broadcast %379 : f32 to vector<12x2xf32>
    %382 = arith.mulf %381, %380 : vector<12x2xf32>
    %c0_118 = arith.constant 0 : index
    %c1_119 = arith.constant 1 : index
    %383 = memref.load %arg6[%c0_118, %c1_119] : memref<30x8xf32, #tpu.memory_space<smem>>
    %384 = vector.extract_strided_slice %94 {offsets = [0, 0], sizes = [12, 2], strides = [1, 1]} : vector<14x2xf32> to vector<12x2xf32>
    %385 = vector.broadcast %383 : f32 to vector<12x2xf32>
    %386 = arith.mulf %385, %384 : vector<12x2xf32>
    %387 = arith.addf %382, %386 : vector<12x2xf32>
    %c0_120 = arith.constant 0 : index
    %c2_121 = arith.constant 2 : index
    %388 = memref.load %arg6[%c0_120, %c2_121] : memref<30x8xf32, #tpu.memory_space<smem>>
    %389 = vector.extract_strided_slice %141 {offsets = [0, 0], sizes = [12, 2], strides = [1, 1]} : vector<14x2xf32> to vector<12x2xf32>
    %390 = vector.broadcast %388 : f32 to vector<12x2xf32>
    %391 = arith.mulf %390, %389 : vector<12x2xf32>
    %392 = arith.addf %387, %391 : vector<12x2xf32>
    %c0_122 = arith.constant 0 : index
    %c3_123 = arith.constant 3 : index
    %393 = memref.load %arg6[%c0_122, %c3_123] : memref<30x8xf32, #tpu.memory_space<smem>>
    %394 = vector.extract_strided_slice %188 {offsets = [0, 0], sizes = [12, 2], strides = [1, 1]} : vector<14x2xf32> to vector<12x2xf32>
    %395 = vector.broadcast %393 : f32 to vector<12x2xf32>
    %396 = arith.mulf %395, %394 : vector<12x2xf32>
    %397 = arith.addf %392, %396 : vector<12x2xf32>
    %c0_124 = arith.constant 0 : index
    %c4_125 = arith.constant 4 : index
    %398 = memref.load %arg6[%c0_124, %c4_125] : memref<30x8xf32, #tpu.memory_space<smem>>
    %399 = vector.extract_strided_slice %235 {offsets = [0, 0], sizes = [12, 2], strides = [1, 1]} : vector<14x2xf32> to vector<12x2xf32>
    %400 = vector.broadcast %398 : f32 to vector<12x2xf32>
    %401 = arith.mulf %400, %399 : vector<12x2xf32>
    %402 = arith.addf %397, %401 : vector<12x2xf32>
    %c0_126 = arith.constant 0 : index
    %c5_127 = arith.constant 5 : index
    %403 = memref.load %arg6[%c0_126, %c5_127] : memref<30x8xf32, #tpu.memory_space<smem>>
    %404 = vector.extract_strided_slice %282 {offsets = [0, 0], sizes = [12, 2], strides = [1, 1]} : vector<14x2xf32> to vector<12x2xf32>
    %405 = vector.broadcast %403 : f32 to vector<12x2xf32>
    %406 = arith.mulf %405, %404 : vector<12x2xf32>
    %407 = arith.addf %402, %406 : vector<12x2xf32>
    %c0_128 = arith.constant 0 : index
    %c6_129 = arith.constant 6 : index
    %408 = memref.load %arg6[%c0_128, %c6_129] : memref<30x8xf32, #tpu.memory_space<smem>>
    %409 = vector.extract_strided_slice %329 {offsets = [0, 0], sizes = [12, 2], strides = [1, 1]} : vector<14x2xf32> to vector<12x2xf32>
    %410 = vector.broadcast %408 : f32 to vector<12x2xf32>
    %411 = arith.mulf %410, %409 : vector<12x2xf32>
    %412 = arith.addf %407, %411 : vector<12x2xf32>
    %c0_130 = arith.constant 0 : index
    %c7_131 = arith.constant 7 : index
    %413 = memref.load %arg6[%c0_130, %c7_131] : memref<30x8xf32, #tpu.memory_space<smem>>
    %414 = vector.extract_strided_slice %376 {offsets = [0, 0], sizes = [12, 2], strides = [1, 1]} : vector<14x2xf32> to vector<12x2xf32>
    %415 = vector.broadcast %413 : f32 to vector<12x2xf32>
    %416 = arith.mulf %415, %414 : vector<12x2xf32>
    %417 = arith.addf %412, %416 : vector<12x2xf32>
    %c10 = arith.constant 10 : index
    %c0_132 = arith.constant 0 : index
    %418 = memref.load %arg6[%c10, %c0_132] : memref<30x8xf32, #tpu.memory_space<smem>>
    %419 = vector.extract_strided_slice %47 {offsets = [1, 0], sizes = [12, 2], strides = [1, 1]} : vector<14x2xf32> to vector<12x2xf32>
    %420 = vector.broadcast %418 : f32 to vector<12x2xf32>
    %421 = arith.mulf %420, %419 : vector<12x2xf32>
    %422 = arith.addf %417, %421 : vector<12x2xf32>
    %c10_133 = arith.constant 10 : index
    %c1_134 = arith.constant 1 : index
    %423 = memref.load %arg6[%c10_133, %c1_134] : memref<30x8xf32, #tpu.memory_space<smem>>
    %424 = vector.extract_strided_slice %94 {offsets = [1, 0], sizes = [12, 2], strides = [1, 1]} : vector<14x2xf32> to vector<12x2xf32>
    %425 = vector.broadcast %423 : f32 to vector<12x2xf32>
    %426 = arith.mulf %425, %424 : vector<12x2xf32>
    %427 = arith.addf %422, %426 : vector<12x2xf32>
    %c10_135 = arith.constant 10 : index
    %c2_136 = arith.constant 2 : index
    %428 = memref.load %arg6[%c10_135, %c2_136] : memref<30x8xf32, #tpu.memory_space<smem>>
    %429 = vector.extract_strided_slice %141 {offsets = [1, 0], sizes = [12, 2], strides = [1, 1]} : vector<14x2xf32> to vector<12x2xf32>
    %430 = vector.broadcast %428 : f32 to vector<12x2xf32>
    %431 = arith.mulf %430, %429 : vector<12x2xf32>
    %432 = arith.addf %427, %431 : vector<12x2xf32>
    %c10_137 = arith.constant 10 : index
    %c3_138 = arith.constant 3 : index
    %433 = memref.load %arg6[%c10_137, %c3_138] : memref<30x8xf32, #tpu.memory_space<smem>>
    %434 = vector.extract_strided_slice %188 {offsets = [1, 0], sizes = [12, 2], strides = [1, 1]} : vector<14x2xf32> to vector<12x2xf32>
    %435 = vector.broadcast %433 : f32 to vector<12x2xf32>
    %436 = arith.mulf %435, %434 : vector<12x2xf32>
    %437 = arith.addf %432, %436 : vector<12x2xf32>
    %c10_139 = arith.constant 10 : index
    %c4_140 = arith.constant 4 : index
    %438 = memref.load %arg6[%c10_139, %c4_140] : memref<30x8xf32, #tpu.memory_space<smem>>
    %439 = vector.extract_strided_slice %235 {offsets = [1, 0], sizes = [12, 2], strides = [1, 1]} : vector<14x2xf32> to vector<12x2xf32>
    %440 = vector.broadcast %438 : f32 to vector<12x2xf32>
    %441 = arith.mulf %440, %439 : vector<12x2xf32>
    %442 = arith.addf %437, %441 : vector<12x2xf32>
    %c10_141 = arith.constant 10 : index
    %c5_142 = arith.constant 5 : index
    %443 = memref.load %arg6[%c10_141, %c5_142] : memref<30x8xf32, #tpu.memory_space<smem>>
    %444 = vector.extract_strided_slice %282 {offsets = [1, 0], sizes = [12, 2], strides = [1, 1]} : vector<14x2xf32> to vector<12x2xf32>
    %445 = vector.broadcast %443 : f32 to vector<12x2xf32>
    %446 = arith.mulf %445, %444 : vector<12x2xf32>
    %447 = arith.addf %442, %446 : vector<12x2xf32>
    %c10_143 = arith.constant 10 : index
    %c6_144 = arith.constant 6 : index
    %448 = memref.load %arg6[%c10_143, %c6_144] : memref<30x8xf32, #tpu.memory_space<smem>>
    %449 = vector.extract_strided_slice %329 {offsets = [1, 0], sizes = [12, 2], strides = [1, 1]} : vector<14x2xf32> to vector<12x2xf32>
    %450 = vector.broadcast %448 : f32 to vector<12x2xf32>
    %451 = arith.mulf %450, %449 : vector<12x2xf32>
    %452 = arith.addf %447, %451 : vector<12x2xf32>
    %c10_145 = arith.constant 10 : index
    %c7_146 = arith.constant 7 : index
    %453 = memref.load %arg6[%c10_145, %c7_146] : memref<30x8xf32, #tpu.memory_space<smem>>
    %454 = vector.extract_strided_slice %376 {offsets = [1, 0], sizes = [12, 2], strides = [1, 1]} : vector<14x2xf32> to vector<12x2xf32>
    %455 = vector.broadcast %453 : f32 to vector<12x2xf32>
    %456 = arith.mulf %455, %454 : vector<12x2xf32>
    %457 = arith.addf %452, %456 : vector<12x2xf32>
    %c20 = arith.constant 20 : index
    %c0_147 = arith.constant 0 : index
    %458 = memref.load %arg6[%c20, %c0_147] : memref<30x8xf32, #tpu.memory_space<smem>>
    %459 = vector.extract_strided_slice %47 {offsets = [2, 0], sizes = [12, 2], strides = [1, 1]} : vector<14x2xf32> to vector<12x2xf32>
    %460 = vector.broadcast %458 : f32 to vector<12x2xf32>
    %461 = arith.mulf %460, %459 : vector<12x2xf32>
    %462 = arith.addf %457, %461 : vector<12x2xf32>
    %c20_148 = arith.constant 20 : index
    %c1_149 = arith.constant 1 : index
    %463 = memref.load %arg6[%c20_148, %c1_149] : memref<30x8xf32, #tpu.memory_space<smem>>
    %464 = vector.extract_strided_slice %94 {offsets = [2, 0], sizes = [12, 2], strides = [1, 1]} : vector<14x2xf32> to vector<12x2xf32>
    %465 = vector.broadcast %463 : f32 to vector<12x2xf32>
    %466 = arith.mulf %465, %464 : vector<12x2xf32>
    %467 = arith.addf %462, %466 : vector<12x2xf32>
    %c20_150 = arith.constant 20 : index
    %c2_151 = arith.constant 2 : index
    %468 = memref.load %arg6[%c20_150, %c2_151] : memref<30x8xf32, #tpu.memory_space<smem>>
    %469 = vector.extract_strided_slice %141 {offsets = [2, 0], sizes = [12, 2], strides = [1, 1]} : vector<14x2xf32> to vector<12x2xf32>
    %470 = vector.broadcast %468 : f32 to vector<12x2xf32>
    %471 = arith.mulf %470, %469 : vector<12x2xf32>
    %472 = arith.addf %467, %471 : vector<12x2xf32>
    %c20_152 = arith.constant 20 : index
    %c3_153 = arith.constant 3 : index
    %473 = memref.load %arg6[%c20_152, %c3_153] : memref<30x8xf32, #tpu.memory_space<smem>>
    %474 = vector.extract_strided_slice %188 {offsets = [2, 0], sizes = [12, 2], strides = [1, 1]} : vector<14x2xf32> to vector<12x2xf32>
    %475 = vector.broadcast %473 : f32 to vector<12x2xf32>
    %476 = arith.mulf %475, %474 : vector<12x2xf32>
    %477 = arith.addf %472, %476 : vector<12x2xf32>
    %c20_154 = arith.constant 20 : index
    %c4_155 = arith.constant 4 : index
    %478 = memref.load %arg6[%c20_154, %c4_155] : memref<30x8xf32, #tpu.memory_space<smem>>
    %479 = vector.extract_strided_slice %235 {offsets = [2, 0], sizes = [12, 2], strides = [1, 1]} : vector<14x2xf32> to vector<12x2xf32>
    %480 = vector.broadcast %478 : f32 to vector<12x2xf32>
    %481 = arith.mulf %480, %479 : vector<12x2xf32>
    %482 = arith.addf %477, %481 : vector<12x2xf32>
    %c20_156 = arith.constant 20 : index
    %c5_157 = arith.constant 5 : index
    %483 = memref.load %arg6[%c20_156, %c5_157] : memref<30x8xf32, #tpu.memory_space<smem>>
    %484 = vector.extract_strided_slice %282 {offsets = [2, 0], sizes = [12, 2], strides = [1, 1]} : vector<14x2xf32> to vector<12x2xf32>
    %485 = vector.broadcast %483 : f32 to vector<12x2xf32>
    %486 = arith.mulf %485, %484 : vector<12x2xf32>
    %487 = arith.addf %482, %486 : vector<12x2xf32>
    %c20_158 = arith.constant 20 : index
    %c6_159 = arith.constant 6 : index
    %488 = memref.load %arg6[%c20_158, %c6_159] : memref<30x8xf32, #tpu.memory_space<smem>>
    %489 = vector.extract_strided_slice %329 {offsets = [2, 0], sizes = [12, 2], strides = [1, 1]} : vector<14x2xf32> to vector<12x2xf32>
    %490 = vector.broadcast %488 : f32 to vector<12x2xf32>
    %491 = arith.mulf %490, %489 : vector<12x2xf32>
    %492 = arith.addf %487, %491 : vector<12x2xf32>
    %c20_160 = arith.constant 20 : index
    %c7_161 = arith.constant 7 : index
    %493 = memref.load %arg6[%c20_160, %c7_161] : memref<30x8xf32, #tpu.memory_space<smem>>
    %494 = vector.extract_strided_slice %376 {offsets = [2, 0], sizes = [12, 2], strides = [1, 1]} : vector<14x2xf32> to vector<12x2xf32>
    %495 = vector.broadcast %493 : f32 to vector<12x2xf32>
    %496 = arith.mulf %495, %494 : vector<12x2xf32>
    %497 = arith.addf %492, %496 : vector<12x2xf32>
    %c0_162 = arith.constant 0 : index
    %498 = memref.load %arg7[%c0_162] : memref<10xf32, #tpu.memory_space<smem>>
    %499 = vector.broadcast %498 : f32 to vector<12x2xf32>
    %500 = arith.addf %497, %499 : vector<12x2xf32>
    %cst_163 = arith.constant 0.000000e+00 : f32
    %501 = vector.broadcast %cst_163 : f32 to vector<12x2xf32>
    %502 = arith.maximumf %500, %501 : vector<12x2xf32>
    %c0_164 = arith.constant 0 : index
    %c0_165 = arith.constant 0 : index
    %c0_166 = arith.constant 0 : index
    %503 = vector.load %arg1[%c0_164, %c0_165, %c0_166] : memref<10x12x2xi32, #tpu.memory_space<vmem>>, vector<1x12x2xi32>
    %504 = vector.shape_cast %503 : vector<1x12x2xi32> to vector<12x2xi32>
    %c429496730_i32 = arith.constant 429496730 : i32
    %505 = vector.broadcast %c429496730_i32 : i32 to vector<12x2xi32>
    %506 = arith.cmpi uge, %504, %505 : vector<12x2xi32>
    %cst_167 = arith.constant 0.000000e+00 : f32
    %507 = vector.broadcast %cst_167 : f32 to vector<12x2xf32>
    %508 = arith.select %506, %502, %507 : vector<12x2xi1>, vector<12x2xf32>
    %c0_168 = arith.constant 0 : index
    %c0_169 = arith.constant 0 : index
    %509 = vector.load %arg13[%c0_168, %c0_169] : memref<128x2xf32, #tpu.memory_space<vmem>>, vector<12x2xf32>
    tpu.vector_store %arg13[%c0_168, %c0_169], %508 {strides = array<i32>} : memref<128x2xf32, #tpu.memory_space<vmem>>, vector<12x2xf32>,
    %c1_170 = arith.constant 1 : index
    %c0_171 = arith.constant 0 : index
    %510 = memref.load %arg6[%c1_170, %c0_171] : memref<30x8xf32, #tpu.memory_space<smem>>
    %511 = vector.extract_strided_slice %47 {offsets = [0, 0], sizes = [12, 2], strides = [1, 1]} : vector<14x2xf32> to vector<12x2xf32>
    %512 = vector.broadcast %510 : f32 to vector<12x2xf32>
    %513 = arith.mulf %512, %511 : vector<12x2xf32>
    %c1_172 = arith.constant 1 : index
    %c1_173 = arith.constant 1 : index
    %514 = memref.load %arg6[%c1_172, %c1_173] : memref<30x8xf32, #tpu.memory_space<smem>>
    %515 = vector.extract_strided_slice %94 {offsets = [0, 0], sizes = [12, 2], strides = [1, 1]} : vector<14x2xf32> to vector<12x2xf32>
    %516 = vector.broadcast %514 : f32 to vector<12x2xf32>
    %517 = arith.mulf %516, %515 : vector<12x2xf32>
    %518 = arith.addf %513, %517 : vector<12x2xf32>
    %c1_174 = arith.constant 1 : index
    %c2_175 = arith.constant 2 : index
    %519 = memref.load %arg6[%c1_174, %c2_175] : memref<30x8xf32, #tpu.memory_space<smem>>
    %520 = vector.extract_strided_slice %141 {offsets = [0, 0], sizes = [12, 2], strides = [1, 1]} : vector<14x2xf32> to vector<12x2xf32>
    %521 = vector.broadcast %519 : f32 to vector<12x2xf32>
    %522 = arith.mulf %521, %520 : vector<12x2xf32>
    %523 = arith.addf %518, %522 : vector<12x2xf32>
    %c1_176 = arith.constant 1 : index
    %c3_177 = arith.constant 3 : index
    %524 = memref.load %arg6[%c1_176, %c3_177] : memref<30x8xf32, #tpu.memory_space<smem>>
    %525 = vector.extract_strided_slice %188 {offsets = [0, 0], sizes = [12, 2], strides = [1, 1]} : vector<14x2xf32> to vector<12x2xf32>
    %526 = vector.broadcast %524 : f32 to vector<12x2xf32>
    %527 = arith.mulf %526, %525 : vector<12x2xf32>
    %528 = arith.addf %523, %527 : vector<12x2xf32>
    %c1_178 = arith.constant 1 : index
    %c4_179 = arith.constant 4 : index
    %529 = memref.load %arg6[%c1_178, %c4_179] : memref<30x8xf32, #tpu.memory_space<smem>>
    %530 = vector.extract_strided_slice %235 {offsets = [0, 0], sizes = [12, 2], strides = [1, 1]} : vector<14x2xf32> to vector<12x2xf32>
    %531 = vector.broadcast %529 : f32 to vector<12x2xf32>
    %532 = arith.mulf %531, %530 : vector<12x2xf32>
    %533 = arith.addf %528, %532 : vector<12x2xf32>
    %c1_180 = arith.constant 1 : index
    %c5_181 = arith.constant 5 : index
    %534 = memref.load %arg6[%c1_180, %c5_181] : memref<30x8xf32, #tpu.memory_space<smem>>
    %535 = vector.extract_strided_slice %282 {offsets = [0, 0], sizes = [12, 2], strides = [1, 1]} : vector<14x2xf32> to vector<12x2xf32>
    %536 = vector.broadcast %534 : f32 to vector<12x2xf32>
    %537 = arith.mulf %536, %535 : vector<12x2xf32>
    %538 = arith.addf %533, %537 : vector<12x2xf32>
    %c1_182 = arith.constant 1 : index
    %c6_183 = arith.constant 6 : index
    %539 = memref.load %arg6[%c1_182, %c6_183] : memref<30x8xf32, #tpu.memory_space<smem>>
    %540 = vector.extract_strided_slice %329 {offsets = [0, 0], sizes = [12, 2], strides = [1, 1]} : vector<14x2xf32> to vector<12x2xf32>
    %541 = vector.broadcast %539 : f32 to vector<12x2xf32>
    %542 = arith.mulf %541, %540 : vector<12x2xf32>
    %543 = arith.addf %538, %542 : vector<12x2xf32>
    %c1_184 = arith.constant 1 : index
    %c7_185 = arith.constant 7 : index
    %544 = memref.load %arg6[%c1_184, %c7_185] : memref<30x8xf32, #tpu.memory_space<smem>>
    %545 = vector.extract_strided_slice %376 {offsets = [0, 0], sizes = [12, 2], strides = [1, 1]} : vector<14x2xf32> to vector<12x2xf32>
    %546 = vector.broadcast %544 : f32 to vector<12x2xf32>
    %547 = arith.mulf %546, %545 : vector<12x2xf32>
    %548 = arith.addf %543, %547 : vector<12x2xf32>
    %c11 = arith.constant 11 : index
    %c0_186 = arith.constant 0 : index
    %549 = memref.load %arg6[%c11, %c0_186] : memref<30x8xf32, #tpu.memory_space<smem>>
    %550 = vector.extract_strided_slice %47 {offsets = [1, 0], sizes = [12, 2], strides = [1, 1]} : vector<14x2xf32> to vector<12x2xf32>
    %551 = vector.broadcast %549 : f32 to vector<12x2xf32>
    %552 = arith.mulf %551, %550 : vector<12x2xf32>
    %553 = arith.addf %548, %552 : vector<12x2xf32>
    %c11_187 = arith.constant 11 : index
    %c1_188 = arith.constant 1 : index
    %554 = memref.load %arg6[%c11_187, %c1_188] : memref<30x8xf32, #tpu.memory_space<smem>>
    %555 = vector.extract_strided_slice %94 {offsets = [1, 0], sizes = [12, 2], strides = [1, 1]} : vector<14x2xf32> to vector<12x2xf32>
    %556 = vector.broadcast %554 : f32 to vector<12x2xf32>
    %557 = arith.mulf %556, %555 : vector<12x2xf32>
    %558 = arith.addf %553, %557 : vector<12x2xf32>
    %c11_189 = arith.constant 11 : index
    %c2_190 = arith.constant 2 : index
    %559 = memref.load %arg6[%c11_189, %c2_190] : memref<30x8xf32, #tpu.memory_space<smem>>
    %560 = vector.extract_strided_slice %141 {offsets = [1, 0], sizes = [12, 2], strides = [1, 1]} : vector<14x2xf32> to vector<12x2xf32>
    %561 = vector.broadcast %559 : f32 to vector<12x2xf32>
    %562 = arith.mulf %561, %560 : vector<12x2xf32>
    %563 = arith.addf %558, %562 : vector<12x2xf32>
    %c11_191 = arith.constant 11 : index
    %c3_192 = arith.constant 3 : index
    %564 = memref.load %arg6[%c11_191, %c3_192] : memref<30x8xf32, #tpu.memory_space<smem>>
    %565 = vector.extract_strided_slice %188 {offsets = [1, 0], sizes = [12, 2], strides = [1, 1]} : vector<14x2xf32> to vector<12x2xf32>
    %566 = vector.broadcast %564 : f32 to vector<12x2xf32>
    %567 = arith.mulf %566, %565 : vector<12x2xf32>
    %568 = arith.addf %563, %567 : vector<12x2xf32>
    %c11_193 = arith.constant 11 : index
    %c4_194 = arith.constant 4 : index
    %569 = memref.load %arg6[%c11_193, %c4_194] : memref<30x8xf32, #tpu.memory_space<smem>>
    %570 = vector.extract_strided_slice %235 {offsets = [1, 0], sizes = [12, 2], strides = [1, 1]} : vector<14x2xf32> to vector<12x2xf32>
    %571 = vector.broadcast %569 : f32 to vector<12x2xf32>
    %572 = arith.mulf %571, %570 : vector<12x2xf32>
    %573 = arith.addf %568, %572 : vector<12x2xf32>
    %c11_195 = arith.constant 11 : index
    %c5_196 = arith.constant 5 : index
    %574 = memref.load %arg6[%c11_195, %c5_196] : memref<30x8xf32, #tpu.memory_space<smem>>
    %575 = vector.extract_strided_slice %282 {offsets = [1, 0], sizes = [12, 2], strides = [1, 1]} : vector<14x2xf32> to vector<12x2xf32>
    %576 = vector.broadcast %574 : f32 to vector<12x2xf32>
    %577 = arith.mulf %576, %575 : vector<12x2xf32>
    %578 = arith.addf %573, %577 : vector<12x2xf32>
    %c11_197 = arith.constant 11 : index
    %c6_198 = arith.constant 6 : index
    %579 = memref.load %arg6[%c11_197, %c6_198] : memref<30x8xf32, #tpu.memory_space<smem>>
    %580 = vector.extract_strided_slice %329 {offsets = [1, 0], sizes = [12, 2], strides = [1, 1]} : vector<14x2xf32> to vector<12x2xf32>
    %581 = vector.broadcast %579 : f32 to vector<12x2xf32>
    %582 = arith.mulf %581, %580 : vector<12x2xf32>
    %583 = arith.addf %578, %582 : vector<12x2xf32>
    %c11_199 = arith.constant 11 : index
    %c7_200 = arith.constant 7 : index
    %584 = memref.load %arg6[%c11_199, %c7_200] : memref<30x8xf32, #tpu.memory_space<smem>>
    %585 = vector.extract_strided_slice %376 {offsets = [1, 0], sizes = [12, 2], strides = [1, 1]} : vector<14x2xf32> to vector<12x2xf32>
    %586 = vector.broadcast %584 : f32 to vector<12x2xf32>
    %587 = arith.mulf %586, %585 : vector<12x2xf32>
    %588 = arith.addf %583, %587 : vector<12x2xf32>
    %c21 = arith.constant 21 : index
    %c0_201 = arith.constant 0 : index
    %589 = memref.load %arg6[%c21, %c0_201] : memref<30x8xf32, #tpu.memory_space<smem>>
    %590 = vector.extract_strided_slice %47 {offsets = [2, 0], sizes = [12, 2], strides = [1, 1]} : vector<14x2xf32> to vector<12x2xf32>
    %591 = vector.broadcast %589 : f32 to vector<12x2xf32>
    %592 = arith.mulf %591, %590 : vector<12x2xf32>
    %593 = arith.addf %588, %592 : vector<12x2xf32>
    %c21_202 = arith.constant 21 : index
    %c1_203 = arith.constant 1 : index
    %594 = memref.load %arg6[%c21_202, %c1_203] : memref<30x8xf32, #tpu.memory_space<smem>>
    %595 = vector.extract_strided_slice %94 {offsets = [2, 0], sizes = [12, 2], strides = [1, 1]} : vector<14x2xf32> to vector<12x2xf32>
    %596 = vector.broadcast %594 : f32 to vector<12x2xf32>
    %597 = arith.mulf %596, %595 : vector<12x2xf32>
    %598 = arith.addf %593, %597 : vector<12x2xf32>
    %c21_204 = arith.constant 21 : index
    %c2_205 = arith.constant 2 : index
    %599 = memref.load %arg6[%c21_204, %c2_205] : memref<30x8xf32, #tpu.memory_space<smem>>
    %600 = vector.extract_strided_slice %141 {offsets = [2, 0], sizes = [12, 2], strides = [1, 1]} : vector<14x2xf32> to vector<12x2xf32>
    %601 = vector.broadcast %599 : f32 to vector<12x2xf32>
    %602 = arith.mulf %601, %600 : vector<12x2xf32>
    %603 = arith.addf %598, %602 : vector<12x2xf32>
    %c21_206 = arith.constant 21 : index
    %c3_207 = arith.constant 3 : index
    %604 = memref.load %arg6[%c21_206, %c3_207] : memref<30x8xf32, #tpu.memory_space<smem>>
    %605 = vector.extract_strided_slice %188 {offsets = [2, 0], sizes = [12, 2], strides = [1, 1]} : vector<14x2xf32> to vector<12x2xf32>
    %606 = vector.broadcast %604 : f32 to vector<12x2xf32>
    %607 = arith.mulf %606, %605 : vector<12x2xf32>
    %608 = arith.addf %603, %607 : vector<12x2xf32>
    %c21_208 = arith.constant 21 : index
    %c4_209 = arith.constant 4 : index
    %609 = memref.load %arg6[%c21_208, %c4_209] : memref<30x8xf32, #tpu.memory_space<smem>>
    %610 = vector.extract_strided_slice %235 {offsets = [2, 0], sizes = [12, 2], strides = [1, 1]} : vector<14x2xf32> to vector<12x2xf32>
    %611 = vector.broadcast %609 : f32 to vector<12x2xf32>
    %612 = arith.mulf %611, %610 : vector<12x2xf32>
    %613 = arith.addf %608, %612 : vector<12x2xf32>
    %c21_210 = arith.constant 21 : index
    %c5_211 = arith.constant 5 : index
    %614 = memref.load %arg6[%c21_210, %c5_211] : memref<30x8xf32, #tpu.memory_space<smem>>
    %615 = vector.extract_strided_slice %282 {offsets = [2, 0], sizes = [12, 2], strides = [1, 1]} : vector<14x2xf32> to vector<12x2xf32>
    %616 = vector.broadcast %614 : f32 to vector<12x2xf32>
    %617 = arith.mulf %616, %615 : vector<12x2xf32>
    %618 = arith.addf %613, %617 : vector<12x2xf32>
    %c21_212 = arith.constant 21 : index
    %c6_213 = arith.constant 6 : index
    %619 = memref.load %arg6[%c21_212, %c6_213] : memref<30x8xf32, #tpu.memory_space<smem>>
    %620 = vector.extract_strided_slice %329 {offsets = [2, 0], sizes = [12, 2], strides = [1, 1]} : vector<14x2xf32> to vector<12x2xf32>
    %621 = vector.broadcast %619 : f32 to vector<12x2xf32>
    %622 = arith.mulf %621, %620 : vector<12x2xf32>
    %623 = arith.addf %618, %622 : vector<12x2xf32>
    %c21_214 = arith.constant 21 : index
    %c7_215 = arith.constant 7 : index
    %624 = memref.load %arg6[%c21_214, %c7_215] : memref<30x8xf32, #tpu.memory_space<smem>>
    %625 = vector.extract_strided_slice %376 {offsets = [2, 0], sizes = [12, 2], strides = [1, 1]} : vector<14x2xf32> to vector<12x2xf32>
    %626 = vector.broadcast %624 : f32 to vector<12x2xf32>
    %627 = arith.mulf %626, %625 : vector<12x2xf32>
    %628 = arith.addf %623, %627 : vector<12x2xf32>
    %c1_216 = arith.constant 1 : index
    %629 = memref.load %arg7[%c1_216] : memref<10xf32, #tpu.memory_space<smem>>
    %630 = vector.broadcast %629 : f32 to vector<12x2xf32>
    %631 = arith.addf %628, %630 : vector<12x2xf32>
    %cst_217 = arith.constant 0.000000e+00 : f32
    %632 = vector.broadcast %cst_217 : f32 to vector<12x2xf32>
    %633 = arith.maximumf %631, %632 : vector<12x2xf32>
    %c1_218 = arith.constant 1 : index
    %c0_219 = arith.constant 0 : index
    %c0_220 = arith.constant 0 : index
    %634 = vector.load %arg1[%c1_218, %c0_219, %c0_220] : memref<10x12x2xi32, #tpu.memory_space<vmem>>, vector<1x12x2xi32>
    %635 = vector.shape_cast %634 : vector<1x12x2xi32> to vector<12x2xi32>
    %c429496730_i32_221 = arith.constant 429496730 : i32
    %636 = vector.broadcast %c429496730_i32_221 : i32 to vector<12x2xi32>
    %637 = arith.cmpi uge, %635, %636 : vector<12x2xi32>
    %cst_222 = arith.constant 0.000000e+00 : f32
    %638 = vector.broadcast %cst_222 : f32 to vector<12x2xf32>
    %639 = arith.select %637, %633, %638 : vector<12x2xi1>, vector<12x2xf32>
    %c12 = arith.constant 12 : index
    %c0_223 = arith.constant 0 : index
    %640 = vector.load %arg13[%c12, %c0_223] : memref<128x2xf32, #tpu.memory_space<vmem>>, vector<12x2xf32>
    tpu.vector_store %arg13[%c12, %c0_223], %639 {strides = array<i32>} : memref<128x2xf32, #tpu.memory_space<vmem>>, vector<12x2xf32>,
    %c2_224 = arith.constant 2 : index
    %c0_225 = arith.constant 0 : index
    %641 = memref.load %arg6[%c2_224, %c0_225] : memref<30x8xf32, #tpu.memory_space<smem>>
    %642 = vector.extract_strided_slice %47 {offsets = [0, 0], sizes = [12, 2], strides = [1, 1]} : vector<14x2xf32> to vector<12x2xf32>
    %643 = vector.broadcast %641 : f32 to vector<12x2xf32>
    %644 = arith.mulf %643, %642 : vector<12x2xf32>
    %c2_226 = arith.constant 2 : index
    %c1_227 = arith.constant 1 : index
    %645 = memref.load %arg6[%c2_226, %c1_227] : memref<30x8xf32, #tpu.memory_space<smem>>
    %646 = vector.extract_strided_slice %94 {offsets = [0, 0], sizes = [12, 2], strides = [1, 1]} : vector<14x2xf32> to vector<12x2xf32>
    %647 = vector.broadcast %645 : f32 to vector<12x2xf32>
    %648 = arith.mulf %647, %646 : vector<12x2xf32>
    %649 = arith.addf %644, %648 : vector<12x2xf32>
    %c2_228 = arith.constant 2 : index
    %c2_229 = arith.constant 2 : index
    %650 = memref.load %arg6[%c2_228, %c2_229] : memref<30x8xf32, #tpu.memory_space<smem>>
    %651 = vector.extract_strided_slice %141 {offsets = [0, 0], sizes = [12, 2], strides = [1, 1]} : vector<14x2xf32> to vector<12x2xf32>
    %652 = vector.broadcast %650 : f32 to vector<12x2xf32>
    %653 = arith.mulf %652, %651 : vector<12x2xf32>
    %654 = arith.addf %649, %653 : vector<12x2xf32>
    %c2_230 = arith.constant 2 : index
    %c3_231 = arith.constant 3 : index
    %655 = memref.load %arg6[%c2_230, %c3_231] : memref<30x8xf32, #tpu.memory_space<smem>>
    %656 = vector.extract_strided_slice %188 {offsets = [0, 0], sizes = [12, 2], strides = [1, 1]} : vector<14x2xf32> to vector<12x2xf32>
    %657 = vector.broadcast %655 : f32 to vector<12x2xf32>
    %658 = arith.mulf %657, %656 : vector<12x2xf32>
    %659 = arith.addf %654, %658 : vector<12x2xf32>
    %c2_232 = arith.constant 2 : index
    %c4_233 = arith.constant 4 : index
    %660 = memref.load %arg6[%c2_232, %c4_233] : memref<30x8xf32, #tpu.memory_space<smem>>
    %661 = vector.extract_strided_slice %235 {offsets = [0, 0], sizes = [12, 2], strides = [1, 1]} : vector<14x2xf32> to vector<12x2xf32>
    %662 = vector.broadcast %660 : f32 to vector<12x2xf32>
    %663 = arith.mulf %662, %661 : vector<12x2xf32>
    %664 = arith.addf %659, %663 : vector<12x2xf32>
    %c2_234 = arith.constant 2 : index
    %c5_235 = arith.constant 5 : index
    %665 = memref.load %arg6[%c2_234, %c5_235] : memref<30x8xf32, #tpu.memory_space<smem>>
    %666 = vector.extract_strided_slice %282 {offsets = [0, 0], sizes = [12, 2], strides = [1, 1]} : vector<14x2xf32> to vector<12x2xf32>
    %667 = vector.broadcast %665 : f32 to vector<12x2xf32>
    %668 = arith.mulf %667, %666 : vector<12x2xf32>
    %669 = arith.addf %664, %668 : vector<12x2xf32>
    %c2_236 = arith.constant 2 : index
    %c6_237 = arith.constant 6 : index
    %670 = memref.load %arg6[%c2_236, %c6_237] : memref<30x8xf32, #tpu.memory_space<smem>>
    %671 = vector.extract_strided_slice %329 {offsets = [0, 0], sizes = [12, 2], strides = [1, 1]} : vector<14x2xf32> to vector<12x2xf32>
    %672 = vector.broadcast %670 : f32 to vector<12x2xf32>
    %673 = arith.mulf %672, %671 : vector<12x2xf32>
    %674 = arith.addf %669, %673 : vector<12x2xf32>
    %c2_238 = arith.constant 2 : index
    %c7_239 = arith.constant 7 : index
    %675 = memref.load %arg6[%c2_238, %c7_239] : memref<30x8xf32, #tpu.memory_space<smem>>
    %676 = vector.extract_strided_slice %376 {offsets = [0, 0], sizes = [12, 2], strides = [1, 1]} : vector<14x2xf32> to vector<12x2xf32>
    %677 = vector.broadcast %675 : f32 to vector<12x2xf32>
    %678 = arith.mulf %677, %676 : vector<12x2xf32>
    %679 = arith.addf %674, %678 : vector<12x2xf32>
    %c12_240 = arith.constant 12 : index
    %c0_241 = arith.constant 0 : index
    %680 = memref.load %arg6[%c12_240, %c0_241] : memref<30x8xf32, #tpu.memory_space<smem>>
    %681 = vector.extract_strided_slice %47 {offsets = [1, 0], sizes = [12, 2], strides = [1, 1]} : vector<14x2xf32> to vector<12x2xf32>
    %682 = vector.broadcast %680 : f32 to vector<12x2xf32>
    %683 = arith.mulf %682, %681 : vector<12x2xf32>
    %684 = arith.addf %679, %683 : vector<12x2xf32>
    %c12_242 = arith.constant 12 : index
    %c1_243 = arith.constant 1 : index
    %685 = memref.load %arg6[%c12_242, %c1_243] : memref<30x8xf32, #tpu.memory_space<smem>>
    %686 = vector.extract_strided_slice %94 {offsets = [1, 0], sizes = [12, 2], strides = [1, 1]} : vector<14x2xf32> to vector<12x2xf32>
    %687 = vector.broadcast %685 : f32 to vector<12x2xf32>
    %688 = arith.mulf %687, %686 : vector<12x2xf32>
    %689 = arith.addf %684, %688 : vector<12x2xf32>
    %c12_244 = arith.constant 12 : index
    %c2_245 = arith.constant 2 : index
    %690 = memref.load %arg6[%c12_244, %c2_245] : memref<30x8xf32, #tpu.memory_space<smem>>
    %691 = vector.extract_strided_slice %141 {offsets = [1, 0], sizes = [12, 2], strides = [1, 1]} : vector<14x2xf32> to vector<12x2xf32>
    %692 = vector.broadcast %690 : f32 to vector<12x2xf32>
    %693 = arith.mulf %692, %691 : vector<12x2xf32>
    %694 = arith.addf %689, %693 : vector<12x2xf32>
    %c12_246 = arith.constant 12 : index
    %c3_247 = arith.constant 3 : index
    %695 = memref.load %arg6[%c12_246, %c3_247] : memref<30x8xf32, #tpu.memory_space<smem>>
    %696 = vector.extract_strided_slice %188 {offsets = [1, 0], sizes = [12, 2], strides = [1, 1]} : vector<14x2xf32> to vector<12x2xf32>
    %697 = vector.broadcast %695 : f32 to vector<12x2xf32>
    %698 = arith.mulf %697, %696 : vector<12x2xf32>
    %699 = arith.addf %694, %698 : vector<12x2xf32>
    %c12_248 = arith.constant 12 : index
    %c4_249 = arith.constant 4 : index
    %700 = memref.load %arg6[%c12_248, %c4_249] : memref<30x8xf32, #tpu.memory_space<smem>>
    %701 = vector.extract_strided_slice %235 {offsets = [1, 0], sizes = [12, 2], strides = [1, 1]} : vector<14x2xf32> to vector<12x2xf32>
    %702 = vector.broadcast %700 : f32 to vector<12x2xf32>
    %703 = arith.mulf %702, %701 : vector<12x2xf32>
    %704 = arith.addf %699, %703 : vector<12x2xf32>
    %c12_250 = arith.constant 12 : index
    %c5_251 = arith.constant 5 : index
    %705 = memref.load %arg6[%c12_250, %c5_251] : memref<30x8xf32, #tpu.memory_space<smem>>
    %706 = vector.extract_strided_slice %282 {offsets = [1, 0], sizes = [12, 2], strides = [1, 1]} : vector<14x2xf32> to vector<12x2xf32>
    %707 = vector.broadcast %705 : f32 to vector<12x2xf32>
    %708 = arith.mulf %707, %706 : vector<12x2xf32>
    %709 = arith.addf %704, %708 : vector<12x2xf32>
    %c12_252 = arith.constant 12 : index
    %c6_253 = arith.constant 6 : index
    %710 = memref.load %arg6[%c12_252, %c6_253] : memref<30x8xf32, #tpu.memory_space<smem>>
    %711 = vector.extract_strided_slice %329 {offsets = [1, 0], sizes = [12, 2], strides = [1, 1]} : vector<14x2xf32> to vector<12x2xf32>
    %712 = vector.broadcast %710 : f32 to vector<12x2xf32>
    %713 = arith.mulf %712, %711 : vector<12x2xf32>
    %714 = arith.addf %709, %713 : vector<12x2xf32>
    %c12_254 = arith.constant 12 : index
    %c7_255 = arith.constant 7 : index
    %715 = memref.load %arg6[%c12_254, %c7_255] : memref<30x8xf32, #tpu.memory_space<smem>>
    %716 = vector.extract_strided_slice %376 {offsets = [1, 0], sizes = [12, 2], strides = [1, 1]} : vector<14x2xf32> to vector<12x2xf32>
    %717 = vector.broadcast %715 : f32 to vector<12x2xf32>
    %718 = arith.mulf %717, %716 : vector<12x2xf32>
    %719 = arith.addf %714, %718 : vector<12x2xf32>
    %c22 = arith.constant 22 : index
    %c0_256 = arith.constant 0 : index
    %720 = memref.load %arg6[%c22, %c0_256] : memref<30x8xf32, #tpu.memory_space<smem>>
    %721 = vector.extract_strided_slice %47 {offsets = [2, 0], sizes = [12, 2], strides = [1, 1]} : vector<14x2xf32> to vector<12x2xf32>
    %722 = vector.broadcast %720 : f32 to vector<12x2xf32>
    %723 = arith.mulf %722, %721 : vector<12x2xf32>
    %724 = arith.addf %719, %723 : vector<12x2xf32>
    %c22_257 = arith.constant 22 : index
    %c1_258 = arith.constant 1 : index
    %725 = memref.load %arg6[%c22_257, %c1_258] : memref<30x8xf32, #tpu.memory_space<smem>>
    %726 = vector.extract_strided_slice %94 {offsets = [2, 0], sizes = [12, 2], strides = [1, 1]} : vector<14x2xf32> to vector<12x2xf32>
    %727 = vector.broadcast %725 : f32 to vector<12x2xf32>
    %728 = arith.mulf %727, %726 : vector<12x2xf32>
    %729 = arith.addf %724, %728 : vector<12x2xf32>
    %c22_259 = arith.constant 22 : index
    %c2_260 = arith.constant 2 : index
    %730 = memref.load %arg6[%c22_259, %c2_260] : memref<30x8xf32, #tpu.memory_space<smem>>
    %731 = vector.extract_strided_slice %141 {offsets = [2, 0], sizes = [12, 2], strides = [1, 1]} : vector<14x2xf32> to vector<12x2xf32>
    %732 = vector.broadcast %730 : f32 to vector<12x2xf32>
    %733 = arith.mulf %732, %731 : vector<12x2xf32>
    %734 = arith.addf %729, %733 : vector<12x2xf32>
    %c22_261 = arith.constant 22 : index
    %c3_262 = arith.constant 3 : index
    %735 = memref.load %arg6[%c22_261, %c3_262] : memref<30x8xf32, #tpu.memory_space<smem>>
    %736 = vector.extract_strided_slice %188 {offsets = [2, 0], sizes = [12, 2], strides = [1, 1]} : vector<14x2xf32> to vector<12x2xf32>
    %737 = vector.broadcast %735 : f32 to vector<12x2xf32>
    %738 = arith.mulf %737, %736 : vector<12x2xf32>
    %739 = arith.addf %734, %738 : vector<12x2xf32>
    %c22_263 = arith.constant 22 : index
    %c4_264 = arith.constant 4 : index
    %740 = memref.load %arg6[%c22_263, %c4_264] : memref<30x8xf32, #tpu.memory_space<smem>>
    %741 = vector.extract_strided_slice %235 {offsets = [2, 0], sizes = [12, 2], strides = [1, 1]} : vector<14x2xf32> to vector<12x2xf32>
    %742 = vector.broadcast %740 : f32 to vector<12x2xf32>
    %743 = arith.mulf %742, %741 : vector<12x2xf32>
    %744 = arith.addf %739, %743 : vector<12x2xf32>
    %c22_265 = arith.constant 22 : index
    %c5_266 = arith.constant 5 : index
    %745 = memref.load %arg6[%c22_265, %c5_266] : memref<30x8xf32, #tpu.memory_space<smem>>
    %746 = vector.extract_strided_slice %282 {offsets = [2, 0], sizes = [12, 2], strides = [1, 1]} : vector<14x2xf32> to vector<12x2xf32>
    %747 = vector.broadcast %745 : f32 to vector<12x2xf32>
    %748 = arith.mulf %747, %746 : vector<12x2xf32>
    %749 = arith.addf %744, %748 : vector<12x2xf32>
    %c22_267 = arith.constant 22 : index
    %c6_268 = arith.constant 6 : index
    %750 = memref.load %arg6[%c22_267, %c6_268] : memref<30x8xf32, #tpu.memory_space<smem>>
    %751 = vector.extract_strided_slice %329 {offsets = [2, 0], sizes = [12, 2], strides = [1, 1]} : vector<14x2xf32> to vector<12x2xf32>
    %752 = vector.broadcast %750 : f32 to vector<12x2xf32>
    %753 = arith.mulf %752, %751 : vector<12x2xf32>
    %754 = arith.addf %749, %753 : vector<12x2xf32>
    %c22_269 = arith.constant 22 : index
    %c7_270 = arith.constant 7 : index
    %755 = memref.load %arg6[%c22_269, %c7_270] : memref<30x8xf32, #tpu.memory_space<smem>>
    %756 = vector.extract_strided_slice %376 {offsets = [2, 0], sizes = [12, 2], strides = [1, 1]} : vector<14x2xf32> to vector<12x2xf32>
    %757 = vector.broadcast %755 : f32 to vector<12x2xf32>
    %758 = arith.mulf %757, %756 : vector<12x2xf32>
    %759 = arith.addf %754, %758 : vector<12x2xf32>
    %c2_271 = arith.constant 2 : index
    %760 = memref.load %arg7[%c2_271] : memref<10xf32, #tpu.memory_space<smem>>
    %761 = vector.broadcast %760 : f32 to vector<12x2xf32>
    %762 = arith.addf %759, %761 : vector<12x2xf32>
    %cst_272 = arith.constant 0.000000e+00 : f32
    %763 = vector.broadcast %cst_272 : f32 to vector<12x2xf32>
    %764 = arith.maximumf %762, %763 : vector<12x2xf32>
    %c2_273 = arith.constant 2 : index
    %c0_274 = arith.constant 0 : index
    %c0_275 = arith.constant 0 : index
    %765 = vector.load %arg1[%c2_273, %c0_274, %c0_275] : memref<10x12x2xi32, #tpu.memory_space<vmem>>, vector<1x12x2xi32>
    %766 = vector.shape_cast %765 : vector<1x12x2xi32> to vector<12x2xi32>
    %c429496730_i32_276 = arith.constant 429496730 : i32
    %767 = vector.broadcast %c429496730_i32_276 : i32 to vector<12x2xi32>
    %768 = arith.cmpi uge, %766, %767 : vector<12x2xi32>
    %cst_277 = arith.constant 0.000000e+00 : f32
    %769 = vector.broadcast %cst_277 : f32 to vector<12x2xf32>
    %770 = arith.select %768, %764, %769 : vector<12x2xi1>, vector<12x2xf32>
    %c24 = arith.constant 24 : index
    %c0_278 = arith.constant 0 : index
    %771 = vector.load %arg13[%c24, %c0_278] : memref<128x2xf32, #tpu.memory_space<vmem>>, vector<12x2xf32>
    tpu.vector_store %arg13[%c24, %c0_278], %770 {strides = array<i32>} : memref<128x2xf32, #tpu.memory_space<vmem>>, vector<12x2xf32>,
    %c3_279 = arith.constant 3 : index
    %c0_280 = arith.constant 0 : index
    %772 = memref.load %arg6[%c3_279, %c0_280] : memref<30x8xf32, #tpu.memory_space<smem>>
    %773 = vector.extract_strided_slice %47 {offsets = [0, 0], sizes = [12, 2], strides = [1, 1]} : vector<14x2xf32> to vector<12x2xf32>
    %774 = vector.broadcast %772 : f32 to vector<12x2xf32>
    %775 = arith.mulf %774, %773 : vector<12x2xf32>
    %c3_281 = arith.constant 3 : index
    %c1_282 = arith.constant 1 : index
    %776 = memref.load %arg6[%c3_281, %c1_282] : memref<30x8xf32, #tpu.memory_space<smem>>
    %777 = vector.extract_strided_slice %94 {offsets = [0, 0], sizes = [12, 2], strides = [1, 1]} : vector<14x2xf32> to vector<12x2xf32>
    %778 = vector.broadcast %776 : f32 to vector<12x2xf32>
    %779 = arith.mulf %778, %777 : vector<12x2xf32>
    %780 = arith.addf %775, %779 : vector<12x2xf32>
    %c3_283 = arith.constant 3 : index
    %c2_284 = arith.constant 2 : index
    %781 = memref.load %arg6[%c3_283, %c2_284] : memref<30x8xf32, #tpu.memory_space<smem>>
    %782 = vector.extract_strided_slice %141 {offsets = [0, 0], sizes = [12, 2], strides = [1, 1]} : vector<14x2xf32> to vector<12x2xf32>
    %783 = vector.broadcast %781 : f32 to vector<12x2xf32>
    %784 = arith.mulf %783, %782 : vector<12x2xf32>
    %785 = arith.addf %780, %784 : vector<12x2xf32>
    %c3_285 = arith.constant 3 : index
    %c3_286 = arith.constant 3 : index
    %786 = memref.load %arg6[%c3_285, %c3_286] : memref<30x8xf32, #tpu.memory_space<smem>>
    %787 = vector.extract_strided_slice %188 {offsets = [0, 0], sizes = [12, 2], strides = [1, 1]} : vector<14x2xf32> to vector<12x2xf32>
    %788 = vector.broadcast %786 : f32 to vector<12x2xf32>
    %789 = arith.mulf %788, %787 : vector<12x2xf32>
    %790 = arith.addf %785, %789 : vector<12x2xf32>
    %c3_287 = arith.constant 3 : index
    %c4_288 = arith.constant 4 : index
    %791 = memref.load %arg6[%c3_287, %c4_288] : memref<30x8xf32, #tpu.memory_space<smem>>
    %792 = vector.extract_strided_slice %235 {offsets = [0, 0], sizes = [12, 2], strides = [1, 1]} : vector<14x2xf32> to vector<12x2xf32>
    %793 = vector.broadcast %791 : f32 to vector<12x2xf32>
    %794 = arith.mulf %793, %792 : vector<12x2xf32>
    %795 = arith.addf %790, %794 : vector<12x2xf32>
    %c3_289 = arith.constant 3 : index
    %c5_290 = arith.constant 5 : index
    %796 = memref.load %arg6[%c3_289, %c5_290] : memref<30x8xf32, #tpu.memory_space<smem>>
    %797 = vector.extract_strided_slice %282 {offsets = [0, 0], sizes = [12, 2], strides = [1, 1]} : vector<14x2xf32> to vector<12x2xf32>
    %798 = vector.broadcast %796 : f32 to vector<12x2xf32>
    %799 = arith.mulf %798, %797 : vector<12x2xf32>
    %800 = arith.addf %795, %799 : vector<12x2xf32>
    %c3_291 = arith.constant 3 : index
    %c6_292 = arith.constant 6 : index
    %801 = memref.load %arg6[%c3_291, %c6_292] : memref<30x8xf32, #tpu.memory_space<smem>>
    %802 = vector.extract_strided_slice %329 {offsets = [0, 0], sizes = [12, 2], strides = [1, 1]} : vector<14x2xf32> to vector<12x2xf32>
    %803 = vector.broadcast %801 : f32 to vector<12x2xf32>
    %804 = arith.mulf %803, %802 : vector<12x2xf32>
    %805 = arith.addf %800, %804 : vector<12x2xf32>
    %c3_293 = arith.constant 3 : index
    %c7_294 = arith.constant 7 : index
    %806 = memref.load %arg6[%c3_293, %c7_294] : memref<30x8xf32, #tpu.memory_space<smem>>
    %807 = vector.extract_strided_slice %376 {offsets = [0, 0], sizes = [12, 2], strides = [1, 1]} : vector<14x2xf32> to vector<12x2xf32>
    %808 = vector.broadcast %806 : f32 to vector<12x2xf32>
    %809 = arith.mulf %808, %807 : vector<12x2xf32>
    %810 = arith.addf %805, %809 : vector<12x2xf32>
    %c13 = arith.constant 13 : index
    %c0_295 = arith.constant 0 : index
    %811 = memref.load %arg6[%c13, %c0_295] : memref<30x8xf32, #tpu.memory_space<smem>>
    %812 = vector.extract_strided_slice %47 {offsets = [1, 0], sizes = [12, 2], strides = [1, 1]} : vector<14x2xf32> to vector<12x2xf32>
    %813 = vector.broadcast %811 : f32 to vector<12x2xf32>
    %814 = arith.mulf %813, %812 : vector<12x2xf32>
    %815 = arith.addf %810, %814 : vector<12x2xf32>
    %c13_296 = arith.constant 13 : index
    %c1_297 = arith.constant 1 : index
    %816 = memref.load %arg6[%c13_296, %c1_297] : memref<30x8xf32, #tpu.memory_space<smem>>
    %817 = vector.extract_strided_slice %94 {offsets = [1, 0], sizes = [12, 2], strides = [1, 1]} : vector<14x2xf32> to vector<12x2xf32>
    %818 = vector.broadcast %816 : f32 to vector<12x2xf32>
    %819 = arith.mulf %818, %817 : vector<12x2xf32>
    %820 = arith.addf %815, %819 : vector<12x2xf32>
    %c13_298 = arith.constant 13 : index
    %c2_299 = arith.constant 2 : index
    %821 = memref.load %arg6[%c13_298, %c2_299] : memref<30x8xf32, #tpu.memory_space<smem>>
    %822 = vector.extract_strided_slice %141 {offsets = [1, 0], sizes = [12, 2], strides = [1, 1]} : vector<14x2xf32> to vector<12x2xf32>
    %823 = vector.broadcast %821 : f32 to vector<12x2xf32>
    %824 = arith.mulf %823, %822 : vector<12x2xf32>
    %825 = arith.addf %820, %824 : vector<12x2xf32>
    %c13_300 = arith.constant 13 : index
    %c3_301 = arith.constant 3 : index
    %826 = memref.load %arg6[%c13_300, %c3_301] : memref<30x8xf32, #tpu.memory_space<smem>>
    %827 = vector.extract_strided_slice %188 {offsets = [1, 0], sizes = [12, 2], strides = [1, 1]} : vector<14x2xf32> to vector<12x2xf32>
    %828 = vector.broadcast %826 : f32 to vector<12x2xf32>
    %829 = arith.mulf %828, %827 : vector<12x2xf32>
    %830 = arith.addf %825, %829 : vector<12x2xf32>
    %c13_302 = arith.constant 13 : index
    %c4_303 = arith.constant 4 : index
    %831 = memref.load %arg6[%c13_302, %c4_303] : memref<30x8xf32, #tpu.memory_space<smem>>
    %832 = vector.extract_strided_slice %235 {offsets = [1, 0], sizes = [12, 2], strides = [1, 1]} : vector<14x2xf32> to vector<12x2xf32>
    %833 = vector.broadcast %831 : f32 to vector<12x2xf32>
    %834 = arith.mulf %833, %832 : vector<12x2xf32>
    %835 = arith.addf %830, %834 : vector<12x2xf32>
    %c13_304 = arith.constant 13 : index
    %c5_305 = arith.constant 5 : index
    %836 = memref.load %arg6[%c13_304, %c5_305] : memref<30x8xf32, #tpu.memory_space<smem>>
    %837 = vector.extract_strided_slice %282 {offsets = [1, 0], sizes = [12, 2], strides = [1, 1]} : vector<14x2xf32> to vector<12x2xf32>
    %838 = vector.broadcast %836 : f32 to vector<12x2xf32>
    %839 = arith.mulf %838, %837 : vector<12x2xf32>
    %840 = arith.addf %835, %839 : vector<12x2xf32>
    %c13_306 = arith.constant 13 : index
    %c6_307 = arith.constant 6 : index
    %841 = memref.load %arg6[%c13_306, %c6_307] : memref<30x8xf32, #tpu.memory_space<smem>>
    %842 = vector.extract_strided_slice %329 {offsets = [1, 0], sizes = [12, 2], strides = [1, 1]} : vector<14x2xf32> to vector<12x2xf32>
    %843 = vector.broadcast %841 : f32 to vector<12x2xf32>
    %844 = arith.mulf %843, %842 : vector<12x2xf32>
    %845 = arith.addf %840, %844 : vector<12x2xf32>
    %c13_308 = arith.constant 13 : index
    %c7_309 = arith.constant 7 : index
    %846 = memref.load %arg6[%c13_308, %c7_309] : memref<30x8xf32, #tpu.memory_space<smem>>
    %847 = vector.extract_strided_slice %376 {offsets = [1, 0], sizes = [12, 2], strides = [1, 1]} : vector<14x2xf32> to vector<12x2xf32>
    %848 = vector.broadcast %846 : f32 to vector<12x2xf32>
    %849 = arith.mulf %848, %847 : vector<12x2xf32>
    %850 = arith.addf %845, %849 : vector<12x2xf32>
    %c23 = arith.constant 23 : index
    %c0_310 = arith.constant 0 : index
    %851 = memref.load %arg6[%c23, %c0_310] : memref<30x8xf32, #tpu.memory_space<smem>>
    %852 = vector.extract_strided_slice %47 {offsets = [2, 0], sizes = [12, 2], strides = [1, 1]} : vector<14x2xf32> to vector<12x2xf32>
    %853 = vector.broadcast %851 : f32 to vector<12x2xf32>
    %854 = arith.mulf %853, %852 : vector<12x2xf32>
    %855 = arith.addf %850, %854 : vector<12x2xf32>
    %c23_311 = arith.constant 23 : index
    %c1_312 = arith.constant 1 : index
    %856 = memref.load %arg6[%c23_311, %c1_312] : memref<30x8xf32, #tpu.memory_space<smem>>
    %857 = vector.extract_strided_slice %94 {offsets = [2, 0], sizes = [12, 2], strides = [1, 1]} : vector<14x2xf32> to vector<12x2xf32>
    %858 = vector.broadcast %856 : f32 to vector<12x2xf32>
    %859 = arith.mulf %858, %857 : vector<12x2xf32>
    %860 = arith.addf %855, %859 : vector<12x2xf32>
    %c23_313 = arith.constant 23 : index
    %c2_314 = arith.constant 2 : index
    %861 = memref.load %arg6[%c23_313, %c2_314] : memref<30x8xf32, #tpu.memory_space<smem>>
    %862 = vector.extract_strided_slice %141 {offsets = [2, 0], sizes = [12, 2], strides = [1, 1]} : vector<14x2xf32> to vector<12x2xf32>
    %863 = vector.broadcast %861 : f32 to vector<12x2xf32>
    %864 = arith.mulf %863, %862 : vector<12x2xf32>
    %865 = arith.addf %860, %864 : vector<12x2xf32>
    %c23_315 = arith.constant 23 : index
    %c3_316 = arith.constant 3 : index
    %866 = memref.load %arg6[%c23_315, %c3_316] : memref<30x8xf32, #tpu.memory_space<smem>>
    %867 = vector.extract_strided_slice %188 {offsets = [2, 0], sizes = [12, 2], strides = [1, 1]} : vector<14x2xf32> to vector<12x2xf32>
    %868 = vector.broadcast %866 : f32 to vector<12x2xf32>
    %869 = arith.mulf %868, %867 : vector<12x2xf32>
    %870 = arith.addf %865, %869 : vector<12x2xf32>
    %c23_317 = arith.constant 23 : index
    %c4_318 = arith.constant 4 : index
    %871 = memref.load %arg6[%c23_317, %c4_318] : memref<30x8xf32, #tpu.memory_space<smem>>
    %872 = vector.extract_strided_slice %235 {offsets = [2, 0], sizes = [12, 2], strides = [1, 1]} : vector<14x2xf32> to vector<12x2xf32>
    %873 = vector.broadcast %871 : f32 to vector<12x2xf32>
    %874 = arith.mulf %873, %872 : vector<12x2xf32>
    %875 = arith.addf %870, %874 : vector<12x2xf32>
    %c23_319 = arith.constant 23 : index
    %c5_320 = arith.constant 5 : index
    %876 = memref.load %arg6[%c23_319, %c5_320] : memref<30x8xf32, #tpu.memory_space<smem>>
    %877 = vector.extract_strided_slice %282 {offsets = [2, 0], sizes = [12, 2], strides = [1, 1]} : vector<14x2xf32> to vector<12x2xf32>
    %878 = vector.broadcast %876 : f32 to vector<12x2xf32>
    %879 = arith.mulf %878, %877 : vector<12x2xf32>
    %880 = arith.addf %875, %879 : vector<12x2xf32>
    %c23_321 = arith.constant 23 : index
    %c6_322 = arith.constant 6 : index
    %881 = memref.load %arg6[%c23_321, %c6_322] : memref<30x8xf32, #tpu.memory_space<smem>>
    %882 = vector.extract_strided_slice %329 {offsets = [2, 0], sizes = [12, 2], strides = [1, 1]} : vector<14x2xf32> to vector<12x2xf32>
    %883 = vector.broadcast %881 : f32 to vector<12x2xf32>
    %884 = arith.mulf %883, %882 : vector<12x2xf32>
    %885 = arith.addf %880, %884 : vector<12x2xf32>
    %c23_323 = arith.constant 23 : index
    %c7_324 = arith.constant 7 : index
    %886 = memref.load %arg6[%c23_323, %c7_324] : memref<30x8xf32, #tpu.memory_space<smem>>
    %887 = vector.extract_strided_slice %376 {offsets = [2, 0], sizes = [12, 2], strides = [1, 1]} : vector<14x2xf32> to vector<12x2xf32>
    %888 = vector.broadcast %886 : f32 to vector<12x2xf32>
    %889 = arith.mulf %888, %887 : vector<12x2xf32>
    %890 = arith.addf %885, %889 : vector<12x2xf32>
    %c3_325 = arith.constant 3 : index
    %891 = memref.load %arg7[%c3_325] : memref<10xf32, #tpu.memory_space<smem>>
    %892 = vector.broadcast %891 : f32 to vector<12x2xf32>
    %893 = arith.addf %890, %892 : vector<12x2xf32>
    %cst_326 = arith.constant 0.000000e+00 : f32
    %894 = vector.broadcast %cst_326 : f32 to vector<12x2xf32>
    %895 = arith.maximumf %893, %894 : vector<12x2xf32>
    %c3_327 = arith.constant 3 : index
    %c0_328 = arith.constant 0 : index
    %c0_329 = arith.constant 0 : index
    %896 = vector.load %arg1[%c3_327, %c0_328, %c0_329] : memref<10x12x2xi32, #tpu.memory_space<vmem>>, vector<1x12x2xi32>
    %897 = vector.shape_cast %896 : vector<1x12x2xi32> to vector<12x2xi32>
    %c429496730_i32_330 = arith.constant 429496730 : i32
    %898 = vector.broadcast %c429496730_i32_330 : i32 to vector<12x2xi32>
    %899 = arith.cmpi uge, %897, %898 : vector<12x2xi32>
    %cst_331 = arith.constant 0.000000e+00 : f32
    %900 = vector.broadcast %cst_331 : f32 to vector<12x2xf32>
    %901 = arith.select %899, %895, %900 : vector<12x2xi1>, vector<12x2xf32>
    %c36 = arith.constant 36 : index
    %c0_332 = arith.constant 0 : index
    %902 = vector.load %arg13[%c36, %c0_332] : memref<128x2xf32, #tpu.memory_space<vmem>>, vector<12x2xf32>
    tpu.vector_store %arg13[%c36, %c0_332], %901 {strides = array<i32>} : memref<128x2xf32, #tpu.memory_space<vmem>>, vector<12x2xf32>,
    %c4_333 = arith.constant 4 : index
    %c0_334 = arith.constant 0 : index
    %903 = memref.load %arg6[%c4_333, %c0_334] : memref<30x8xf32, #tpu.memory_space<smem>>
    %904 = vector.extract_strided_slice %47 {offsets = [0, 0], sizes = [12, 2], strides = [1, 1]} : vector<14x2xf32> to vector<12x2xf32>
    %905 = vector.broadcast %903 : f32 to vector<12x2xf32>
    %906 = arith.mulf %905, %904 : vector<12x2xf32>
    %c4_335 = arith.constant 4 : index
    %c1_336 = arith.constant 1 : index
    %907 = memref.load %arg6[%c4_335, %c1_336] : memref<30x8xf32, #tpu.memory_space<smem>>
    %908 = vector.extract_strided_slice %94 {offsets = [0, 0], sizes = [12, 2], strides = [1, 1]} : vector<14x2xf32> to vector<12x2xf32>
    %909 = vector.broadcast %907 : f32 to vector<12x2xf32>
    %910 = arith.mulf %909, %908 : vector<12x2xf32>
    %911 = arith.addf %906, %910 : vector<12x2xf32>
    %c4_337 = arith.constant 4 : index
    %c2_338 = arith.constant 2 : index
    %912 = memref.load %arg6[%c4_337, %c2_338] : memref<30x8xf32, #tpu.memory_space<smem>>
    %913 = vector.extract_strided_slice %141 {offsets = [0, 0], sizes = [12, 2], strides = [1, 1]} : vector<14x2xf32> to vector<12x2xf32>
    %914 = vector.broadcast %912 : f32 to vector<12x2xf32>
    %915 = arith.mulf %914, %913 : vector<12x2xf32>
    %916 = arith.addf %911, %915 : vector<12x2xf32>
    %c4_339 = arith.constant 4 : index
    %c3_340 = arith.constant 3 : index
    %917 = memref.load %arg6[%c4_339, %c3_340] : memref<30x8xf32, #tpu.memory_space<smem>>
    %918 = vector.extract_strided_slice %188 {offsets = [0, 0], sizes = [12, 2], strides = [1, 1]} : vector<14x2xf32> to vector<12x2xf32>
    %919 = vector.broadcast %917 : f32 to vector<12x2xf32>
    %920 = arith.mulf %919, %918 : vector<12x2xf32>
    %921 = arith.addf %916, %920 : vector<12x2xf32>
    %c4_341 = arith.constant 4 : index
    %c4_342 = arith.constant 4 : index
    %922 = memref.load %arg6[%c4_341, %c4_342] : memref<30x8xf32, #tpu.memory_space<smem>>
    %923 = vector.extract_strided_slice %235 {offsets = [0, 0], sizes = [12, 2], strides = [1, 1]} : vector<14x2xf32> to vector<12x2xf32>
    %924 = vector.broadcast %922 : f32 to vector<12x2xf32>
    %925 = arith.mulf %924, %923 : vector<12x2xf32>
    %926 = arith.addf %921, %925 : vector<12x2xf32>
    %c4_343 = arith.constant 4 : index
    %c5_344 = arith.constant 5 : index
    %927 = memref.load %arg6[%c4_343, %c5_344] : memref<30x8xf32, #tpu.memory_space<smem>>
    %928 = vector.extract_strided_slice %282 {offsets = [0, 0], sizes = [12, 2], strides = [1, 1]} : vector<14x2xf32> to vector<12x2xf32>
    %929 = vector.broadcast %927 : f32 to vector<12x2xf32>
    %930 = arith.mulf %929, %928 : vector<12x2xf32>
    %931 = arith.addf %926, %930 : vector<12x2xf32>
    %c4_345 = arith.constant 4 : index
    %c6_346 = arith.constant 6 : index
    %932 = memref.load %arg6[%c4_345, %c6_346] : memref<30x8xf32, #tpu.memory_space<smem>>
    %933 = vector.extract_strided_slice %329 {offsets = [0, 0], sizes = [12, 2], strides = [1, 1]} : vector<14x2xf32> to vector<12x2xf32>
    %934 = vector.broadcast %932 : f32 to vector<12x2xf32>
    %935 = arith.mulf %934, %933 : vector<12x2xf32>
    %936 = arith.addf %931, %935 : vector<12x2xf32>
    %c4_347 = arith.constant 4 : index
    %c7_348 = arith.constant 7 : index
    %937 = memref.load %arg6[%c4_347, %c7_348] : memref<30x8xf32, #tpu.memory_space<smem>>
    %938 = vector.extract_strided_slice %376 {offsets = [0, 0], sizes = [12, 2], strides = [1, 1]} : vector<14x2xf32> to vector<12x2xf32>
    %939 = vector.broadcast %937 : f32 to vector<12x2xf32>
    %940 = arith.mulf %939, %938 : vector<12x2xf32>
    %941 = arith.addf %936, %940 : vector<12x2xf32>
    %c14 = arith.constant 14 : index
    %c0_349 = arith.constant 0 : index
    %942 = memref.load %arg6[%c14, %c0_349] : memref<30x8xf32, #tpu.memory_space<smem>>
    %943 = vector.extract_strided_slice %47 {offsets = [1, 0], sizes = [12, 2], strides = [1, 1]} : vector<14x2xf32> to vector<12x2xf32>
    %944 = vector.broadcast %942 : f32 to vector<12x2xf32>
    %945 = arith.mulf %944, %943 : vector<12x2xf32>
    %946 = arith.addf %941, %945 : vector<12x2xf32>
    %c14_350 = arith.constant 14 : index
    %c1_351 = arith.constant 1 : index
    %947 = memref.load %arg6[%c14_350, %c1_351] : memref<30x8xf32, #tpu.memory_space<smem>>
    %948 = vector.extract_strided_slice %94 {offsets = [1, 0], sizes = [12, 2], strides = [1, 1]} : vector<14x2xf32> to vector<12x2xf32>
    %949 = vector.broadcast %947 : f32 to vector<12x2xf32>
    %950 = arith.mulf %949, %948 : vector<12x2xf32>
    %951 = arith.addf %946, %950 : vector<12x2xf32>
    %c14_352 = arith.constant 14 : index
    %c2_353 = arith.constant 2 : index
    %952 = memref.load %arg6[%c14_352, %c2_353] : memref<30x8xf32, #tpu.memory_space<smem>>
    %953 = vector.extract_strided_slice %141 {offsets = [1, 0], sizes = [12, 2], strides = [1, 1]} : vector<14x2xf32> to vector<12x2xf32>
    %954 = vector.broadcast %952 : f32 to vector<12x2xf32>
    %955 = arith.mulf %954, %953 : vector<12x2xf32>
    %956 = arith.addf %951, %955 : vector<12x2xf32>
    %c14_354 = arith.constant 14 : index
    %c3_355 = arith.constant 3 : index
    %957 = memref.load %arg6[%c14_354, %c3_355] : memref<30x8xf32, #tpu.memory_space<smem>>
    %958 = vector.extract_strided_slice %188 {offsets = [1, 0], sizes = [12, 2], strides = [1, 1]} : vector<14x2xf32> to vector<12x2xf32>
    %959 = vector.broadcast %957 : f32 to vector<12x2xf32>
    %960 = arith.mulf %959, %958 : vector<12x2xf32>
    %961 = arith.addf %956, %960 : vector<12x2xf32>
    %c14_356 = arith.constant 14 : index
    %c4_357 = arith.constant 4 : index
    %962 = memref.load %arg6[%c14_356, %c4_357] : memref<30x8xf32, #tpu.memory_space<smem>>
    %963 = vector.extract_strided_slice %235 {offsets = [1, 0], sizes = [12, 2], strides = [1, 1]} : vector<14x2xf32> to vector<12x2xf32>
    %964 = vector.broadcast %962 : f32 to vector<12x2xf32>
    %965 = arith.mulf %964, %963 : vector<12x2xf32>
    %966 = arith.addf %961, %965 : vector<12x2xf32>
    %c14_358 = arith.constant 14 : index
    %c5_359 = arith.constant 5 : index
    %967 = memref.load %arg6[%c14_358, %c5_359] : memref<30x8xf32, #tpu.memory_space<smem>>
    %968 = vector.extract_strided_slice %282 {offsets = [1, 0], sizes = [12, 2], strides = [1, 1]} : vector<14x2xf32> to vector<12x2xf32>
    %969 = vector.broadcast %967 : f32 to vector<12x2xf32>
    %970 = arith.mulf %969, %968 : vector<12x2xf32>
    %971 = arith.addf %966, %970 : vector<12x2xf32>
    %c14_360 = arith.constant 14 : index
    %c6_361 = arith.constant 6 : index
    %972 = memref.load %arg6[%c14_360, %c6_361] : memref<30x8xf32, #tpu.memory_space<smem>>
    %973 = vector.extract_strided_slice %329 {offsets = [1, 0], sizes = [12, 2], strides = [1, 1]} : vector<14x2xf32> to vector<12x2xf32>
    %974 = vector.broadcast %972 : f32 to vector<12x2xf32>
    %975 = arith.mulf %974, %973 : vector<12x2xf32>
    %976 = arith.addf %971, %975 : vector<12x2xf32>
    %c14_362 = arith.constant 14 : index
    %c7_363 = arith.constant 7 : index
    %977 = memref.load %arg6[%c14_362, %c7_363] : memref<30x8xf32, #tpu.memory_space<smem>>
    %978 = vector.extract_strided_slice %376 {offsets = [1, 0], sizes = [12, 2], strides = [1, 1]} : vector<14x2xf32> to vector<12x2xf32>
    %979 = vector.broadcast %977 : f32 to vector<12x2xf32>
    %980 = arith.mulf %979, %978 : vector<12x2xf32>
    %981 = arith.addf %976, %980 : vector<12x2xf32>
    %c24_364 = arith.constant 24 : index
    %c0_365 = arith.constant 0 : index
    %982 = memref.load %arg6[%c24_364, %c0_365] : memref<30x8xf32, #tpu.memory_space<smem>>
    %983 = vector.extract_strided_slice %47 {offsets = [2, 0], sizes = [12, 2], strides = [1, 1]} : vector<14x2xf32> to vector<12x2xf32>
    %984 = vector.broadcast %982 : f32 to vector<12x2xf32>
    %985 = arith.mulf %984, %983 : vector<12x2xf32>
    %986 = arith.addf %981, %985 : vector<12x2xf32>
    %c24_366 = arith.constant 24 : index
    %c1_367 = arith.constant 1 : index
    %987 = memref.load %arg6[%c24_366, %c1_367] : memref<30x8xf32, #tpu.memory_space<smem>>
    %988 = vector.extract_strided_slice %94 {offsets = [2, 0], sizes = [12, 2], strides = [1, 1]} : vector<14x2xf32> to vector<12x2xf32>
    %989 = vector.broadcast %987 : f32 to vector<12x2xf32>
    %990 = arith.mulf %989, %988 : vector<12x2xf32>
    %991 = arith.addf %986, %990 : vector<12x2xf32>
    %c24_368 = arith.constant 24 : index
    %c2_369 = arith.constant 2 : index
    %992 = memref.load %arg6[%c24_368, %c2_369] : memref<30x8xf32, #tpu.memory_space<smem>>
    %993 = vector.extract_strided_slice %141 {offsets = [2, 0], sizes = [12, 2], strides = [1, 1]} : vector<14x2xf32> to vector<12x2xf32>
    %994 = vector.broadcast %992 : f32 to vector<12x2xf32>
    %995 = arith.mulf %994, %993 : vector<12x2xf32>
    %996 = arith.addf %991, %995 : vector<12x2xf32>
    %c24_370 = arith.constant 24 : index
    %c3_371 = arith.constant 3 : index
    %997 = memref.load %arg6[%c24_370, %c3_371] : memref<30x8xf32, #tpu.memory_space<smem>>
    %998 = vector.extract_strided_slice %188 {offsets = [2, 0], sizes = [12, 2], strides = [1, 1]} : vector<14x2xf32> to vector<12x2xf32>
    %999 = vector.broadcast %997 : f32 to vector<12x2xf32>
    %1000 = arith.mulf %999, %998 : vector<12x2xf32>
    %1001 = arith.addf %996, %1000 : vector<12x2xf32>
    %c24_372 = arith.constant 24 : index
    %c4_373 = arith.constant 4 : index
    %1002 = memref.load %arg6[%c24_372, %c4_373] : memref<30x8xf32, #tpu.memory_space<smem>>
    %1003 = vector.extract_strided_slice %235 {offsets = [2, 0], sizes = [12, 2], strides = [1, 1]} : vector<14x2xf32> to vector<12x2xf32>
    %1004 = vector.broadcast %1002 : f32 to vector<12x2xf32>
    %1005 = arith.mulf %1004, %1003 : vector<12x2xf32>
    %1006 = arith.addf %1001, %1005 : vector<12x2xf32>
    %c24_374 = arith.constant 24 : index
    %c5_375 = arith.constant 5 : index
    %1007 = memref.load %arg6[%c24_374, %c5_375] : memref<30x8xf32, #tpu.memory_space<smem>>
    %1008 = vector.extract_strided_slice %282 {offsets = [2, 0], sizes = [12, 2], strides = [1, 1]} : vector<14x2xf32> to vector<12x2xf32>
    %1009 = vector.broadcast %1007 : f32 to vector<12x2xf32>
    %1010 = arith.mulf %1009, %1008 : vector<12x2xf32>
    %1011 = arith.addf %1006, %1010 : vector<12x2xf32>
    %c24_376 = arith.constant 24 : index
    %c6_377 = arith.constant 6 : index
    %1012 = memref.load %arg6[%c24_376, %c6_377] : memref<30x8xf32, #tpu.memory_space<smem>>
    %1013 = vector.extract_strided_slice %329 {offsets = [2, 0], sizes = [12, 2], strides = [1, 1]} : vector<14x2xf32> to vector<12x2xf32>
    %1014 = vector.broadcast %1012 : f32 to vector<12x2xf32>
    %1015 = arith.mulf %1014, %1013 : vector<12x2xf32>
    %1016 = arith.addf %1011, %1015 : vector<12x2xf32>
    %c24_378 = arith.constant 24 : index
    %c7_379 = arith.constant 7 : index
    %1017 = memref.load %arg6[%c24_378, %c7_379] : memref<30x8xf32, #tpu.memory_space<smem>>
    %1018 = vector.extract_strided_slice %376 {offsets = [2, 0], sizes = [12, 2], strides = [1, 1]} : vector<14x2xf32> to vector<12x2xf32>
    %1019 = vector.broadcast %1017 : f32 to vector<12x2xf32>
    %1020 = arith.mulf %1019, %1018 : vector<12x2xf32>
    %1021 = arith.addf %1016, %1020 : vector<12x2xf32>
    %c4_380 = arith.constant 4 : index
    %1022 = memref.load %arg7[%c4_380] : memref<10xf32, #tpu.memory_space<smem>>
    %1023 = vector.broadcast %1022 : f32 to vector<12x2xf32>
    %1024 = arith.addf %1021, %1023 : vector<12x2xf32>
    %cst_381 = arith.constant 0.000000e+00 : f32
    %1025 = vector.broadcast %cst_381 : f32 to vector<12x2xf32>
    %1026 = arith.maximumf %1024, %1025 : vector<12x2xf32>
    %c4_382 = arith.constant 4 : index
    %c0_383 = arith.constant 0 : index
    %c0_384 = arith.constant 0 : index
    %1027 = vector.load %arg1[%c4_382, %c0_383, %c0_384] : memref<10x12x2xi32, #tpu.memory_space<vmem>>, vector<1x12x2xi32>
    %1028 = vector.shape_cast %1027 : vector<1x12x2xi32> to vector<12x2xi32>
    %c429496730_i32_385 = arith.constant 429496730 : i32
    %1029 = vector.broadcast %c429496730_i32_385 : i32 to vector<12x2xi32>
    %1030 = arith.cmpi uge, %1028, %1029 : vector<12x2xi32>
    %cst_386 = arith.constant 0.000000e+00 : f32
    %1031 = vector.broadcast %cst_386 : f32 to vector<12x2xf32>
    %1032 = arith.select %1030, %1026, %1031 : vector<12x2xi1>, vector<12x2xf32>
    %c48 = arith.constant 48 : index
    %c0_387 = arith.constant 0 : index
    %1033 = vector.load %arg13[%c48, %c0_387] : memref<128x2xf32, #tpu.memory_space<vmem>>, vector<12x2xf32>
    tpu.vector_store %arg13[%c48, %c0_387], %1032 {strides = array<i32>} : memref<128x2xf32, #tpu.memory_space<vmem>>, vector<12x2xf32>,
    %c5_388 = arith.constant 5 : index
    %c0_389 = arith.constant 0 : index
    %1034 = memref.load %arg6[%c5_388, %c0_389] : memref<30x8xf32, #tpu.memory_space<smem>>
    %1035 = vector.extract_strided_slice %47 {offsets = [0, 0], sizes = [12, 2], strides = [1, 1]} : vector<14x2xf32> to vector<12x2xf32>
    %1036 = vector.broadcast %1034 : f32 to vector<12x2xf32>
    %1037 = arith.mulf %1036, %1035 : vector<12x2xf32>
    %c5_390 = arith.constant 5 : index
    %c1_391 = arith.constant 1 : index
    %1038 = memref.load %arg6[%c5_390, %c1_391] : memref<30x8xf32, #tpu.memory_space<smem>>
    %1039 = vector.extract_strided_slice %94 {offsets = [0, 0], sizes = [12, 2], strides = [1, 1]} : vector<14x2xf32> to vector<12x2xf32>
    %1040 = vector.broadcast %1038 : f32 to vector<12x2xf32>
    %1041 = arith.mulf %1040, %1039 : vector<12x2xf32>
    %1042 = arith.addf %1037, %1041 : vector<12x2xf32>
    %c5_392 = arith.constant 5 : index
    %c2_393 = arith.constant 2 : index
    %1043 = memref.load %arg6[%c5_392, %c2_393] : memref<30x8xf32, #tpu.memory_space<smem>>
    %1044 = vector.extract_strided_slice %141 {offsets = [0, 0], sizes = [12, 2], strides = [1, 1]} : vector<14x2xf32> to vector<12x2xf32>
    %1045 = vector.broadcast %1043 : f32 to vector<12x2xf32>
    %1046 = arith.mulf %1045, %1044 : vector<12x2xf32>
    %1047 = arith.addf %1042, %1046 : vector<12x2xf32>
    %c5_394 = arith.constant 5 : index
    %c3_395 = arith.constant 3 : index
    %1048 = memref.load %arg6[%c5_394, %c3_395] : memref<30x8xf32, #tpu.memory_space<smem>>
    %1049 = vector.extract_strided_slice %188 {offsets = [0, 0], sizes = [12, 2], strides = [1, 1]} : vector<14x2xf32> to vector<12x2xf32>
    %1050 = vector.broadcast %1048 : f32 to vector<12x2xf32>
    %1051 = arith.mulf %1050, %1049 : vector<12x2xf32>
    %1052 = arith.addf %1047, %1051 : vector<12x2xf32>
    %c5_396 = arith.constant 5 : index
    %c4_397 = arith.constant 4 : index
    %1053 = memref.load %arg6[%c5_396, %c4_397] : memref<30x8xf32, #tpu.memory_space<smem>>
    %1054 = vector.extract_strided_slice %235 {offsets = [0, 0], sizes = [12, 2], strides = [1, 1]} : vector<14x2xf32> to vector<12x2xf32>
    %1055 = vector.broadcast %1053 : f32 to vector<12x2xf32>
    %1056 = arith.mulf %1055, %1054 : vector<12x2xf32>
    %1057 = arith.addf %1052, %1056 : vector<12x2xf32>
    %c5_398 = arith.constant 5 : index
    %c5_399 = arith.constant 5 : index
    %1058 = memref.load %arg6[%c5_398, %c5_399] : memref<30x8xf32, #tpu.memory_space<smem>>
    %1059 = vector.extract_strided_slice %282 {offsets = [0, 0], sizes = [12, 2], strides = [1, 1]} : vector<14x2xf32> to vector<12x2xf32>
    %1060 = vector.broadcast %1058 : f32 to vector<12x2xf32>
    %1061 = arith.mulf %1060, %1059 : vector<12x2xf32>
    %1062 = arith.addf %1057, %1061 : vector<12x2xf32>
    %c5_400 = arith.constant 5 : index
    %c6_401 = arith.constant 6 : index
    %1063 = memref.load %arg6[%c5_400, %c6_401] : memref<30x8xf32, #tpu.memory_space<smem>>
    %1064 = vector.extract_strided_slice %329 {offsets = [0, 0], sizes = [12, 2], strides = [1, 1]} : vector<14x2xf32> to vector<12x2xf32>
    %1065 = vector.broadcast %1063 : f32 to vector<12x2xf32>
    %1066 = arith.mulf %1065, %1064 : vector<12x2xf32>
    %1067 = arith.addf %1062, %1066 : vector<12x2xf32>
    %c5_402 = arith.constant 5 : index
    %c7_403 = arith.constant 7 : index
    %1068 = memref.load %arg6[%c5_402, %c7_403] : memref<30x8xf32, #tpu.memory_space<smem>>
    %1069 = vector.extract_strided_slice %376 {offsets = [0, 0], sizes = [12, 2], strides = [1, 1]} : vector<14x2xf32> to vector<12x2xf32>
    %1070 = vector.broadcast %1068 : f32 to vector<12x2xf32>
    %1071 = arith.mulf %1070, %1069 : vector<12x2xf32>
    %1072 = arith.addf %1067, %1071 : vector<12x2xf32>
    %c15 = arith.constant 15 : index
    %c0_404 = arith.constant 0 : index
    %1073 = memref.load %arg6[%c15, %c0_404] : memref<30x8xf32, #tpu.memory_space<smem>>
    %1074 = vector.extract_strided_slice %47 {offsets = [1, 0], sizes = [12, 2], strides = [1, 1]} : vector<14x2xf32> to vector<12x2xf32>
    %1075 = vector.broadcast %1073 : f32 to vector<12x2xf32>
    %1076 = arith.mulf %1075, %1074 : vector<12x2xf32>
    %1077 = arith.addf %1072, %1076 : vector<12x2xf32>
    %c15_405 = arith.constant 15 : index
    %c1_406 = arith.constant 1 : index
    %1078 = memref.load %arg6[%c15_405, %c1_406] : memref<30x8xf32, #tpu.memory_space<smem>>
    %1079 = vector.extract_strided_slice %94 {offsets = [1, 0], sizes = [12, 2], strides = [1, 1]} : vector<14x2xf32> to vector<12x2xf32>
    %1080 = vector.broadcast %1078 : f32 to vector<12x2xf32>
    %1081 = arith.mulf %1080, %1079 : vector<12x2xf32>
    %1082 = arith.addf %1077, %1081 : vector<12x2xf32>
    %c15_407 = arith.constant 15 : index
    %c2_408 = arith.constant 2 : index
    %1083 = memref.load %arg6[%c15_407, %c2_408] : memref<30x8xf32, #tpu.memory_space<smem>>
    %1084 = vector.extract_strided_slice %141 {offsets = [1, 0], sizes = [12, 2], strides = [1, 1]} : vector<14x2xf32> to vector<12x2xf32>
    %1085 = vector.broadcast %1083 : f32 to vector<12x2xf32>
    %1086 = arith.mulf %1085, %1084 : vector<12x2xf32>
    %1087 = arith.addf %1082, %1086 : vector<12x2xf32>
    %c15_409 = arith.constant 15 : index
    %c3_410 = arith.constant 3 : index
    %1088 = memref.load %arg6[%c15_409, %c3_410] : memref<30x8xf32, #tpu.memory_space<smem>>
    %1089 = vector.extract_strided_slice %188 {offsets = [1, 0], sizes = [12, 2], strides = [1, 1]} : vector<14x2xf32> to vector<12x2xf32>
    %1090 = vector.broadcast %1088 : f32 to vector<12x2xf32>
    %1091 = arith.mulf %1090, %1089 : vector<12x2xf32>
    %1092 = arith.addf %1087, %1091 : vector<12x2xf32>
    %c15_411 = arith.constant 15 : index
    %c4_412 = arith.constant 4 : index
    %1093 = memref.load %arg6[%c15_411, %c4_412] : memref<30x8xf32, #tpu.memory_space<smem>>
    %1094 = vector.extract_strided_slice %235 {offsets = [1, 0], sizes = [12, 2], strides = [1, 1]} : vector<14x2xf32> to vector<12x2xf32>
    %1095 = vector.broadcast %1093 : f32 to vector<12x2xf32>
    %1096 = arith.mulf %1095, %1094 : vector<12x2xf32>
    %1097 = arith.addf %1092, %1096 : vector<12x2xf32>
    %c15_413 = arith.constant 15 : index
    %c5_414 = arith.constant 5 : index
    %1098 = memref.load %arg6[%c15_413, %c5_414] : memref<30x8xf32, #tpu.memory_space<smem>>
    %1099 = vector.extract_strided_slice %282 {offsets = [1, 0], sizes = [12, 2], strides = [1, 1]} : vector<14x2xf32> to vector<12x2xf32>
    %1100 = vector.broadcast %1098 : f32 to vector<12x2xf32>
    %1101 = arith.mulf %1100, %1099 : vector<12x2xf32>
    %1102 = arith.addf %1097, %1101 : vector<12x2xf32>
    %c15_415 = arith.constant 15 : index
    %c6_416 = arith.constant 6 : index
    %1103 = memref.load %arg6[%c15_415, %c6_416] : memref<30x8xf32, #tpu.memory_space<smem>>
    %1104 = vector.extract_strided_slice %329 {offsets = [1, 0], sizes = [12, 2], strides = [1, 1]} : vector<14x2xf32> to vector<12x2xf32>
    %1105 = vector.broadcast %1103 : f32 to vector<12x2xf32>
    %1106 = arith.mulf %1105, %1104 : vector<12x2xf32>
    %1107 = arith.addf %1102, %1106 : vector<12x2xf32>
    %c15_417 = arith.constant 15 : index
    %c7_418 = arith.constant 7 : index
    %1108 = memref.load %arg6[%c15_417, %c7_418] : memref<30x8xf32, #tpu.memory_space<smem>>
    %1109 = vector.extract_strided_slice %376 {offsets = [1, 0], sizes = [12, 2], strides = [1, 1]} : vector<14x2xf32> to vector<12x2xf32>
    %1110 = vector.broadcast %1108 : f32 to vector<12x2xf32>
    %1111 = arith.mulf %1110, %1109 : vector<12x2xf32>
    %1112 = arith.addf %1107, %1111 : vector<12x2xf32>
    %c25 = arith.constant 25 : index
    %c0_419 = arith.constant 0 : index
    %1113 = memref.load %arg6[%c25, %c0_419] : memref<30x8xf32, #tpu.memory_space<smem>>
    %1114 = vector.extract_strided_slice %47 {offsets = [2, 0], sizes = [12, 2], strides = [1, 1]} : vector<14x2xf32> to vector<12x2xf32>
    %1115 = vector.broadcast %1113 : f32 to vector<12x2xf32>
    %1116 = arith.mulf %1115, %1114 : vector<12x2xf32>
    %1117 = arith.addf %1112, %1116 : vector<12x2xf32>
    %c25_420 = arith.constant 25 : index
    %c1_421 = arith.constant 1 : index
    %1118 = memref.load %arg6[%c25_420, %c1_421] : memref<30x8xf32, #tpu.memory_space<smem>>
    %1119 = vector.extract_strided_slice %94 {offsets = [2, 0], sizes = [12, 2], strides = [1, 1]} : vector<14x2xf32> to vector<12x2xf32>
    %1120 = vector.broadcast %1118 : f32 to vector<12x2xf32>
    %1121 = arith.mulf %1120, %1119 : vector<12x2xf32>
    %1122 = arith.addf %1117, %1121 : vector<12x2xf32>
    %c25_422 = arith.constant 25 : index
    %c2_423 = arith.constant 2 : index
    %1123 = memref.load %arg6[%c25_422, %c2_423] : memref<30x8xf32, #tpu.memory_space<smem>>
    %1124 = vector.extract_strided_slice %141 {offsets = [2, 0], sizes = [12, 2], strides = [1, 1]} : vector<14x2xf32> to vector<12x2xf32>
    %1125 = vector.broadcast %1123 : f32 to vector<12x2xf32>
    %1126 = arith.mulf %1125, %1124 : vector<12x2xf32>
    %1127 = arith.addf %1122, %1126 : vector<12x2xf32>
    %c25_424 = arith.constant 25 : index
    %c3_425 = arith.constant 3 : index
    %1128 = memref.load %arg6[%c25_424, %c3_425] : memref<30x8xf32, #tpu.memory_space<smem>>
    %1129 = vector.extract_strided_slice %188 {offsets = [2, 0], sizes = [12, 2], strides = [1, 1]} : vector<14x2xf32> to vector<12x2xf32>
    %1130 = vector.broadcast %1128 : f32 to vector<12x2xf32>
    %1131 = arith.mulf %1130, %1129 : vector<12x2xf32>
    %1132 = arith.addf %1127, %1131 : vector<12x2xf32>
    %c25_426 = arith.constant 25 : index
    %c4_427 = arith.constant 4 : index
    %1133 = memref.load %arg6[%c25_426, %c4_427] : memref<30x8xf32, #tpu.memory_space<smem>>
    %1134 = vector.extract_strided_slice %235 {offsets = [2, 0], sizes = [12, 2], strides = [1, 1]} : vector<14x2xf32> to vector<12x2xf32>
    %1135 = vector.broadcast %1133 : f32 to vector<12x2xf32>
    %1136 = arith.mulf %1135, %1134 : vector<12x2xf32>
    %1137 = arith.addf %1132, %1136 : vector<12x2xf32>
    %c25_428 = arith.constant 25 : index
    %c5_429 = arith.constant 5 : index
    %1138 = memref.load %arg6[%c25_428, %c5_429] : memref<30x8xf32, #tpu.memory_space<smem>>
    %1139 = vector.extract_strided_slice %282 {offsets = [2, 0], sizes = [12, 2], strides = [1, 1]} : vector<14x2xf32> to vector<12x2xf32>
    %1140 = vector.broadcast %1138 : f32 to vector<12x2xf32>
    %1141 = arith.mulf %1140, %1139 : vector<12x2xf32>
    %1142 = arith.addf %1137, %1141 : vector<12x2xf32>
    %c25_430 = arith.constant 25 : index
    %c6_431 = arith.constant 6 : index
    %1143 = memref.load %arg6[%c25_430, %c6_431] : memref<30x8xf32, #tpu.memory_space<smem>>
    %1144 = vector.extract_strided_slice %329 {offsets = [2, 0], sizes = [12, 2], strides = [1, 1]} : vector<14x2xf32> to vector<12x2xf32>
    %1145 = vector.broadcast %1143 : f32 to vector<12x2xf32>
    %1146 = arith.mulf %1145, %1144 : vector<12x2xf32>
    %1147 = arith.addf %1142, %1146 : vector<12x2xf32>
    %c25_432 = arith.constant 25 : index
    %c7_433 = arith.constant 7 : index
    %1148 = memref.load %arg6[%c25_432, %c7_433] : memref<30x8xf32, #tpu.memory_space<smem>>
    %1149 = vector.extract_strided_slice %376 {offsets = [2, 0], sizes = [12, 2], strides = [1, 1]} : vector<14x2xf32> to vector<12x2xf32>
    %1150 = vector.broadcast %1148 : f32 to vector<12x2xf32>
    %1151 = arith.mulf %1150, %1149 : vector<12x2xf32>
    %1152 = arith.addf %1147, %1151 : vector<12x2xf32>
    %c5_434 = arith.constant 5 : index
    %1153 = memref.load %arg7[%c5_434] : memref<10xf32, #tpu.memory_space<smem>>
    %1154 = vector.broadcast %1153 : f32 to vector<12x2xf32>
    %1155 = arith.addf %1152, %1154 : vector<12x2xf32>
    %cst_435 = arith.constant 0.000000e+00 : f32
    %1156 = vector.broadcast %cst_435 : f32 to vector<12x2xf32>
    %1157 = arith.maximumf %1155, %1156 : vector<12x2xf32>
    %c5_436 = arith.constant 5 : index
    %c0_437 = arith.constant 0 : index
    %c0_438 = arith.constant 0 : index
    %1158 = vector.load %arg1[%c5_436, %c0_437, %c0_438] : memref<10x12x2xi32, #tpu.memory_space<vmem>>, vector<1x12x2xi32>
    %1159 = vector.shape_cast %1158 : vector<1x12x2xi32> to vector<12x2xi32>
    %c429496730_i32_439 = arith.constant 429496730 : i32
    %1160 = vector.broadcast %c429496730_i32_439 : i32 to vector<12x2xi32>
    %1161 = arith.cmpi uge, %1159, %1160 : vector<12x2xi32>
    %cst_440 = arith.constant 0.000000e+00 : f32
    %1162 = vector.broadcast %cst_440 : f32 to vector<12x2xf32>
    %1163 = arith.select %1161, %1157, %1162 : vector<12x2xi1>, vector<12x2xf32>
    %c60 = arith.constant 60 : index
    %c0_441 = arith.constant 0 : index
    %1164 = vector.load %arg13[%c60, %c0_441] : memref<128x2xf32, #tpu.memory_space<vmem>>, vector<12x2xf32>
    tpu.vector_store %arg13[%c60, %c0_441], %1163 {strides = array<i32>} : memref<128x2xf32, #tpu.memory_space<vmem>>, vector<12x2xf32>,
    %c6_442 = arith.constant 6 : index
    %c0_443 = arith.constant 0 : index
    %1165 = memref.load %arg6[%c6_442, %c0_443] : memref<30x8xf32, #tpu.memory_space<smem>>
    %1166 = vector.extract_strided_slice %47 {offsets = [0, 0], sizes = [12, 2], strides = [1, 1]} : vector<14x2xf32> to vector<12x2xf32>
    %1167 = vector.broadcast %1165 : f32 to vector<12x2xf32>
    %1168 = arith.mulf %1167, %1166 : vector<12x2xf32>
    %c6_444 = arith.constant 6 : index
    %c1_445 = arith.constant 1 : index
    %1169 = memref.load %arg6[%c6_444, %c1_445] : memref<30x8xf32, #tpu.memory_space<smem>>
    %1170 = vector.extract_strided_slice %94 {offsets = [0, 0], sizes = [12, 2], strides = [1, 1]} : vector<14x2xf32> to vector<12x2xf32>
    %1171 = vector.broadcast %1169 : f32 to vector<12x2xf32>
    %1172 = arith.mulf %1171, %1170 : vector<12x2xf32>
    %1173 = arith.addf %1168, %1172 : vector<12x2xf32>
    %c6_446 = arith.constant 6 : index
    %c2_447 = arith.constant 2 : index
    %1174 = memref.load %arg6[%c6_446, %c2_447] : memref<30x8xf32, #tpu.memory_space<smem>>
    %1175 = vector.extract_strided_slice %141 {offsets = [0, 0], sizes = [12, 2], strides = [1, 1]} : vector<14x2xf32> to vector<12x2xf32>
    %1176 = vector.broadcast %1174 : f32 to vector<12x2xf32>
    %1177 = arith.mulf %1176, %1175 : vector<12x2xf32>
    %1178 = arith.addf %1173, %1177 : vector<12x2xf32>
    %c6_448 = arith.constant 6 : index
    %c3_449 = arith.constant 3 : index
    %1179 = memref.load %arg6[%c6_448, %c3_449] : memref<30x8xf32, #tpu.memory_space<smem>>
    %1180 = vector.extract_strided_slice %188 {offsets = [0, 0], sizes = [12, 2], strides = [1, 1]} : vector<14x2xf32> to vector<12x2xf32>
    %1181 = vector.broadcast %1179 : f32 to vector<12x2xf32>
    %1182 = arith.mulf %1181, %1180 : vector<12x2xf32>
    %1183 = arith.addf %1178, %1182 : vector<12x2xf32>
    %c6_450 = arith.constant 6 : index
    %c4_451 = arith.constant 4 : index
    %1184 = memref.load %arg6[%c6_450, %c4_451] : memref<30x8xf32, #tpu.memory_space<smem>>
    %1185 = vector.extract_strided_slice %235 {offsets = [0, 0], sizes = [12, 2], strides = [1, 1]} : vector<14x2xf32> to vector<12x2xf32>
    %1186 = vector.broadcast %1184 : f32 to vector<12x2xf32>
    %1187 = arith.mulf %1186, %1185 : vector<12x2xf32>
    %1188 = arith.addf %1183, %1187 : vector<12x2xf32>
    %c6_452 = arith.constant 6 : index
    %c5_453 = arith.constant 5 : index
    %1189 = memref.load %arg6[%c6_452, %c5_453] : memref<30x8xf32, #tpu.memory_space<smem>>
    %1190 = vector.extract_strided_slice %282 {offsets = [0, 0], sizes = [12, 2], strides = [1, 1]} : vector<14x2xf32> to vector<12x2xf32>
    %1191 = vector.broadcast %1189 : f32 to vector<12x2xf32>
    %1192 = arith.mulf %1191, %1190 : vector<12x2xf32>
    %1193 = arith.addf %1188, %1192 : vector<12x2xf32>
    %c6_454 = arith.constant 6 : index
    %c6_455 = arith.constant 6 : index
    %1194 = memref.load %arg6[%c6_454, %c6_455] : memref<30x8xf32, #tpu.memory_space<smem>>
    %1195 = vector.extract_strided_slice %329 {offsets = [0, 0], sizes = [12, 2], strides = [1, 1]} : vector<14x2xf32> to vector<12x2xf32>
    %1196 = vector.broadcast %1194 : f32 to vector<12x2xf32>
    %1197 = arith.mulf %1196, %1195 : vector<12x2xf32>
    %1198 = arith.addf %1193, %1197 : vector<12x2xf32>
    %c6_456 = arith.constant 6 : index
    %c7_457 = arith.constant 7 : index
    %1199 = memref.load %arg6[%c6_456, %c7_457] : memref<30x8xf32, #tpu.memory_space<smem>>
    %1200 = vector.extract_strided_slice %376 {offsets = [0, 0], sizes = [12, 2], strides = [1, 1]} : vector<14x2xf32> to vector<12x2xf32>
    %1201 = vector.broadcast %1199 : f32 to vector<12x2xf32>
    %1202 = arith.mulf %1201, %1200 : vector<12x2xf32>
    %1203 = arith.addf %1198, %1202 : vector<12x2xf32>
    %c16 = arith.constant 16 : index
    %c0_458 = arith.constant 0 : index
    %1204 = memref.load %arg6[%c16, %c0_458] : memref<30x8xf32, #tpu.memory_space<smem>>
    %1205 = vector.extract_strided_slice %47 {offsets = [1, 0], sizes = [12, 2], strides = [1, 1]} : vector<14x2xf32> to vector<12x2xf32>
    %1206 = vector.broadcast %1204 : f32 to vector<12x2xf32>
    %1207 = arith.mulf %1206, %1205 : vector<12x2xf32>
    %1208 = arith.addf %1203, %1207 : vector<12x2xf32>
    %c16_459 = arith.constant 16 : index
    %c1_460 = arith.constant 1 : index
    %1209 = memref.load %arg6[%c16_459, %c1_460] : memref<30x8xf32, #tpu.memory_space<smem>>
    %1210 = vector.extract_strided_slice %94 {offsets = [1, 0], sizes = [12, 2], strides = [1, 1]} : vector<14x2xf32> to vector<12x2xf32>
    %1211 = vector.broadcast %1209 : f32 to vector<12x2xf32>
    %1212 = arith.mulf %1211, %1210 : vector<12x2xf32>
    %1213 = arith.addf %1208, %1212 : vector<12x2xf32>
    %c16_461 = arith.constant 16 : index
    %c2_462 = arith.constant 2 : index
    %1214 = memref.load %arg6[%c16_461, %c2_462] : memref<30x8xf32, #tpu.memory_space<smem>>
    %1215 = vector.extract_strided_slice %141 {offsets = [1, 0], sizes = [12, 2], strides = [1, 1]} : vector<14x2xf32> to vector<12x2xf32>
    %1216 = vector.broadcast %1214 : f32 to vector<12x2xf32>
    %1217 = arith.mulf %1216, %1215 : vector<12x2xf32>
    %1218 = arith.addf %1213, %1217 : vector<12x2xf32>
    %c16_463 = arith.constant 16 : index
    %c3_464 = arith.constant 3 : index
    %1219 = memref.load %arg6[%c16_463, %c3_464] : memref<30x8xf32, #tpu.memory_space<smem>>
    %1220 = vector.extract_strided_slice %188 {offsets = [1, 0], sizes = [12, 2], strides = [1, 1]} : vector<14x2xf32> to vector<12x2xf32>
    %1221 = vector.broadcast %1219 : f32 to vector<12x2xf32>
    %1222 = arith.mulf %1221, %1220 : vector<12x2xf32>
    %1223 = arith.addf %1218, %1222 : vector<12x2xf32>
    %c16_465 = arith.constant 16 : index
    %c4_466 = arith.constant 4 : index
    %1224 = memref.load %arg6[%c16_465, %c4_466] : memref<30x8xf32, #tpu.memory_space<smem>>
    %1225 = vector.extract_strided_slice %235 {offsets = [1, 0], sizes = [12, 2], strides = [1, 1]} : vector<14x2xf32> to vector<12x2xf32>
    %1226 = vector.broadcast %1224 : f32 to vector<12x2xf32>
    %1227 = arith.mulf %1226, %1225 : vector<12x2xf32>
    %1228 = arith.addf %1223, %1227 : vector<12x2xf32>
    %c16_467 = arith.constant 16 : index
    %c5_468 = arith.constant 5 : index
    %1229 = memref.load %arg6[%c16_467, %c5_468] : memref<30x8xf32, #tpu.memory_space<smem>>
    %1230 = vector.extract_strided_slice %282 {offsets = [1, 0], sizes = [12, 2], strides = [1, 1]} : vector<14x2xf32> to vector<12x2xf32>
    %1231 = vector.broadcast %1229 : f32 to vector<12x2xf32>
    %1232 = arith.mulf %1231, %1230 : vector<12x2xf32>
    %1233 = arith.addf %1228, %1232 : vector<12x2xf32>
    %c16_469 = arith.constant 16 : index
    %c6_470 = arith.constant 6 : index
    %1234 = memref.load %arg6[%c16_469, %c6_470] : memref<30x8xf32, #tpu.memory_space<smem>>
    %1235 = vector.extract_strided_slice %329 {offsets = [1, 0], sizes = [12, 2], strides = [1, 1]} : vector<14x2xf32> to vector<12x2xf32>
    %1236 = vector.broadcast %1234 : f32 to vector<12x2xf32>
    %1237 = arith.mulf %1236, %1235 : vector<12x2xf32>
    %1238 = arith.addf %1233, %1237 : vector<12x2xf32>
    %c16_471 = arith.constant 16 : index
    %c7_472 = arith.constant 7 : index
    %1239 = memref.load %arg6[%c16_471, %c7_472] : memref<30x8xf32, #tpu.memory_space<smem>>
    %1240 = vector.extract_strided_slice %376 {offsets = [1, 0], sizes = [12, 2], strides = [1, 1]} : vector<14x2xf32> to vector<12x2xf32>
    %1241 = vector.broadcast %1239 : f32 to vector<12x2xf32>
    %1242 = arith.mulf %1241, %1240 : vector<12x2xf32>
    %1243 = arith.addf %1238, %1242 : vector<12x2xf32>
    %c26 = arith.constant 26 : index
    %c0_473 = arith.constant 0 : index
    %1244 = memref.load %arg6[%c26, %c0_473] : memref<30x8xf32, #tpu.memory_space<smem>>
    %1245 = vector.extract_strided_slice %47 {offsets = [2, 0], sizes = [12, 2], strides = [1, 1]} : vector<14x2xf32> to vector<12x2xf32>
    %1246 = vector.broadcast %1244 : f32 to vector<12x2xf32>
    %1247 = arith.mulf %1246, %1245 : vector<12x2xf32>
    %1248 = arith.addf %1243, %1247 : vector<12x2xf32>
    %c26_474 = arith.constant 26 : index
    %c1_475 = arith.constant 1 : index
    %1249 = memref.load %arg6[%c26_474, %c1_475] : memref<30x8xf32, #tpu.memory_space<smem>>
    %1250 = vector.extract_strided_slice %94 {offsets = [2, 0], sizes = [12, 2], strides = [1, 1]} : vector<14x2xf32> to vector<12x2xf32>
    %1251 = vector.broadcast %1249 : f32 to vector<12x2xf32>
    %1252 = arith.mulf %1251, %1250 : vector<12x2xf32>
    %1253 = arith.addf %1248, %1252 : vector<12x2xf32>
    %c26_476 = arith.constant 26 : index
    %c2_477 = arith.constant 2 : index
    %1254 = memref.load %arg6[%c26_476, %c2_477] : memref<30x8xf32, #tpu.memory_space<smem>>
    %1255 = vector.extract_strided_slice %141 {offsets = [2, 0], sizes = [12, 2], strides = [1, 1]} : vector<14x2xf32> to vector<12x2xf32>
    %1256 = vector.broadcast %1254 : f32 to vector<12x2xf32>
    %1257 = arith.mulf %1256, %1255 : vector<12x2xf32>
    %1258 = arith.addf %1253, %1257 : vector<12x2xf32>
    %c26_478 = arith.constant 26 : index
    %c3_479 = arith.constant 3 : index
    %1259 = memref.load %arg6[%c26_478, %c3_479] : memref<30x8xf32, #tpu.memory_space<smem>>
    %1260 = vector.extract_strided_slice %188 {offsets = [2, 0], sizes = [12, 2], strides = [1, 1]} : vector<14x2xf32> to vector<12x2xf32>
    %1261 = vector.broadcast %1259 : f32 to vector<12x2xf32>
    %1262 = arith.mulf %1261, %1260 : vector<12x2xf32>
    %1263 = arith.addf %1258, %1262 : vector<12x2xf32>
    %c26_480 = arith.constant 26 : index
    %c4_481 = arith.constant 4 : index
    %1264 = memref.load %arg6[%c26_480, %c4_481] : memref<30x8xf32, #tpu.memory_space<smem>>
    %1265 = vector.extract_strided_slice %235 {offsets = [2, 0], sizes = [12, 2], strides = [1, 1]} : vector<14x2xf32> to vector<12x2xf32>
    %1266 = vector.broadcast %1264 : f32 to vector<12x2xf32>
    %1267 = arith.mulf %1266, %1265 : vector<12x2xf32>
    %1268 = arith.addf %1263, %1267 : vector<12x2xf32>
    %c26_482 = arith.constant 26 : index
    %c5_483 = arith.constant 5 : index
    %1269 = memref.load %arg6[%c26_482, %c5_483] : memref<30x8xf32, #tpu.memory_space<smem>>
    %1270 = vector.extract_strided_slice %282 {offsets = [2, 0], sizes = [12, 2], strides = [1, 1]} : vector<14x2xf32> to vector<12x2xf32>
    %1271 = vector.broadcast %1269 : f32 to vector<12x2xf32>
    %1272 = arith.mulf %1271, %1270 : vector<12x2xf32>
    %1273 = arith.addf %1268, %1272 : vector<12x2xf32>
    %c26_484 = arith.constant 26 : index
    %c6_485 = arith.constant 6 : index
    %1274 = memref.load %arg6[%c26_484, %c6_485] : memref<30x8xf32, #tpu.memory_space<smem>>
    %1275 = vector.extract_strided_slice %329 {offsets = [2, 0], sizes = [12, 2], strides = [1, 1]} : vector<14x2xf32> to vector<12x2xf32>
    %1276 = vector.broadcast %1274 : f32 to vector<12x2xf32>
    %1277 = arith.mulf %1276, %1275 : vector<12x2xf32>
    %1278 = arith.addf %1273, %1277 : vector<12x2xf32>
    %c26_486 = arith.constant 26 : index
    %c7_487 = arith.constant 7 : index
    %1279 = memref.load %arg6[%c26_486, %c7_487] : memref<30x8xf32, #tpu.memory_space<smem>>
    %1280 = vector.extract_strided_slice %376 {offsets = [2, 0], sizes = [12, 2], strides = [1, 1]} : vector<14x2xf32> to vector<12x2xf32>
    %1281 = vector.broadcast %1279 : f32 to vector<12x2xf32>
    %1282 = arith.mulf %1281, %1280 : vector<12x2xf32>
    %1283 = arith.addf %1278, %1282 : vector<12x2xf32>
    %c6_488 = arith.constant 6 : index
    %1284 = memref.load %arg7[%c6_488] : memref<10xf32, #tpu.memory_space<smem>>
    %1285 = vector.broadcast %1284 : f32 to vector<12x2xf32>
    %1286 = arith.addf %1283, %1285 : vector<12x2xf32>
    %cst_489 = arith.constant 0.000000e+00 : f32
    %1287 = vector.broadcast %cst_489 : f32 to vector<12x2xf32>
    %1288 = arith.maximumf %1286, %1287 : vector<12x2xf32>
    %c6_490 = arith.constant 6 : index
    %c0_491 = arith.constant 0 : index
    %c0_492 = arith.constant 0 : index
    %1289 = vector.load %arg1[%c6_490, %c0_491, %c0_492] : memref<10x12x2xi32, #tpu.memory_space<vmem>>, vector<1x12x2xi32>
    %1290 = vector.shape_cast %1289 : vector<1x12x2xi32> to vector<12x2xi32>
    %c429496730_i32_493 = arith.constant 429496730 : i32
    %1291 = vector.broadcast %c429496730_i32_493 : i32 to vector<12x2xi32>
    %1292 = arith.cmpi uge, %1290, %1291 : vector<12x2xi32>
    %cst_494 = arith.constant 0.000000e+00 : f32
    %1293 = vector.broadcast %cst_494 : f32 to vector<12x2xf32>
    %1294 = arith.select %1292, %1288, %1293 : vector<12x2xi1>, vector<12x2xf32>
    %c72 = arith.constant 72 : index
    %c0_495 = arith.constant 0 : index
    %1295 = vector.load %arg13[%c72, %c0_495] : memref<128x2xf32, #tpu.memory_space<vmem>>, vector<12x2xf32>
    tpu.vector_store %arg13[%c72, %c0_495], %1294 {strides = array<i32>} : memref<128x2xf32, #tpu.memory_space<vmem>>, vector<12x2xf32>,
    %c7_496 = arith.constant 7 : index
    %c0_497 = arith.constant 0 : index
    %1296 = memref.load %arg6[%c7_496, %c0_497] : memref<30x8xf32, #tpu.memory_space<smem>>
    %1297 = vector.extract_strided_slice %47 {offsets = [0, 0], sizes = [12, 2], strides = [1, 1]} : vector<14x2xf32> to vector<12x2xf32>
    %1298 = vector.broadcast %1296 : f32 to vector<12x2xf32>
    %1299 = arith.mulf %1298, %1297 : vector<12x2xf32>
    %c7_498 = arith.constant 7 : index
    %c1_499 = arith.constant 1 : index
    %1300 = memref.load %arg6[%c7_498, %c1_499] : memref<30x8xf32, #tpu.memory_space<smem>>
    %1301 = vector.extract_strided_slice %94 {offsets = [0, 0], sizes = [12, 2], strides = [1, 1]} : vector<14x2xf32> to vector<12x2xf32>
    %1302 = vector.broadcast %1300 : f32 to vector<12x2xf32>
    %1303 = arith.mulf %1302, %1301 : vector<12x2xf32>
    %1304 = arith.addf %1299, %1303 : vector<12x2xf32>
    %c7_500 = arith.constant 7 : index
    %c2_501 = arith.constant 2 : index
    %1305 = memref.load %arg6[%c7_500, %c2_501] : memref<30x8xf32, #tpu.memory_space<smem>>
    %1306 = vector.extract_strided_slice %141 {offsets = [0, 0], sizes = [12, 2], strides = [1, 1]} : vector<14x2xf32> to vector<12x2xf32>
    %1307 = vector.broadcast %1305 : f32 to vector<12x2xf32>
    %1308 = arith.mulf %1307, %1306 : vector<12x2xf32>
    %1309 = arith.addf %1304, %1308 : vector<12x2xf32>
    %c7_502 = arith.constant 7 : index
    %c3_503 = arith.constant 3 : index
    %1310 = memref.load %arg6[%c7_502, %c3_503] : memref<30x8xf32, #tpu.memory_space<smem>>
    %1311 = vector.extract_strided_slice %188 {offsets = [0, 0], sizes = [12, 2], strides = [1, 1]} : vector<14x2xf32> to vector<12x2xf32>
    %1312 = vector.broadcast %1310 : f32 to vector<12x2xf32>
    %1313 = arith.mulf %1312, %1311 : vector<12x2xf32>
    %1314 = arith.addf %1309, %1313 : vector<12x2xf32>
    %c7_504 = arith.constant 7 : index
    %c4_505 = arith.constant 4 : index
    %1315 = memref.load %arg6[%c7_504, %c4_505] : memref<30x8xf32, #tpu.memory_space<smem>>
    %1316 = vector.extract_strided_slice %235 {offsets = [0, 0], sizes = [12, 2], strides = [1, 1]} : vector<14x2xf32> to vector<12x2xf32>
    %1317 = vector.broadcast %1315 : f32 to vector<12x2xf32>
    %1318 = arith.mulf %1317, %1316 : vector<12x2xf32>
    %1319 = arith.addf %1314, %1318 : vector<12x2xf32>
    %c7_506 = arith.constant 7 : index
    %c5_507 = arith.constant 5 : index
    %1320 = memref.load %arg6[%c7_506, %c5_507] : memref<30x8xf32, #tpu.memory_space<smem>>
    %1321 = vector.extract_strided_slice %282 {offsets = [0, 0], sizes = [12, 2], strides = [1, 1]} : vector<14x2xf32> to vector<12x2xf32>
    %1322 = vector.broadcast %1320 : f32 to vector<12x2xf32>
    %1323 = arith.mulf %1322, %1321 : vector<12x2xf32>
    %1324 = arith.addf %1319, %1323 : vector<12x2xf32>
    %c7_508 = arith.constant 7 : index
    %c6_509 = arith.constant 6 : index
    %1325 = memref.load %arg6[%c7_508, %c6_509] : memref<30x8xf32, #tpu.memory_space<smem>>
    %1326 = vector.extract_strided_slice %329 {offsets = [0, 0], sizes = [12, 2], strides = [1, 1]} : vector<14x2xf32> to vector<12x2xf32>
    %1327 = vector.broadcast %1325 : f32 to vector<12x2xf32>
    %1328 = arith.mulf %1327, %1326 : vector<12x2xf32>
    %1329 = arith.addf %1324, %1328 : vector<12x2xf32>
    %c7_510 = arith.constant 7 : index
    %c7_511 = arith.constant 7 : index
    %1330 = memref.load %arg6[%c7_510, %c7_511] : memref<30x8xf32, #tpu.memory_space<smem>>
    %1331 = vector.extract_strided_slice %376 {offsets = [0, 0], sizes = [12, 2], strides = [1, 1]} : vector<14x2xf32> to vector<12x2xf32>
    %1332 = vector.broadcast %1330 : f32 to vector<12x2xf32>
    %1333 = arith.mulf %1332, %1331 : vector<12x2xf32>
    %1334 = arith.addf %1329, %1333 : vector<12x2xf32>
    %c17 = arith.constant 17 : index
    %c0_512 = arith.constant 0 : index
    %1335 = memref.load %arg6[%c17, %c0_512] : memref<30x8xf32, #tpu.memory_space<smem>>
    %1336 = vector.extract_strided_slice %47 {offsets = [1, 0], sizes = [12, 2], strides = [1, 1]} : vector<14x2xf32> to vector<12x2xf32>
    %1337 = vector.broadcast %1335 : f32 to vector<12x2xf32>
    %1338 = arith.mulf %1337, %1336 : vector<12x2xf32>
    %1339 = arith.addf %1334, %1338 : vector<12x2xf32>
    %c17_513 = arith.constant 17 : index
    %c1_514 = arith.constant 1 : index
    %1340 = memref.load %arg6[%c17_513, %c1_514] : memref<30x8xf32, #tpu.memory_space<smem>>
    %1341 = vector.extract_strided_slice %94 {offsets = [1, 0], sizes = [12, 2], strides = [1, 1]} : vector<14x2xf32> to vector<12x2xf32>
    %1342 = vector.broadcast %1340 : f32 to vector<12x2xf32>
    %1343 = arith.mulf %1342, %1341 : vector<12x2xf32>
    %1344 = arith.addf %1339, %1343 : vector<12x2xf32>
    %c17_515 = arith.constant 17 : index
    %c2_516 = arith.constant 2 : index
    %1345 = memref.load %arg6[%c17_515, %c2_516] : memref<30x8xf32, #tpu.memory_space<smem>>
    %1346 = vector.extract_strided_slice %141 {offsets = [1, 0], sizes = [12, 2], strides = [1, 1]} : vector<14x2xf32> to vector<12x2xf32>
    %1347 = vector.broadcast %1345 : f32 to vector<12x2xf32>
    %1348 = arith.mulf %1347, %1346 : vector<12x2xf32>
    %1349 = arith.addf %1344, %1348 : vector<12x2xf32>
    %c17_517 = arith.constant 17 : index
    %c3_518 = arith.constant 3 : index
    %1350 = memref.load %arg6[%c17_517, %c3_518] : memref<30x8xf32, #tpu.memory_space<smem>>
    %1351 = vector.extract_strided_slice %188 {offsets = [1, 0], sizes = [12, 2], strides = [1, 1]} : vector<14x2xf32> to vector<12x2xf32>
    %1352 = vector.broadcast %1350 : f32 to vector<12x2xf32>
    %1353 = arith.mulf %1352, %1351 : vector<12x2xf32>
    %1354 = arith.addf %1349, %1353 : vector<12x2xf32>
    %c17_519 = arith.constant 17 : index
    %c4_520 = arith.constant 4 : index
    %1355 = memref.load %arg6[%c17_519, %c4_520] : memref<30x8xf32, #tpu.memory_space<smem>>
    %1356 = vector.extract_strided_slice %235 {offsets = [1, 0], sizes = [12, 2], strides = [1, 1]} : vector<14x2xf32> to vector<12x2xf32>
    %1357 = vector.broadcast %1355 : f32 to vector<12x2xf32>
    %1358 = arith.mulf %1357, %1356 : vector<12x2xf32>
    %1359 = arith.addf %1354, %1358 : vector<12x2xf32>
    %c17_521 = arith.constant 17 : index
    %c5_522 = arith.constant 5 : index
    %1360 = memref.load %arg6[%c17_521, %c5_522] : memref<30x8xf32, #tpu.memory_space<smem>>
    %1361 = vector.extract_strided_slice %282 {offsets = [1, 0], sizes = [12, 2], strides = [1, 1]} : vector<14x2xf32> to vector<12x2xf32>
    %1362 = vector.broadcast %1360 : f32 to vector<12x2xf32>
    %1363 = arith.mulf %1362, %1361 : vector<12x2xf32>
    %1364 = arith.addf %1359, %1363 : vector<12x2xf32>
    %c17_523 = arith.constant 17 : index
    %c6_524 = arith.constant 6 : index
    %1365 = memref.load %arg6[%c17_523, %c6_524] : memref<30x8xf32, #tpu.memory_space<smem>>
    %1366 = vector.extract_strided_slice %329 {offsets = [1, 0], sizes = [12, 2], strides = [1, 1]} : vector<14x2xf32> to vector<12x2xf32>
    %1367 = vector.broadcast %1365 : f32 to vector<12x2xf32>
    %1368 = arith.mulf %1367, %1366 : vector<12x2xf32>
    %1369 = arith.addf %1364, %1368 : vector<12x2xf32>
    %c17_525 = arith.constant 17 : index
    %c7_526 = arith.constant 7 : index
    %1370 = memref.load %arg6[%c17_525, %c7_526] : memref<30x8xf32, #tpu.memory_space<smem>>
    %1371 = vector.extract_strided_slice %376 {offsets = [1, 0], sizes = [12, 2], strides = [1, 1]} : vector<14x2xf32> to vector<12x2xf32>
    %1372 = vector.broadcast %1370 : f32 to vector<12x2xf32>
    %1373 = arith.mulf %1372, %1371 : vector<12x2xf32>
    %1374 = arith.addf %1369, %1373 : vector<12x2xf32>
    %c27 = arith.constant 27 : index
    %c0_527 = arith.constant 0 : index
    %1375 = memref.load %arg6[%c27, %c0_527] : memref<30x8xf32, #tpu.memory_space<smem>>
    %1376 = vector.extract_strided_slice %47 {offsets = [2, 0], sizes = [12, 2], strides = [1, 1]} : vector<14x2xf32> to vector<12x2xf32>
    %1377 = vector.broadcast %1375 : f32 to vector<12x2xf32>
    %1378 = arith.mulf %1377, %1376 : vector<12x2xf32>
    %1379 = arith.addf %1374, %1378 : vector<12x2xf32>
    %c27_528 = arith.constant 27 : index
    %c1_529 = arith.constant 1 : index
    %1380 = memref.load %arg6[%c27_528, %c1_529] : memref<30x8xf32, #tpu.memory_space<smem>>
    %1381 = vector.extract_strided_slice %94 {offsets = [2, 0], sizes = [12, 2], strides = [1, 1]} : vector<14x2xf32> to vector<12x2xf32>
    %1382 = vector.broadcast %1380 : f32 to vector<12x2xf32>
    %1383 = arith.mulf %1382, %1381 : vector<12x2xf32>
    %1384 = arith.addf %1379, %1383 : vector<12x2xf32>
    %c27_530 = arith.constant 27 : index
    %c2_531 = arith.constant 2 : index
    %1385 = memref.load %arg6[%c27_530, %c2_531] : memref<30x8xf32, #tpu.memory_space<smem>>
    %1386 = vector.extract_strided_slice %141 {offsets = [2, 0], sizes = [12, 2], strides = [1, 1]} : vector<14x2xf32> to vector<12x2xf32>
    %1387 = vector.broadcast %1385 : f32 to vector<12x2xf32>
    %1388 = arith.mulf %1387, %1386 : vector<12x2xf32>
    %1389 = arith.addf %1384, %1388 : vector<12x2xf32>
    %c27_532 = arith.constant 27 : index
    %c3_533 = arith.constant 3 : index
    %1390 = memref.load %arg6[%c27_532, %c3_533] : memref<30x8xf32, #tpu.memory_space<smem>>
    %1391 = vector.extract_strided_slice %188 {offsets = [2, 0], sizes = [12, 2], strides = [1, 1]} : vector<14x2xf32> to vector<12x2xf32>
    %1392 = vector.broadcast %1390 : f32 to vector<12x2xf32>
    %1393 = arith.mulf %1392, %1391 : vector<12x2xf32>
    %1394 = arith.addf %1389, %1393 : vector<12x2xf32>
    %c27_534 = arith.constant 27 : index
    %c4_535 = arith.constant 4 : index
    %1395 = memref.load %arg6[%c27_534, %c4_535] : memref<30x8xf32, #tpu.memory_space<smem>>
    %1396 = vector.extract_strided_slice %235 {offsets = [2, 0], sizes = [12, 2], strides = [1, 1]} : vector<14x2xf32> to vector<12x2xf32>
    %1397 = vector.broadcast %1395 : f32 to vector<12x2xf32>
    %1398 = arith.mulf %1397, %1396 : vector<12x2xf32>
    %1399 = arith.addf %1394, %1398 : vector<12x2xf32>
    %c27_536 = arith.constant 27 : index
    %c5_537 = arith.constant 5 : index
    %1400 = memref.load %arg6[%c27_536, %c5_537] : memref<30x8xf32, #tpu.memory_space<smem>>
    %1401 = vector.extract_strided_slice %282 {offsets = [2, 0], sizes = [12, 2], strides = [1, 1]} : vector<14x2xf32> to vector<12x2xf32>
    %1402 = vector.broadcast %1400 : f32 to vector<12x2xf32>
    %1403 = arith.mulf %1402, %1401 : vector<12x2xf32>
    %1404 = arith.addf %1399, %1403 : vector<12x2xf32>
    %c27_538 = arith.constant 27 : index
    %c6_539 = arith.constant 6 : index
    %1405 = memref.load %arg6[%c27_538, %c6_539] : memref<30x8xf32, #tpu.memory_space<smem>>
    %1406 = vector.extract_strided_slice %329 {offsets = [2, 0], sizes = [12, 2], strides = [1, 1]} : vector<14x2xf32> to vector<12x2xf32>
    %1407 = vector.broadcast %1405 : f32 to vector<12x2xf32>
    %1408 = arith.mulf %1407, %1406 : vector<12x2xf32>
    %1409 = arith.addf %1404, %1408 : vector<12x2xf32>
    %c27_540 = arith.constant 27 : index
    %c7_541 = arith.constant 7 : index
    %1410 = memref.load %arg6[%c27_540, %c7_541] : memref<30x8xf32, #tpu.memory_space<smem>>
    %1411 = vector.extract_strided_slice %376 {offsets = [2, 0], sizes = [12, 2], strides = [1, 1]} : vector<14x2xf32> to vector<12x2xf32>
    %1412 = vector.broadcast %1410 : f32 to vector<12x2xf32>
    %1413 = arith.mulf %1412, %1411 : vector<12x2xf32>
    %1414 = arith.addf %1409, %1413 : vector<12x2xf32>
    %c7_542 = arith.constant 7 : index
    %1415 = memref.load %arg7[%c7_542] : memref<10xf32, #tpu.memory_space<smem>>
    %1416 = vector.broadcast %1415 : f32 to vector<12x2xf32>
    %1417 = arith.addf %1414, %1416 : vector<12x2xf32>
    %cst_543 = arith.constant 0.000000e+00 : f32
    %1418 = vector.broadcast %cst_543 : f32 to vector<12x2xf32>
    %1419 = arith.maximumf %1417, %1418 : vector<12x2xf32>
    %c7_544 = arith.constant 7 : index
    %c0_545 = arith.constant 0 : index
    %c0_546 = arith.constant 0 : index
    %1420 = vector.load %arg1[%c7_544, %c0_545, %c0_546] : memref<10x12x2xi32, #tpu.memory_space<vmem>>, vector<1x12x2xi32>
    %1421 = vector.shape_cast %1420 : vector<1x12x2xi32> to vector<12x2xi32>
    %c429496730_i32_547 = arith.constant 429496730 : i32
    %1422 = vector.broadcast %c429496730_i32_547 : i32 to vector<12x2xi32>
    %1423 = arith.cmpi uge, %1421, %1422 : vector<12x2xi32>
    %cst_548 = arith.constant 0.000000e+00 : f32
    %1424 = vector.broadcast %cst_548 : f32 to vector<12x2xf32>
    %1425 = arith.select %1423, %1419, %1424 : vector<12x2xi1>, vector<12x2xf32>
    %c84 = arith.constant 84 : index
    %c0_549 = arith.constant 0 : index
    %1426 = vector.load %arg13[%c84, %c0_549] : memref<128x2xf32, #tpu.memory_space<vmem>>, vector<12x2xf32>
    tpu.vector_store %arg13[%c84, %c0_549], %1425 {strides = array<i32>} : memref<128x2xf32, #tpu.memory_space<vmem>>, vector<12x2xf32>,
    %c8 = arith.constant 8 : index
    %c0_550 = arith.constant 0 : index
    %1427 = memref.load %arg6[%c8, %c0_550] : memref<30x8xf32, #tpu.memory_space<smem>>
    %1428 = vector.extract_strided_slice %47 {offsets = [0, 0], sizes = [12, 2], strides = [1, 1]} : vector<14x2xf32> to vector<12x2xf32>
    %1429 = vector.broadcast %1427 : f32 to vector<12x2xf32>
    %1430 = arith.mulf %1429, %1428 : vector<12x2xf32>
    %c8_551 = arith.constant 8 : index
    %c1_552 = arith.constant 1 : index
    %1431 = memref.load %arg6[%c8_551, %c1_552] : memref<30x8xf32, #tpu.memory_space<smem>>
    %1432 = vector.extract_strided_slice %94 {offsets = [0, 0], sizes = [12, 2], strides = [1, 1]} : vector<14x2xf32> to vector<12x2xf32>
    %1433 = vector.broadcast %1431 : f32 to vector<12x2xf32>
    %1434 = arith.mulf %1433, %1432 : vector<12x2xf32>
    %1435 = arith.addf %1430, %1434 : vector<12x2xf32>
    %c8_553 = arith.constant 8 : index
    %c2_554 = arith.constant 2 : index
    %1436 = memref.load %arg6[%c8_553, %c2_554] : memref<30x8xf32, #tpu.memory_space<smem>>
    %1437 = vector.extract_strided_slice %141 {offsets = [0, 0], sizes = [12, 2], strides = [1, 1]} : vector<14x2xf32> to vector<12x2xf32>
    %1438 = vector.broadcast %1436 : f32 to vector<12x2xf32>
    %1439 = arith.mulf %1438, %1437 : vector<12x2xf32>
    %1440 = arith.addf %1435, %1439 : vector<12x2xf32>
    %c8_555 = arith.constant 8 : index
    %c3_556 = arith.constant 3 : index
    %1441 = memref.load %arg6[%c8_555, %c3_556] : memref<30x8xf32, #tpu.memory_space<smem>>
    %1442 = vector.extract_strided_slice %188 {offsets = [0, 0], sizes = [12, 2], strides = [1, 1]} : vector<14x2xf32> to vector<12x2xf32>
    %1443 = vector.broadcast %1441 : f32 to vector<12x2xf32>
    %1444 = arith.mulf %1443, %1442 : vector<12x2xf32>
    %1445 = arith.addf %1440, %1444 : vector<12x2xf32>
    %c8_557 = arith.constant 8 : index
    %c4_558 = arith.constant 4 : index
    %1446 = memref.load %arg6[%c8_557, %c4_558] : memref<30x8xf32, #tpu.memory_space<smem>>
    %1447 = vector.extract_strided_slice %235 {offsets = [0, 0], sizes = [12, 2], strides = [1, 1]} : vector<14x2xf32> to vector<12x2xf32>
    %1448 = vector.broadcast %1446 : f32 to vector<12x2xf32>
    %1449 = arith.mulf %1448, %1447 : vector<12x2xf32>
    %1450 = arith.addf %1445, %1449 : vector<12x2xf32>
    %c8_559 = arith.constant 8 : index
    %c5_560 = arith.constant 5 : index
    %1451 = memref.load %arg6[%c8_559, %c5_560] : memref<30x8xf32, #tpu.memory_space<smem>>
    %1452 = vector.extract_strided_slice %282 {offsets = [0, 0], sizes = [12, 2], strides = [1, 1]} : vector<14x2xf32> to vector<12x2xf32>
    %1453 = vector.broadcast %1451 : f32 to vector<12x2xf32>
    %1454 = arith.mulf %1453, %1452 : vector<12x2xf32>
    %1455 = arith.addf %1450, %1454 : vector<12x2xf32>
    %c8_561 = arith.constant 8 : index
    %c6_562 = arith.constant 6 : index
    %1456 = memref.load %arg6[%c8_561, %c6_562] : memref<30x8xf32, #tpu.memory_space<smem>>
    %1457 = vector.extract_strided_slice %329 {offsets = [0, 0], sizes = [12, 2], strides = [1, 1]} : vector<14x2xf32> to vector<12x2xf32>
    %1458 = vector.broadcast %1456 : f32 to vector<12x2xf32>
    %1459 = arith.mulf %1458, %1457 : vector<12x2xf32>
    %1460 = arith.addf %1455, %1459 : vector<12x2xf32>
    %c8_563 = arith.constant 8 : index
    %c7_564 = arith.constant 7 : index
    %1461 = memref.load %arg6[%c8_563, %c7_564] : memref<30x8xf32, #tpu.memory_space<smem>>
    %1462 = vector.extract_strided_slice %376 {offsets = [0, 0], sizes = [12, 2], strides = [1, 1]} : vector<14x2xf32> to vector<12x2xf32>
    %1463 = vector.broadcast %1461 : f32 to vector<12x2xf32>
    %1464 = arith.mulf %1463, %1462 : vector<12x2xf32>
    %1465 = arith.addf %1460, %1464 : vector<12x2xf32>
    %c18 = arith.constant 18 : index
    %c0_565 = arith.constant 0 : index
    %1466 = memref.load %arg6[%c18, %c0_565] : memref<30x8xf32, #tpu.memory_space<smem>>
    %1467 = vector.extract_strided_slice %47 {offsets = [1, 0], sizes = [12, 2], strides = [1, 1]} : vector<14x2xf32> to vector<12x2xf32>
    %1468 = vector.broadcast %1466 : f32 to vector<12x2xf32>
    %1469 = arith.mulf %1468, %1467 : vector<12x2xf32>
    %1470 = arith.addf %1465, %1469 : vector<12x2xf32>
    %c18_566 = arith.constant 18 : index
    %c1_567 = arith.constant 1 : index
    %1471 = memref.load %arg6[%c18_566, %c1_567] : memref<30x8xf32, #tpu.memory_space<smem>>
    %1472 = vector.extract_strided_slice %94 {offsets = [1, 0], sizes = [12, 2], strides = [1, 1]} : vector<14x2xf32> to vector<12x2xf32>
    %1473 = vector.broadcast %1471 : f32 to vector<12x2xf32>
    %1474 = arith.mulf %1473, %1472 : vector<12x2xf32>
    %1475 = arith.addf %1470, %1474 : vector<12x2xf32>
    %c18_568 = arith.constant 18 : index
    %c2_569 = arith.constant 2 : index
    %1476 = memref.load %arg6[%c18_568, %c2_569] : memref<30x8xf32, #tpu.memory_space<smem>>
    %1477 = vector.extract_strided_slice %141 {offsets = [1, 0], sizes = [12, 2], strides = [1, 1]} : vector<14x2xf32> to vector<12x2xf32>
    %1478 = vector.broadcast %1476 : f32 to vector<12x2xf32>
    %1479 = arith.mulf %1478, %1477 : vector<12x2xf32>
    %1480 = arith.addf %1475, %1479 : vector<12x2xf32>
    %c18_570 = arith.constant 18 : index
    %c3_571 = arith.constant 3 : index
    %1481 = memref.load %arg6[%c18_570, %c3_571] : memref<30x8xf32, #tpu.memory_space<smem>>
    %1482 = vector.extract_strided_slice %188 {offsets = [1, 0], sizes = [12, 2], strides = [1, 1]} : vector<14x2xf32> to vector<12x2xf32>
    %1483 = vector.broadcast %1481 : f32 to vector<12x2xf32>
    %1484 = arith.mulf %1483, %1482 : vector<12x2xf32>
    %1485 = arith.addf %1480, %1484 : vector<12x2xf32>
    %c18_572 = arith.constant 18 : index
    %c4_573 = arith.constant 4 : index
    %1486 = memref.load %arg6[%c18_572, %c4_573] : memref<30x8xf32, #tpu.memory_space<smem>>
    %1487 = vector.extract_strided_slice %235 {offsets = [1, 0], sizes = [12, 2], strides = [1, 1]} : vector<14x2xf32> to vector<12x2xf32>
    %1488 = vector.broadcast %1486 : f32 to vector<12x2xf32>
    %1489 = arith.mulf %1488, %1487 : vector<12x2xf32>
    %1490 = arith.addf %1485, %1489 : vector<12x2xf32>
    %c18_574 = arith.constant 18 : index
    %c5_575 = arith.constant 5 : index
    %1491 = memref.load %arg6[%c18_574, %c5_575] : memref<30x8xf32, #tpu.memory_space<smem>>
    %1492 = vector.extract_strided_slice %282 {offsets = [1, 0], sizes = [12, 2], strides = [1, 1]} : vector<14x2xf32> to vector<12x2xf32>
    %1493 = vector.broadcast %1491 : f32 to vector<12x2xf32>
    %1494 = arith.mulf %1493, %1492 : vector<12x2xf32>
    %1495 = arith.addf %1490, %1494 : vector<12x2xf32>
    %c18_576 = arith.constant 18 : index
    %c6_577 = arith.constant 6 : index
    %1496 = memref.load %arg6[%c18_576, %c6_577] : memref<30x8xf32, #tpu.memory_space<smem>>
    %1497 = vector.extract_strided_slice %329 {offsets = [1, 0], sizes = [12, 2], strides = [1, 1]} : vector<14x2xf32> to vector<12x2xf32>
    %1498 = vector.broadcast %1496 : f32 to vector<12x2xf32>
    %1499 = arith.mulf %1498, %1497 : vector<12x2xf32>
    %1500 = arith.addf %1495, %1499 : vector<12x2xf32>
    %c18_578 = arith.constant 18 : index
    %c7_579 = arith.constant 7 : index
    %1501 = memref.load %arg6[%c18_578, %c7_579] : memref<30x8xf32, #tpu.memory_space<smem>>
    %1502 = vector.extract_strided_slice %376 {offsets = [1, 0], sizes = [12, 2], strides = [1, 1]} : vector<14x2xf32> to vector<12x2xf32>
    %1503 = vector.broadcast %1501 : f32 to vector<12x2xf32>
    %1504 = arith.mulf %1503, %1502 : vector<12x2xf32>
    %1505 = arith.addf %1500, %1504 : vector<12x2xf32>
    %c28 = arith.constant 28 : index
    %c0_580 = arith.constant 0 : index
    %1506 = memref.load %arg6[%c28, %c0_580] : memref<30x8xf32, #tpu.memory_space<smem>>
    %1507 = vector.extract_strided_slice %47 {offsets = [2, 0], sizes = [12, 2], strides = [1, 1]} : vector<14x2xf32> to vector<12x2xf32>
    %1508 = vector.broadcast %1506 : f32 to vector<12x2xf32>
    %1509 = arith.mulf %1508, %1507 : vector<12x2xf32>
    %1510 = arith.addf %1505, %1509 : vector<12x2xf32>
    %c28_581 = arith.constant 28 : index
    %c1_582 = arith.constant 1 : index
    %1511 = memref.load %arg6[%c28_581, %c1_582] : memref<30x8xf32, #tpu.memory_space<smem>>
    %1512 = vector.extract_strided_slice %94 {offsets = [2, 0], sizes = [12, 2], strides = [1, 1]} : vector<14x2xf32> to vector<12x2xf32>
    %1513 = vector.broadcast %1511 : f32 to vector<12x2xf32>
    %1514 = arith.mulf %1513, %1512 : vector<12x2xf32>
    %1515 = arith.addf %1510, %1514 : vector<12x2xf32>
    %c28_583 = arith.constant 28 : index
    %c2_584 = arith.constant 2 : index
    %1516 = memref.load %arg6[%c28_583, %c2_584] : memref<30x8xf32, #tpu.memory_space<smem>>
    %1517 = vector.extract_strided_slice %141 {offsets = [2, 0], sizes = [12, 2], strides = [1, 1]} : vector<14x2xf32> to vector<12x2xf32>
    %1518 = vector.broadcast %1516 : f32 to vector<12x2xf32>
    %1519 = arith.mulf %1518, %1517 : vector<12x2xf32>
    %1520 = arith.addf %1515, %1519 : vector<12x2xf32>
    %c28_585 = arith.constant 28 : index
    %c3_586 = arith.constant 3 : index
    %1521 = memref.load %arg6[%c28_585, %c3_586] : memref<30x8xf32, #tpu.memory_space<smem>>
    %1522 = vector.extract_strided_slice %188 {offsets = [2, 0], sizes = [12, 2], strides = [1, 1]} : vector<14x2xf32> to vector<12x2xf32>
    %1523 = vector.broadcast %1521 : f32 to vector<12x2xf32>
    %1524 = arith.mulf %1523, %1522 : vector<12x2xf32>
    %1525 = arith.addf %1520, %1524 : vector<12x2xf32>
    %c28_587 = arith.constant 28 : index
    %c4_588 = arith.constant 4 : index
    %1526 = memref.load %arg6[%c28_587, %c4_588] : memref<30x8xf32, #tpu.memory_space<smem>>
    %1527 = vector.extract_strided_slice %235 {offsets = [2, 0], sizes = [12, 2], strides = [1, 1]} : vector<14x2xf32> to vector<12x2xf32>
    %1528 = vector.broadcast %1526 : f32 to vector<12x2xf32>
    %1529 = arith.mulf %1528, %1527 : vector<12x2xf32>
    %1530 = arith.addf %1525, %1529 : vector<12x2xf32>
    %c28_589 = arith.constant 28 : index
    %c5_590 = arith.constant 5 : index
    %1531 = memref.load %arg6[%c28_589, %c5_590] : memref<30x8xf32, #tpu.memory_space<smem>>
    %1532 = vector.extract_strided_slice %282 {offsets = [2, 0], sizes = [12, 2], strides = [1, 1]} : vector<14x2xf32> to vector<12x2xf32>
    %1533 = vector.broadcast %1531 : f32 to vector<12x2xf32>
    %1534 = arith.mulf %1533, %1532 : vector<12x2xf32>
    %1535 = arith.addf %1530, %1534 : vector<12x2xf32>
    %c28_591 = arith.constant 28 : index
    %c6_592 = arith.constant 6 : index
    %1536 = memref.load %arg6[%c28_591, %c6_592] : memref<30x8xf32, #tpu.memory_space<smem>>
    %1537 = vector.extract_strided_slice %329 {offsets = [2, 0], sizes = [12, 2], strides = [1, 1]} : vector<14x2xf32> to vector<12x2xf32>
    %1538 = vector.broadcast %1536 : f32 to vector<12x2xf32>
    %1539 = arith.mulf %1538, %1537 : vector<12x2xf32>
    %1540 = arith.addf %1535, %1539 : vector<12x2xf32>
    %c28_593 = arith.constant 28 : index
    %c7_594 = arith.constant 7 : index
    %1541 = memref.load %arg6[%c28_593, %c7_594] : memref<30x8xf32, #tpu.memory_space<smem>>
    %1542 = vector.extract_strided_slice %376 {offsets = [2, 0], sizes = [12, 2], strides = [1, 1]} : vector<14x2xf32> to vector<12x2xf32>
    %1543 = vector.broadcast %1541 : f32 to vector<12x2xf32>
    %1544 = arith.mulf %1543, %1542 : vector<12x2xf32>
    %1545 = arith.addf %1540, %1544 : vector<12x2xf32>
    %c8_595 = arith.constant 8 : index
    %1546 = memref.load %arg7[%c8_595] : memref<10xf32, #tpu.memory_space<smem>>
    %1547 = vector.broadcast %1546 : f32 to vector<12x2xf32>
    %1548 = arith.addf %1545, %1547 : vector<12x2xf32>
    %cst_596 = arith.constant 0.000000e+00 : f32
    %1549 = vector.broadcast %cst_596 : f32 to vector<12x2xf32>
    %1550 = arith.maximumf %1548, %1549 : vector<12x2xf32>
    %c8_597 = arith.constant 8 : index
    %c0_598 = arith.constant 0 : index
    %c0_599 = arith.constant 0 : index
    %1551 = vector.load %arg1[%c8_597, %c0_598, %c0_599] : memref<10x12x2xi32, #tpu.memory_space<vmem>>, vector<1x12x2xi32>
    %1552 = vector.shape_cast %1551 : vector<1x12x2xi32> to vector<12x2xi32>
    %c429496730_i32_600 = arith.constant 429496730 : i32
    %1553 = vector.broadcast %c429496730_i32_600 : i32 to vector<12x2xi32>
    %1554 = arith.cmpi uge, %1552, %1553 : vector<12x2xi32>
    %cst_601 = arith.constant 0.000000e+00 : f32
    %1555 = vector.broadcast %cst_601 : f32 to vector<12x2xf32>
    %1556 = arith.select %1554, %1550, %1555 : vector<12x2xi1>, vector<12x2xf32>
    %c96 = arith.constant 96 : index
    %c0_602 = arith.constant 0 : index
    %1557 = vector.load %arg13[%c96, %c0_602] : memref<128x2xf32, #tpu.memory_space<vmem>>, vector<12x2xf32>
    tpu.vector_store %arg13[%c96, %c0_602], %1556 {strides = array<i32>} : memref<128x2xf32, #tpu.memory_space<vmem>>, vector<12x2xf32>,
    %c9 = arith.constant 9 : index
    %c0_603 = arith.constant 0 : index
    %1558 = memref.load %arg6[%c9, %c0_603] : memref<30x8xf32, #tpu.memory_space<smem>>
    %1559 = vector.extract_strided_slice %47 {offsets = [0, 0], sizes = [12, 2], strides = [1, 1]} : vector<14x2xf32> to vector<12x2xf32>
    %1560 = vector.broadcast %1558 : f32 to vector<12x2xf32>
    %1561 = arith.mulf %1560, %1559 : vector<12x2xf32>
    %c9_604 = arith.constant 9 : index
    %c1_605 = arith.constant 1 : index
    %1562 = memref.load %arg6[%c9_604, %c1_605] : memref<30x8xf32, #tpu.memory_space<smem>>
    %1563 = vector.extract_strided_slice %94 {offsets = [0, 0], sizes = [12, 2], strides = [1, 1]} : vector<14x2xf32> to vector<12x2xf32>
    %1564 = vector.broadcast %1562 : f32 to vector<12x2xf32>
    %1565 = arith.mulf %1564, %1563 : vector<12x2xf32>
    %1566 = arith.addf %1561, %1565 : vector<12x2xf32>
    %c9_606 = arith.constant 9 : index
    %c2_607 = arith.constant 2 : index
    %1567 = memref.load %arg6[%c9_606, %c2_607] : memref<30x8xf32, #tpu.memory_space<smem>>
    %1568 = vector.extract_strided_slice %141 {offsets = [0, 0], sizes = [12, 2], strides = [1, 1]} : vector<14x2xf32> to vector<12x2xf32>
    %1569 = vector.broadcast %1567 : f32 to vector<12x2xf32>
    %1570 = arith.mulf %1569, %1568 : vector<12x2xf32>
    %1571 = arith.addf %1566, %1570 : vector<12x2xf32>
    %c9_608 = arith.constant 9 : index
    %c3_609 = arith.constant 3 : index
    %1572 = memref.load %arg6[%c9_608, %c3_609] : memref<30x8xf32, #tpu.memory_space<smem>>
    %1573 = vector.extract_strided_slice %188 {offsets = [0, 0], sizes = [12, 2], strides = [1, 1]} : vector<14x2xf32> to vector<12x2xf32>
    %1574 = vector.broadcast %1572 : f32 to vector<12x2xf32>
    %1575 = arith.mulf %1574, %1573 : vector<12x2xf32>
    %1576 = arith.addf %1571, %1575 : vector<12x2xf32>
    %c9_610 = arith.constant 9 : index
    %c4_611 = arith.constant 4 : index
    %1577 = memref.load %arg6[%c9_610, %c4_611] : memref<30x8xf32, #tpu.memory_space<smem>>
    %1578 = vector.extract_strided_slice %235 {offsets = [0, 0], sizes = [12, 2], strides = [1, 1]} : vector<14x2xf32> to vector<12x2xf32>
    %1579 = vector.broadcast %1577 : f32 to vector<12x2xf32>
    %1580 = arith.mulf %1579, %1578 : vector<12x2xf32>
    %1581 = arith.addf %1576, %1580 : vector<12x2xf32>
    %c9_612 = arith.constant 9 : index
    %c5_613 = arith.constant 5 : index
    %1582 = memref.load %arg6[%c9_612, %c5_613] : memref<30x8xf32, #tpu.memory_space<smem>>
    %1583 = vector.extract_strided_slice %282 {offsets = [0, 0], sizes = [12, 2], strides = [1, 1]} : vector<14x2xf32> to vector<12x2xf32>
    %1584 = vector.broadcast %1582 : f32 to vector<12x2xf32>
    %1585 = arith.mulf %1584, %1583 : vector<12x2xf32>
    %1586 = arith.addf %1581, %1585 : vector<12x2xf32>
    %c9_614 = arith.constant 9 : index
    %c6_615 = arith.constant 6 : index
    %1587 = memref.load %arg6[%c9_614, %c6_615] : memref<30x8xf32, #tpu.memory_space<smem>>
    %1588 = vector.extract_strided_slice %329 {offsets = [0, 0], sizes = [12, 2], strides = [1, 1]} : vector<14x2xf32> to vector<12x2xf32>
    %1589 = vector.broadcast %1587 : f32 to vector<12x2xf32>
    %1590 = arith.mulf %1589, %1588 : vector<12x2xf32>
    %1591 = arith.addf %1586, %1590 : vector<12x2xf32>
    %c9_616 = arith.constant 9 : index
    %c7_617 = arith.constant 7 : index
    %1592 = memref.load %arg6[%c9_616, %c7_617] : memref<30x8xf32, #tpu.memory_space<smem>>
    %1593 = vector.extract_strided_slice %376 {offsets = [0, 0], sizes = [12, 2], strides = [1, 1]} : vector<14x2xf32> to vector<12x2xf32>
    %1594 = vector.broadcast %1592 : f32 to vector<12x2xf32>
    %1595 = arith.mulf %1594, %1593 : vector<12x2xf32>
    %1596 = arith.addf %1591, %1595 : vector<12x2xf32>
    %c19 = arith.constant 19 : index
    %c0_618 = arith.constant 0 : index
    %1597 = memref.load %arg6[%c19, %c0_618] : memref<30x8xf32, #tpu.memory_space<smem>>
    %1598 = vector.extract_strided_slice %47 {offsets = [1, 0], sizes = [12, 2], strides = [1, 1]} : vector<14x2xf32> to vector<12x2xf32>
    %1599 = vector.broadcast %1597 : f32 to vector<12x2xf32>
    %1600 = arith.mulf %1599, %1598 : vector<12x2xf32>
    %1601 = arith.addf %1596, %1600 : vector<12x2xf32>
    %c19_619 = arith.constant 19 : index
    %c1_620 = arith.constant 1 : index
    %1602 = memref.load %arg6[%c19_619, %c1_620] : memref<30x8xf32, #tpu.memory_space<smem>>
    %1603 = vector.extract_strided_slice %94 {offsets = [1, 0], sizes = [12, 2], strides = [1, 1]} : vector<14x2xf32> to vector<12x2xf32>
    %1604 = vector.broadcast %1602 : f32 to vector<12x2xf32>
    %1605 = arith.mulf %1604, %1603 : vector<12x2xf32>
    %1606 = arith.addf %1601, %1605 : vector<12x2xf32>
    %c19_621 = arith.constant 19 : index
    %c2_622 = arith.constant 2 : index
    %1607 = memref.load %arg6[%c19_621, %c2_622] : memref<30x8xf32, #tpu.memory_space<smem>>
    %1608 = vector.extract_strided_slice %141 {offsets = [1, 0], sizes = [12, 2], strides = [1, 1]} : vector<14x2xf32> to vector<12x2xf32>
    %1609 = vector.broadcast %1607 : f32 to vector<12x2xf32>
    %1610 = arith.mulf %1609, %1608 : vector<12x2xf32>
    %1611 = arith.addf %1606, %1610 : vector<12x2xf32>
    %c19_623 = arith.constant 19 : index
    %c3_624 = arith.constant 3 : index
    %1612 = memref.load %arg6[%c19_623, %c3_624] : memref<30x8xf32, #tpu.memory_space<smem>>
    %1613 = vector.extract_strided_slice %188 {offsets = [1, 0], sizes = [12, 2], strides = [1, 1]} : vector<14x2xf32> to vector<12x2xf32>
    %1614 = vector.broadcast %1612 : f32 to vector<12x2xf32>
    %1615 = arith.mulf %1614, %1613 : vector<12x2xf32>
    %1616 = arith.addf %1611, %1615 : vector<12x2xf32>
    %c19_625 = arith.constant 19 : index
    %c4_626 = arith.constant 4 : index
    %1617 = memref.load %arg6[%c19_625, %c4_626] : memref<30x8xf32, #tpu.memory_space<smem>>
    %1618 = vector.extract_strided_slice %235 {offsets = [1, 0], sizes = [12, 2], strides = [1, 1]} : vector<14x2xf32> to vector<12x2xf32>
    %1619 = vector.broadcast %1617 : f32 to vector<12x2xf32>
    %1620 = arith.mulf %1619, %1618 : vector<12x2xf32>
    %1621 = arith.addf %1616, %1620 : vector<12x2xf32>
    %c19_627 = arith.constant 19 : index
    %c5_628 = arith.constant 5 : index
    %1622 = memref.load %arg6[%c19_627, %c5_628] : memref<30x8xf32, #tpu.memory_space<smem>>
    %1623 = vector.extract_strided_slice %282 {offsets = [1, 0], sizes = [12, 2], strides = [1, 1]} : vector<14x2xf32> to vector<12x2xf32>
    %1624 = vector.broadcast %1622 : f32 to vector<12x2xf32>
    %1625 = arith.mulf %1624, %1623 : vector<12x2xf32>
    %1626 = arith.addf %1621, %1625 : vector<12x2xf32>
    %c19_629 = arith.constant 19 : index
    %c6_630 = arith.constant 6 : index
    %1627 = memref.load %arg6[%c19_629, %c6_630] : memref<30x8xf32, #tpu.memory_space<smem>>
    %1628 = vector.extract_strided_slice %329 {offsets = [1, 0], sizes = [12, 2], strides = [1, 1]} : vector<14x2xf32> to vector<12x2xf32>
    %1629 = vector.broadcast %1627 : f32 to vector<12x2xf32>
    %1630 = arith.mulf %1629, %1628 : vector<12x2xf32>
    %1631 = arith.addf %1626, %1630 : vector<12x2xf32>
    %c19_631 = arith.constant 19 : index
    %c7_632 = arith.constant 7 : index
    %1632 = memref.load %arg6[%c19_631, %c7_632] : memref<30x8xf32, #tpu.memory_space<smem>>
    %1633 = vector.extract_strided_slice %376 {offsets = [1, 0], sizes = [12, 2], strides = [1, 1]} : vector<14x2xf32> to vector<12x2xf32>
    %1634 = vector.broadcast %1632 : f32 to vector<12x2xf32>
    %1635 = arith.mulf %1634, %1633 : vector<12x2xf32>
    %1636 = arith.addf %1631, %1635 : vector<12x2xf32>
    %c29 = arith.constant 29 : index
    %c0_633 = arith.constant 0 : index
    %1637 = memref.load %arg6[%c29, %c0_633] : memref<30x8xf32, #tpu.memory_space<smem>>
    %1638 = vector.extract_strided_slice %47 {offsets = [2, 0], sizes = [12, 2], strides = [1, 1]} : vector<14x2xf32> to vector<12x2xf32>
    %1639 = vector.broadcast %1637 : f32 to vector<12x2xf32>
    %1640 = arith.mulf %1639, %1638 : vector<12x2xf32>
    %1641 = arith.addf %1636, %1640 : vector<12x2xf32>
    %c29_634 = arith.constant 29 : index
    %c1_635 = arith.constant 1 : index
    %1642 = memref.load %arg6[%c29_634, %c1_635] : memref<30x8xf32, #tpu.memory_space<smem>>
    %1643 = vector.extract_strided_slice %94 {offsets = [2, 0], sizes = [12, 2], strides = [1, 1]} : vector<14x2xf32> to vector<12x2xf32>
    %1644 = vector.broadcast %1642 : f32 to vector<12x2xf32>
    %1645 = arith.mulf %1644, %1643 : vector<12x2xf32>
    %1646 = arith.addf %1641, %1645 : vector<12x2xf32>
    %c29_636 = arith.constant 29 : index
    %c2_637 = arith.constant 2 : index
    %1647 = memref.load %arg6[%c29_636, %c2_637] : memref<30x8xf32, #tpu.memory_space<smem>>
    %1648 = vector.extract_strided_slice %141 {offsets = [2, 0], sizes = [12, 2], strides = [1, 1]} : vector<14x2xf32> to vector<12x2xf32>
    %1649 = vector.broadcast %1647 : f32 to vector<12x2xf32>
    %1650 = arith.mulf %1649, %1648 : vector<12x2xf32>
    %1651 = arith.addf %1646, %1650 : vector<12x2xf32>
    %c29_638 = arith.constant 29 : index
    %c3_639 = arith.constant 3 : index
    %1652 = memref.load %arg6[%c29_638, %c3_639] : memref<30x8xf32, #tpu.memory_space<smem>>
    %1653 = vector.extract_strided_slice %188 {offsets = [2, 0], sizes = [12, 2], strides = [1, 1]} : vector<14x2xf32> to vector<12x2xf32>
    %1654 = vector.broadcast %1652 : f32 to vector<12x2xf32>
    %1655 = arith.mulf %1654, %1653 : vector<12x2xf32>
    %1656 = arith.addf %1651, %1655 : vector<12x2xf32>
    %c29_640 = arith.constant 29 : index
    %c4_641 = arith.constant 4 : index
    %1657 = memref.load %arg6[%c29_640, %c4_641] : memref<30x8xf32, #tpu.memory_space<smem>>
    %1658 = vector.extract_strided_slice %235 {offsets = [2, 0], sizes = [12, 2], strides = [1, 1]} : vector<14x2xf32> to vector<12x2xf32>
    %1659 = vector.broadcast %1657 : f32 to vector<12x2xf32>
    %1660 = arith.mulf %1659, %1658 : vector<12x2xf32>
    %1661 = arith.addf %1656, %1660 : vector<12x2xf32>
    %c29_642 = arith.constant 29 : index
    %c5_643 = arith.constant 5 : index
    %1662 = memref.load %arg6[%c29_642, %c5_643] : memref<30x8xf32, #tpu.memory_space<smem>>
    %1663 = vector.extract_strided_slice %282 {offsets = [2, 0], sizes = [12, 2], strides = [1, 1]} : vector<14x2xf32> to vector<12x2xf32>
    %1664 = vector.broadcast %1662 : f32 to vector<12x2xf32>
    %1665 = arith.mulf %1664, %1663 : vector<12x2xf32>
    %1666 = arith.addf %1661, %1665 : vector<12x2xf32>
    %c29_644 = arith.constant 29 : index
    %c6_645 = arith.constant 6 : index
    %1667 = memref.load %arg6[%c29_644, %c6_645] : memref<30x8xf32, #tpu.memory_space<smem>>
    %1668 = vector.extract_strided_slice %329 {offsets = [2, 0], sizes = [12, 2], strides = [1, 1]} : vector<14x2xf32> to vector<12x2xf32>
    %1669 = vector.broadcast %1667 : f32 to vector<12x2xf32>
    %1670 = arith.mulf %1669, %1668 : vector<12x2xf32>
    %1671 = arith.addf %1666, %1670 : vector<12x2xf32>
    %c29_646 = arith.constant 29 : index
    %c7_647 = arith.constant 7 : index
    %1672 = memref.load %arg6[%c29_646, %c7_647] : memref<30x8xf32, #tpu.memory_space<smem>>
    %1673 = vector.extract_strided_slice %376 {offsets = [2, 0], sizes = [12, 2], strides = [1, 1]} : vector<14x2xf32> to vector<12x2xf32>
    %1674 = vector.broadcast %1672 : f32 to vector<12x2xf32>
    %1675 = arith.mulf %1674, %1673 : vector<12x2xf32>
    %1676 = arith.addf %1671, %1675 : vector<12x2xf32>
    %c9_648 = arith.constant 9 : index
    %1677 = memref.load %arg7[%c9_648] : memref<10xf32, #tpu.memory_space<smem>>
    %1678 = vector.broadcast %1677 : f32 to vector<12x2xf32>
    %1679 = arith.addf %1676, %1678 : vector<12x2xf32>
    %cst_649 = arith.constant 0.000000e+00 : f32
    %1680 = vector.broadcast %cst_649 : f32 to vector<12x2xf32>
    %1681 = arith.maximumf %1679, %1680 : vector<12x2xf32>
    %c9_650 = arith.constant 9 : index
    %c0_651 = arith.constant 0 : index
    %c0_652 = arith.constant 0 : index
    %1682 = vector.load %arg1[%c9_650, %c0_651, %c0_652] : memref<10x12x2xi32, #tpu.memory_space<vmem>>, vector<1x12x2xi32>
    %1683 = vector.shape_cast %1682 : vector<1x12x2xi32> to vector<12x2xi32>
    %c429496730_i32_653 = arith.constant 429496730 : i32
    %1684 = vector.broadcast %c429496730_i32_653 : i32 to vector<12x2xi32>
    %1685 = arith.cmpi uge, %1683, %1684 : vector<12x2xi32>
    %cst_654 = arith.constant 0.000000e+00 : f32
    %1686 = vector.broadcast %cst_654 : f32 to vector<12x2xf32>
    %1687 = arith.select %1685, %1681, %1686 : vector<12x2xi1>, vector<12x2xf32>
    %c108 = arith.constant 108 : index
    %c0_655 = arith.constant 0 : index
    %1688 = vector.load %arg13[%c108, %c0_655] : memref<128x2xf32, #tpu.memory_space<vmem>>, vector<12x2xf32>
    tpu.vector_store %arg13[%c108, %c0_655], %1687 {strides = array<i32>} : memref<128x2xf32, #tpu.memory_space<vmem>>, vector<12x2xf32>,
    %c0_656 = arith.constant 0 : index
    %c0_657 = arith.constant 0 : index
    %1689 = vector.load %arg13[%c0_656, %c0_657] : memref<128x2xf32, #tpu.memory_space<vmem>>, vector<128x2xf32>
    %1690 = arith.truncf %1689 : vector<128x2xf32> to vector<128x2xbf16>
    %c0_658 = arith.constant 0 : index
    %c0_659 = arith.constant 0 : index
    %1691 = vector.load %arg8[%c0_658, %c0_659] : memref<512x128xbf16, #tpu.memory_space<vmem>>, vector<512x128xbf16>
    %cst_660 = arith.constant dense<0.000000e+00> : vector<512x2xf32>
    %1692 = tpu.matmul %1691, %1690, %cst_660 {dimension_numbers = #tpu.dot_dimension_numbers<[1], [0], [0], [1], [0, 0, 1, 1], [], []>} : vector<512x128xbf16>, vector<128x2xbf16>, vector<512x2xf32> -> vector<512x2xf32>
    %c0_661 = arith.constant 0 : index
    %c0_662 = arith.constant 0 : index
    %1693 = vector.load %arg9[%c0_661, %c0_662] : memref<512x1xf32, #tpu.memory_space<vmem>>, vector<512x1xf32>
    %1694 = vector.broadcast %1693 : vector<512x1xf32> to vector<512x2xf32>
    %1695 = arith.addf %1692, %1694 : vector<512x2xf32>
    %cst_663 = arith.constant 0.000000e+00 : f32
    %1696 = vector.broadcast %cst_663 : f32 to vector<512x2xf32>
    %1697 = arith.maximumf %1695, %1696 : vector<512x2xf32>
    %c0_664 = arith.constant 0 : index
    %c0_665 = arith.constant 0 : index
    %1698 = vector.load %arg10[%c0_664, %c0_665] : memref<4x512xbf16, #tpu.memory_space<vmem>>, vector<4x512xbf16>
    %1699 = arith.truncf %1697 : vector<512x2xf32> to vector<512x2xbf16>
    %cst_666 = arith.constant dense<0.000000e+00> : vector<4x2xf32>
    %1700 = tpu.matmul %1698, %1699, %cst_666 {dimension_numbers = #tpu.dot_dimension_numbers<[1], [0], [0], [1], [0, 0, 1, 1], [], []>} : vector<4x512xbf16>, vector<512x2xbf16>, vector<4x2xf32> -> vector<4x2xf32>
    %c0_667 = arith.constant 0 : index
    %c0_668 = arith.constant 0 : index
    %1701 = vector.load %arg11[%c0_667, %c0_668] : memref<4x1xf32, #tpu.memory_space<vmem>>, vector<4x1xf32>
    %1702 = vector.broadcast %1701 : vector<4x1xf32> to vector<4x2xf32>
    %1703 = arith.addf %1700, %1702 : vector<4x2xf32>
    %c0_669 = arith.constant 0 : index
    %c0_670 = arith.constant 0 : index
    %1704 = vector.load %arg12[%c0_669, %c0_670] : memref<4x2xf32, #tpu.memory_space<vmem>>, vector<4x2xf32>
    tpu.vector_store %arg12[%c0_669, %c0_670], %1703 {strides = array<i32>} : memref<4x2xf32, #tpu.memory_space<vmem>>, vector<4x2xf32>,
    return
  }
}

</mosaic_0001>

<bundles_post_ra>
// kernel: tpu_custom_call.1
= control target key start
LH: loop header
LB: loop body
LE: loop exit
PB: predicated region body
PF: predicated region fallthrough
CT: control target
= control target key end

     0   :  { %s9941_s0 = inlined_call_operand.vmem [shape: f32[16,2], index: 0, kind: input, shape index: {}]   ;;  %s9942_s1 = inlined_call_operand.vmem [shape: u32[10,12,2], index: 1, kind: input, shape index: {}]   ;;  %s9943_s2 = inlined_call_operand.vmem [shape: f32[3,8], index: 2, kind: input, shape index: {}]   ;;  %s9944_s3 = inlined_call_operand.vmem [shape: f32[8], index: 3, kind: input, shape index: {}]   ;;  %s9945_s4 = inlined_call_operand.vmem [shape: f32[8], index: 4, kind: input, shape index: {}]   ;;  %s9946_s5 = inlined_call_operand.vmem [shape: f32[8], index: 5, kind: input, shape index: {}]   ;;  %s9947_s6 = inlined_call_operand.vmem [shape: f32[30,8], index: 6, kind: input, shape index: {}]   ;;  %s9948_s7 = inlined_call_operand.vmem [shape: f32[10], index: 7, kind: input, shape index: {}]   ;;  %s9949_s8 = inlined_call_operand.vmem [shape: bf16[512,128], index: 8, kind: input, shape index: {}]   ;;  %s9950_s9 = inlined_call_operand.vmem [shape: f32[512,1], index: 9, kind: input, shape index: {}]   ;;  %s9951_s10 = inlined_call_operand.vmem [shape: bf16[4,512], index: 10, kind: input, shape index: {}]   ;;  %s9952_s11 = inlined_call_operand.vmem [shape: f32[4,1], index: 11, kind: input, shape index: {}]   ;;  %s9953_s12 = inlined_call_operand.vmem [shape: f32[4,2], index: 12, kind: output, shape index: {}]  }
   0x1   :  { %10174 = sst [smem:[#allocation277_spill]] %s9949_s8 }
   0x2   :  { %10175 = sst [smem:[#allocation278_spill]] %s9951_s10 }
   0x3   :  { %10176 = sst [smem:[#allocation279_spill]] %s9952_s11 }
   0x4   :  { %10177 = sst [smem:[#allocation280_spill]] %s9953_s12 }
   0x5   :  { %17 = vsyncpa [#allocation4], 0 }
   0x6   :  { %18 = vsyncpa [#allocation6], 0 }
   0x7   :  { %19 = vsyncpa [#allocation9], 0  ;;  %s41_s23 = sshll.u32 %s9944_s3, 4  ;;  %s42_s23 = int_to_ptr.vmem [resolvable:$true] %s41_s23 }
   0x8   :  { %20 = vsyncpa [#allocation12], 0  ;;  %s61_s26 = sshll.u32 %s9946_s5, 4  ;;  %s5246_s27 = scalar_lea.vmem %s42_s23, 16  ;;  %s62_s26 = int_to_ptr.vmem [resolvable:$true] %s61_s26 }
   0x9   :  { %p5247_p0 = scmp.ne.s32.totalorder %s42_s23, %s5246_s27  ;;  %p5251_p1 = scmp.lt.s32.totalorder %s42_s23, %s42_s23 }
   0xa   :  { %p5252_p2 = scmp.lt.s32.totalorder %s5246_s27, %s5246_s27 }
   0xc   :  { %p5253_p3 = por %p5252_p2, %p5251_p1 }
   0xe   :  { %p5254_p4 = pnand %p5253_p3, %p5247_p0 }
  0x10   :  { %5257 = shalt.err (!%p5254_p4)
}
  0x11   :  { %s5326_s28 = smov [#allocation5]   ;;  %s5258_s29 = scalar_lea.vmem %s62_s26, 16 }
  0x12   :  { %44 = dma.vmem_to_smem %s42_s23, 16, %s5326_s28, [#allocation6]  }
  0x13   :  { %p5259_p5 = scmp.ne.s32.totalorder %s62_s26, %s5258_s29  ;;  %p5263_p6 = scmp.lt.s32.totalorder %s62_s26, %s62_s26 }
  0x14   :  { %p5264_p7 = scmp.lt.s32.totalorder %s5258_s29, %s5258_s29 }
  0x16   :  { %p5265_p8 = por %p5264_p7, %p5263_p6 }
  0x18   :  { %p5266_p9 = pnand %p5265_p8, %p5259_p5 }
  0x1a   :  { %5269 = shalt.err (!%p5266_p9)
}
  0x1b   :  { %s5327_s3 = smov [#allocation8]   ;;  %s31_s13 = sshll.u32 %s9943_s2, 4  ;;  %s32_s13 = int_to_ptr.vmem [resolvable:$true] %s31_s13 }
  0x1c   :  { %64 = dma.vmem_to_smem %s62_s26, 16, %s5327_s3, [#allocation9]  }
  0x1d   :  { %s51_s16 = sshll.u32 %s9945_s4, 4  ;;  %s5270_s17 = scalar_lea.vmem %s32_s13, 64  ;;  %s52_s16 = int_to_ptr.vmem [resolvable:$true] %s51_s16 }
  0x1e   :  { %p5271_p10 = scmp.ne.s32.totalorder %s32_s13, %s5270_s17  ;;  %p5275_p11 = scmp.lt.s32.totalorder %s32_s13, %s32_s13 }
  0x1f   :  { %p5276_p12 = scmp.lt.s32.totalorder %s5270_s17, %s5270_s17 }
  0x21   :  { %p5277_p13 = por %p5276_p12, %p5275_p11 }
  0x23   :  { %p5278_p0 = pnand %p5277_p13, %p5271_p10 }
  0x25   :  { %5281 = shalt.err (!%p5278_p0)
}
  0x26   :  { %s5328_s18 = smov [#allocation3]   ;;  %s5282_s19 = scalar_lea.vmem %s52_s16, 16 }
  0x27   :  { %34 = dma.vmem_to_smem %s32_s13, 64, %s5328_s18, [#allocation4]  }
  0x28   :  { %p5283_p1 = scmp.ne.s32.totalorder %s52_s16, %s5282_s19  ;;  %p5287_p2 = scmp.lt.s32.totalorder %s52_s16, %s52_s16 }
  0x29   :  { %p5288_p3 = scmp.lt.s32.totalorder %s5282_s19, %s5282_s19 }
  0x2b   :  { %p5289_p4 = por %p5288_p3, %p5287_p2 }
  0x2d   :  { %p5290_p5 = pnand %p5289_p4, %p5283_p1 }
  0x2f   :  { %5293 = shalt.err (!%p5290_p5)
}
  0x30   :  { %s5329_s2 = smov [#allocation7]   ;;  %s70_s21 = sshll.u32 %s9947_s6, 4  ;;  %s71_s21 = int_to_ptr.vmem [resolvable:$true] %s70_s21 }
  0x31   :  { %54 = dma.vmem_to_smem %s52_s16, 16, %s5329_s2, [#allocation6]  }
  0x32   :  { %s83_s24 = sshll.u32 %s9948_s7, 4  ;;  %s5294_s25 = scalar_lea.vmem %s71_s21, 512  ;;  %s84_s24 = int_to_ptr.vmem [resolvable:$true] %s83_s24 }
  0x33   :  { %p5295_p6 = scmp.ne.s32.totalorder %s71_s21, %s5294_s25  ;;  %p5299_p7 = scmp.lt.s32.totalorder %s71_s21, %s71_s21 }
  0x34   :  { %p5300_p8 = scmp.lt.s32.totalorder %s5294_s25, %s5294_s25 }
  0x36   :  { %p5301_p9 = por %p5300_p8, %p5299_p7 }
  0x38   :  { %p5302_p10 = pnand %p5301_p9, %p5295_p6 }
  0x3a   :  { %5305 = shalt.err (!%p5302_p10)
}
  0x3b   :  { %s5330_s26 = smov [#allocation10]   ;;  %s5331_s27 = smov 128  }
  0x3c   :  { %s5332_s28 = smov 8   ;;  %s5306_s29 = scalar_lea.vmem %s84_s24, 16 }
  0x3d   :  { %76 = dma.vmem_to_smem %s71_s21, 512, %s5330_s26, [#allocation9], %s5331_s27, %s5331_s27, %s5332_s28  }
  0x3e   :  { %p5307_p11 = scmp.ne.s32.totalorder %s84_s24, %s5306_s29  ;;  %p5311_p12 = scmp.lt.s32.totalorder %s84_s24, %s84_s24 }
  0x3f   :  { %p5312_p13 = scmp.lt.s32.totalorder %s5306_s29, %s5306_s29 }
  0x41   :  { %p5313_p0 = por %p5312_p13, %p5311_p12 }
  0x43   :  { %p5314_p1 = pnand %p5313_p0, %p5307_p11 }
  0x45   :  { %5317 = shalt.err (!%p5314_p1)
}
  0x46   :  { %s5333_s6 = smov [#allocation11]  }
  0x47   :  { %86 = dma.vmem_to_smem %s84_s24, 16, %s5333_s6, [#allocation12]  }
  0x48   :  { %5318 = dma.done.wait [#allocation4], 64  }
  0x49   :  { %5319 = vsyncadd [#allocation4], 4294967232 }
  0x4a   :  { %5320 = dma.done.wait [#allocation6], 32  }
  0x4b   :  { %5321 = vsyncadd [#allocation6], 4294967264 }
  0x4c   :  { %5322 = dma.done.wait [#allocation9], 528  }
  0x4d   :  { %5323 = vsyncadd [#allocation9], 4294966768 }
  0x4e   :  { %5324 = dma.done.wait [#allocation12], 16  }
  0x4f   :  { %5325 = vsyncadd [#allocation12], 4294967280 }
  0x50   :  { %113 = sfence }
  0x51   :  { %s117_s7 = sld [smem:[#allocation3]]  ;;  %v5423_v0 = vld [vmem:[%s9941_s0] sm:$0xff]  ;;  %v5428_v1 = vld [vmem:[%s9941_s0 + $0x8] sm:$0xff]  ;;  %vm127_vm0 = vcmask 1046528   ;;  %vm141_vm1 = vcmask 1045504   ;;  %vm157_vm2 = vcmask 13312  }
  0x52   :  { %s4626_s3 = sld [smem:[#allocation3 + $0x80]]  ;;  %vm155_vm3 = vcmask 15360   ;;  %s4629_s17 = sld [smem:[#allocation3 + $0x81]]  ;;  %vm1036_vm6 = vcmask 11264  }
  0x53   :  { %s4627_s5 = sld [smem:[#allocation3 + $0x100]]  ;;  %s4630_s18 = sld [smem:[#allocation3 + $0x101]] }
  0x54   :  { %s149_s16 = sld [smem:[#allocation5]]  ;;  %s4628_s19 = sld [smem:[#allocation3 + $0x1]] }
  0x55   :  { %s4631_s2 = sld [smem:[#allocation5 + $0x1]]  ;;  %s4635_s20 = sld [smem:[#allocation3 + $0x82]] }
  0x56   :  { %s4636_s21 = sld [smem:[#allocation3 + $0x102]]  ;;  %s189_s26 = sld [smem:[#allocation7]] }
  0x57   :  { %v118_v2 = vstv %s117_s7  ;;  %s4634_s22 = sld [smem:[#allocation3 + $0x2]]  ;;  %s196_s27 = sld [smem:[#allocation8]] }
  0x58   :  { %v122_v3 = vstv %s4626_s3  ;;  %v120_v4 = vmul.f32 %v118_v2, %v5428_v1  ;;  %v119_v7 = vmul.f32 %v118_v2, %v5423_v0  ;;  %v205_v29 = vstv %s4629_s17  ;;  %s4637_s23 = sld [smem:[#allocation5 + $0x2]]  ;;  %s4790_s28 = sld [smem:[#allocation10 + $0xc00]] }
  0x59   :  { %v123_v5 = vmul.f32 %v122_v3, %v5423_v0  ;;  %v124_v6 = vmul.f32 %v122_v3, %v5428_v1  ;;  %v136_v8 = vstv %s4627_s5  ;;  %v206_v30 = vmul.f32 %v205_v29, %v5423_v0  ;;  %s4809_s29 = sld [smem:[#allocation10 + $0x780]]  ;;  %s4641_s17 = sld [smem:[#allocation3 + $0x83]] }
  0x5a   :  { %v137_v11 = vmul.f32 %v136_v8, %v5423_v0  ;;  %v138_v12 = vmul.f32 %v136_v8, %v5428_v1  ;;  %v150_v18 = vstv %s149_s16  ;;  %v207_v31 = vmul.f32 %v205_v29, %v5428_v1  ;;  %s4817_s6 = sld [smem:[#allocation10 + $0xc80]]  ;;  %s8473_s12 = sld [smem:[#allocation10 + $0x807]] }
  0x5b   :  { %v128_v9 = vrot.slane %v123_v5, 1  ;;  %v129_v10 = vrot.slane %v124_v6, 1  ;;  %v218_v32 = vstv %s4630_s18  ;;  %v201_v33 = vstv %s4628_s19  ;;  %s5506_s7 = sld [smem:[#allocation10 + $0x800]]  ;;  %s4642_s18 = sld [smem:[#allocation3 + $0x103]] }
  0x5c   :  { %v142_v15 = vrot.slane %v137_v11, 2  ;;  %v143_v16 = vrot.slane %v138_v12, 2  ;;  %v210_v34 = vrot.slane %v206_v30, 1  ;;  %v211_v35 = vrot.slane %v207_v31, 1  ;;  %s5508_s3 = sld [smem:[#allocation10 + $0xd00]]  ;;  %s4640_s19 = sld [smem:[#allocation3 + $0x3]] }
  0x5d   :  { %v130_v13 = vsel %vm127_vm0, %v128_v9, %v129_v10  ;;  %v134_v14 = vadd.f32 %v129_v10, %v120_v4  ;;  %v219_v36 = vmul.f32 %v218_v32, %v5423_v0  ;;  %v202_v37 = vmul.f32 %v201_v33, %v5423_v0  ;;  %s5512_s5 = sld [smem:[#allocation10 + $0x880]]  ;;  %s8483_s10 = sld [smem:[#allocation10 + $0xd07]] }
  0x5e   :  { %v133_v17 = vadd.f32 %v130_v13, %v119_v7  ;;  %v144_v19 = vsel %vm141_vm1, %v142_v15, %v143_v16  ;;  %v203_v38 = vmul.f32 %v201_v33, %v5428_v1  ;;  %v220_v39 = vmul.f32 %v218_v32, %v5428_v1  ;;  %s5514_s30 = sld [smem:[#allocation10 + $0xd80]]  ;;  %s8485_s11 = sld [smem:[#allocation10 + $0x387]] }
  0x5f   :  { %v148_v20 = vadd.f32 %v143_v16, %v134_v14  ;;  %v212_v40 = vsel %vm127_vm0, %v210_v34, %v211_v35  ;;  %v223_v41 = vrot.slane %v219_v36, 2  ;;  %v231_v48 = vstv %s4631_s2  ;;  %s5518_s13 = sld [smem:[#allocation10 + $0x900]]  ;;  %s4643_s2 = sld [smem:[#allocation5 + $0x3]] }
  0x60   :  { %v147_v21 = vadd.f32 %v144_v19, %v133_v17  ;;  %v215_v42 = vadd.f32 %v212_v40, %v202_v37  ;;  %v216_v43 = vadd.f32 %v211_v35, %v203_v38  ;;  %v224_v44 = vrot.slane %v220_v39, 2  ;;  %s5525_s14 = sld [smem:[#allocation10 + $0xe00]]  ;;  %s8493_s8 = sld [smem:[#allocation10 + $0x887]] }
  0x61   :  { %v152_v22 = vadd.f32 %v150_v18, %v148_v20  ;;  %v284_v10 = vstv %s4635_s20  ;;  %v297_v13 = vstv %s4636_s21  ;;  %v280_v14 = vstv %s4634_s22  ;;  %s5529_s15 = sld [smem:[#allocation10 + $0x980]]  ;;  %s4632_s21 = sld [smem:[#allocation7 + $0x1]] }
  0x62   :  { %v151_v23 = vadd.f32 %v150_v18, %v147_v21  ;;  %v225_v45 = vsel %vm141_vm1, %v223_v41, %v224_v44  ;;  %v229_v46 = vadd.f32 %v224_v44, %v216_v43  ;;  %v285_v11 = vmul.f32 %v284_v10, %v5423_v0  ;;  %s5536_s16 = sld [smem:[#allocation10 + $0xe80]]  ;;  %s4633_s22 = sld [smem:[#allocation8 + $0x1]] }
  0x63   :  { %v154_v24 = vmax.f32 %v152_v22, 0.0  ;;  %v228_v47 = vadd.f32 %v225_v45, %v215_v42  ;;  %v286_v12 = vmul.f32 %v284_v10, %v5428_v1  ;;  %v298_v17 = vmul.f32 %v297_v13, %v5423_v0 }
  0x64   :  { %v153_v25 = vmax.f32 %v151_v23, 0.0  ;;  %v5448_v49 = vadd.f32 %v231_v48, %v229_v46  ;;  %v289_v15 = vrot.slane %v285_v11, 1  ;;  %v281_v18 = vmul.f32 %v280_v14, %v5423_v0 }
  0x65   :  { %v158_v26 = vsel %vm157_vm2, %v154_v24, 0.0  ;;  %v5450_v50 = vadd.f32 %v231_v48, %v228_v47  ;;  %v290_v16 = vrot.slane %v286_v12, 1  ;;  %v282_v19 = vmul.f32 %v280_v14, %v5428_v1 }
  0x66   :  { %v156_v27 = vsel %vm155_vm3, %v153_v25, 0.0  ;;  %v235_v51 = vmax.f32 %v5448_v49, 0.0  ;;  %v299_v20 = vmul.f32 %v297_v13, %v5428_v1  ;;  %v302_v22 = vrot.slane %v298_v17, 2 }
  0x67   :  { %v159_v28 = vadd.f32 %v158_v26, %v156_v27  ;;  %v234_v52 = vmax.f32 %v5450_v50, 0.0  ;;  %v291_v21 = vsel %vm127_vm0, %v289_v15, %v290_v16  ;;  %v310_v29 = vstv %s4637_s23  ;;  %s769_s23 = sld [smem:[#allocation10]] }
  0x68   :  { %v237_v53 = vsel %vm157_vm2, %v235_v51, 0.0  ;;  %v294_v23 = vadd.f32 %v291_v21, %v281_v18  ;;  %v1996_v11 = vstv %s4790_s28  ;;  %v2265_v12 = vstv %s4817_s6  ;;  %s5684_s28 = sld [smem:[#allocation10 + $0x180]] }
  0x69   :  { %160 = vadd.xlane.f32.xlu0 %v159_v28  ;;  %v236_v54 = vsel %vm155_vm3, %v234_v52, 0.0  ;;  %v2534_v17 = vstv %s5508_s3  ;;  %s5688_s6 = sld [smem:[#allocation10 + $0x280]] }
  0x6a   :  { %v238_v55 = vadd.f32 %v237_v53, %v236_v54  ;;  %s5692_s3 = sld [smem:[#allocation10 + $0x380]] }
  0x6c   :  { %239 = vadd.xlane.f32.xlu1 %v238_v55 }
  0xf6   :  { %v161_v56 = vpop.xlane.xlu0 %160 }
  0xf7   :  { %v162_v57 = vrot.slane %v161_v56, 4 }
  0xf9   :  { %v163_v58 = vadd.f32 %v162_v57, %v161_v56  ;;  %v240_v37 = vpop.xlane.xlu1 %239 }
  0xfa   :  { %v241_v38 = vrot.slane %v240_v37, 4 }
  0xfb   :  { %v164_v59 = vrot.slane %v163_v58, 2 }
  0xfc   :  { %v242_v39 = vadd.f32 %v241_v38, %v240_v37 }
  0xfd   :  { %v165_v60 = vadd.f32 %v164_v59, %v163_v58 }
  0xfe   :  { %v243_v40 = vrot.slane %v242_v39, 2 }
  0xff   :  { %v166_v61 = vrot.slane %v165_v60, 1 }
 0x100   :  { %v244_v44 = vadd.f32 %v243_v40, %v242_v39  ;;  %v2968_v39 = vstv %s5518_s13  ;;  %s5700_s13 = sld [smem:[#allocation10 + $0x480]] }
 0x101   :  { %v167_v62 = vadd.f32 %v166_v61, %v165_v60 }
 0x102   :  { %v245_v47 = vrot.slane %v244_v44, 1 }
 0x103   :  { %5148 = vpush %v167_v62 }
 0x104   :  { %v246_v54 = vadd.f32 %v245_v47, %v244_v44  ;;  %v3072_v47 = vstv %s5525_s14  ;;  %s5708_s14 = sld [smem:[#allocation10 + $0x181]] }
 0x134   :  { %s5149_s4 = spop %5148 }
 0x135   :  { %v169_v63 = vstv %s5149_s4 }
 0x136   :  { %v170_v2 = vmul.f32 0.035714287, %v169_v63 }
 0x138   :  { %v5460_v3 = vsub.f32 %v153_v25, %v170_v2  ;;  %v5462_v4 = vsub.f32 %v154_v24, %v170_v2  ;;  %v295_v24 = vadd.f32 %v290_v16, %v282_v19  ;;  %v303_v25 = vrot.slane %v299_v20, 2 }
 0x139   :  { %v2430_v16 = vstv %s5506_s7  ;;  %s5690_s7 = sld [smem:[#allocation10 + $0x300]] }
 0x13a   :  { %v173_v5 = vmul.f32 %v5460_v3, %v5460_v3  ;;  %v174_v6 = vmul.f32 %v5462_v4, %v5462_v4  ;;  %v304_v26 = vsel %vm141_vm1, %v302_v22, %v303_v25  ;;  %v308_v27 = vadd.f32 %v303_v25, %v295_v24 }
 0x13b   :  { %v307_v28 = vadd.f32 %v304_v26, %v294_v23  ;;  %v2699_v23 = vstv %s5512_s5  ;;  %v2803_v24 = vstv %s5514_s30  ;;  %s5696_s5 = sld [smem:[#allocation10 + $0x101]]  ;;  %s5698_s30 = sld [smem:[#allocation10 + $0x400]] }
 0x13c   :  { %v175_v7 = vsel %vm155_vm3, %v173_v5, 0.0  ;;  %v176_v8 = vsel %vm157_vm2, %v174_v6, 0.0  ;;  %v5478_v30 = vadd.f32 %v310_v29, %v308_v27 }
 0x13d   :  { %v177_v9 = vadd.f32 %v176_v8, %v175_v7  ;;  %v5480_v31 = vadd.f32 %v310_v29, %v307_v28  ;;  %v197_v8 = vstv %s196_s27  ;;  %s5682_s27 = sld [smem:[#allocation10 + $0x100]] }
 0x13e   :  { %v314_v32 = vmax.f32 %v5478_v30, 0.0  ;;  %v271_v30 = vstv %s4632_s21  ;;  %s5754_s21 = sld [smem:[#allocation10 + $0x381]] }
 0x13f   :  { %178 = vadd.xlane.f32.xlu0 %v177_v9  ;;  %v313_v33 = vmax.f32 %v5480_v31, 0.0 }
 0x140   :  { %v316_v34 = vsel %vm157_vm2, %v314_v32, 0.0 }
 0x141   :  { %v315_v35 = vsel %vm155_vm3, %v313_v33, 0.0 }
 0x142   :  { %v317_v36 = vadd.f32 %v316_v34, %v315_v35 }
 0x144   :  { %318 = vadd.xlane.f32.xlu0 %v317_v36 }
 0x1cc   :  { %v179_v41 = vpop.xlane.xlu0 %178 }
 0x1cd   :  { %v180_v42 = vrot.slane %v179_v41, 4 }
 0x1cf   :  { %v181_v43 = vadd.f32 %v180_v42, %v179_v41 }
 0x1d1   :  { %v182_v45 = vrot.slane %v181_v43, 2 }
 0x1d3   :  { %v183_v46 = vadd.f32 %v182_v45, %v181_v43 }
 0x1d5   :  { %v184_v48 = vrot.slane %v183_v46, 1 }
 0x1d7   :  { %v185_v53 = vadd.f32 %v184_v48, %v183_v46 }
 0x1d9   :  { %5150 = vpush %v185_v53 }
 0x1da   :  { %5152 = vpush %v246_v54 }
 0x20a   :  { %s5151_s24 = spop %5150 }
 0x20b   :  { %v187_v55 = vstv %s5151_s24  ;;  %s5153_s25 = spop %5152  ;;  %s4670_s24 = sld [smem:[#allocation10 + $0x1]] }
 0x20c   :  { %v248_v56 = vstv %s5153_s25  ;;  %v188_v57 = vmul.f32 0.035714287, %v187_v55  ;;  %v3237_v55 = vstv %s5529_s15  ;;  %s5678_s25 = sld [smem:[#allocation10 + $0x80]]  ;;  %s5721_s15 = sld [smem:[#allocation10 + $0x201]] }
 0x20d   :  { %v249_v58 = vmul.f32 0.035714287, %v248_v56 }
 0x20e   :  { %v190_v61 = vadd.f32 1e-05, %v188_v57 }
 0x20f   :  { %v5492_v59 = vsub.f32 %v234_v52, %v249_v58  ;;  %v5496_v60 = vsub.f32 %v235_v51, %v249_v58  ;;  %v192_v52 = vstv %s189_s26  ;;  %s5680_s26 = sld [smem:[#allocation10 + $0x81]] }
 0x210   :  { %5226 = vrsqrt.f32 %v190_v61  ;;  %v3341_v61 = vstv %s5536_s16  ;;  %s5723_s16 = sld [smem:[#allocation10 + $0xc01]] }
 0x211   :  { %v252_v62 = vmul.f32 %v5492_v59, %v5492_v59  ;;  %v253_v63 = vmul.f32 %v5496_v60, %v5496_v60 }
 0x213   :  { %v254_v2 = vsel %vm155_vm3, %v252_v62, 0.0  ;;  %v255_v5 = vsel %vm157_vm2, %v253_v63, 0.0 }
 0x214   :  { %v256_v6 = vadd.f32 %v255_v5, %v254_v2 }
 0x216   :  { %257 = vadd.xlane.f32.xlu1 %v256_v6 }
 0x21a   :  { %v5227_v50 = vpop.eup %5226 }
 0x21b   :  { %v193_v49 = vmul.f32 %v5227_v50, %v192_v52 }
 0x21d   :  { %v194_v51 = vmul.f32 %v193_v49, %v5460_v3  ;;  %v195_v7 = vmul.f32 %v193_v49, %v5462_v4  ;;  %v2161_v3 = vstv %s4809_s29  ;;  %s5686_s29 = sld [smem:[#allocation10 + $0x200]] }
 0x21f   :  { %v5510_v9 = vadd.f32 %v197_v8, %v194_v51  ;;  %v5516_v10 = vadd.f32 %v197_v8, %v195_v7 }
 0x221   :  { %v1997_v4 = vmul.f32 %v1996_v11, %v5510_v9  ;;  %v5522_v13 = vmul.f32 %v1996_v11, %v5516_v10  ;;  %v2162_v14 = vmul.f32 %v2161_v3, %v5510_v9  ;;  %v5533_v19 = vmul.f32 %v2161_v3, %v5516_v10 }
 0x222   :  { %v2266_v21 = vmul.f32 %v2265_v12, %v5510_v9  ;;  %v5539_v22 = vmul.f32 %v2265_v12, %v5516_v10  ;;  %v2431_v28 = vmul.f32 %v2430_v16, %v5510_v9  ;;  %v5552_v34 = vmul.f32 %v2430_v16, %v5516_v10 }
 0x223   :  { %10178 = vst [vmem:[#allocation17_spill] sm:$0xff] %v5522_v13  ;;  %v2001_v15 = vrot.slane %v1997_v4, 2  ;;  %v9964_v18 = vrot.slane %v5522_v13, 2  ;;  %10179 = vst [vmem:[#allocation18_spill] sm:$0xff] %v5533_v19  ;;  %v2166_v20 = vrot.slane %v2162_v14, 1  ;;  %v9963_v26 = vrot.slane %v5533_v19, 1 }
 0x224   :  { %10180 = vst [vmem:[#allocation19_spill] sm:$0xff] %v5539_v22  ;;  %v2270_v27 = vrot.slane %v2266_v21, 2  ;;  %v9960_v29 = vrot.slane %v5539_v22, 2  ;;  %10182 = vst [vmem:[#allocation21_spill] sm:$0xff] %v5552_v34  ;;  %v2535_v35 = vmul.f32 %v2534_v17, %v5510_v9  ;;  %v5556_v36 = vmul.f32 %v2534_v17, %v5516_v10 }
 0x225   :  { %v5546_v25 = vsel %vm141_vm1, %v2001_v15, %v9964_v18  ;;  %v5561_v37 = vsel %vm127_vm0, %v2166_v20, %v9963_v26  ;;  %v2435_v38 = vrot.slane %v2431_v28, 1  ;;  %v9962_v41 = vrot.slane %v5552_v34, 1 }
 0x226   :  { %10181 = vst [vmem:[#allocation20_spill] sm:$0xff] %v5546_v25  ;;  %10183 = vst [vmem:[#allocation22_spill] sm:$0xff] %v5556_v36  ;;  %v5567_v40 = vsel %vm141_vm1, %v2270_v27, %v9960_v29  ;;  %v2539_v42 = vrot.slane %v2535_v35, 2  ;;  %v9959_v43 = vrot.slane %v5556_v36, 2  ;;  %v2700_v44 = vmul.f32 %v2699_v23, %v5510_v9 }
 0x227   :  { %10184 = vst [vmem:[#allocation23_spill] sm:$0xff] %v5561_v37  ;;  %10185 = vst [vmem:[#allocation24_spill] sm:$0xff] %v5567_v40  ;;  %v5573_v45 = vmul.f32 %v2699_v23, %v5516_v10  ;;  %v2804_v46 = vmul.f32 %v2803_v24, %v5510_v9  ;;  %v5580_v48 = vsel %vm127_vm0, %v2435_v38, %v9962_v41  ;;  %v363_v27 = vstv %s4641_s17  ;;  %s5730_s17 = sld [smem:[#allocation10 + $0x281]] }
 0x228   :  { %10187 = vst [vmem:[#allocation26_spill] sm:$0xff] %v5580_v48  ;;  %v5585_v53 = vsel %vm141_vm1, %v2539_v42, %v9959_v43  ;;  %v5588_v54 = vmul.f32 %v2803_v24, %v5516_v10  ;;  %v2704_v56 = vrot.slane %v2700_v44, 1  ;;  %v2969_v63 = vmul.f32 %v2968_v39, %v5510_v9 }
 0x229   :  { %10186 = vst [vmem:[#allocation25_spill] sm:$0xff] %v5573_v45  ;;  %10188 = vst [vmem:[#allocation27_spill] sm:$0xff] %v5585_v53  ;;  %v9961_v57 = vrot.slane %v5573_v45, 1  ;;  %v2808_v58 = vrot.slane %v2804_v46, 2  ;;  %v5596_v2 = vmul.f32 %v2968_v39, %v5516_v10  ;;  %v3073_v5 = vmul.f32 %v3072_v47, %v5510_v9 }
 0x22a   :  { %10189 = vst [vmem:[#allocation28_spill] sm:$0xff] %v5588_v54  ;;  %v9958_v62 = vrot.slane %v5588_v54, 2  ;;  %v5605_v50 = vmul.f32 %v3072_v47, %v5516_v10  ;;  %v3238_v52 = vmul.f32 %v3237_v55, %v5510_v9  ;;  %v2973_v51 = vrot.slane %v2969_v63, 1 }
 0x22b   :  { %10190 = vst [vmem:[#allocation29_spill] sm:$0xff] %v5596_v2  ;;  %v5602_v6 = vsel %vm127_vm0, %v2704_v56, %v9961_v57  ;;  %v9957_v7 = vrot.slane %v5596_v2, 1  ;;  %v3077_v8 = vrot.slane %v3073_v5, 2  ;;  %v5616_v3 = vmul.f32 %v3237_v55, %v5516_v10 }
 0x22c   :  { %10191 = vst [vmem:[#allocation30_spill] sm:$0xff] %v5602_v6  ;;  %10192 = vst [vmem:[#allocation31_spill] sm:$0xff] %v5605_v50  ;;  %v5611_v49 = vsel %vm141_vm1, %v2808_v58, %v9958_v62  ;;  %v9956_v11 = vrot.slane %v5605_v50, 2  ;;  %v3242_v4 = vrot.slane %v3238_v52, 1  ;;  %v3342_v12 = vmul.f32 %v3341_v61, %v5510_v9 }
 0x22d   :  { %10193 = vst [vmem:[#allocation32_spill] sm:$0xff] %v5611_v49  ;;  %10194 = vst [vmem:[#allocation33_spill] sm:$0xff] %v5616_v3  ;;  %v5622_v14 = vsel %vm127_vm0, %v2973_v51, %v9957_v7  ;;  %v5625_v15 = vmul.f32 %v3341_v61, %v5516_v10  ;;  %v9955_v17 = vrot.slane %v5616_v3, 1  ;;  %v364_v28 = vmul.f32 %v363_v27, %v5423_v0 }
 0x22e   :  { %10195 = vst [vmem:[#allocation34_spill] sm:$0xff] %v5622_v14  ;;  %v5630_v16 = vsel %vm141_vm1, %v3077_v8, %v9956_v11  ;;  %v3346_v20 = vrot.slane %v3342_v12, 2  ;;  %v365_v35 = vmul.f32 %v363_v27, %v5428_v1  ;;  %v376_v38 = vstv %s4642_s18  ;;  %s5732_s18 = sld [smem:[#allocation10 + $0x781]] }
 0x22f   :  { %10196 = vst [vmem:[#allocation35_spill] sm:$0xff] %v5625_v15  ;;  %10197 = vst [vmem:[#allocation36_spill] sm:$0xff] %v5630_v16  ;;  %v9954_v21 = vrot.slane %v5625_v15, 2  ;;  %v5637_v23 = vsel %vm127_vm0, %v3242_v4, %v9955_v17  ;;  %v359_v39 = vstv %s4640_s19  ;;  %v368_v42 = vrot.slane %v364_v28, 1  ;;  %s5735_s19 = sld [smem:[#allocation10 + $0xc81]] }
 0x230   :  { %10198 = vst [vmem:[#allocation37_spill] sm:$0xff] %v5637_v23  ;;  %v369_v44 = vrot.slane %v365_v35, 1  ;;  %v377_v46 = vmul.f32 %v376_v38, %v5423_v0  ;;  %v360_v47 = vmul.f32 %v359_v39, %v5423_v0  ;;  %v361_v55 = vmul.f32 %v359_v39, %v5428_v1  ;;  %v319_v39 = vpop.xlane.xlu0 %318 }
 0x231   :  { %v5642_v24 = vsel %vm141_vm1, %v3346_v20, %v9954_v21  ;;  %v378_v56 = vmul.f32 %v376_v38, %v5428_v1  ;;  %v389_v12 = vstv %s4643_s2  ;;  %s5738_s2 = sld [smem:[#allocation10 + $0x301]]  ;;  %v1581_v21 = vstv %s5708_s14  ;;  %s6093_s14 = sld [smem:[#allocation10 + $0x482]] }
 0x232   :  { %10199 = vst [vmem:[#allocation38_spill] sm:$0xff] %v5642_v24  ;;  %v370_v58 = vsel %vm127_vm0, %v368_v42, %v369_v44  ;;  %v381_v61 = vrot.slane %v377_v46, 2  ;;  %v374_v5 = vadd.f32 %v369_v44, %v361_v55  ;;  %v320_v42 = vrot.slane %v319_v39, 4 }
 0x233   :  { %v373_v63 = vadd.f32 %v370_v58, %v360_v47  ;;  %v382_v52 = vrot.slane %v378_v56, 2  ;;  %v1850_v43 = vstv %s5721_s15  ;;  %v2009_v29 = vstv %s5723_s16  ;;  %s4649_s15 = sld [smem:[#allocation5 + $0x4]] }
 0x234   :  { %v321_v44 = vadd.f32 %v320_v42, %v319_v39  ;;  %v2119_v41 = vstv %s5730_s17  ;;  %v2174_v26 = vstv %s5732_s18  ;;  %v2657_v3 = vstv %s5754_s21  ;;  %s4638_s18 = sld [smem:[#allocation7 + $0x2]] }
 0x235   :  { %v383_v51 = vsel %vm141_vm1, %v381_v61, %v382_v52  ;;  %v387_v8 = vadd.f32 %v382_v52, %v374_v5  ;;  %s6041_s21 = sld [smem:[#allocation10 + $0x182]] }
 0x236   :  { %v386_v4 = vadd.f32 %v383_v51, %v373_v63  ;;  %v322_v46 = vrot.slane %v321_v44, 2 }
 0x237   :  { %v5652_v20 = vadd.f32 %v389_v12, %v387_v8 }
 0x238   :  { %v5654_v27 = vadd.f32 %v389_v12, %v386_v4  ;;  %v323_v58 = vadd.f32 %v322_v46, %v321_v44 }
 0x239   :  { %v9965_v0 = vmax.f32 %v5652_v20, 0.0 }
 0x23a   :  { %v9966_v28 = vmax.f32 %v5654_v27, 0.0  ;;  %v324_v5 = vrot.slane %v323_v58, 1 }
 0x23b   :  { %v395_v1 = vsel %vm157_vm2, %v9965_v0, 0.0  ;;  %v2388_v0 = vstv %s5738_s2  ;;  %s4671_s2 = sld [smem:[#allocation10 + $0x2]] }
 0x23c   :  { %v394_v35 = vsel %vm155_vm3, %v9966_v28, 0.0  ;;  %v325_v8 = vadd.f32 %v324_v5, %v323_v58  ;;  %v774_v5 = vstv %s4670_s24  ;;  %s5765_s24 = sld [smem:[#allocation10 + $0x401]] }
 0x23d   :  { %v396_v38 = vadd.f32 %v395_v1, %v394_v35 }
 0x23f   :  { %397 = vadd.xlane.f32.xlu0 %v396_v38 }
 0x2a3   :  { %v258_v47 = vpop.xlane.xlu1 %257 }
 0x2a4   :  { %v259_v55 = vrot.slane %v258_v47, 4 }
 0x2a6   :  { %v260_v56 = vadd.f32 %v259_v55, %v258_v47 }
 0x2a8   :  { %v261_v61 = vrot.slane %v260_v56, 2 }
 0x2aa   :  { %v262_v63 = vadd.f32 %v261_v61, %v260_v56  ;;  %v276_v56 = vstv %s4633_s22  ;;  %s5756_s22 = sld [smem:[#allocation10 + $0x881]] }
 0x2ac   :  { %v263_v52 = vrot.slane %v262_v63, 1 }
 0x2ae   :  { %v264_v51 = vadd.f32 %v263_v52, %v262_v63  ;;  %v770_v63 = vstv %s769_s23  ;;  %s5763_s23 = sld [smem:[#allocation10 + $0xd81]] }
 0x2b0   :  { %5154 = vpush %v264_v51 }
 0x2b1   :  { %5156 = vpush %v325_v8  ;;  %v1039_v8 = vstv %s5678_s25  ;;  %s5775_s25 = sld [smem:[#allocation10 + $0x901]] }
 0x2b7   :  { %v2981_v16 = vstv %s5775_s25  ;;  %s6061_s25 = sld [smem:[#allocation10 + $0x782]] }
 0x2e1   :  { %s5155_s4 = spop %5154 }
 0x2e2   :  { %v266_v4 = vstv %s5155_s4  ;;  %s5157_s20 = spop %5156  ;;  %s5745_s4 = sld [smem:[#allocation10 + $0x801]] }
 0x2e3   :  { %v267_v12 = vmul.f32 0.035714287, %v266_v4  ;;  %v327_v1 = vstv %s5157_s20  ;;  %v1043_v4 = vstv %s5680_s26  ;;  %s5747_s20 = sld [smem:[#allocation10 + $0xd01]] }
 0x2e4   :  { %v328_v35 = vmul.f32 0.035714287, %v327_v1  ;;  %s5788_s26 = sld [smem:[#allocation10 + $0xe01]] }
 0x2e5   :  { %v269_v38 = vadd.f32 1e-05, %v267_v12 }
 0x2e6   :  { %v5666_v39 = vsub.f32 %v313_v33, %v328_v35  ;;  %v5670_v42 = vsub.f32 %v314_v32, %v328_v35  ;;  %v1040_v35 = vmul.f32 %v1039_v8, %v5510_v9 }
 0x2e7   :  { %5228 = vrsqrt.f32 %v269_v38 }
 0x2e8   :  { %v331_v44 = vmul.f32 %v5666_v39, %v5666_v39  ;;  %v332_v46 = vmul.f32 %v5670_v42, %v5670_v42  ;;  %v2443_v28 = vstv %s5745_s4  ;;  %s4695_s4 = sld [smem:[#allocation10 + $0x82]] }
 0x2e9   :  { %v2547_v24 = vstv %s5747_s20  ;;  %s6035_s20 = sld [smem:[#allocation10 + $0x102]] }
 0x2ea   :  { %v333_v47 = vsel %vm155_vm3, %v331_v44, 0.0  ;;  %v334_v55 = vsel %vm157_vm2, %v332_v46, 0.0  ;;  %v3085_v2 = vstv %s5788_s26  ;;  %s6064_s26 = sld [smem:[#allocation10 + $0xc82]] }
 0x2eb   :  { %v335_v31 = vadd.f32 %v334_v55, %v333_v47  ;;  %v1308_v47 = vstv %s5682_s27  ;;  %s5790_s27 = sld [smem:[#allocation10 + $0x481]] }
 0x2ed   :  { %336 = vadd.xlane.f32.xlu1 %v335_v31  ;;  %v1577_v31 = vstv %s5684_s28  ;;  %s5800_s28 = sld [smem:[#allocation10 + $0x981]] }
 0x2f1   :  { %v5229_v32 = vpop.eup %5228 }
 0x2f2   :  { %v272_v33 = vmul.f32 %v5229_v32, %v271_v30  ;;  %v1846_v30 = vstv %s5686_s29  ;;  %v2115_v32 = vstv %s5688_s6  ;;  %s5805_s29 = sld [smem:[#allocation10 + $0xe81]]  ;;  %s4647_s6 = sld [smem:[#allocation3 + $0x84]] }
 0x2f3   :  { %v1848_v17 = vmul.f32 %v1846_v30, %v5516_v10 }
 0x2f4   :  { %v273_v58 = vmul.f32 %v272_v33, %v5492_v59  ;;  %v274_v61 = vmul.f32 %v272_v33, %v5496_v60  ;;  %v771_v59 = vmul.f32 %v770_v63, %v5510_v9  ;;  %v772_v60 = vmul.f32 %v770_v63, %v5516_v10 }
 0x2f5   :  { %v1312_v33 = vstv %s5696_s5  ;;  %v1041_v63 = vmul.f32 %v1039_v8, %v5516_v10  ;;  %s6084_s5 = sld [smem:[#allocation10 + $0x402]] }
 0x2f6   :  { %v5702_v52 = vadd.f32 %v276_v56, %v273_v58  ;;  %v5704_v51 = vadd.f32 %v276_v56, %v274_v61  ;;  %v2384_v56 = vstv %s5690_s7  ;;  %v2653_v58 = vstv %s5692_s3  ;;  %s4648_s7 = sld [smem:[#allocation3 + $0x104]] }
 0x2f7   :  { %v2922_v61 = vstv %s5698_s30  ;;  %v5770_v11 = vmul.f32 %v2384_v56, %v5510_v9  ;;  %v5783_v7 = vmul.f32 %v2653_v58, %v5516_v10  ;;  %s4646_s3 = sld [smem:[#allocation3 + $0x4]]  ;;  %s6086_s30 = sld [smem:[#allocation10 + $0x902]] }
 0x2f8   :  { %v775_v12 = vmul.f32 %v774_v5, %v5702_v52  ;;  %v776_v1 = vmul.f32 %v774_v5, %v5704_v51  ;;  %v1044_v38 = vmul.f32 %v1043_v4, %v5702_v52  ;;  %v1045_v5 = vmul.f32 %v1043_v4, %v5704_v51 }
 0x2f9   :  { %v1313_v4 = vmul.f32 %v1312_v33, %v5702_v52  ;;  %v1583_v62 = vmul.f32 %v1581_v21, %v5704_v51  ;;  %v1851_v15 = vmul.f32 %v1850_v43, %v5702_v52  ;;  %v5834_v50 = vmul.f32 %v2009_v29, %v5704_v51 }
 0x2fa   :  { %v5716_v44 = vadd.f32 %v775_v12, %v771_v59  ;;  %v5718_v46 = vadd.f32 %v776_v1, %v772_v60  ;;  %v5725_v55 = vadd.f32 %v1044_v38, %v1040_v35  ;;  %v1309_v59 = vmul.f32 %v1308_v47, %v5510_v9 }
 0x2fb   :  { %v3191_v60 = vstv %s5700_s13  ;;  %v1310_v12 = vmul.f32 %v1308_v47, %v5516_v10  ;;  %v1578_v1 = vmul.f32 %v1577_v31, %v5510_v9  ;;  %v1579_v35 = vmul.f32 %v1577_v31, %v5516_v10  ;;  %10200 = vst [vmem:[#allocation39_spill] sm:$0xff] %v5834_v50  ;;  %s6091_s13 = sld [smem:[#allocation10 + $0xe02]] }
 0x2fc   :  { %v1847_v38 = vmul.f32 %v1846_v30, %v5510_v9  ;;  %v5758_v8 = vadd.f32 %v1045_v5, %v1041_v63  ;;  %v2116_v47 = vmul.f32 %v2115_v32, %v5510_v9  ;;  %v2117_v31 = vmul.f32 %v2115_v32, %v5516_v10 }
 0x2fd   :  { %v5773_v63 = vmul.f32 %v2384_v56, %v5516_v10  ;;  %v5777_v5 = vadd.f32 %v1313_v4, %v1309_v59  ;;  %v5780_v30 = vmul.f32 %v2653_v58, %v5510_v9  ;;  %v5786_v32 = vmul.f32 %v2922_v61, %v5510_v9 }
 0x2fe   :  { %v1314_v56 = vmul.f32 %v1312_v33, %v5704_v51  ;;  %v1582_v59 = vmul.f32 %v1581_v21, %v5702_v52  ;;  %v5795_v4 = vmul.f32 %v2922_v61, %v5516_v10  ;;  %v5798_v58 = vmul.f32 %v3191_v60, %v5510_v9 }
 0x2ff   :  { %v5808_v33 = vmul.f32 %v3191_v60, %v5516_v10  ;;  %v5816_v18 = vadd.f32 %v1583_v62, %v1579_v35  ;;  %v2278_v21 = vstv %s5735_s19  ;;  %v1852_v60 = vmul.f32 %v1850_v43, %v5704_v51  ;;  %s4639_s19 = sld [smem:[#allocation8 + $0x2]] }
 0x300   :  { %v5810_v61 = vadd.f32 %v1314_v56, %v1310_v12  ;;  %v5812_v57 = vadd.f32 %v1582_v59, %v1578_v1  ;;  %v2010_v12 = vmul.f32 %v2009_v29, %v5702_v52  ;;  %v2712_v1 = vstv %s5756_s22  ;;  %s6052_s22 = sld [smem:[#allocation10 + $0x202]] }
 0x301   :  { %v2816_v56 = vstv %s5763_s23  ;;  %v2926_v59 = vstv %s5765_s24  ;;  %v5829_v62 = vadd.f32 %v1851_v15, %v1847_v38  ;;  %v5831_v35 = vadd.f32 %v1852_v60, %v1848_v17  ;;  %s6054_s23 = sld [smem:[#allocation10 + $0xc02]] }
 0x302   :  { %v2014_v23 = vrot.slane %v2010_v12, 2  ;;  %v2120_v43 = vmul.f32 %v2119_v41, %v5702_v52  ;;  %v9975_v54 = vrot.slane %v5834_v50, 2  ;;  %v2175_v49 = vmul.f32 %v2174_v26, %v5702_v52  ;;  %s6059_s24 = sld [smem:[#allocation10 + $0x282]] }
 0x303   :  { %v5843_v36 = vmul.f32 %v2174_v26, %v5704_v51  ;;  %v3250_v15 = vstv %s5800_s28  ;;  %v2279_v17 = vmul.f32 %v2278_v21, %v5702_v52  ;;  %v5850_v29 = vmul.f32 %v2278_v21, %v5704_v51  ;;  %s6069_s28 = sld [smem:[#allocation10 + $0x802]] }
 0x304   :  { %v5846_v38 = vadd.f32 %v2120_v43, %v2116_v47  ;;  %v3354_v60 = vstv %s5805_s29  ;;  %v5856_v12 = vsel %vm141_vm1, %v2014_v23, %v9975_v54  ;;  %v2179_v14 = vrot.slane %v2175_v49, 1  ;;  %s6071_s29 = sld [smem:[#allocation10 + $0xd02]] }
 0x305   :  { %10201 = vst [vmem:[#allocation40_spill] sm:$0xff] %v5843_v36  ;;  %10202 = vst [vmem:[#allocation41_spill] sm:$0xff] %v5850_v29  ;;  %v9977_v53 = vrot.slane %v5843_v36, 1  ;;  %v2121_v26 = vmul.f32 %v2119_v41, %v5704_v51  ;;  %v2283_v22 = vrot.slane %v2279_v17, 2  ;;  %v9980_v47 = vrot.slane %v5850_v29, 2 }
 0x306   :  { %10203 = vst [vmem:[#allocation42_spill] sm:$0xff] %v5856_v12  ;;  %v2389_v43 = vmul.f32 %v2388_v0, %v5702_v52  ;;  %v2444_v45 = vmul.f32 %v2443_v28, %v5702_v52  ;;  %v5871_v49 = vmul.f32 %v2443_v28, %v5704_v51  ;;  %v2548_v23 = vmul.f32 %v2547_v24, %v5702_v52 }
 0x307   :  { %v5866_v21 = vsel %vm127_vm0, %v2179_v14, %v9977_v53  ;;  %v5868_v6 = vadd.f32 %v2121_v26, %v2117_v31  ;;  %v5877_v41 = vsel %vm141_vm1, %v2283_v22, %v9980_v47  ;;  %v5883_v34 = vmul.f32 %v2547_v24, %v5704_v51 }
 0x308   :  { %10204 = vst [vmem:[#allocation43_spill] sm:$0xff] %v5866_v21  ;;  %10205 = vst [vmem:[#allocation44_spill] sm:$0xff] %v5871_v49  ;;  %v5880_v17 = vadd.f32 %v2389_v43, %v5770_v11  ;;  %v2448_v54 = vrot.slane %v2444_v45, 1  ;;  %v9982_v14 = vrot.slane %v5871_v49, 1  ;;  %v2552_v31 = vrot.slane %v2548_v23, 2 }
 0x309   :  { %10206 = vst [vmem:[#allocation45_spill] sm:$0xff] %v5877_v41  ;;  %10207 = vst [vmem:[#allocation46_spill] sm:$0xff] %v5883_v34  ;;  %v2390_v28 = vmul.f32 %v2388_v0, %v5704_v51  ;;  %v2658_v26 = vmul.f32 %v2657_v3, %v5702_v52  ;;  %v9979_v53 = vrot.slane %v5883_v34, 2  ;;  %v2659_v29 = vmul.f32 %v2657_v3, %v5704_v51 }
 0x30a   :  { %v2713_v22 = vmul.f32 %v2712_v1, %v5702_v52  ;;  %v5892_v11 = vmul.f32 %v2712_v1, %v5704_v51  ;;  %v5897_v45 = vsel %vm127_vm0, %v2448_v54, %v9982_v14  ;;  %v2817_v43 = vmul.f32 %v2816_v56, %v5702_v52 }
 0x30b   :  { %10209 = vst [vmem:[#allocation48_spill] sm:$0xff] %v5897_v45  ;;  %v5900_v24 = vadd.f32 %v2390_v28, %v5773_v63  ;;  %v5903_v0 = vadd.f32 %v2658_v26, %v5780_v30  ;;  %v5909_v3 = vsel %vm141_vm1, %v2552_v31, %v9979_v53  ;;  %v5912_v1 = vadd.f32 %v2659_v29, %v5783_v7 }
 0x30c   :  { %10208 = vst [vmem:[#allocation47_spill] sm:$0xff] %v5892_v11  ;;  %10210 = vst [vmem:[#allocation49_spill] sm:$0xff] %v5909_v3  ;;  %v2717_v23 = vrot.slane %v2713_v22, 1  ;;  %v9981_v54 = vrot.slane %v5892_v11, 1  ;;  %v5916_v63 = vmul.f32 %v2816_v56, %v5704_v51  ;;  %v2821_v28 = vrot.slane %v2817_v43, 2 }
 0x30d   :  { %v2927_v30 = vmul.f32 %v2926_v59, %v5702_v52  ;;  %v2928_v26 = vmul.f32 %v2926_v59, %v5704_v51  ;;  %v2982_v7 = vmul.f32 %v2981_v16, %v5702_v52  ;;  %v5927_v29 = vmul.f32 %v2981_v16, %v5704_v51 }
 0x30e   :  { %10211 = vst [vmem:[#allocation50_spill] sm:$0xff] %v5916_v63  ;;  %v5923_v31 = vsel %vm127_vm0, %v2717_v23, %v9981_v54  ;;  %v3086_v22 = vmul.f32 %v3085_v2, %v5702_v52  ;;  %v9984_v56 = vrot.slane %v5916_v63, 2  ;;  %v5938_v59 = vmul.f32 %v3085_v2, %v5704_v51 }
 0x30f   :  { %10212 = vst [vmem:[#allocation51_spill] sm:$0xff] %v5923_v31  ;;  %10213 = vst [vmem:[#allocation52_spill] sm:$0xff] %v5927_v29  ;;  %v5932_v43 = vadd.f32 %v2927_v30, %v5786_v32  ;;  %v5935_v53 = vadd.f32 %v2928_v26, %v5795_v4  ;;  %v2986_v23 = vrot.slane %v2982_v7, 1  ;;  %v9985_v47 = vrot.slane %v5927_v29, 1 }
 0x310   :  { %10214 = vst [vmem:[#allocation53_spill] sm:$0xff] %v5938_v59  ;;  %v3090_v54 = vrot.slane %v3086_v22, 2  ;;  %v10215_v16 = vstv %s5790_s27  ;;  %v5947_v34 = vsel %vm141_vm1, %v2821_v28, %v9984_v56  ;;  %v9988_v32 = vrot.slane %v5938_v59, 2 }
 0x311   :  { %v3196_v14 = vmul.f32 %v10215_v16, %v5702_v52  ;;  %10216 = vst [vmem:[#allocation54_spill] sm:$0xff] %v5947_v34  ;;  %v3251_v4 = vmul.f32 %v3250_v15, %v5702_v52  ;;  %v5952_v2 = vmul.f32 %v3250_v15, %v5704_v51  ;;  %v5957_v30 = vsel %vm127_vm0, %v2986_v23, %v9985_v47 }
 0x312   :  { %10218 = vst [vmem:[#allocation56_spill] sm:$0xff] %v5957_v30  ;;  %v3355_v7 = vmul.f32 %v3354_v60, %v5702_v52  ;;  %v5964_v28 = vmul.f32 %v3354_v60, %v5704_v51  ;;  %v5969_v22 = vsel %vm141_vm1, %v3090_v54, %v9988_v32  ;;  %v10221_v56 = vstv %s5790_s27  ;;  %s6066_s27 = sld [smem:[#allocation10 + $0x302]] }
 0x313   :  { %10217 = vst [vmem:[#allocation55_spill] sm:$0xff] %v5952_v2  ;;  %v5960_v26 = vadd.f32 %v3196_v14, %v5798_v58  ;;  %10220 = vst [vmem:[#allocation58_spill] sm:$0xff] %v5969_v22  ;;  %v3255_v15 = vrot.slane %v3251_v4, 1  ;;  %v9987_v16 = vrot.slane %v5952_v2, 1  ;;  %v3197_v23 = vmul.f32 %v10221_v56, %v5704_v51  ;;  %v5992_v4 = vld [vmem:[%s9941_s0] sm:$0xff] }
 0x314   :  { %10219 = vst [vmem:[#allocation57_spill] sm:$0xff] %v5964_v28  ;;  %v3359_v47 = vrot.slane %v3355_v7, 2  ;;  %v9986_v58 = vrot.slane %v5964_v28, 2  ;;  %v442_v56 = vstv %s4647_s6  ;;  %s6073_s6 = sld [smem:[#allocation10 + $0x382]]  ;;  %v3098_v41 = vstv %s6091_s13  ;;  %s6364_s13 = sld [smem:[#allocation10 + $0x383]] }
 0x315   :  { %v5979_v14 = vsel %vm127_vm0, %v3255_v15, %v9987_v16  ;;  %v5982_v60 = vadd.f32 %v3197_v23, %v5808_v33  ;;  %v443_v7 = vmul.f32 %v5992_v4, %v442_v56  ;;  %v5998_v33 = vld [vmem:[%s9941_s0 + $0x8] sm:$0xff]  ;;  %v438_v23 = vstv %s4646_s3  ;;  %s6082_s3 = sld [smem:[#allocation10 + $0xd82]] }
 0x316   :  { %10222 = vst [vmem:[#allocation59_spill] sm:$0xff] %v5979_v14  ;;  %v5987_v54 = vsel %vm141_vm1, %v3359_v47, %v9986_v58  ;;  %v444_v15 = vmul.f32 %v5998_v33, %v442_v56  ;;  %v455_v47 = vstv %s4648_s7  ;;  %v439_v28 = vmul.f32 %v5992_v4, %v438_v23  ;;  %s6075_s7 = sld [smem:[#allocation10 + $0x882]] }
 0x317   :  { %10223 = vst [vmem:[#allocation60_spill] sm:$0xff] %v5987_v54  ;;  %v447_v58 = vrot.slane %v443_v7, 1  ;;  %v456_v32 = vmul.f32 %v5992_v4, %v455_v47  ;;  %v440_v54 = vmul.f32 %v5998_v33, %v438_v23  ;;  %v457_v2 = vmul.f32 %v5998_v33, %v455_v47 }
 0x318   :  { %v448_v16 = vrot.slane %v444_v15, 1  ;;  %v468_v15 = vstv %s4649_s15  ;;  %s6097_s15 = sld [smem:[#allocation10 + $0x982]] }
 0x319   :  { %v460_v22 = vrot.slane %v456_v32, 2  ;;  %v461_v30 = vrot.slane %v457_v2, 2 }
 0x31a   :  { %v449_v59 = vsel %vm127_vm0, %v447_v58, %v448_v16  ;;  %v453_v29 = vadd.f32 %v448_v16, %v440_v54 }
 0x31b   :  { %v452_v14 = vadd.f32 %v449_v59, %v439_v28  ;;  %v462_v56 = vsel %vm141_vm1, %v460_v22, %v461_v30 }
 0x31c   :  { %v466_v63 = vadd.f32 %v461_v30, %v453_v29  ;;  %v398_v29 = vpop.xlane.xlu0 %397 }
 0x31d   :  { %v465_v7 = vadd.f32 %v462_v56, %v452_v14  ;;  %v399_v30 = vrot.slane %v398_v29, 4 }
 0x31e   :  { %v6007_v34 = vadd.f32 %v468_v15, %v466_v63 }
 0x31f   :  { %v6009_v3 = vadd.f32 %v468_v15, %v465_v7  ;;  %v400_v63 = vadd.f32 %v399_v30, %v398_v29  ;;  %v10224_v30 = vmax.f32 %v5654_v27, 0.0 }
 0x320   :  { %v9995_v11 = vmax.f32 %v6007_v34, 0.0 }
 0x321   :  { %v9996_v23 = vmax.f32 %v6009_v3, 0.0  ;;  %v401_v28 = vrot.slane %v400_v63, 2 }
 0x322   :  { %v474_v32 = vsel %vm157_vm2, %v9995_v11, 0.0 }
 0x323   :  { %v473_v59 = vsel %vm155_vm3, %v9996_v23, 0.0  ;;  %v402_v14 = vadd.f32 %v401_v28, %v400_v63  ;;  %v10225_v63 = vmax.f32 %v5652_v20, 0.0  ;;  %v350_v20 = vstv %s4638_s18  ;;  %s4654_s18 = sld [smem:[#allocation3 + $0x105]] }
 0x324   :  { %v475_v2 = vadd.f32 %v474_v32, %v473_v59 }
 0x325   :  { %v403_v56 = vrot.slane %v402_v14, 1 }
 0x326   :  { %476 = vadd.xlane.f32.xlu0 %v475_v2 }
 0x327   :  { %v404_v11 = vadd.f32 %v403_v56, %v402_v14 }
 0x37a   :  { %v337_v22 = vpop.xlane.xlu1 %336 }
 0x37b   :  { %v338_v16 = vrot.slane %v337_v22, 4 }
 0x37d   :  { %v339_v58 = vadd.f32 %v338_v16, %v337_v22 }
 0x37f   :  { %v340_v54 = vrot.slane %v339_v58, 2 }
 0x381   :  { %v341_v47 = vadd.f32 %v340_v54, %v339_v58  ;;  %v355_v54 = vstv %s4639_s19  ;;  %s4652_s19 = sld [smem:[#allocation3 + $0x5]] }
 0x383   :  { %v342_v7 = vrot.slane %v341_v47, 1 }
 0x385   :  { %v343_v15 = vadd.f32 %v342_v7, %v341_v47  ;;  %v780_v7 = vstv %s4671_s2  ;;  %s4655_s2 = sld [smem:[#allocation5 + $0x5]] }
 0x387   :  { %5158 = vpush %v343_v15 }
 0x388   :  { %5160 = vpush %v404_v11 }
 0x3b8   :  { %s5159_s16 = spop %5158 }
 0x3b9   :  { %v345_v23 = vstv %s5159_s16  ;;  %s5161_s17 = spop %5160  ;;  %s6102_s16 = sld [smem:[#allocation10 + $0xe82]] }
 0x3ba   :  { %v346_v32 = vmul.f32 0.035714287, %v345_v23  ;;  %v406_v59 = vstv %s5161_s17  ;;  %s4653_s17 = sld [smem:[#allocation3 + $0x85]] }
 0x3bb   :  { %v407_v2 = vmul.f32 0.035714287, %v406_v59  ;;  %v1049_v59 = vstv %s4695_s4 }
 0x3bc   :  { %v348_v29 = vadd.f32 1e-05, %v346_v32 }
 0x3bd   :  { %v6021_v31 = vsub.f32 %v10224_v30, %v407_v2  ;;  %v6025_v28 = vsub.f32 %v10225_v63, %v407_v2 }
 0x3be   :  { %5230 = vrsqrt.f32 %v348_v29 }
 0x3bf   :  { %v410_v11 = vmul.f32 %v6021_v31, %v6021_v31  ;;  %v411_v22 = vmul.f32 %v6025_v28, %v6025_v28 }
 0x3c1   :  { %v412_v23 = vsel %vm155_vm3, %v410_v11, 0.0  ;;  %v413_v16 = vsel %vm157_vm2, %v411_v22, 0.0  ;;  %v1318_v11 = vstv %s6035_s20  ;;  %v1587_v22 = vstv %s6041_s21  ;;  %s4644_s21 = sld [smem:[#allocation7 + $0x3]] }
 0x3c2   :  { %v414_v27 = vadd.f32 %v413_v16, %v412_v23 }
 0x3c4   :  { %415 = vadd.xlane.f32.xlu1 %v414_v27 }
 0x3c8   :  { %v5231_v58 = vpop.eup %5230 }
 0x3c9   :  { %v351_v14 = vmul.f32 %v5231_v58, %v350_v20  ;;  %v1856_v20 = vstv %s6052_s22  ;;  %s4645_s22 = sld [smem:[#allocation8 + $0x3]] }
 0x3cb   :  { %v352_v47 = vmul.f32 %v351_v14, %v5666_v39  ;;  %v353_v56 = vmul.f32 %v351_v14, %v5670_v42 }
 0x3cd   :  { %v6037_v15 = vadd.f32 %v355_v54, %v352_v47  ;;  %v6039_v32 = vadd.f32 %v355_v54, %v353_v56  ;;  %v2125_v54 = vstv %s6059_s24  ;;  %v2187_v47 = vstv %s6061_s25  ;;  %s4696_s24 = sld [smem:[#allocation10 + $0x83]] }
 0x3ce   :  { %s6326_s25 = sld [smem:[#allocation10 + $0x103]] }
 0x3cf   :  { %v781_v2 = vmul.f32 %v780_v7, %v6037_v15  ;;  %v782_v29 = vmul.f32 %v780_v7, %v6039_v32  ;;  %v1050_v30 = vmul.f32 %v1049_v59, %v6037_v15  ;;  %v1588_v16 = vmul.f32 %v1587_v22, %v6037_v15 }
 0x3d0   :  { %v1589_v27 = vmul.f32 %v1587_v22, %v6039_v32  ;;  %v2291_v7 = vstv %s6064_s26  ;;  %v2932_v22 = vstv %s6084_s5  ;;  %v2126_v49 = vmul.f32 %v2125_v54, %v6037_v15  ;;  %s6332_s26 = sld [smem:[#allocation10 + $0x183]] }
 0x3d1   :  { %v6047_v39 = vadd.f32 %v781_v2, %v5716_v44  ;;  %v6050_v42 = vadd.f32 %v782_v29, %v5718_v46  ;;  %v6057_v63 = vadd.f32 %v1050_v30, %v5725_v55  ;;  %v1051_v44 = vmul.f32 %v1049_v59, %v6039_v32  ;;  %s6360_s5 = sld [smem:[#allocation10 + $0x803]] }
 0x3d2   :  { %v1319_v55 = vmul.f32 %v1318_v11, %v6037_v15  ;;  %v6108_v14 = vadd.f32 %v1588_v16, %v5812_v57  ;;  %v6113_v56 = vadd.f32 %v1589_v27, %v5816_v18  ;;  %v2394_v59 = vstv %s6066_s27  ;;  %s6343_s27 = sld [smem:[#allocation10 + $0x203]] }
 0x3d3   :  { %v6078_v46 = vadd.f32 %v1051_v44, %v5758_v8  ;;  %v1320_v8 = vmul.f32 %v1318_v11, %v6039_v32  ;;  %v2456_v2 = vstv %s6069_s28  ;;  %v1857_v29 = vmul.f32 %v1856_v20, %v6037_v15  ;;  %s6345_s28 = sld [smem:[#allocation10 + $0xc03]] }
 0x3d4   :  { %v6089_v23 = vadd.f32 %v1319_v55, %v5777_v5  ;;  %v2022_v5 = vstv %s6054_s23  ;;  %v1858_v30 = vmul.f32 %v1856_v20, %v6039_v32  ;;  %v2663_v11 = vstv %s6073_s6  ;;  %s4672_s23 = sld [smem:[#allocation10 + $0x3]] }
 0x3d5   :  { %v6105_v58 = vadd.f32 %v1320_v8, %v5810_v61  ;;  %v2560_v61 = vstv %s6071_s29  ;;  %v2023_v57 = vmul.f32 %v2022_v5, %v6037_v15  ;;  %v2725_v44 = vstv %s6075_s7  ;;  %s6350_s29 = sld [smem:[#allocation10 + $0x283]] }
 0x3d6   :  { %v2829_v55 = vstv %s6082_s3  ;;  %v6127_v18 = vadd.f32 %v1857_v29, %v5829_v62  ;;  %v6130_v8 = vadd.f32 %v1858_v30, %v5831_v35  ;;  %v6133_v16 = vmul.f32 %v2022_v5, %v6039_v32  ;;  %s6352_s6 = sld [smem:[#allocation10 + $0x783]] }
 0x3d7   :  { %v2994_v27 = vstv %s6086_s30  ;;  %v2027_v20 = vrot.slane %v2023_v57, 2  ;;  %v2188_v36 = vmul.f32 %v2187_v47, %v6037_v15  ;;  %v6142_v48 = vmul.f32 %v2187_v47, %v6039_v32  ;;  %s6355_s7 = sld [smem:[#allocation10 + $0xc83]] }
 0x3d8   :  { %10226 = vst [vmem:[#allocation61_spill] sm:$0xff] %v6133_v16  ;;  %v10001_v45 = vrot.slane %v6133_v16, 2  ;;  %v3263_v62 = vstv %s6097_s15  ;;  %v6146_v35 = vadd.f32 %v2126_v49, %v5846_v38  ;;  %v2292_v5 = vmul.f32 %v2291_v7, %v6037_v15  ;;  %s6357_s3 = sld [smem:[#allocation10 + $0x303]] }
 0x3d9   :  { %10227 = vst [vmem:[#allocation62_spill] sm:$0xff] %v6142_v48  ;;  %v6150_v29 = vmul.f32 %v2291_v7, %v6039_v32  ;;  %v3367_v30 = vstv %s6102_s16  ;;  %v2192_v40 = vrot.slane %v2188_v36, 1  ;;  %v10003_v19 = vrot.slane %v6142_v48, 1  ;;  %s6362_s30 = sld [smem:[#allocation10 + $0xd03]] }
 0x3da   :  { %v6156_v57 = vsel %vm141_vm1, %v2027_v20, %v10001_v45  ;;  %v2127_v47 = vmul.f32 %v2125_v54, %v6039_v32  ;;  %v2296_v50 = vrot.slane %v2292_v5, 2  ;;  %v2395_v49 = vmul.f32 %v2394_v59, %v6037_v15  ;;  %s6373_s15 = sld [smem:[#allocation10 + $0xd83]] }
 0x3db   :  { %10228 = vst [vmem:[#allocation63_spill] sm:$0xff] %v6150_v29  ;;  %10229 = vst [vmem:[#allocation64_spill] sm:$0xff] %v6156_v57  ;;  %v10007_v38 = vrot.slane %v6150_v29, 2  ;;  %v2457_v12 = vmul.f32 %v2456_v2, %v6037_v15  ;;  %v6166_v7 = vsel %vm127_vm0, %v2192_v40, %v10003_v19  ;;  %v6172_v36 = vmul.f32 %v2456_v2, %v6039_v32  ;;  %s6375_s16 = sld [smem:[#allocation10 + $0x403]] }
 0x3dc   :  { %10230 = vst [vmem:[#allocation65_spill] sm:$0xff] %v6166_v7  ;;  %v6169_v20 = vadd.f32 %v2127_v47, %v5868_v6  ;;  %v2561_v54 = vmul.f32 %v2560_v61, %v6037_v15  ;;  %v6181_v45 = vadd.f32 %v2395_v49, %v5880_v17  ;;  %v6184_v40 = vmul.f32 %v2560_v61, %v6039_v32 }
 0x3dd   :  { %10231 = vst [vmem:[#allocation66_spill] sm:$0xff] %v6172_v36  ;;  %v6178_v5 = vsel %vm141_vm1, %v2296_v50, %v10007_v38  ;;  %v2461_v48 = vrot.slane %v2457_v12, 1  ;;  %v10009_v6 = vrot.slane %v6172_v36, 1  ;;  %v2396_v2 = vmul.f32 %v2394_v59, %v6039_v32 }
 0x3de   :  { %10232 = vst [vmem:[#allocation67_spill] sm:$0xff] %v6178_v5  ;;  %10233 = vst [vmem:[#allocation68_spill] sm:$0xff] %v6184_v40  ;;  %v2565_v47 = vrot.slane %v2561_v54, 2  ;;  %v2664_v19 = vmul.f32 %v2663_v11, %v6037_v15  ;;  %v10006_v16 = vrot.slane %v6184_v40, 2  ;;  %v2665_v29 = vmul.f32 %v2663_v11, %v6039_v32 }
 0x3df   :  { %v2726_v50 = vmul.f32 %v2725_v44, %v6037_v15  ;;  %v6193_v17 = vmul.f32 %v2725_v44, %v6039_v32  ;;  %v6198_v12 = vsel %vm127_vm0, %v2461_v48, %v10009_v6  ;;  %v6201_v61 = vadd.f32 %v2396_v2, %v5900_v24 }
 0x3e0   :  { %10235 = vst [vmem:[#allocation70_spill] sm:$0xff] %v6198_v12  ;;  %v6204_v59 = vadd.f32 %v2664_v19, %v5903_v0  ;;  %v2830_v49 = vmul.f32 %v2829_v55, %v6037_v15  ;;  %v6210_v11 = vsel %vm141_vm1, %v2565_v47, %v10006_v16  ;;  %v6213_v44 = vadd.f32 %v2665_v29, %v5912_v1 }
 0x3e1   :  { %10234 = vst [vmem:[#allocation69_spill] sm:$0xff] %v6193_v17  ;;  %10236 = vst [vmem:[#allocation71_spill] sm:$0xff] %v6210_v11  ;;  %v2730_v54 = vrot.slane %v2726_v50, 1  ;;  %v10008_v48 = vrot.slane %v6193_v17, 1  ;;  %v6217_v24 = vmul.f32 %v2829_v55, %v6039_v32  ;;  %v2933_v19 = vmul.f32 %v2932_v22, %v6037_v15 }
 0x3e2   :  { %v2834_v2 = vrot.slane %v2830_v49, 2  ;;  %v2934_v0 = vmul.f32 %v2932_v22, %v6039_v32  ;;  %v2995_v1 = vmul.f32 %v2994_v27, %v6037_v15  ;;  %v6228_v29 = vmul.f32 %v2994_v27, %v6039_v32 }
 0x3e3   :  { %10237 = vst [vmem:[#allocation72_spill] sm:$0xff] %v6217_v24  ;;  %v6224_v47 = vsel %vm127_vm0, %v2730_v54, %v10008_v48  ;;  %v3099_v50 = vmul.f32 %v3098_v41, %v6037_v15  ;;  %v10011_v55 = vrot.slane %v6217_v24, 2  ;;  %v6233_v49 = vadd.f32 %v2933_v19, %v5932_v43 }
 0x3e4   :  { %10238 = vst [vmem:[#allocation73_spill] sm:$0xff] %v6224_v47  ;;  %10239 = vst [vmem:[#allocation74_spill] sm:$0xff] %v6228_v29  ;;  %v6236_v16 = vadd.f32 %v2934_v0, %v5935_v53  ;;  %v6239_v22 = vmul.f32 %v3098_v41, %v6039_v32  ;;  %v2999_v54 = vrot.slane %v2995_v1, 1  ;;  %v10012_v38 = vrot.slane %v6228_v29, 1 }
 0x3e5   :  { %v3103_v48 = vrot.slane %v3099_v50, 2  ;;  %v10241_v27 = vstv %s6093_s14  ;;  %v6248_v40 = vsel %vm141_vm1, %v2834_v2, %v10011_v55  ;;  %v3264_v53 = vmul.f32 %v3263_v62, %v6037_v15 }
 0x3e6   :  { %10240 = vst [vmem:[#allocation75_spill] sm:$0xff] %v6239_v22  ;;  %v3202_v6 = vmul.f32 %v10241_v27, %v6037_v15  ;;  %10242 = vst [vmem:[#allocation76_spill] sm:$0xff] %v6248_v40  ;;  %v10013_v43 = vrot.slane %v6239_v22, 2  ;;  %v6253_v41 = vmul.f32 %v3263_v62, %v6039_v32  ;;  %v6258_v19 = vsel %vm127_vm0, %v2999_v54, %v10012_v38 }
 0x3e7   :  { %10244 = vst [vmem:[#allocation78_spill] sm:$0xff] %v6258_v19  ;;  %v3368_v1 = vmul.f32 %v3367_v30, %v6037_v15  ;;  %v6265_v2 = vmul.f32 %v3367_v30, %v6039_v32  ;;  %v3268_v62 = vrot.slane %v3264_v53, 1  ;;  %v10247_v55 = vstv %s6093_s14  ;;  %s6366_s14 = sld [smem:[#allocation10 + $0x883]] }
 0x3e8   :  { %10243 = vst [vmem:[#allocation77_spill] sm:$0xff] %v6253_v41  ;;  %v6261_v0 = vadd.f32 %v3202_v6, %v5960_v26  ;;  %v6270_v50 = vsel %vm141_vm1, %v3103_v48, %v10013_v43  ;;  %v10015_v27 = vrot.slane %v6253_v41, 1  ;;  %v3203_v54 = vmul.f32 %v10247_v55, %v6039_v32 }
 0x3e9   :  { %10245 = vst [vmem:[#allocation79_spill] sm:$0xff] %v6265_v2  ;;  %10246 = vst [vmem:[#allocation80_spill] sm:$0xff] %v6270_v50  ;;  %v3372_v38 = vrot.slane %v3368_v1, 2  ;;  %v10016_v26 = vrot.slane %v6265_v2, 2  ;;  %v521_v55 = vstv %s4653_s17  ;;  %v534_v43 = vstv %s4654_s18  ;;  %s6377_s17 = sld [smem:[#allocation10 + $0x903]] }
 0x3ea   :  { %v6280_v6 = vsel %vm127_vm0, %v3268_v62, %v10015_v27  ;;  %v6283_v30 = vadd.f32 %v3203_v54, %v5982_v60  ;;  %v522_v53 = vmul.f32 %v5992_v4, %v521_v55  ;;  %v523_v1 = vmul.f32 %v5998_v33, %v521_v55  ;;  %s6382_s18 = sld [smem:[#allocation10 + $0xe03]] }
 0x3eb   :  { %10248 = vst [vmem:[#allocation81_spill] sm:$0xff] %v6280_v6  ;;  %v6288_v48 = vsel %vm141_vm1, %v3372_v38, %v10016_v26  ;;  %v517_v41 = vstv %s4652_s19  ;;  %v535_v60 = vmul.f32 %v5992_v4, %v534_v43  ;;  %v536_v26 = vmul.f32 %v5998_v33, %v534_v43  ;;  %s6384_s19 = sld [smem:[#allocation10 + $0x483]] }
 0x3ec   :  { %10249 = vst [vmem:[#allocation82_spill] sm:$0xff] %v6288_v48  ;;  %v526_v62 = vrot.slane %v522_v53, 1  ;;  %v527_v27 = vrot.slane %v523_v1, 1  ;;  %v518_v54 = vmul.f32 %v5992_v4, %v517_v41  ;;  %v519_v38 = vmul.f32 %v5998_v33, %v517_v41 }
 0x3ed   :  { %v539_v48 = vrot.slane %v535_v60, 2  ;;  %v540_v6 = vrot.slane %v536_v26, 2  ;;  %v547_v1 = vstv %s4655_s2  ;;  %s6388_s2 = sld [smem:[#allocation10 + $0x983]] }
 0x3ee   :  { %v528_v2 = vsel %vm127_vm0, %v526_v62, %v527_v27  ;;  %v532_v50 = vadd.f32 %v527_v27, %v519_v38 }
 0x3ef   :  { %v531_v22 = vadd.f32 %v528_v2, %v518_v54  ;;  %v541_v55 = vsel %vm141_vm1, %v539_v48, %v540_v6 }
 0x3f0   :  { %v545_v29 = vadd.f32 %v540_v6, %v532_v50  ;;  %v3111_v47 = vstv %s6382_s18  ;;  %s6655_s18 = sld [smem:[#allocation10 + $0x384]] }
 0x3f1   :  { %v544_v53 = vadd.f32 %v541_v55, %v531_v22  ;;  %v477_v22 = vpop.xlane.xlu0 %476 }
 0x3f2   :  { %v6298_v19 = vadd.f32 %v547_v1, %v545_v29  ;;  %v478_v50 = vrot.slane %v477_v22, 4 }
 0x3f3   :  { %v6300_v24 = vadd.f32 %v547_v1, %v544_v53 }
 0x3f4   :  { %v10021_v40 = vmax.f32 %v6298_v19, 0.0  ;;  %v479_v29 = vadd.f32 %v478_v50, %v477_v22  ;;  %v10250_v50 = vmax.f32 %v6009_v3, 0.0 }
 0x3f5   :  { %v10022_v41 = vmax.f32 %v6300_v24, 0.0 }
 0x3f6   :  { %v553_v43 = vsel %vm157_vm2, %v10021_v40, 0.0  ;;  %v480_v26 = vrot.slane %v479_v29, 2 }
 0x3f7   :  { %v552_v2 = vsel %vm155_vm3, %v10022_v41, 0.0 }
 0x3f8   :  { %v554_v27 = vadd.f32 %v553_v43, %v552_v2  ;;  %v481_v60 = vadd.f32 %v480_v26, %v479_v29  ;;  %v10251_v29 = vmax.f32 %v6007_v34, 0.0  ;;  %v429_v34 = vstv %s4644_s21  ;;  %s4660_s21 = sld [smem:[#allocation3 + $0x106]] }
 0x3fa   :  { %555 = vadd.xlane.f32.xlu0 %v554_v27  ;;  %v482_v55 = vrot.slane %v481_v60, 1 }
 0x3fc   :  { %v483_v40 = vadd.f32 %v482_v55, %v481_v60 }
 0x451   :  { %v416_v6 = vpop.xlane.xlu1 %415 }
 0x452   :  { %v417_v48 = vrot.slane %v416_v6, 4 }
 0x454   :  { %v418_v62 = vadd.f32 %v417_v48, %v416_v6 }
 0x456   :  { %v419_v54 = vrot.slane %v418_v62, 2 }
 0x458   :  { %v420_v38 = vadd.f32 %v419_v54, %v418_v62  ;;  %v434_v54 = vstv %s4645_s22  ;;  %s4658_s22 = sld [smem:[#allocation3 + $0x6]] }
 0x45a   :  { %v421_v53 = vrot.slane %v420_v38, 1 }
 0x45c   :  { %v422_v1 = vadd.f32 %v421_v53, %v420_v38  ;;  %v786_v53 = vstv %s4672_s23  ;;  %s4661_s23 = sld [smem:[#allocation5 + $0x6]] }
 0x45e   :  { %5162 = vpush %v422_v1 }
 0x45f   :  { %5164 = vpush %v483_v40 }
 0x48f   :  { %s5163_s4 = spop %5162 }
 0x490   :  { %v424_v41 = vstv %s5163_s4  ;;  %s5165_s20 = spop %5164  ;;  %s6393_s4 = sld [smem:[#allocation10 + $0xe83]] }
 0x491   :  { %v425_v43 = vmul.f32 0.035714287, %v424_v41  ;;  %v485_v2 = vstv %s5165_s20  ;;  %s4659_s20 = sld [smem:[#allocation3 + $0x86]] }
 0x492   :  { %v486_v27 = vmul.f32 0.035714287, %v485_v2  ;;  %v1055_v2 = vstv %s4696_s24 }
 0x493   :  { %v427_v22 = vadd.f32 1e-05, %v425_v43 }
 0x494   :  { %v6312_v11 = vsub.f32 %v10250_v50, %v486_v27  ;;  %v6316_v26 = vsub.f32 %v10251_v29, %v486_v27 }
 0x495   :  { %5232 = vrsqrt.f32 %v427_v22 }
 0x496   :  { %v489_v40 = vmul.f32 %v6312_v11, %v6312_v11  ;;  %v490_v6 = vmul.f32 %v6316_v26, %v6316_v26 }
 0x498   :  { %v491_v41 = vsel %vm155_vm3, %v489_v40, 0.0  ;;  %v492_v48 = vsel %vm157_vm2, %v490_v6, 0.0  ;;  %v1324_v40 = vstv %s6326_s25  ;;  %v1593_v6 = vstv %s6332_s26  ;;  %s4650_s26 = sld [smem:[#allocation7 + $0x4]] }
 0x499   :  { %v493_v3 = vadd.f32 %v492_v48, %v491_v41 }
 0x49b   :  { %494 = vadd.xlane.f32.xlu1 %v493_v3 }
 0x49f   :  { %v5233_v62 = vpop.eup %5232 }
 0x4a0   :  { %v430_v60 = vmul.f32 %v5233_v62, %v429_v34  ;;  %v1862_v34 = vstv %s6343_s27  ;;  %s4651_s27 = sld [smem:[#allocation8 + $0x4]] }
 0x4a2   :  { %v431_v38 = vmul.f32 %v430_v60, %v6021_v31  ;;  %v432_v55 = vmul.f32 %v430_v60, %v6025_v28 }
 0x4a4   :  { %v6328_v1 = vadd.f32 %v434_v54, %v431_v38  ;;  %v6330_v43 = vadd.f32 %v434_v54, %v432_v55  ;;  %v2131_v54 = vstv %s6350_s29  ;;  %v2200_v38 = vstv %s6352_s6  ;;  %s4697_s29 = sld [smem:[#allocation10 + $0x84]] }
 0x4a5   :  { %s6617_s6 = sld [smem:[#allocation10 + $0x104]] }
 0x4a6   :  { %v787_v27 = vmul.f32 %v786_v53, %v6328_v1  ;;  %v788_v22 = vmul.f32 %v786_v53, %v6330_v43  ;;  %v1056_v50 = vmul.f32 %v1055_v2, %v6328_v1  ;;  %v1594_v48 = vmul.f32 %v1593_v6, %v6328_v1 }
 0x4a7   :  { %v1595_v3 = vmul.f32 %v1593_v6, %v6330_v43  ;;  %v2304_v53 = vstv %s6355_s7  ;;  %v2938_v6 = vstv %s6375_s16  ;;  %v2132_v17 = vmul.f32 %v2131_v54, %v6328_v1  ;;  %s6623_s7 = sld [smem:[#allocation10 + $0x184]] }
 0x4a8   :  { %v6338_v31 = vadd.f32 %v787_v27, %v6047_v39  ;;  %v6341_v28 = vadd.f32 %v788_v22, %v6050_v42  ;;  %v6348_v29 = vadd.f32 %v1056_v50, %v6057_v63  ;;  %v1057_v39 = vmul.f32 %v1055_v2, %v6330_v43  ;;  %s6651_s16 = sld [smem:[#allocation10 + $0x804]] }
 0x4a9   :  { %v1325_v63 = vmul.f32 %v1324_v40, %v6328_v1  ;;  %v6399_v60 = vadd.f32 %v1594_v48, %v6108_v14  ;;  %v6404_v55 = vadd.f32 %v1595_v3, %v6113_v56  ;;  %v2400_v2 = vstv %s6357_s3  ;;  %s6634_s3 = sld [smem:[#allocation10 + $0x204]] }
 0x4aa   :  { %v6369_v42 = vadd.f32 %v1057_v39, %v6078_v46  ;;  %v1326_v46 = vmul.f32 %v1324_v40, %v6330_v43  ;;  %v2469_v27 = vstv %s6360_s5  ;;  %v1863_v22 = vmul.f32 %v1862_v34, %v6328_v1  ;;  %s6636_s5 = sld [smem:[#allocation10 + $0xc04]] }
 0x4ab   :  { %v6380_v41 = vadd.f32 %v1325_v63, %v6089_v23  ;;  %v2035_v23 = vstv %s6345_s28  ;;  %v1864_v50 = vmul.f32 %v1862_v34, %v6330_v43  ;;  %v2669_v40 = vstv %s6364_s13  ;;  %s4673_s28 = sld [smem:[#allocation10 + $0x4]] }
 0x4ac   :  { %v6396_v62 = vadd.f32 %v1326_v46, %v6105_v58  ;;  %v2573_v58 = vstv %s6362_s30  ;;  %v2036_v14 = vmul.f32 %v2035_v23, %v6328_v1  ;;  %v2738_v39 = vstv %s6366_s14  ;;  %s6641_s30 = sld [smem:[#allocation10 + $0x284]] }
 0x4ad   :  { %v2842_v63 = vstv %s6373_s15  ;;  %v6418_v56 = vadd.f32 %v1863_v22, %v6127_v18  ;;  %v6421_v46 = vadd.f32 %v1864_v50, %v6130_v8  ;;  %v6424_v48 = vmul.f32 %v2035_v23, %v6330_v43  ;;  %s6643_s13 = sld [smem:[#allocation10 + $0x784]] }
 0x4ae   :  { %v3007_v3 = vstv %s6377_s17  ;;  %v2040_v34 = vrot.slane %v2036_v14, 2  ;;  %v2201_v12 = vmul.f32 %v2200_v38, %v6328_v1  ;;  %v6433_v57 = vmul.f32 %v2200_v38, %v6330_v43  ;;  %s6646_s14 = sld [smem:[#allocation10 + $0xc84]] }
 0x4af   :  { %10252 = vst [vmem:[#allocation83_spill] sm:$0xff] %v6424_v48  ;;  %v10026_v5 = vrot.slane %v6424_v48, 2  ;;  %v3276_v18 = vstv %s6388_s2  ;;  %v6437_v8 = vadd.f32 %v2132_v17, %v6146_v35  ;;  %v2305_v23 = vmul.f32 %v2304_v53, %v6328_v1  ;;  %s6648_s15 = sld [smem:[#allocation10 + $0x304]] }
 0x4b0   :  { %10253 = vst [vmem:[#allocation84_spill] sm:$0xff] %v6433_v57  ;;  %v6441_v22 = vmul.f32 %v2304_v53, %v6330_v43  ;;  %v3380_v50 = vstv %s6393_s4  ;;  %v2205_v36 = vrot.slane %v2201_v12, 1  ;;  %v10028_v13 = vrot.slane %v6433_v57, 1  ;;  %s6653_s17 = sld [smem:[#allocation10 + $0xd04]] }
 0x4b1   :  { %v6447_v14 = vsel %vm141_vm1, %v2040_v34, %v10026_v5  ;;  %v2133_v38 = vmul.f32 %v2131_v54, %v6330_v43  ;;  %v2309_v7 = vrot.slane %v2305_v23, 2  ;;  %v2401_v17 = vmul.f32 %v2400_v2, %v6328_v1  ;;  %s6664_s2 = sld [smem:[#allocation10 + $0xd84]] }
 0x4b2   :  { %10254 = vst [vmem:[#allocation85_spill] sm:$0xff] %v6441_v22  ;;  %10255 = vst [vmem:[#allocation86_spill] sm:$0xff] %v6447_v14  ;;  %v10032_v35 = vrot.slane %v6441_v22, 2  ;;  %v2470_v25 = vmul.f32 %v2469_v27, %v6328_v1  ;;  %v6457_v53 = vsel %vm127_vm0, %v2205_v36, %v10028_v13  ;;  %v6463_v12 = vmul.f32 %v2469_v27, %v6330_v43  ;;  %s6666_s4 = sld [smem:[#allocation10 + $0x404]] }
 0x4b3   :  { %10256 = vst [vmem:[#allocation87_spill] sm:$0xff] %v6457_v53  ;;  %v6460_v34 = vadd.f32 %v2133_v38, %v6169_v20  ;;  %v2574_v54 = vmul.f32 %v2573_v58, %v6328_v1  ;;  %v6472_v5 = vadd.f32 %v2401_v17, %v6181_v45  ;;  %v6475_v36 = vmul.f32 %v2573_v58, %v6330_v43 }
 0x4b4   :  { %10257 = vst [vmem:[#allocation88_spill] sm:$0xff] %v6463_v12  ;;  %v6469_v23 = vsel %vm141_vm1, %v2309_v7, %v10032_v35  ;;  %v2474_v57 = vrot.slane %v2470_v25, 1  ;;  %v10034_v20 = vrot.slane %v6463_v12, 1  ;;  %v2402_v27 = vmul.f32 %v2400_v2, %v6330_v43 }
 0x4b5   :  { %10258 = vst [vmem:[#allocation89_spill] sm:$0xff] %v6469_v23  ;;  %10259 = vst [vmem:[#allocation90_spill] sm:$0xff] %v6475_v36  ;;  %v2578_v38 = vrot.slane %v2574_v54, 2  ;;  %v2670_v13 = vmul.f32 %v2669_v40, %v6328_v1  ;;  %v10031_v48 = vrot.slane %v6475_v36, 2  ;;  %v2671_v22 = vmul.f32 %v2669_v40, %v6330_v43 }
 0x4b6   :  { %v2739_v7 = vmul.f32 %v2738_v39, %v6328_v1  ;;  %v6484_v45 = vmul.f32 %v2738_v39, %v6330_v43  ;;  %v6489_v25 = vsel %vm127_vm0, %v2474_v57, %v10034_v20  ;;  %v6492_v58 = vadd.f32 %v2402_v27, %v6201_v61 }
 0x4b7   :  { %10261 = vst [vmem:[#allocation92_spill] sm:$0xff] %v6489_v25  ;;  %v6495_v2 = vadd.f32 %v2670_v13, %v6204_v59  ;;  %v2843_v17 = vmul.f32 %v2842_v63, %v6328_v1  ;;  %v6501_v40 = vsel %vm141_vm1, %v2578_v38, %v10031_v48  ;;  %v6504_v39 = vadd.f32 %v2671_v22, %v6213_v44 }
 0x4b8   :  { %10260 = vst [vmem:[#allocation91_spill] sm:$0xff] %v6484_v45  ;;  %10262 = vst [vmem:[#allocation93_spill] sm:$0xff] %v6501_v40  ;;  %v2743_v54 = vrot.slane %v2739_v7, 1  ;;  %v10033_v57 = vrot.slane %v6484_v45, 1  ;;  %v6508_v61 = vmul.f32 %v2842_v63, %v6330_v43  ;;  %v2939_v13 = vmul.f32 %v2938_v6, %v6328_v1 }
 0x4b9   :  { %v2847_v27 = vrot.slane %v2843_v17, 2  ;;  %v2940_v59 = vmul.f32 %v2938_v6, %v6330_v43  ;;  %v3008_v44 = vmul.f32 %v3007_v3, %v6328_v1  ;;  %v6519_v22 = vmul.f32 %v3007_v3, %v6330_v43 }
 0x4ba   :  { %10263 = vst [vmem:[#allocation94_spill] sm:$0xff] %v6508_v61  ;;  %v6515_v38 = vsel %vm127_vm0, %v2743_v54, %v10033_v57  ;;  %v3112_v7 = vmul.f32 %v3111_v47, %v6328_v1  ;;  %v10036_v63 = vrot.slane %v6508_v61, 2  ;;  %v6524_v17 = vadd.f32 %v2939_v13, %v6233_v49 }
 0x4bb   :  { %10264 = vst [vmem:[#allocation95_spill] sm:$0xff] %v6515_v38  ;;  %10265 = vst [vmem:[#allocation96_spill] sm:$0xff] %v6519_v22  ;;  %v6527_v48 = vadd.f32 %v2940_v59, %v6236_v16  ;;  %v6530_v6 = vmul.f32 %v3111_v47, %v6330_v43  ;;  %v3012_v54 = vrot.slane %v3008_v44, 1  ;;  %v10037_v35 = vrot.slane %v6519_v22, 1 }
 0x4bc   :  { %v3116_v57 = vrot.slane %v3112_v7, 2  ;;  %v10267_v3 = vstv %s6384_s19  ;;  %v6539_v36 = vsel %vm141_vm1, %v2847_v27, %v10036_v63  ;;  %v3277_v16 = vmul.f32 %v3276_v18, %v6328_v1 }
 0x4bd   :  { %10266 = vst [vmem:[#allocation97_spill] sm:$0xff] %v6530_v6  ;;  %v3208_v20 = vmul.f32 %v10267_v3, %v6328_v1  ;;  %10268 = vst [vmem:[#allocation98_spill] sm:$0xff] %v6539_v36  ;;  %v10038_v49 = vrot.slane %v6530_v6, 2  ;;  %v6544_v47 = vmul.f32 %v3276_v18, %v6330_v43  ;;  %v6549_v13 = vsel %vm127_vm0, %v3012_v54, %v10037_v35 }
 0x4be   :  { %10270 = vst [vmem:[#allocation100_spill] sm:$0xff] %v6549_v13  ;;  %v3381_v44 = vmul.f32 %v3380_v50, %v6328_v1  ;;  %v6556_v27 = vmul.f32 %v3380_v50, %v6330_v43  ;;  %v3281_v18 = vrot.slane %v3277_v16, 1  ;;  %v10273_v63 = vstv %s6384_s19  ;;  %s6657_s19 = sld [smem:[#allocation10 + $0x884]] }
 0x4bf   :  { %10269 = vst [vmem:[#allocation99_spill] sm:$0xff] %v6544_v47  ;;  %v6552_v59 = vadd.f32 %v3208_v20, %v6261_v0  ;;  %v6561_v7 = vsel %vm141_vm1, %v3116_v57, %v10038_v49  ;;  %v10040_v3 = vrot.slane %v6544_v47, 1  ;;  %v3209_v54 = vmul.f32 %v10273_v63, %v6330_v43 }
 0x4c0   :  { %10271 = vst [vmem:[#allocation101_spill] sm:$0xff] %v6556_v27  ;;  %10272 = vst [vmem:[#allocation102_spill] sm:$0xff] %v6561_v7  ;;  %v3385_v35 = vrot.slane %v3381_v44, 2  ;;  %v10041_v0 = vrot.slane %v6556_v27, 2  ;;  %v600_v63 = vstv %s4659_s20  ;;  %v613_v49 = vstv %s4660_s21  ;;  %s6668_s20 = sld [smem:[#allocation10 + $0x904]] }
 0x4c1   :  { %v6571_v20 = vsel %vm127_vm0, %v3281_v18, %v10040_v3  ;;  %v6574_v50 = vadd.f32 %v3209_v54, %v6283_v30  ;;  %v601_v16 = vmul.f32 %v5992_v4, %v600_v63  ;;  %v602_v44 = vmul.f32 %v5998_v33, %v600_v63  ;;  %s6673_s21 = sld [smem:[#allocation10 + $0xe04]] }
 0x4c2   :  { %10274 = vst [vmem:[#allocation103_spill] sm:$0xff] %v6571_v20  ;;  %v6579_v57 = vsel %vm141_vm1, %v3385_v35, %v10041_v0  ;;  %v596_v47 = vstv %s4658_s22  ;;  %v614_v30 = vmul.f32 %v5992_v4, %v613_v49  ;;  %v615_v0 = vmul.f32 %v5998_v33, %v613_v49  ;;  %s6675_s22 = sld [smem:[#allocation10 + $0x484]] }
 0x4c3   :  { %10275 = vst [vmem:[#allocation104_spill] sm:$0xff] %v6579_v57  ;;  %v605_v18 = vrot.slane %v601_v16, 1  ;;  %v606_v3 = vrot.slane %v602_v44, 1  ;;  %v597_v54 = vmul.f32 %v5992_v4, %v596_v47  ;;  %v598_v35 = vmul.f32 %v5998_v33, %v596_v47 }
 0x4c4   :  { %v618_v57 = vrot.slane %v614_v30, 2  ;;  %v619_v20 = vrot.slane %v615_v0, 2  ;;  %v626_v44 = vstv %s4661_s23  ;;  %s6679_s23 = sld [smem:[#allocation10 + $0x984]] }
 0x4c5   :  { %v607_v27 = vsel %vm127_vm0, %v605_v18, %v606_v3  ;;  %v611_v7 = vadd.f32 %v606_v3, %v598_v35 }
 0x4c6   :  { %v610_v6 = vadd.f32 %v607_v27, %v597_v54  ;;  %v620_v63 = vsel %vm141_vm1, %v618_v57, %v619_v20 }
 0x4c7   :  { %v624_v22 = vadd.f32 %v619_v20, %v611_v7  ;;  %v3124_v40 = vstv %s6673_s21  ;;  %s6939_s21 = sld [smem:[#allocation10 + $0x305]] }
 0x4c8   :  { %v623_v16 = vadd.f32 %v620_v63, %v610_v6  ;;  %v556_v6 = vpop.xlane.xlu0 %555 }
 0x4c9   :  { %v6589_v13 = vadd.f32 %v626_v44, %v624_v22  ;;  %v557_v7 = vrot.slane %v556_v6, 4 }
 0x4ca   :  { %v6591_v61 = vadd.f32 %v626_v44, %v623_v16 }
 0x4cb   :  { %v10046_v4 = vmax.f32 %v6589_v13, 0.0  ;;  %v558_v22 = vadd.f32 %v557_v7, %v556_v6  ;;  %v10276_v7 = vmax.f32 %v6300_v24, 0.0 }
 0x4cc   :  { %v10047_v47 = vmax.f32 %v6591_v61, 0.0 }
 0x4cd   :  { %v632_v33 = vsel %vm157_vm2, %v10046_v4, 0.0  ;;  %v559_v3 = vrot.slane %v558_v22, 2 }
 0x4ce   :  { %v631_v49 = vsel %vm155_vm3, %v10047_v47, 0.0 }
 0x4cf   :  { %v633_v27 = vadd.f32 %v632_v33, %v631_v49  ;;  %v560_v18 = vadd.f32 %v559_v3, %v558_v22  ;;  %v10277_v22 = vmax.f32 %v6298_v19, 0.0  ;;  %v508_v19 = vstv %s4650_s26  ;;  %s4666_s26 = sld [smem:[#allocation3 + $0x107]] }
 0x4d1   :  { %634 = vadd.xlane.f32.xlu0 %v633_v27  ;;  %v561_v35 = vrot.slane %v560_v18, 1 }
 0x4d3   :  { %v562_v44 = vadd.f32 %v561_v35, %v560_v18 }
 0x528   :  { %v495_v0 = vpop.xlane.xlu1 %494 }
 0x529   :  { %v496_v20 = vrot.slane %v495_v0, 4 }
 0x52b   :  { %v497_v57 = vadd.f32 %v496_v20, %v495_v0 }
 0x52d   :  { %v498_v30 = vrot.slane %v497_v57, 2 }
 0x52f   :  { %v499_v54 = vadd.f32 %v498_v30, %v497_v57 }
 0x531   :  { %v500_v63 = vrot.slane %v499_v54, 1 }
 0x533   :  { %v501_v16 = vadd.f32 %v500_v63, %v499_v54  ;;  %v513_v54 = vstv %s4651_s27  ;;  %s4664_s27 = sld [smem:[#allocation3 + $0x7]] }
 0x535   :  { %5166 = vpush %v501_v16  ;;  %v792_v16 = vstv %s4673_s28  ;;  %s6959_s28 = sld [smem:[#allocation10 + $0x905]] }
 0x536   :  { %5168 = vpush %v562_v44 }
 0x566   :  { %s5167_s24 = spop %5166 }
 0x567   :  { %v503_v4 = vstv %s5167_s24  ;;  %s5169_s25 = spop %5168  ;;  %s6684_s24 = sld [smem:[#allocation10 + $0xe84]] }
 0x568   :  { %v504_v33 = vmul.f32 0.035714287, %v503_v4  ;;  %v564_v49 = vstv %s5169_s25  ;;  %s4665_s25 = sld [smem:[#allocation3 + $0x87]] }
 0x569   :  { %v565_v27 = vmul.f32 0.035714287, %v564_v49  ;;  %v1061_v49 = vstv %s4697_s29  ;;  %s6964_s29 = sld [smem:[#allocation10 + $0xe05]] }
 0x56a   :  { %v506_v6 = vadd.f32 1e-05, %v504_v33 }
 0x56b   :  { %v6603_v47 = vsub.f32 %v10276_v7, %v565_v27  ;;  %v6607_v3 = vsub.f32 %v10277_v22, %v565_v27 }
 0x56c   :  { %5234 = vrsqrt.f32 %v506_v6 }
 0x56d   :  { %v568_v0 = vmul.f32 %v6603_v47, %v6603_v47  ;;  %v569_v20 = vmul.f32 %v6607_v3, %v6607_v3 }
 0x56f   :  { %v570_v4 = vsel %vm155_vm3, %v568_v0, 0.0  ;;  %v571_v57 = vsel %vm157_vm2, %v569_v20, 0.0  ;;  %v1330_v0 = vstv %s6617_s6  ;;  %v1599_v20 = vstv %s6623_s7  ;;  %s6966_s6 = sld [smem:[#allocation10 + $0x485]] }
 0x570   :  { %v572_v24 = vadd.f32 %v571_v57, %v570_v4  ;;  %s6970_s7 = sld [smem:[#allocation10 + $0x985]] }
 0x572   :  { %573 = vadd.xlane.f32.xlu1 %v572_v24 }
 0x576   :  { %v5235_v18 = vpop.eup %5234 }
 0x577   :  { %v509_v30 = vmul.f32 %v5235_v18, %v508_v19  ;;  %v1868_v19 = vstv %s6634_s3  ;;  %s4667_s3 = sld [smem:[#allocation5 + $0x7]] }
 0x579   :  { %v510_v35 = vmul.f32 %v509_v30, %v6312_v11  ;;  %v511_v63 = vmul.f32 %v509_v30, %v6316_v26 }
 0x57b   :  { %v6619_v44 = vadd.f32 %v513_v54, %v510_v35  ;;  %v6621_v33 = vadd.f32 %v513_v54, %v511_v63  ;;  %v2137_v54 = vstv %s6641_s30  ;;  %v2213_v35 = vstv %s6643_s13  ;;  %s4656_s30 = sld [smem:[#allocation7 + $0x5]] }
 0x57c   :  { %s4657_s13 = sld [smem:[#allocation8 + $0x5]] }
 0x57d   :  { %v793_v27 = vmul.f32 %v792_v16, %v6619_v44  ;;  %v794_v6 = vmul.f32 %v792_v16, %v6621_v33  ;;  %v1062_v7 = vmul.f32 %v1061_v49, %v6619_v44  ;;  %v1600_v57 = vmul.f32 %v1599_v20, %v6619_v44 }
 0x57e   :  { %v1601_v24 = vmul.f32 %v1599_v20, %v6621_v33  ;;  %v2317_v16 = vstv %s6646_s14  ;;  %v2944_v20 = vstv %s6666_s4  ;;  %v2138_v36 = vmul.f32 %v2137_v54, %v6619_v44  ;;  %s4674_s14 = sld [smem:[#allocation10 + $0x5]] }
 0x57f   :  { %v6629_v11 = vadd.f32 %v793_v27, %v6338_v31  ;;  %v6632_v26 = vadd.f32 %v794_v6, %v6341_v28  ;;  %v6639_v22 = vadd.f32 %v1062_v7, %v6348_v29  ;;  %v1063_v31 = vmul.f32 %v1061_v49, %v6621_v33  ;;  %s6934_s4 = sld [smem:[#allocation10 + $0x785]] }
 0x580   :  { %v1331_v29 = vmul.f32 %v1330_v0, %v6619_v44  ;;  %v6690_v30 = vadd.f32 %v1600_v57, %v6399_v60  ;;  %v6695_v63 = vadd.f32 %v1601_v24, %v6404_v55  ;;  %v2406_v49 = vstv %s6648_s15  ;;  %s4698_s15 = sld [smem:[#allocation10 + $0x85]] }
 0x581   :  { %v6660_v28 = vadd.f32 %v1063_v31, %v6369_v42  ;;  %v1332_v42 = vmul.f32 %v1330_v0, %v6621_v33  ;;  %v2482_v27 = vstv %s6651_s16  ;;  %v1869_v6 = vmul.f32 %v1868_v19, %v6619_v44  ;;  %s6908_s16 = sld [smem:[#allocation10 + $0x105]] }
 0x582   :  { %v6671_v4 = vadd.f32 %v1331_v29, %v6380_v41  ;;  %v2048_v41 = vstv %s6636_s5  ;;  %v1870_v7 = vmul.f32 %v1868_v19, %v6621_v33  ;;  %v2675_v0 = vstv %s6655_s18  ;;  %s6925_s18 = sld [smem:[#allocation10 + $0x205]] }
 0x583   :  { %v6687_v18 = vadd.f32 %v1332_v42, %v6396_v62  ;;  %v2586_v62 = vstv %s6653_s17  ;;  %v2049_v60 = vmul.f32 %v2048_v41, %v6619_v44  ;;  %v2751_v31 = vstv %s6657_s19  ;;  %s6914_s17 = sld [smem:[#allocation10 + $0x185]] }
 0x584   :  { %v2855_v29 = vstv %s6664_s2  ;;  %v6709_v55 = vadd.f32 %v1869_v6, %v6418_v56  ;;  %v6712_v42 = vadd.f32 %v1870_v7, %v6421_v46  ;;  %v6715_v57 = vmul.f32 %v2048_v41, %v6621_v33  ;;  %s6927_s19 = sld [smem:[#allocation10 + $0xc05]] }
 0x585   :  { %v3020_v24 = vstv %s6668_s20  ;;  %v2053_v19 = vrot.slane %v2049_v60, 2  ;;  %v2214_v12 = vmul.f32 %v2213_v35, %v6619_v44  ;;  %v6724_v23 = vmul.f32 %v2213_v35, %v6621_v33  ;;  %s6932_s2 = sld [smem:[#allocation10 + $0x285]] }
 0x586   :  { %10278 = vst [vmem:[#allocation105_spill] sm:$0xff] %v6715_v57  ;;  %v10050_v38 = vrot.slane %v6715_v57, 2  ;;  %v3289_v56 = vstv %s6679_s23  ;;  %v6728_v46 = vadd.f32 %v2138_v36, %v6437_v8  ;;  %v2318_v41 = vmul.f32 %v2317_v16, %v6619_v44  ;;  %s6937_s20 = sld [smem:[#allocation10 + $0xc85]] }
 0x587   :  { %10279 = vst [vmem:[#allocation106_spill] sm:$0xff] %v6724_v23  ;;  %v6732_v6 = vmul.f32 %v2317_v16, %v6621_v33  ;;  %v3393_v7 = vstv %s6684_s24  ;;  %v2218_v45 = vrot.slane %v2214_v12, 1  ;;  %v10052_v25 = vrot.slane %v6724_v23, 1  ;;  %s6944_s23 = sld [smem:[#allocation10 + $0xd05]] }
 0x588   :  { %v6738_v60 = vsel %vm141_vm1, %v2053_v19, %v10050_v38  ;;  %v2139_v35 = vmul.f32 %v2137_v54, %v6621_v33  ;;  %v2322_v14 = vrot.slane %v2318_v41, 2  ;;  %v2407_v36 = vmul.f32 %v2406_v49, %v6619_v44  ;;  %s6946_s24 = sld [smem:[#allocation10 + $0x385]] }
 0x589   :  { %10280 = vst [vmem:[#allocation107_spill] sm:$0xff] %v6732_v6  ;;  %10281 = vst [vmem:[#allocation108_spill] sm:$0xff] %v6738_v60  ;;  %v10056_v8 = vrot.slane %v6732_v6, 2  ;;  %v2483_v53 = vmul.f32 %v2482_v27, %v6619_v44  ;;  %v6748_v16 = vsel %vm127_vm0, %v2218_v45, %v10052_v25  ;;  %v6754_v12 = vmul.f32 %v2482_v27, %v6621_v33 }
 0x58a   :  { %10282 = vst [vmem:[#allocation109_spill] sm:$0xff] %v6748_v16  ;;  %v6751_v19 = vadd.f32 %v2139_v35, %v6460_v34  ;;  %v2587_v54 = vmul.f32 %v2586_v62, %v6619_v44  ;;  %v6763_v38 = vadd.f32 %v2407_v36, %v6472_v5  ;;  %v6766_v45 = vmul.f32 %v2586_v62, %v6621_v33 }
 0x58b   :  { %10283 = vst [vmem:[#allocation110_spill] sm:$0xff] %v6754_v12  ;;  %v6760_v41 = vsel %vm141_vm1, %v2322_v14, %v10056_v8  ;;  %v2487_v23 = vrot.slane %v2483_v53, 1  ;;  %v10058_v34 = vrot.slane %v6754_v12, 1  ;;  %v2408_v27 = vmul.f32 %v2406_v49, %v6621_v33 }
 0x58c   :  { %10284 = vst [vmem:[#allocation111_spill] sm:$0xff] %v6760_v41  ;;  %10285 = vst [vmem:[#allocation112_spill] sm:$0xff] %v6766_v45  ;;  %v2591_v35 = vrot.slane %v2587_v54, 2  ;;  %v2676_v25 = vmul.f32 %v2675_v0, %v6619_v44  ;;  %v10055_v57 = vrot.slane %v6766_v45, 2  ;;  %v2677_v6 = vmul.f32 %v2675_v0, %v6621_v33 }
 0x58d   :  { %v2752_v14 = vmul.f32 %v2751_v31, %v6619_v44  ;;  %v6775_v5 = vmul.f32 %v2751_v31, %v6621_v33  ;;  %v6780_v53 = vsel %vm127_vm0, %v2487_v23, %v10058_v34  ;;  %v6783_v62 = vadd.f32 %v2408_v27, %v6492_v58 }
 0x58e   :  { %10287 = vst [vmem:[#allocation114_spill] sm:$0xff] %v6780_v53  ;;  %v6786_v49 = vadd.f32 %v2676_v25, %v6495_v2  ;;  %v2856_v36 = vmul.f32 %v2855_v29, %v6619_v44  ;;  %v6792_v0 = vsel %vm141_vm1, %v2591_v35, %v10055_v57  ;;  %v6795_v31 = vadd.f32 %v2677_v6, %v6504_v39 }
 0x58f   :  { %10286 = vst [vmem:[#allocation113_spill] sm:$0xff] %v6775_v5  ;;  %10288 = vst [vmem:[#allocation115_spill] sm:$0xff] %v6792_v0  ;;  %v2756_v54 = vrot.slane %v2752_v14, 1  ;;  %v10057_v23 = vrot.slane %v6775_v5, 1  ;;  %v6799_v58 = vmul.f32 %v2855_v29, %v6621_v33  ;;  %v2945_v25 = vmul.f32 %v2944_v20, %v6619_v44 }
 0x590   :  { %v2860_v27 = vrot.slane %v2856_v36, 2  ;;  %v2946_v2 = vmul.f32 %v2944_v20, %v6621_v33  ;;  %v3021_v39 = vmul.f32 %v3020_v24, %v6619_v44  ;;  %v6810_v6 = vmul.f32 %v3020_v24, %v6621_v33 }
 0x591   :  { %10289 = vst [vmem:[#allocation116_spill] sm:$0xff] %v6799_v58  ;;  %v6806_v35 = vsel %vm127_vm0, %v2756_v54, %v10057_v23  ;;  %v3125_v14 = vmul.f32 %v3124_v40, %v6619_v44  ;;  %v10060_v29 = vrot.slane %v6799_v58, 2  ;;  %v6815_v36 = vadd.f32 %v2945_v25, %v6524_v17 }
 0x592   :  { %10290 = vst [vmem:[#allocation117_spill] sm:$0xff] %v6806_v35  ;;  %10291 = vst [vmem:[#allocation118_spill] sm:$0xff] %v6810_v6  ;;  %v6818_v57 = vadd.f32 %v2946_v2, %v6527_v48  ;;  %v6821_v20 = vmul.f32 %v3124_v40, %v6621_v33  ;;  %v3025_v54 = vrot.slane %v3021_v39, 1  ;;  %v10061_v8 = vrot.slane %v6810_v6, 1 }
 0x593   :  { %v3129_v23 = vrot.slane %v3125_v14, 2  ;;  %v10293_v24 = vstv %s6675_s22  ;;  %v6830_v45 = vsel %vm141_vm1, %v2860_v27, %v10060_v29  ;;  %v3290_v48 = vmul.f32 %v3289_v56, %v6619_v44 }
 0x594   :  { %10292 = vst [vmem:[#allocation119_spill] sm:$0xff] %v6821_v20  ;;  %v3214_v34 = vmul.f32 %v10293_v24, %v6619_v44  ;;  %10294 = vst [vmem:[#allocation120_spill] sm:$0xff] %v6830_v45  ;;  %v10063_v17 = vrot.slane %v6821_v20, 2  ;;  %v6835_v40 = vmul.f32 %v3289_v56, %v6621_v33  ;;  %v6840_v25 = vsel %vm127_vm0, %v3025_v54, %v10061_v8 }
 0x595   :  { %10296 = vst [vmem:[#allocation122_spill] sm:$0xff] %v6840_v25  ;;  %v3394_v39 = vmul.f32 %v3393_v7, %v6619_v44  ;;  %v6847_v27 = vmul.f32 %v3393_v7, %v6621_v33  ;;  %v3294_v56 = vrot.slane %v3290_v48, 1  ;;  %v10299_v29 = vstv %s6675_s22  ;;  %v5244_v48 = vld [vmem:[%s9941_s0] sm:$0xff]  ;;  %s6942_s22 = sld [smem:[#allocation10 + $0x805]] }
 0x596   :  { %10295 = vst [vmem:[#allocation121_spill] sm:$0xff] %v6835_v40  ;;  %v6843_v2 = vadd.f32 %v3214_v34, %v6552_v59  ;;  %v6852_v14 = vsel %vm141_vm1, %v3129_v23, %v10063_v17  ;;  %v10062_v24 = vrot.slane %v6835_v40, 1  ;;  %v3215_v54 = vmul.f32 %v10299_v29, %v6621_v33 }
 0x597   :  { %10297 = vst [vmem:[#allocation123_spill] sm:$0xff] %v6847_v27  ;;  %10298 = vst [vmem:[#allocation124_spill] sm:$0xff] %v6852_v14  ;;  %v3398_v8 = vrot.slane %v3394_v39, 2  ;;  %v10065_v59 = vrot.slane %v6847_v27, 2  ;;  %v679_v29 = vstv %s4665_s25  ;;  %s6948_s25 = sld [smem:[#allocation10 + $0x885]]  ;;  %v3137_v35 = vstv %s6964_s29  ;;  %s7235_s29 = sld [smem:[#allocation10 + $0xe06]] }
 0x598   :  { %v6862_v34 = vsel %vm127_vm0, %v3294_v56, %v10062_v24  ;;  %v6865_v7 = vadd.f32 %v3215_v54, %v6574_v50  ;;  %v680_v39 = vmul.f32 %v5244_v48, %v679_v29  ;;  %v5245_v56 = vld [vmem:[%s9941_s0 + $0x8] sm:$0xff]  ;;  %v692_v54 = vstv %s4666_s26  ;;  %s6955_s26 = sld [smem:[#allocation10 + $0xd85]] }
 0x599   :  { %10300 = vst [vmem:[#allocation125_spill] sm:$0xff] %v6862_v34  ;;  %v6870_v23 = vsel %vm141_vm1, %v3398_v8, %v10065_v59  ;;  %v681_v50 = vmul.f32 %v5245_v56, %v679_v29  ;;  %v675_v24 = vstv %s4664_s27  ;;  %v693_v8 = vmul.f32 %v5244_v48, %v692_v54  ;;  %s6957_s27 = sld [smem:[#allocation10 + $0x405]] }
 0x59a   :  { %10301 = vst [vmem:[#allocation126_spill] sm:$0xff] %v6870_v23  ;;  %v684_v17 = vrot.slane %v680_v39, 1  ;;  %v676_v59 = vmul.f32 %v5244_v48, %v675_v24  ;;  %v677_v23 = vmul.f32 %v5245_v56, %v675_v24  ;;  %v694_v40 = vmul.f32 %v5245_v56, %v692_v54 }
 0x59b   :  { %v685_v27 = vrot.slane %v681_v50, 1  ;;  %v697_v14 = vrot.slane %v693_v8, 2  ;;  %v705_v29 = vstv %s4667_s3  ;;  %s6975_s3 = sld [smem:[#allocation10 + $0xe85]] }
 0x59c   :  { %v698_v25 = vrot.slane %v694_v40, 2 }
 0x59d   :  { %v686_v20 = vsel %vm127_vm0, %v684_v17, %v685_v27  ;;  %v690_v6 = vadd.f32 %v685_v27, %v677_v23 }
 0x59e   :  { %v689_v34 = vadd.f32 %v686_v20, %v676_v59  ;;  %v699_v58 = vsel %vm141_vm1, %v697_v14, %v698_v25 }
 0x59f   :  { %v703_v45 = vadd.f32 %v698_v25, %v690_v6 }
 0x5a0   :  { %v702_v0 = vadd.f32 %v699_v58, %v689_v34  ;;  %v635_v58 = vpop.xlane.xlu0 %634 }
 0x5a1   :  { %v6880_v5 = vadd.f32 %v705_v29, %v703_v45  ;;  %v636_v6 = vrot.slane %v635_v58, 4 }
 0x5a2   :  { %v6882_v39 = vadd.f32 %v705_v29, %v702_v0 }
 0x5a3   :  { %v10071_v50 = vmax.f32 %v6880_v5, 0.0  ;;  %v637_v45 = vadd.f32 %v636_v6, %v635_v58  ;;  %v10302_v6 = vmax.f32 %v6591_v61, 0.0 }
 0x5a4   :  { %v10072_v24 = vmax.f32 %v6882_v39, 0.0 }
 0x5a5   :  { %v711_v17 = vsel %vm157_vm2, %v10071_v50, 0.0  ;;  %v638_v25 = vrot.slane %v637_v45, 2 }
 0x5a6   :  { %v710_v20 = vsel %vm155_vm3, %v10072_v24, 0.0 }
 0x5a7   :  { %v712_v40 = vadd.f32 %v711_v17, %v710_v20  ;;  %v639_v59 = vadd.f32 %v638_v25, %v637_v45  ;;  %v10303_v45 = vmax.f32 %v6589_v13, 0.0  ;;  %v587_v13 = vstv %s4656_s30  ;;  %s4662_s30 = sld [smem:[#allocation7 + $0x6]] }
 0x5a9   :  { %713 = vadd.xlane.f32.xlu0 %v712_v40  ;;  %v640_v48 = vrot.slane %v639_v59, 1 }
 0x5ab   :  { %v641_v8 = vadd.f32 %v640_v48, %v639_v59  ;;  %v592_v48 = vstv %s4657_s13  ;;  %s4663_s13 = sld [smem:[#allocation8 + $0x6]] }
 0x5ff   :  { %v574_v0 = vpop.xlane.xlu1 %573 }
 0x600   :  { %v575_v27 = vrot.slane %v574_v0, 4 }
 0x602   :  { %v576_v14 = vadd.f32 %v575_v27, %v574_v0 }
 0x604   :  { %v577_v34 = vrot.slane %v576_v14, 2 }
 0x606   :  { %v578_v23 = vadd.f32 %v577_v34, %v576_v14 }
 0x608   :  { %v579_v56 = vrot.slane %v578_v23, 1 }
 0x60a   :  { %v580_v54 = vadd.f32 %v579_v56, %v578_v23 }
 0x60c   :  { %5170 = vpush %v580_v54 }
 0x60d   :  { %5172 = vpush %v641_v8  ;;  %v798_v8 = vstv %s4674_s14  ;;  %s4675_s14 = sld [smem:[#allocation10 + $0x6]] }
 0x63d   :  { %s5171_s0 = spop %5170 }
 0x63e   :  { %v582_v29 = vstv %s5171_s0  ;;  %s5173_s5 = spop %5172 }
 0x63f   :  { %v583_v17 = vmul.f32 0.035714287, %v582_v29  ;;  %v643_v20 = vstv %s5173_s5 }
 0x640   :  { %v644_v40 = vmul.f32 0.035714287, %v643_v20  ;;  %v1067_v20 = vstv %s4698_s15  ;;  %s4699_s15 = sld [smem:[#allocation10 + $0x86]] }
 0x641   :  { %v585_v58 = vadd.f32 1e-05, %v583_v17 }
 0x642   :  { %v6894_v50 = vsub.f32 %v10302_v6, %v644_v40  ;;  %v6898_v25 = vsub.f32 %v10303_v45, %v644_v40 }
 0x643   :  { %5236 = vrsqrt.f32 %v585_v58 }
 0x644   :  { %v647_v0 = vmul.f32 %v6894_v50, %v6894_v50  ;;  %v648_v27 = vmul.f32 %v6898_v25, %v6898_v25 }
 0x646   :  { %v649_v14 = vsel %vm155_vm3, %v647_v0, 0.0  ;;  %v650_v59 = vsel %vm157_vm2, %v648_v27, 0.0  ;;  %v1336_v0 = vstv %s6908_s16  ;;  %v1605_v27 = vstv %s6914_s17  ;;  %s7177_s16 = sld [smem:[#allocation10 + $0x106]] }
 0x647   :  { %v651_v61 = vadd.f32 %v650_v59, %v649_v14  ;;  %s7185_s17 = sld [smem:[#allocation10 + $0x186]] }
 0x649   :  { %652 = vadd.xlane.f32.xlu1 %v651_v61 }
 0x64d   :  { %v5237_v34 = vpop.eup %5236 }
 0x64e   :  { %v588_v23 = vmul.f32 %v5237_v34, %v587_v13  ;;  %v1874_v13 = vstv %s6925_s18  ;;  %s7189_s18 = sld [smem:[#allocation10 + $0x206]] }
 0x650   :  { %v589_v56 = vmul.f32 %v588_v23, %v6603_v47  ;;  %v590_v54 = vmul.f32 %v588_v23, %v6607_v3 }
 0x652   :  { %v6910_v29 = vadd.f32 %v592_v48, %v589_v56  ;;  %v6912_v17 = vadd.f32 %v592_v48, %v590_v54  ;;  %v2143_v48 = vstv %s6932_s2  ;;  %v2226_v56 = vstv %s6934_s4  ;;  %s7194_s2 = sld [smem:[#allocation10 + $0x286]] }
 0x653   :  { %s7203_s4 = sld [smem:[#allocation10 + $0x786]] }
 0x654   :  { %v799_v40 = vmul.f32 %v798_v8, %v6910_v29  ;;  %v800_v58 = vmul.f32 %v798_v8, %v6912_v17  ;;  %v1068_v6 = vmul.f32 %v1067_v20, %v6910_v29  ;;  %v1606_v59 = vmul.f32 %v1605_v27, %v6910_v29 }
 0x655   :  { %v1607_v61 = vmul.f32 %v1605_v27, %v6912_v17  ;;  %v2330_v8 = vstv %s6937_s20  ;;  %v2950_v27 = vstv %s6957_s27  ;;  %v2144_v24 = vmul.f32 %v2143_v48, %v6910_v29  ;;  %s7205_s20 = sld [smem:[#allocation10 + $0xc86]] }
 0x656   :  { %v6920_v47 = vadd.f32 %v799_v40, %v6629_v11  ;;  %v6923_v3 = vadd.f32 %v800_v58, %v6632_v26  ;;  %v6930_v45 = vadd.f32 %v1068_v6, %v6639_v22  ;;  %v1069_v11 = vmul.f32 %v1067_v20, %v6912_v17  ;;  %s7225_s27 = sld [smem:[#allocation10 + $0x406]] }
 0x657   :  { %v1337_v22 = vmul.f32 %v1336_v0, %v6910_v29  ;;  %v6981_v23 = vadd.f32 %v1606_v59, %v6690_v30  ;;  %v6986_v54 = vadd.f32 %v1607_v61, %v6695_v63  ;;  %v2412_v20 = vstv %s6939_s21  ;;  %s7210_s21 = sld [smem:[#allocation10 + $0x306]] }
 0x658   :  { %v6951_v26 = vadd.f32 %v1069_v11, %v6660_v28  ;;  %v1338_v28 = vmul.f32 %v1336_v0, %v6912_v17  ;;  %v2495_v40 = vstv %s6942_s22  ;;  %v1875_v58 = vmul.f32 %v1874_v13, %v6910_v29  ;;  %s7212_s22 = sld [smem:[#allocation10 + $0x806]] }
 0x659   :  { %v6962_v14 = vadd.f32 %v1337_v22, %v6671_v4  ;;  %v2061_v4 = vstv %s6927_s19  ;;  %v1876_v6 = vmul.f32 %v1874_v13, %v6912_v17  ;;  %v2681_v0 = vstv %s6946_s24  ;;  %s7192_s19 = sld [smem:[#allocation10 + $0xc06]] }
 0x65a   :  { %v6978_v34 = vadd.f32 %v1338_v28, %v6687_v18  ;;  %v2599_v18 = vstv %s6944_s23  ;;  %v2062_v30 = vmul.f32 %v2061_v4, %v6910_v29  ;;  %v2764_v11 = vstv %s6948_s25  ;;  %s7214_s23 = sld [smem:[#allocation10 + $0xd06]] }
 0x65b   :  { %v2868_v22 = vstv %s6955_s26  ;;  %v7000_v63 = vadd.f32 %v1875_v58, %v6709_v55  ;;  %v7003_v28 = vadd.f32 %v1876_v6, %v6712_v42  ;;  %v7006_v59 = vmul.f32 %v2061_v4, %v6912_v17  ;;  %s7216_s24 = sld [smem:[#allocation10 + $0x386]] }
 0x65c   :  { %v3033_v61 = vstv %s6959_s28  ;;  %v2066_v13 = vrot.slane %v2062_v30, 2  ;;  %v2227_v53 = vmul.f32 %v2226_v56, %v6910_v29  ;;  %v7015_v60 = vmul.f32 %v2226_v56, %v6912_v17  ;;  %s7220_s25 = sld [smem:[#allocation10 + $0x886]] }
 0x65d   :  { %10304 = vst [vmem:[#allocation127_spill] sm:$0xff] %v7006_v59  ;;  %v10074_v41 = vrot.slane %v7006_v59, 2  ;;  %v3302_v55 = vstv %s6970_s7  ;;  %v7019_v42 = vadd.f32 %v2144_v24, %v6728_v46  ;;  %v2331_v4 = vmul.f32 %v2330_v8, %v6910_v29  ;;  %s7222_s26 = sld [smem:[#allocation10 + $0xd86]] }
 0x65e   :  { %10305 = vst [vmem:[#allocation128_spill] sm:$0xff] %v7015_v60  ;;  %v7023_v58 = vmul.f32 %v2330_v8, %v6912_v17  ;;  %v3406_v6 = vstv %s6975_s3  ;;  %v2231_v12 = vrot.slane %v2227_v53, 1  ;;  %v10076_v16 = vrot.slane %v7015_v60, 1  ;;  %s7227_s28 = sld [smem:[#allocation10 + $0x906]] }
 0x65f   :  { %v7029_v30 = vsel %vm141_vm1, %v2066_v13, %v10074_v41  ;;  %v2145_v56 = vmul.f32 %v2143_v48, %v6912_v17  ;;  %v2335_v21 = vrot.slane %v2331_v4, 2  ;;  %v2413_v24 = vmul.f32 %v2412_v20, %v6910_v29  ;;  %s7239_s7 = sld [smem:[#allocation10 + $0x986]] }
 0x660   :  { %10306 = vst [vmem:[#allocation129_spill] sm:$0xff] %v7023_v58  ;;  %10307 = vst [vmem:[#allocation130_spill] sm:$0xff] %v7029_v30  ;;  %v10080_v46 = vrot.slane %v7023_v58, 2  ;;  %v2496_v37 = vmul.f32 %v2495_v40, %v6910_v29  ;;  %v7039_v8 = vsel %vm127_vm0, %v2231_v12, %v10076_v16  ;;  %v7045_v53 = vmul.f32 %v2495_v40, %v6912_v17  ;;  %s7247_s3 = sld [smem:[#allocation10 + $0xe86]] }
 0x661   :  { %10308 = vst [vmem:[#allocation131_spill] sm:$0xff] %v7039_v8  ;;  %v7042_v13 = vadd.f32 %v2145_v56, %v6751_v19  ;;  %v2600_v48 = vmul.f32 %v2599_v18, %v6910_v29  ;;  %v7054_v41 = vadd.f32 %v2413_v24, %v6763_v38  ;;  %v7057_v12 = vmul.f32 %v2599_v18, %v6912_v17 }
 0x662   :  { %10309 = vst [vmem:[#allocation132_spill] sm:$0xff] %v7045_v53  ;;  %v7051_v4 = vsel %vm141_vm1, %v2335_v21, %v10080_v46  ;;  %v2500_v60 = vrot.slane %v2496_v37, 1  ;;  %v10082_v19 = vrot.slane %v7045_v53, 1  ;;  %v2414_v40 = vmul.f32 %v2412_v20, %v6912_v17 }
 0x663   :  { %10310 = vst [vmem:[#allocation133_spill] sm:$0xff] %v7051_v4  ;;  %10311 = vst [vmem:[#allocation134_spill] sm:$0xff] %v7057_v12  ;;  %v2604_v56 = vrot.slane %v2600_v48, 2  ;;  %v2682_v16 = vmul.f32 %v2681_v0, %v6910_v29  ;;  %v10079_v59 = vrot.slane %v7057_v12, 2  ;;  %v2683_v58 = vmul.f32 %v2681_v0, %v6912_v17 }
 0x664   :  { %v2765_v21 = vmul.f32 %v2764_v11, %v6910_v29  ;;  %v7066_v38 = vmul.f32 %v2764_v11, %v6912_v17  ;;  %v7071_v37 = vsel %vm127_vm0, %v2500_v60, %v10082_v19  ;;  %v7074_v18 = vadd.f32 %v2414_v40, %v6783_v62 }
 0x665   :  { %10313 = vst [vmem:[#allocation136_spill] sm:$0xff] %v7071_v37  ;;  %v7077_v20 = vadd.f32 %v2682_v16, %v6786_v49  ;;  %v2869_v24 = vmul.f32 %v2868_v22, %v6910_v29  ;;  %v7083_v0 = vsel %vm141_vm1, %v2604_v56, %v10079_v59  ;;  %v7086_v11 = vadd.f32 %v2683_v58, %v6795_v31 }
 0x666   :  { %10312 = vst [vmem:[#allocation135_spill] sm:$0xff] %v7066_v38  ;;  %10314 = vst [vmem:[#allocation137_spill] sm:$0xff] %v7083_v0  ;;  %v2769_v48 = vrot.slane %v2765_v21, 1  ;;  %v10081_v60 = vrot.slane %v7066_v38, 1  ;;  %v7090_v62 = vmul.f32 %v2868_v22, %v6912_v17  ;;  %v2951_v16 = vmul.f32 %v2950_v27, %v6910_v29 }
 0x667   :  { %v2873_v40 = vrot.slane %v2869_v24, 2  ;;  %v2952_v49 = vmul.f32 %v2950_v27, %v6912_v17  ;;  %v3034_v31 = vmul.f32 %v3033_v61, %v6910_v29  ;;  %v7101_v58 = vmul.f32 %v3033_v61, %v6912_v17 }
 0x668   :  { %10315 = vst [vmem:[#allocation138_spill] sm:$0xff] %v7090_v62  ;;  %v7097_v56 = vsel %vm127_vm0, %v2769_v48, %v10081_v60  ;;  %v3138_v21 = vmul.f32 %v3137_v35, %v6910_v29  ;;  %v10084_v22 = vrot.slane %v7090_v62, 2  ;;  %v7106_v24 = vadd.f32 %v2951_v16, %v6815_v36 }
 0x669   :  { %10316 = vst [vmem:[#allocation139_spill] sm:$0xff] %v7097_v56  ;;  %10317 = vst [vmem:[#allocation140_spill] sm:$0xff] %v7101_v58  ;;  %v7109_v59 = vadd.f32 %v2952_v49, %v6818_v57  ;;  %v7112_v27 = vmul.f32 %v3137_v35, %v6912_v17  ;;  %v3038_v48 = vrot.slane %v3034_v31, 1  ;;  %v10085_v46 = vrot.slane %v7101_v58, 1 }
 0x66a   :  { %v3142_v60 = vrot.slane %v3138_v21, 2  ;;  %v10319_v61 = vstv %s6966_s6  ;;  %v7121_v12 = vsel %vm141_vm1, %v2873_v40, %v10084_v22  ;;  %v3303_v57 = vmul.f32 %v3302_v55, %v6910_v29 }
 0x66b   :  { %10318 = vst [vmem:[#allocation141_spill] sm:$0xff] %v7112_v27  ;;  %v3220_v19 = vmul.f32 %v10319_v61, %v6910_v29  ;;  %10320 = vst [vmem:[#allocation142_spill] sm:$0xff] %v7121_v12  ;;  %v10086_v36 = vrot.slane %v7112_v27, 2  ;;  %v7126_v35 = vmul.f32 %v3302_v55, %v6912_v17  ;;  %v7131_v16 = vsel %vm127_vm0, %v3038_v48, %v10085_v46 }
 0x66c   :  { %10322 = vst [vmem:[#allocation144_spill] sm:$0xff] %v7131_v16  ;;  %v3407_v31 = vmul.f32 %v3406_v6, %v6910_v29  ;;  %v7138_v40 = vmul.f32 %v3406_v6, %v6912_v17  ;;  %v3307_v55 = vrot.slane %v3303_v57, 1  ;;  %v10325_v22 = vstv %s6966_s6  ;;  %v714_v57 = vpop.xlane.xlu0 %713  ;;  %s7237_s6 = sld [smem:[#allocation10 + $0x486]] }
 0x66d   :  { %10321 = vst [vmem:[#allocation143_spill] sm:$0xff] %v7126_v35  ;;  %v7134_v49 = vadd.f32 %v3220_v19, %v6843_v2  ;;  %v7143_v21 = vsel %vm141_vm1, %v3142_v60, %v10086_v36  ;;  %v10091_v61 = vrot.slane %v7126_v35, 1  ;;  %v3221_v48 = vmul.f32 %v10325_v22, %v6912_v17 }
 0x66e   :  { %10323 = vst [vmem:[#allocation145_spill] sm:$0xff] %v7138_v40  ;;  %10324 = vst [vmem:[#allocation146_spill] sm:$0xff] %v7143_v21  ;;  %v3411_v46 = vrot.slane %v3407_v31, 2  ;;  %v10092_v2 = vrot.slane %v7138_v40, 2  ;;  %v715_v36 = vrot.slane %v714_v57, 4  ;;  %v3150_v12 = vstv %s7235_s29  ;;  %s4709_s29 = sld [smem:[#allocation10 + $0xa80]] }
 0x66f   :  { %v7153_v19 = vsel %vm127_vm0, %v3307_v55, %v10091_v61  ;;  %v7156_v6 = vadd.f32 %v3221_v48, %v6865_v7  ;;  %v3315_v56 = vstv %s7239_s7  ;;  %s7877_s7 = sld [smem:[#allocation10 + $0x703]] }
 0x670   :  { %10326 = vst [vmem:[#allocation147_spill] sm:$0xff] %v7153_v19  ;;  %v7161_v60 = vsel %vm141_vm1, %v3411_v46, %v10092_v2  ;;  %v716_v27 = vadd.f32 %v715_v36, %v714_v57  ;;  %v10328_v57 = vmax.f32 %v6882_v39, 0.0 }
 0x671   :  { %10327 = vst [vmem:[#allocation148_spill] sm:$0xff] %v7161_v60 }
 0x672   :  { %v717_v22 = vrot.slane %v716_v27, 2 }
 0x674   :  { %v718_v16 = vadd.f32 %v717_v22, %v716_v27  ;;  %v10329_v27 = vmax.f32 %v6880_v5, 0.0  ;;  %v666_v5 = vstv %s4662_s30  ;;  %s7485_s30 = sld [smem:[#allocation10 + $0xb00]] }
 0x676   :  { %v719_v55 = vrot.slane %v718_v16, 1 }
 0x678   :  { %v720_v7 = vadd.f32 %v719_v55, %v718_v16 }
 0x6d6   :  { %v653_v31 = vpop.xlane.xlu1 %652 }
 0x6d7   :  { %v654_v21 = vrot.slane %v653_v31, 4 }
 0x6d9   :  { %v655_v58 = vadd.f32 %v654_v21, %v653_v31  ;;  %v804_v31 = vstv %s4675_s14  ;;  %s7927_s14 = sld [smem:[#allocation10 + $0xb04]] }
 0x6db   :  { %v656_v35 = vrot.slane %v655_v58, 2 }
 0x6dd   :  { %v657_v62 = vadd.f32 %v656_v35, %v655_v58 }
 0x6df   :  { %v658_v61 = vrot.slane %v657_v62, 1 }
 0x6e1   :  { %v659_v19 = vadd.f32 %v658_v61, %v657_v62 }
 0x6e3   :  { %5174 = vpush %v659_v19 }
 0x6e4   :  { %5176 = vpush %v720_v7 }
 0x714   :  { %s5175_s0 = spop %5174 }
 0x715   :  { %v661_v48 = vstv %s5175_s0  ;;  %s5177_s5 = spop %5176  ;;  %s7617_s0 = sld [smem:[#allocation10 + $0x502]] }
 0x716   :  { %v662_v46 = vmul.f32 0.035714287, %v661_v48  ;;  %v722_v2 = vstv %s5177_s5  ;;  %v1073_v48 = vstv %s4699_s15  ;;  %s7631_s5 = sld [smem:[#allocation10 + $0xa02]] }
 0x717   :  { %v723_v40 = vmul.f32 0.035714287, %v722_v2  ;;  %v671_v2 = vstv %s4663_s13  ;;  %s7487_s13 = sld [smem:[#allocation10 + $0x680]]  ;;  %s7640_s15 = sld [smem:[#allocation10 + $0xa82]] }
 0x718   :  { %v664_v36 = vadd.f32 1e-05, %v662_v46 }
 0x719   :  { %v7165_v60 = vsub.f32 %v10328_v57, %v723_v40  ;;  %v7169_v58 = vsub.f32 %v10329_v27, %v723_v40  ;;  %v1342_v27 = vstv %s7177_s16  ;;  %s7496_s16 = sld [smem:[#allocation10 + $0xb80]] }
 0x71a   :  { %5238 = vrsqrt.f32 %v664_v36 }
 0x71b   :  { %v726_v62 = vmul.f32 %v7165_v60, %v7165_v60  ;;  %v727_v35 = vmul.f32 %v7169_v58, %v7169_v58 }
 0x71d   :  { %v728_v16 = vsel %vm155_vm3, %v726_v62, 0.0  ;;  %v729_v21 = vsel %vm157_vm2, %v727_v35, 0.0 }
 0x71e   :  { %v730_v39 = vadd.f32 %v729_v21, %v728_v16 }
 0x720   :  { %731 = vadd.xlane.f32.xlu1 %v730_v39 }
 0x724   :  { %v5239_v40 = vpop.eup %5238 }
 0x725   :  { %v667_v61 = vmul.f32 %v5239_v40, %v666_v5  ;;  %v1880_v5 = vstv %s7189_s18  ;;  %v2149_v40 = vstv %s7194_s2  ;;  %s7512_s18 = sld [smem:[#allocation10 + $0x501]]  ;;  %s7737_s2 = sld [smem:[#allocation10 + $0x702]] }
 0x727   :  { %v668_v19 = vmul.f32 %v667_v61, %v6894_v50  ;;  %v669_v22 = vmul.f32 %v667_v61, %v6898_v25 }
 0x729   :  { %v7181_v55 = vadd.f32 %v671_v2, %v668_v19  ;;  %v7183_v7 = vadd.f32 %v671_v2, %v669_v22  ;;  %v2239_v22 = vstv %s7203_s4  ;;  %s7758_s4 = sld [smem:[#allocation10 + $0x503]] }
 0x72b   :  { %v805_v46 = vmul.f32 %v804_v31, %v7181_v55  ;;  %v806_v36 = vmul.f32 %v804_v31, %v7183_v7  ;;  %v1074_v57 = vmul.f32 %v1073_v48, %v7181_v55  ;;  %v1344_v21 = vmul.f32 %v1342_v27, %v7183_v7 }
 0x72c   :  { %v2343_v31 = vstv %s7205_s20  ;;  %v2240_v4 = vmul.f32 %v2239_v22, %v7181_v55  ;;  %v7287_v37 = vmul.f32 %v2239_v22, %v7183_v7  ;;  %s7521_s20 = sld [smem:[#allocation10 + $0x581]] }
 0x72d   :  { %v7197_v50 = vadd.f32 %v805_v46, %v6920_v47  ;;  %v7200_v25 = vadd.f32 %v806_v36, %v6923_v3  ;;  %v7208_v62 = vadd.f32 %v1074_v57, %v6930_v45  ;;  %v1075_v47 = vmul.f32 %v1073_v48, %v7183_v7 }
 0x72e   :  { %v1343_v3 = vmul.f32 %v1342_v27, %v7181_v55  ;;  %v1611_v45 = vstv %s7185_s17  ;;  %v7250_v61 = vadd.f32 %v1344_v21, %v6978_v34  ;;  %v2418_v48 = vstv %s7210_s21  ;;  %10336 = vst [vmem:[#allocation155_spill] sm:$0xff] %v7287_v37  ;;  %s7498_s17 = sld [smem:[#allocation10 + $0x700]]  ;;  %s7523_s21 = sld [smem:[#allocation10 + $0xa81]] }
 0x72f   :  { %v7230_v35 = vadd.f32 %v1075_v47, %v6951_v26  ;;  %v1612_v39 = vmul.f32 %v1611_v45, %v7181_v55  ;;  %v1613_v26 = vmul.f32 %v1611_v45, %v7183_v7  ;;  %v2508_v46 = vstv %s7212_s22  ;;  %s7774_s22 = sld [smem:[#allocation10 + $0xa83]] }
 0x730   :  { %v7233_v16 = vadd.f32 %v1343_v3, %v6962_v14  ;;  %v2074_v14 = vstv %s7192_s19  ;;  %10330 = vst [vmem:[#allocation149_spill] sm:$0xff] %v7250_v61  ;;  %v2612_v36 = vstv %s7214_s23  ;;  %v1881_v57 = vmul.f32 %v1880_v5, %v7181_v55  ;;  %s7514_s19 = sld [smem:[#allocation10 + $0xa01]]  ;;  %s7781_s23 = sld [smem:[#allocation10 + $0x603]] }
 0x731   :  { %v7253_v2 = vadd.f32 %v1612_v39, %v6981_v23  ;;  %v7256_v19 = vadd.f32 %v1613_v26, %v6986_v54  ;;  %v1882_v27 = vmul.f32 %v1880_v5, %v7183_v7  ;;  %v2687_v34 = vstv %s7216_s24  ;;  %s7545_s24 = sld [smem:[#allocation10 + $0x601]] }
 0x732   :  { %v2777_v47 = vstv %s7220_s25  ;;  %v2075_v23 = vmul.f32 %v2074_v14, %v7181_v55  ;;  %v2881_v3 = vstv %s7222_s26  ;;  %v2956_v45 = vstv %s7225_s27  ;;  %s4677_s26 = sld [smem:[#allocation10 + $0x500]]  ;;  %s7557_s25 = sld [smem:[#allocation10 + $0xb01]] }
 0x733   :  { %10331 = vst [vmem:[#allocation150_spill] sm:$0xff] %v7253_v2  ;;  %10332 = vst [vmem:[#allocation151_spill] sm:$0xff] %v7256_v19  ;;  %v3046_v54 = vstv %s7227_s28  ;;  %v7272_v21 = vadd.f32 %v1881_v57, %v7000_v63  ;;  %v7275_v39 = vadd.f32 %v1882_v27, %v7003_v28  ;;  %v7278_v26 = vmul.f32 %v2074_v14, %v7183_v7  ;;  %s4685_s27 = sld [smem:[#allocation10 + $0xa00]] }
 0x734   :  { %v2079_v0 = vrot.slane %v2075_v23, 2  ;;  %v2150_v5 = vmul.f32 %v2149_v40, %v7181_v55  ;;  %v2344_v63 = vmul.f32 %v2343_v31, %v7181_v55  ;;  %v7294_v14 = vmul.f32 %v2343_v31, %v7183_v7  ;;  %s4701_s28 = sld [smem:[#allocation10 + $0x580]] }
 0x735   :  { %10333 = vst [vmem:[#allocation152_spill] sm:$0xff] %v7272_v21  ;;  %10334 = vst [vmem:[#allocation153_spill] sm:$0xff] %v7275_v39  ;;  %v10096_v53 = vrot.slane %v7278_v26, 2  ;;  %v2151_v57 = vmul.f32 %v2149_v40, %v7183_v7  ;;  %v3419_v27 = vstv %s7247_s3  ;;  %v2244_v38 = vrot.slane %v2240_v4, 1  ;;  %s7480_s3 = sld [smem:[#allocation10 + $0x600]] }
 0x736   :  { %10335 = vst [vmem:[#allocation154_spill] sm:$0xff] %v7278_v26  ;;  %v7291_v28 = vadd.f32 %v2150_v5, %v7019_v42  ;;  %10338 = vst [vmem:[#allocation157_spill] sm:$0xff] %v7294_v14  ;;  %v10097_v22 = vrot.slane %v7287_v37, 1  ;;  %v2348_v30 = vrot.slane %v2344_v63, 2  ;;  %v10101_v8 = vrot.slane %v7294_v14, 2 }
 0x737   :  { %v7301_v23 = vsel %vm141_vm1, %v2079_v0, %v10096_v53  ;;  %v7306_v42 = vadd.f32 %v2151_v57, %v7042_v13  ;;  %v2419_v31 = vmul.f32 %v2418_v48, %v7181_v55  ;;  %v2509_v5 = vmul.f32 %v2508_v46, %v7181_v55 }
 0x738   :  { %10337 = vst [vmem:[#allocation156_spill] sm:$0xff] %v7291_v28  ;;  %10339 = vst [vmem:[#allocation158_spill] sm:$0xff] %v7301_v23  ;;  %v7313_v40 = vsel %vm127_vm0, %v2244_v38, %v10097_v22  ;;  %v7316_v0 = vmul.f32 %v2508_v46, %v7183_v7  ;;  %v2613_v4 = vmul.f32 %v2612_v36, %v7181_v55  ;;  %v1471_v23 = vstv %s7557_s25  ;;  %s7792_s25 = sld [smem:[#allocation10 + $0x683]] }
 0x739   :  { %10340 = vst [vmem:[#allocation159_spill] sm:$0xff] %v7306_v42  ;;  %10341 = vst [vmem:[#allocation160_spill] sm:$0xff] %v7313_v40  ;;  %v7320_v63 = vmul.f32 %v2612_v36, %v7183_v7  ;;  %v7325_v13 = vsel %vm141_vm1, %v2348_v30, %v10101_v8  ;;  %v7328_v57 = vadd.f32 %v2419_v31, %v7054_v41  ;;  %v2513_v53 = vrot.slane %v2509_v5, 1 }
 0x73a   :  { %10342 = vst [vmem:[#allocation161_spill] sm:$0xff] %v7316_v0  ;;  %10344 = vst [vmem:[#allocation163_spill] sm:$0xff] %v7325_v13  ;;  %v2420_v38 = vmul.f32 %v2418_v48, %v7183_v7  ;;  %v10104_v22 = vrot.slane %v7316_v0, 1  ;;  %v2617_v46 = vrot.slane %v2613_v4, 2  ;;  %v2688_v26 = vmul.f32 %v2687_v34, %v7181_v55 }
 0x73b   :  { %10343 = vst [vmem:[#allocation162_spill] sm:$0xff] %v7320_v63  ;;  %10345 = vst [vmem:[#allocation164_spill] sm:$0xff] %v7328_v57  ;;  %v10102_v37 = vrot.slane %v7320_v63, 2  ;;  %v2689_v14 = vmul.f32 %v2687_v34, %v7183_v7  ;;  %v2778_v30 = vmul.f32 %v2777_v47, %v7181_v55  ;;  %v7340_v41 = vmul.f32 %v2777_v47, %v7183_v7 }
 0x73c   :  { %v7335_v36 = vadd.f32 %v2420_v38, %v7074_v18  ;;  %v7345_v48 = vsel %vm127_vm0, %v2513_v53, %v10104_v22  ;;  %v7353_v18 = vadd.f32 %v2688_v26, %v7077_v20  ;;  %v2882_v34 = vmul.f32 %v2881_v3, %v7181_v55 }
 0x73d   :  { %10347 = vst [vmem:[#allocation166_spill] sm:$0xff] %v7340_v41  ;;  %10348 = vst [vmem:[#allocation167_spill] sm:$0xff] %v7345_v48  ;;  %v7350_v31 = vsel %vm141_vm1, %v2617_v46, %v10102_v37  ;;  %v7357_v5 = vadd.f32 %v2689_v14, %v7086_v11  ;;  %v2782_v47 = vrot.slane %v2778_v30, 1  ;;  %v10103_v4 = vrot.slane %v7340_v41, 1 }
 0x73e   :  { %10346 = vst [vmem:[#allocation165_spill] sm:$0xff] %v7335_v36  ;;  %10349 = vst [vmem:[#allocation168_spill] sm:$0xff] %v7350_v31  ;;  %v7361_v38 = vmul.f32 %v2881_v3, %v7183_v7  ;;  %v2886_v53 = vrot.slane %v2882_v34, 2  ;;  %v2957_v8 = vmul.f32 %v2956_v45, %v7181_v55  ;;  %v2958_v46 = vmul.f32 %v2956_v45, %v7183_v7 }
 0x73f   :  { %10350 = vst [vmem:[#allocation169_spill] sm:$0xff] %v7353_v18  ;;  %10351 = vst [vmem:[#allocation170_spill] sm:$0xff] %v7357_v5  ;;  %v3047_v20 = vmul.f32 %v3046_v54, %v7181_v55  ;;  %v7369_v26 = vsel %vm127_vm0, %v2782_v47, %v10103_v4  ;;  %v7373_v14 = vmul.f32 %v3046_v54, %v7183_v7  ;;  %v10359_v22 = vstv %s7237_s6  ;;  %s7604_s6 = sld [smem:[#allocation10 + $0x701]] }
 0x740   :  { %10352 = vst [vmem:[#allocation171_spill] sm:$0xff] %v7361_v38  ;;  %10353 = vst [vmem:[#allocation172_spill] sm:$0xff] %v7369_v26  ;;  %v10106_v11 = vrot.slane %v7361_v38, 2  ;;  %v3151_v3 = vmul.f32 %v3150_v12, %v7181_v55  ;;  %v7377_v30 = vadd.f32 %v2957_v8, %v7106_v24  ;;  %v7380_v45 = vadd.f32 %v2958_v46, %v7109_v59 }
 0x741   :  { %10354 = vst [vmem:[#allocation173_spill] sm:$0xff] %v7373_v14  ;;  %v3051_v34 = vrot.slane %v3047_v20, 1  ;;  %v7383_v37 = vmul.f32 %v3150_v12, %v7183_v7  ;;  %v10112_v54 = vrot.slane %v7373_v14, 1  ;;  %v3226_v63 = vmul.f32 %v10359_v22, %v7181_v55 }
 0x742   :  { %10355 = vst [vmem:[#allocation174_spill] sm:$0xff] %v7377_v30  ;;  %10356 = vst [vmem:[#allocation175_spill] sm:$0xff] %v7380_v45  ;;  %v7388_v47 = vsel %vm141_vm1, %v2886_v53, %v10106_v11  ;;  %v3155_v4 = vrot.slane %v3151_v3, 2  ;;  %v3316_v59 = vmul.f32 %v3315_v56, %v7181_v55  ;;  %v7397_v24 = vmul.f32 %v3315_v56, %v7183_v7 }
 0x743   :  { %10357 = vst [vmem:[#allocation176_spill] sm:$0xff] %v7383_v37  ;;  %10358 = vst [vmem:[#allocation177_spill] sm:$0xff] %v7388_v47  ;;  %v10111_v8 = vrot.slane %v7383_v37, 2  ;;  %v3420_v12 = vmul.f32 %v3419_v27, %v7181_v55  ;;  %v7403_v53 = vsel %vm127_vm0, %v3051_v34, %v10112_v54  ;;  %v7406_v46 = vadd.f32 %v3226_v63, %v7134_v49 }
 0x744   :  { %10360 = vst [vmem:[#allocation178_spill] sm:$0xff] %v7397_v24  ;;  %10361 = vst [vmem:[#allocation179_spill] sm:$0xff] %v7403_v53  ;;  %v7409_v20 = vmul.f32 %v3419_v27, %v7183_v7  ;;  %v3227_v3 = vmul.f32 %v10359_v22, %v7183_v7  ;;  %v3320_v11 = vrot.slane %v3316_v59, 1  ;;  %v10110_v14 = vrot.slane %v7397_v24, 1  ;;  %v3564_v59 = vld [vmem:[%s9950_s9 + $0x88] sm:$0xff]  ;;  %v3566_v22 = vld [vmem:[%s9950_s9 + $0x98] sm:$0xff] }
 0x745   :  { %10362 = vst [vmem:[#allocation180_spill] sm:$0xff] %v7406_v46  ;;  %v7417_v56 = vsel %vm141_vm1, %v3155_v4, %v10111_v8  ;;  %v3424_v38 = vrot.slane %v3420_v12, 2  ;;  %v5334_v4 = vmov 0   ;;  %v5335_v12 = vmov 0.0  }
 0x746   :  { %10363 = vst [vmem:[#allocation181_spill] sm:$0xff] %v7409_v20  ;;  %10364 = vst [vmem:[#allocation182_spill] sm:$0xff] %v7417_v56  ;;  %v10109_v34 = vrot.slane %v7409_v20, 2  ;;  %v7422_v49 = vadd.f32 %v3227_v3, %v7156_v6  ;;  %v7427_v27 = vsel %vm127_vm0, %v3320_v11, %v10110_v14  ;;  %5192 = vset.pattern.permute.xlu1 %v5334_v4  ;;  %5191 = vset.pattern.permute.xlu0 %v5334_v4  ;;  %v3547_v6 = vld [vmem:[%s9950_s9] sm:$0xff]  ;;  %v3548_v11 = vld [vmem:[%s9950_s9 + $0x8] sm:$0xff] }
 0x747   :  { %10366 = vst [vmem:[#allocation184_spill] sm:$0xff] %v7427_v27  ;;  %3698 = vperm.xlu1 %5192, %v3564_v59   ;;  %753 = vst.msk [vmem:[#allocation2] sm:$0xff] %vm155_vm3, %v5335_v12  ;;  %v3563_v3 = vld [vmem:[%s9950_s9 + $0x80] sm:$0xff]  ;;  %v3568_v4 = vld [vmem:[%s9950_s9 + $0xa8] sm:$0xff]  ;;  %v829_v31 = vstv %s7512_s18  ;;  %v933_v41 = vstv %s7514_s19  ;;  %v7666_v57 = vmul.f32 %v1471_v23, %v5702_v52  ;;  %s7722_s18 = sld [smem:[#allocation10 + $0x682]] }
 0x748   :  { %10365 = vst [vmem:[#allocation183_spill] sm:$0xff] %v7422_v49  ;;  %v7432_v63 = vsel %vm141_vm1, %v3424_v38, %v10109_v34  ;;  %v3565_v38 = vld [vmem:[%s9950_s9 + $0x90] sm:$0xff]  ;;  %754 = vst.msk [vmem:[#allocation2 + $0x8] sm:$0xff] %vm155_vm3, %v5335_v12  ;;  %3693 = vperm.xlu0 %5191, %v3563_v3   ;;  %v1085_v3 = vstv %s4701_s28  ;;  %v1727_v49 = vstv %s7496_s16  ;;  %v1202_v0 = vstv %s7523_s21  ;;  %s7663_s16 = sld [smem:[#allocation10 + $0x602]]  ;;  %s7770_s21 = sld [smem:[#allocation10 + $0x583]] }
 0x749   :  { %10367 = vst [vmem:[#allocation185_spill] sm:$0xff] %v7432_v63  ;;  %755 = vst.msk [vmem:[#allocation2 + $0x10] sm:$0xff] %vm155_vm3, %v5335_v12  ;;  %v3549_v59 = vld [vmem:[%s9950_s9 + $0x10] sm:$0xff]  ;;  %v1086_v14 = vmul.f32 %v1085_v3, %v5510_v9  ;;  %v7506_v8 = vmul.f32 %v1085_v3, %v5516_v10  ;;  %v1354_v63 = vstv %s7480_s3  ;;  %v1458_v3 = vstv %s7485_s30  ;;  %s7634_s30 = sld [smem:[#allocation10 + $0x582]]  ;;  %s7891_s3 = sld [smem:[#allocation10 + $0x504]] }
 0x74a   :  { %756 = vst.msk [vmem:[#allocation2 + $0x18] sm:$0xff] %vm155_vm3, %v5335_v12  ;;  %757 = vst.msk [vmem:[#allocation2 + $0x20] sm:$0xff] %vm155_vm3, %v5335_v12  ;;  %v1355_v53 = vmul.f32 %v1354_v63, %v5510_v9  ;;  %v7532_v24 = vmul.f32 %v1354_v63, %v5516_v10  ;;  %v7535_v46 = vmul.f32 %v1458_v3, %v5510_v9  ;;  %v1892_v63 = vstv %s7498_s17  ;;  %s7682_s17 = sld [smem:[#allocation10 + $0xb02]]  ;;  %s8088_s28 = sld [smem:[#allocation10 + $0x705]] }
 0x74b   :  { %3613 = vperm.xlu1 %5192, %v3547_v6   ;;  %758 = vst.msk [vmem:[#allocation2 + $0x28] sm:$0xff] %vm155_vm3, %v5335_v12  ;;  %759 = vst.msk [vmem:[#allocation2 + $0x30] sm:$0xff] %vm155_vm3, %v5335_v12  ;;  %v3550_v6 = vld [vmem:[%s9950_s9 + $0x18] sm:$0xff]  ;;  %v1090_v37 = vrot.slane %v1086_v14, 1  ;;  %v7555_v56 = vmul.f32 %v1458_v3, %v5516_v10  ;;  %v10375_v47 = vrot.slane %v7506_v8, 1  ;;  %v1728_v26 = vmul.f32 %v1727_v49, %v5510_v9  ;;  %s7727_s19 = sld [smem:[#allocation10 + $0xb82]] }
 0x74c   :  { %760 = vst.msk [vmem:[#allocation2 + $0x38] sm:$0xff] %vm155_vm3, %v5335_v12  ;;  %761 = vst.msk [vmem:[#allocation2 + $0x40] sm:$0xff] %vm155_vm3, %v5335_v12  ;;  %3718 = vperm.xlu0 %5191, %v3568_v4   ;;  %v7586_v13 = vmul.f32 %v1727_v49, %v5516_v10  ;;  %v830_v30 = vmul.f32 %v829_v31, %v5702_v52  ;;  %v7598_v48 = vmul.f32 %v829_v31, %v5704_v51 }
 0x74d   :  { %762 = vst.msk [vmem:[#allocation2 + $0x48] sm:$0xff] %vm155_vm3, %v5335_v12  ;;  %763 = vst.msk [vmem:[#allocation2 + $0x50] sm:$0xff] %vm155_vm3, %v5335_v12  ;;  %v7568_v45 = vsel %vm127_vm0, %v1090_v37, %v10375_v47  ;;  %v3555_v37 = vld [vmem:[%s9950_s9 + $0x40] sm:$0xff]  ;;  %v1098_v47 = vstv %s7521_s20  ;;  %v934_v49 = vmul.f32 %v933_v41, %v5702_v52  ;;  %v7612_v31 = vmul.f32 %v1202_v0, %v5704_v51  ;;  %s7768_s20 = sld [smem:[#allocation10 + $0xa03]] }
 0x74e   :  { %764 = vst.msk [vmem:[#allocation2 + $0x58] sm:$0xff] %vm155_vm3, %v5335_v12  ;;  %765 = vst.msk [vmem:[#allocation2 + $0x60] sm:$0xff] %vm155_vm3, %v5335_v12  ;;  %v1367_v18 = vstv %s7545_s24  ;;  %v834_v40 = vrot.slane %v830_v30, 1  ;;  %v3557_v30 = vld [vmem:[%s9950_s9 + $0x50] sm:$0xff]  ;;  %v842_v21 = vstv %s7617_s0  ;;  %s7790_s24 = sld [smem:[#allocation10 + $0xb03]]  ;;  %s7901_s0 = sld [smem:[#allocation10 + $0xa04]] }
 0x74f   :  { %3618 = vperm.xlu1 %5192, %v3548_v11   ;;  %766 = vst.msk [vmem:[#allocation2 + $0x68] sm:$0xff] %vm155_vm3, %v5335_v12  ;;  %767 = vst.msk [vmem:[#allocation2 + $0x70] sm:$0xff] %vm155_vm3, %v5335_v12  ;;  %v3567_v11 = vld [vmem:[%s9950_s9 + $0xa0] sm:$0xff]  ;;  %v938_v42 = vrot.slane %v934_v49, 2  ;;  %v7643_v49 = vmul.f32 %v1367_v18, %v5702_v52  ;;  %v7661_v28 = vmul.f32 %v1367_v18, %v5704_v51 }
 0x750   :  { %768 = vst.msk [vmem:[#allocation2 + $0x78] sm:$0xff] %vm155_vm3, %v5335_v12  ;;  %v816_v12 = vstv %s4677_s26  ;;  %10370 = vst [vmem:[#allocation188_spill] sm:$0xff] %v7532_v24  ;;  %s7563_s26 = sld [smem:[#allocation10 + $0x681]]  ;;  %v7680_v18 = vmul.f32 %v1471_v23, %v5704_v51  ;;  %v10396_v23 = vrot.slane %v7612_v31, 2 }
 0x751   :  { %v817_v4 = vmul.f32 %v816_v12, %v5510_v9  ;;  %10373 = vst [vmem:[#allocation190_spill] sm:$0xff] %v7555_v56  ;;  %10378 = vst [vmem:[#allocation193_spill] sm:$0xff] %v7586_v13 }
 0x752   :  { %10382 = vst [vmem:[#allocation197_spill] sm:$0xff] %v7612_v31  ;;  %10389 = vst [vmem:[#allocation201_spill] sm:$0xff] %v7661_v28  ;;  %v1380_v31 = vstv %s7663_s16  ;;  %s7942_s16 = sld [smem:[#allocation10 + $0xb84]] }
 0x753   :  { %3703 = vperm.xlu1 %5192, %v3565_v38   ;;  %v3551_v38 = vld [vmem:[%s9950_s9 + $0x20] sm:$0xff]  ;;  %v821_v20 = vrot.slane %v817_v4, 1  ;;  %10392 = vst [vmem:[#allocation203_spill] sm:$0xff] %v7680_v18 }
 0x756   :  { %v1636_v36 = vstv %s7563_s26  ;;  %s8067_s26 = sld [smem:[#allocation10 + $0x685]] }
 0x757   :  { %3708 = vperm.xlu1 %5192, %v3566_v22   ;;  %v920_v22 = vstv %s4685_s27  ;;  %s8081_s27 = sld [smem:[#allocation10 + $0xb85]] }
 0x758   :  { %v921_v34 = vmul.f32 %v920_v22, %v5510_v9 }
 0x75a   :  { %v925_v4 = vrot.slane %v921_v34, 2  ;;  %v3571_v34 = vld [vmem:[%s9950_s9 + $0xc0] sm:$0xff] }
 0x75b   :  { %3623 = vperm.xlu1 %5192, %v3549_v59   ;;  %v1189_v59 = vstv %s4709_s29  ;;  %s7591_s29 = sld [smem:[#allocation10 + $0xb81]] }
 0x75c   :  { %v1190_v54 = vmul.f32 %v1189_v59, %v5510_v9 }
 0x75e   :  { %v1194_v27 = vrot.slane %v1190_v54, 2 }
 0x75f   :  { %3628 = vperm.xlu1 %5192, %v3550_v6   ;;  %v3569_v6 = vld [vmem:[%s9950_s9 + $0xb0] sm:$0xff] }
 0x763   :  { %3713 = vperm.xlu1 %5192, %v3567_v11   ;;  %v7494_v11 = vmul.f32 %v816_v12, %v5516_v10  ;;  %v7510_v12 = vmul.f32 %v1189_v59, %v5516_v10  ;;  %v1623_v59 = vstv %s7487_s13  ;;  %s7924_s13 = sld [smem:[#allocation10 + $0x604]] }
 0x765   :  { %10369 = vst [vmem:[#allocation187_spill] sm:$0xff] %v7510_v12  ;;  %v10371_v14 = vrot.slane %v7494_v11, 1 }
 0x767   :  { %3633 = vperm.xlu1 %5192, %v3551_v38   ;;  %v7502_v38 = vmul.f32 %v920_v22, %v5516_v10  ;;  %v3553_v22 = vld [vmem:[%s9950_s9 + $0x30] sm:$0xff]  ;;  %v7543_v54 = vsel %vm127_vm0, %v821_v20, %v10371_v14  ;;  %v1624_v20 = vmul.f32 %v1623_v59, %v5510_v9  ;;  %v7561_v14 = vmul.f32 %v1623_v59, %v5516_v10 }
 0x768   :  { %v1463_v59 = vrot.slane %v7535_v46, 2  ;;  %v7594_v46 = vmul.f32 %v1892_v63, %v5516_v10  ;;  %v7608_v10 = vmul.f32 %v1098_v47, %v5704_v51 }
 0x769   :  { %10368 = vst [vmem:[#allocation186_spill] sm:$0xff] %v7502_v38  ;;  %10374 = vst [vmem:[#allocation191_spill] sm:$0xff] %v7561_v14 }
 0x76a   :  { %10379 = vst [vmem:[#allocation194_spill] sm:$0xff] %v7594_v46  ;;  %10381 = vst [vmem:[#allocation196_spill] sm:$0xff] %v7608_v10 }
 0x76b   :  { %3723 = vperm.xlu1 %5192, %v3569_v6   ;;  %v10116_v6 = vrot.slane %v7502_v38, 2 }
 0x76f   :  { %3643 = vperm.xlu1 %5192, %v3553_v22   ;;  %v7552_v22 = vsel %vm141_vm1, %v925_v4, %v10116_v6  ;;  %v10376_v4 = vrot.slane %v7510_v12, 2  ;;  %v1359_v6 = vrot.slane %v1355_v53, 1  ;;  %v1893_v53 = vmul.f32 %v1892_v63, %v5510_v9 }
 0x770   :  { %10372 = vst [vmem:[#allocation189_spill] sm:$0xff] %v7552_v22  ;;  %v7602_v9 = vmul.f32 %v933_v41, %v5704_v51  ;;  %v1203_v63 = vmul.f32 %v1202_v0, %v5702_v52  ;;  %v10383_v41 = vrot.slane %v7532_v24, 1  ;;  %v10120_v0 = vrot.slane %v7594_v46, 1 }
 0x771   :  { %v7573_v3 = vsel %vm141_vm1, %v1194_v27, %v10376_v4  ;;  %v3573_v4 = vld [vmem:[%s9950_s9 + $0xd0] sm:$0xff]  ;;  %v1732_v27 = vrot.slane %v1728_v26, 2  ;;  %v1897_v5 = vrot.slane %v1893_v53, 1  ;;  %v10386_v26 = vrot.slane %v7561_v14, 1 }
 0x772   :  { %10377 = vst [vmem:[#allocation192_spill] sm:$0xff] %v7573_v3  ;;  %10380 = vst [vmem:[#allocation195_spill] sm:$0xff] %v7602_v9  ;;  %v1207_v53 = vrot.slane %v1203_v63, 2 }
 0x773   :  { %3733 = vperm.xlu1 %5192, %v3571_v34   ;;  %v1628_v34 = vrot.slane %v1624_v20, 1  ;;  %v1099_v20 = vmul.f32 %v1098_v47, %v5702_v52  ;;  %v10119_v47 = vrot.slane %v7586_v13, 2  ;;  %v1372_v13 = vrot.slane %v7643_v49, 1 }
 0x774   :  { %v7701_v46 = vsel %vm141_vm1, %v1207_v53, %v10396_v23  ;;  %v946_v23 = vstv %s7631_s5  ;;  %s7909_s5 = sld [smem:[#allocation10 + $0x584]] }
 0x775   :  { %v7653_v63 = vsel %vm127_vm0, %v1628_v34, %v10386_v26  ;;  %v7672_v34 = vsel %vm127_vm0, %v1897_v5, %v10120_v0  ;;  %v10391_v26 = vrot.slane %v7598_v48, 1  ;;  %v10393_v5 = vrot.slane %v7602_v9, 2  ;;  %10397 = vst [vmem:[#allocation205_spill] sm:$0xff] %v7701_v46 }
 0x776   :  { %10387 = vst [vmem:[#allocation199_spill] sm:$0xff] %v7653_v63  ;;  %10390 = vst [vmem:[#allocation202_spill] sm:$0xff] %v7672_v34  ;;  %v7704_v34 = vmul.f32 %v1636_v36, %v5704_v51  ;;  %v1649_v63 = vstv %s7722_s18  ;;  %s8266_s18 = sld [smem:[#allocation10 + $0x7]] }
 0x777   :  { %3653 = vperm.xlu1 %5192, %v3555_v37   ;;  %v7622_v37 = vsel %vm127_vm0, %v1359_v6, %v10383_v41  ;;  %v1103_v6 = vrot.slane %v1099_v20, 1  ;;  %v7658_v41 = vsel %vm141_vm1, %v1732_v27, %v10119_v47  ;;  %v7677_v27 = vsel %vm127_vm0, %v834_v40, %v10391_v26 }
 0x778   :  { %10388 = vst [vmem:[#allocation200_spill] sm:$0xff] %v7658_v41  ;;  %v1905_v47 = vstv %s7604_s6  ;;  %v7691_v0 = vsel %vm141_vm1, %v938_v42, %v10393_v5  ;;  %v10395_v40 = vrot.slane %v7608_v10, 1  ;;  %10398 = vst [vmem:[#allocation206_spill] sm:$0xff] %v7704_v34  ;;  %v843_v5 = vmul.f32 %v842_v21, %v6037_v15  ;;  %s7830_s6 = sld [smem:[#allocation10 + $0xb83]] }
 0x779   :  { %10394 = vst [vmem:[#allocation204_spill] sm:$0xff] %v7691_v0  ;;  %v7717_v53 = vmul.f32 %v1905_v47, %v5702_v52  ;;  %v947_v41 = vmul.f32 %v946_v23, %v6037_v15 }
 0x77a   :  { %v7696_v26 = vsel %vm127_vm0, %v1103_v6, %v10395_v40  ;;  %v1476_v6 = vrot.slane %v7666_v57, 2  ;;  %v847_v46 = vrot.slane %v843_v5, 1 }
 0x77b   :  { %3743 = vperm.xlu1 %5192, %v3573_v4   ;;  %v10384_v4 = vrot.slane %v7555_v56, 2  ;;  %v1111_v56 = vstv %s7634_s30  ;;  %v1910_v57 = vrot.slane %v7717_v53, 1  ;;  %v951_v5 = vrot.slane %v947_v41, 2  ;;  %s7920_s30 = sld [smem:[#allocation10 + $0xa84]] }
 0x77c   :  { %v7749_v14 = vmul.f32 %v1111_v56, %v6039_v32 }
 0x77d   :  { %v7648_v20 = vsel %vm141_vm1, %v1463_v59, %v10384_v4  ;;  %v1740_v59 = vstv %s7591_s29  ;;  %v7685_v4 = vmul.f32 %v1636_v36, %v5702_v52  ;;  %s8119_s29 = sld [smem:[#allocation10 + $0x506]] }
 0x77e   :  { %10385 = vst [vmem:[#allocation198_spill] sm:$0xff] %v7648_v20  ;;  %v7709_v42 = vmul.f32 %v1740_v59, %v5702_v52  ;;  %v7714_v40 = vmul.f32 %v1740_v59, %v5704_v51  ;;  %v7730_v52 = vmul.f32 %v1905_v47, %v5704_v51  ;;  %v7733_v59 = vmul.f32 %v842_v21, %v6039_v32 }
 0x77f   :  { %3663 = vperm.xlu1 %5192, %v3557_v30   ;;  %v1641_v49 = vrot.slane %v7685_v4, 1  ;;  %v7744_v51 = vmul.f32 %v946_v23, %v6039_v32  ;;  %v1112_v47 = vmul.f32 %v1111_v56, %v6037_v15  ;;  %v1484_v21 = vstv %s7682_s17  ;;  %10402 = vst [vmem:[#allocation210_spill] sm:$0xff] %v7749_v14  ;;  %s8260_s17 = sld [smem:[#allocation8 + $0x7]] }
 0x780   :  { %10399 = vst [vmem:[#allocation207_spill] sm:$0xff] %v7714_v40  ;;  %10400 = vst [vmem:[#allocation208_spill] sm:$0xff] %v7730_v52  ;;  %v1745_v4 = vrot.slane %v7709_v42, 2  ;;  %v7761_v56 = vmul.f32 %v1380_v31, %v6039_v32  ;;  %v1485_v23 = vmul.f32 %v1484_v21, %v6037_v15  ;;  %v10408_v20 = vrot.slane %v7680_v18, 2 }
 0x781   :  { %10401 = vst [vmem:[#allocation209_spill] sm:$0xff] %v7744_v51  ;;  %v10413_v41 = vrot.slane %v7714_v40, 2  ;;  %v1393_v40 = vstv %s7781_s23  ;;  %s8046_s23 = sld [smem:[#allocation10 + $0xa85]] }
 0x782   :  { %10404 = vst [vmem:[#allocation212_spill] sm:$0xff] %v7761_v56  ;;  %v7788_v19 = vsel %vm141_vm1, %v1476_v6, %v10408_v20  ;;  %v3575_v20 = vld [vmem:[%s9950_s9 + $0xe0] sm:$0xff]  ;;  %v10410_v6 = vrot.slane %v7704_v34, 1 }
 0x783   :  { %10409 = vst [vmem:[#allocation215_spill] sm:$0xff] %v7788_v19  ;;  %v10415_v19 = vrot.slane %v7733_v59, 1  ;;  %3753 = vperm.xlu1 %5192, %v3575_v20  }
 0x785   :  { %v7825_v34 = vsel %vm127_vm0, %v847_v46, %v10415_v19  ;;  %v10421_v19 = vrot.slane %v7749_v14, 1 }
 0x7ad   :  { %v732_v39 = vpop.xlane.xlu1 %731 }
 0x7ae   :  { %v733_v30 = vrot.slane %v732_v39, 4 }
 0x7b0   :  { %v734_v36 = vadd.f32 %v733_v30, %v732_v39  ;;  %v1215_v30 = vstv %s7640_s15  ;;  %s7934_s15 = sld [smem:[#allocation10 + $0x684]] }
 0x7b1   :  { %v1216_v42 = vmul.f32 %v1215_v30, %v6037_v15  ;;  %v7755_v53 = vmul.f32 %v1215_v30, %v6039_v32  ;;  %v1116_v30 = vrot.slane %v1112_v47, 1 }
 0x7b2   :  { %v735_v39 = vrot.slane %v734_v36, 2 }
 0x7b3   :  { %10403 = vst [vmem:[#allocation211_spill] sm:$0xff] %v7755_v53  ;;  %v1220_v3 = vrot.slane %v1216_v42, 2  ;;  %v1918_v42 = vstv %s7737_s2  ;;  %v7845_v46 = vsel %vm127_vm0, %v1116_v30, %v10421_v19  ;;  %s8455_s2 = sld [smem:[#allocation10 + $0xc87]] }
 0x7b4   :  { %v736_v12 = vadd.f32 %v735_v39, %v734_v36  ;;  %v1381_v36 = vmul.f32 %v1380_v31, %v6037_v15  ;;  %v7765_v39 = vmul.f32 %v1484_v21, %v6039_v32  ;;  %v10406_v31 = vrot.slane %v7661_v28, 1 }
 0x7b5   :  { %v7853_v20 = vmul.f32 %v1918_v42, %v6037_v15 }
 0x7b6   :  { %v737_v0 = vrot.slane %v736_v12, 1  ;;  %10405 = vst [vmem:[#allocation213_spill] sm:$0xff] %v7765_v39  ;;  %v7779_v21 = vsel %vm127_vm0, %v1372_v13, %v10406_v31  ;;  %v1385_v47 = vrot.slane %v1381_v36, 1  ;;  %v1489_v31 = vrot.slane %v1485_v23, 2  ;;  %v3552_v36 = vld [vmem:[%s9950_s9 + $0x28] sm:$0xff] }
 0x7b7   :  { %10407 = vst [vmem:[#allocation214_spill] sm:$0xff] %v7779_v21  ;;  %v7812_v23 = vmul.f32 %v1649_v63, %v6039_v32  ;;  %v7817_v13 = vsel %vm141_vm1, %v1745_v4, %v10413_v41  ;;  %3638 = vperm.xlu0 %5191, %v3552_v36   ;;  %v10419_v41 = vrot.slane %v7744_v51, 2 }
 0x7b8   :  { %v738_v9 = vadd.f32 %v737_v0, %v736_v12  ;;  %v1753_v12 = vstv %s7727_s19  ;;  %v7809_v0 = vsel %vm127_vm0, %v1641_v49, %v10410_v6  ;;  %10414 = vst [vmem:[#allocation218_spill] sm:$0xff] %v7817_v13  ;;  %v10417_v49 = vrot.slane %v7730_v52, 1  ;;  %s8268_s19 = sld [smem:[#allocation10 + $0x507]] }
 0x7b9   :  { %10411 = vst [vmem:[#allocation216_spill] sm:$0xff] %v7809_v0  ;;  %10412 = vst [vmem:[#allocation217_spill] sm:$0xff] %v7812_v23  ;;  %v7820_v18 = vmul.f32 %v1753_v12, %v6037_v15  ;;  %v7840_v6 = vsel %vm141_vm1, %v951_v5, %v10419_v41  ;;  %v10426_v41 = vrot.slane %v7765_v39, 2 }
 0x7ba   :  { %5178 = vpush %v738_v9  ;;  %v7798_v9 = vmul.f32 %v1649_v63, %v6037_v15  ;;  %v7828_v63 = vmul.f32 %v1753_v12, %v6039_v32  ;;  %v7835_v4 = vsel %vm127_vm0, %v1910_v57, %v10417_v49  ;;  %10420 = vst [vmem:[#allocation221_spill] sm:$0xff] %v7840_v6  ;;  %v10422_v12 = vrot.slane %v7755_v53, 2 }
 0x7bb   :  { %10418 = vst [vmem:[#allocation220_spill] sm:$0xff] %v7835_v4  ;;  %v855_v57 = vstv %s7758_s4  ;;  %v10424_v49 = vrot.slane %v7761_v56, 1  ;;  %v7864_v30 = vsel %vm141_vm1, %v1489_v31, %v10426_v41  ;;  %v1758_v15 = vrot.slane %v7820_v18, 2  ;;  %s8014_s4 = sld [smem:[#allocation10 + $0x704]] }
 0x7bc   :  { %10416 = vst [vmem:[#allocation219_spill] sm:$0xff] %v7828_v63  ;;  %v7850_v36 = vsel %vm141_vm1, %v1220_v3, %v10422_v12  ;;  %10427 = vst [vmem:[#allocation224_spill] sm:$0xff] %v7864_v30  ;;  %v1654_v19 = vrot.slane %v7798_v9, 1  ;;  %v959_v3 = vstv %s7768_s20  ;;  %v1124_v12 = vstv %s7770_s21  ;;  %s8022_s20 = sld [smem:[#allocation10 + $0x505]] }
 0x7bd   :  { %10423 = vst [vmem:[#allocation222_spill] sm:$0xff] %v7850_v36  ;;  %v7859_v5 = vsel %vm127_vm0, %v1385_v47, %v10424_v49  ;;  %v1228_v4 = vstv %s7774_s22  ;;  %v7875_v47 = vmul.f32 %v1918_v42, %v6039_v32  ;;  %v856_v31 = vmul.f32 %v855_v57, %v6328_v1  ;;  %s8028_s21 = sld [smem:[#allocation10 + $0xa05]] }
 0x7be   :  { %10425 = vst [vmem:[#allocation223_spill] sm:$0xff] %v7859_v5  ;;  %v1497_v49 = vstv %s7790_s24  ;;  %v1662_v9 = vstv %s7792_s25  ;;  %v1923_v41 = vrot.slane %v7853_v20, 1  ;;  %v7884_v52 = vmul.f32 %v855_v57, %v6330_v43  ;;  %s8039_s22 = sld [smem:[#allocation10 + $0x585]] }
 0x7bf   :  { %10428 = vst [vmem:[#allocation225_spill] sm:$0xff] %v7875_v47  ;;  %v960_v18 = vmul.f32 %v959_v3, %v6328_v1  ;;  %v7888_v39 = vmul.f32 %v959_v3, %v6330_v43  ;;  %v1125_v32 = vmul.f32 %v1124_v12, %v6328_v1  ;;  %v7894_v42 = vmul.f32 %v1124_v12, %v6330_v43  ;;  %s8059_s24 = sld [smem:[#allocation10 + $0x605]] }
 0x7c0   :  { %v1229_v13 = vmul.f32 %v1228_v4, %v6328_v1  ;;  %v7898_v30 = vmul.f32 %v1228_v4, %v6330_v43  ;;  %v1394_v20 = vmul.f32 %v1393_v40, %v6328_v1  ;;  %v7904_v57 = vmul.f32 %v1393_v40, %v6330_v43  ;;  %s8065_s25 = sld [smem:[#allocation10 + $0xb05]] }
 0x7c1   :  { %10429 = vst [vmem:[#allocation226_spill] sm:$0xff] %v7888_v39  ;;  %10430 = vst [vmem:[#allocation227_spill] sm:$0xff] %v7894_v42  ;;  %v1498_v3 = vmul.f32 %v1497_v49, %v6328_v1  ;;  %v1766_v53 = vstv %s7830_s6  ;;  %v860_v51 = vrot.slane %v856_v31, 1  ;;  %v7912_v12 = vmul.f32 %v1497_v49, %v6330_v43  ;;  %s8121_s6 = sld [smem:[#allocation10 + $0xa06]] }
 0x7c2   :  { %10431 = vst [vmem:[#allocation228_spill] sm:$0xff] %v7898_v30  ;;  %10432 = vst [vmem:[#allocation229_spill] sm:$0xff] %v7904_v57  ;;  %v1663_v4 = vmul.f32 %v1662_v9, %v6328_v1  ;;  %v7916_v6 = vmul.f32 %v1662_v9, %v6330_v43  ;;  %v10139_v40 = vrot.slane %v7884_v52, 1  ;;  %v964_v0 = vrot.slane %v960_v18, 2 }
 0x7c3   :  { %10433 = vst [vmem:[#allocation230_spill] sm:$0xff] %v7912_v12  ;;  %v1129_v28 = vrot.slane %v1125_v32, 1  ;;  %v1233_v36 = vrot.slane %v1229_v13, 2  ;;  %v1398_v38 = vrot.slane %v1394_v20, 1  ;;  %v1502_v22 = vrot.slane %v1498_v3, 2 }
 0x7c4   :  { %10434 = vst [vmem:[#allocation231_spill] sm:$0xff] %v7916_v6  ;;  %v10435_v18 = vrot.slane %v7812_v23, 1  ;;  %v1931_v13 = vstv %s7877_s7  ;;  %v1667_v20 = vrot.slane %v1663_v4, 1  ;;  %v7940_v56 = vmul.f32 %v1766_v53, %v6328_v1  ;;  %s8151_s7 = sld [smem:[#allocation10 + $0x586]] }
 0x7c5   :  { %v10437_v3 = vrot.slane %v7828_v63, 2  ;;  %v7955_v4 = vmul.f32 %v1766_v53, %v6330_v43  ;;  %v10440_v31 = vrot.slane %v7875_v47, 1  ;;  %v868_v9 = vstv %s7891_s3  ;;  %s8178_s3 = sld [smem:[#allocation10 + $0xa86]] }
 0x7c6   :  { %v7932_v32 = vsel %vm127_vm0, %v1654_v19, %v10435_v18  ;;  %v7947_v19 = vsel %vm127_vm0, %v860_v51, %v10139_v40  ;;  %v10442_v23 = vrot.slane %v7888_v39, 2  ;;  %v10444_v51 = vrot.slane %v7894_v42, 1 }
 0x7c7   :  { %10436 = vst [vmem:[#allocation232_spill] sm:$0xff] %v7932_v32  ;;  %v7952_v18 = vsel %vm141_vm1, %v1758_v15, %v10437_v3  ;;  %10439 = vst [vmem:[#allocation234_spill] sm:$0xff] %v7955_v4  ;;  %v7960_v49 = vsel %vm127_vm0, %v1923_v41, %v10440_v31  ;;  %v7974_v53 = vmul.f32 %v1931_v13, %v6328_v1  ;;  %v972_v15 = vstv %s7901_s0  ;;  %v3559_v1 = vld [vmem:[%s9950_s9 + $0x60] sm:$0xff]  ;;  %s8187_s0 = sld [smem:[#allocation10 + $0x606]] }
 0x7c8   :  { %10438 = vst [vmem:[#allocation233_spill] sm:$0xff] %v7952_v18  ;;  %10441 = vst [vmem:[#allocation235_spill] sm:$0xff] %v7960_v49  ;;  %v7966_v32 = vsel %vm141_vm1, %v964_v0, %v10442_v23  ;;  %v7971_v40 = vsel %vm127_vm0, %v1129_v28, %v10444_v51  ;;  %v10445_v3 = vrot.slane %v7898_v30, 2  ;;  %v10447_v31 = vrot.slane %v7904_v57, 1  ;;  %v3570_v28 = vld [vmem:[%s9950_s9 + $0xb8] sm:$0xff]  ;;  %3673 = vperm.xlu1 %5192, %v3559_v1  }
 0x7c9   :  { %10443 = vst [vmem:[#allocation236_spill] sm:$0xff] %v7966_v32  ;;  %v7994_v23 = vmul.f32 %v1931_v13, %v6330_v43  ;;  %v1137_v51 = vstv %s7909_s5  ;;  %v1771_v47 = vrot.slane %v7940_v56, 2  ;;  %3728 = vperm.xlu0 %5191, %v3570_v28   ;;  %v869_v43 = vmul.f32 %v868_v9, %v6619_v44  ;;  %s8192_s5 = sld [smem:[#allocation10 + $0xb06]] }
 0x7ca   :  { %v7980_v41 = vsel %vm141_vm1, %v1233_v36, %v10445_v3  ;;  %v7985_v0 = vsel %vm127_vm0, %v1398_v38, %v10447_v31  ;;  %v10450_v36 = vrot.slane %v7912_v12, 2  ;;  %v10452_v38 = vrot.slane %v7916_v6, 1 }
 0x7cb   :  { %10446 = vst [vmem:[#allocation237_spill] sm:$0xff] %v7980_v41  ;;  %10448 = vst [vmem:[#allocation238_spill] sm:$0xff] %v7985_v0  ;;  %v8010_v13 = vmul.f32 %v868_v9, %v6621_v33  ;;  %v1241_v49 = vstv %s7920_s30  ;;  %v1936_v56 = vrot.slane %v7974_v53, 1  ;;  %v1138_v28 = vmul.f32 %v1137_v51, %v6619_v44  ;;  %s8207_s30 = sld [smem:[#allocation10 + $0x686]]  ;;  %v3554_v0 = vld [vmem:[%s9950_s9 + $0x38] sm:$0xff] }
 0x7cc   :  { %10449 = vst [vmem:[#allocation239_spill] sm:$0xff] %v7994_v23  ;;  %v8000_v3 = vsel %vm141_vm1, %v1502_v22, %v10450_v36  ;;  %v8005_v31 = vsel %vm127_vm0, %v1667_v20, %v10452_v38  ;;  %v973_v36 = vmul.f32 %v972_v15, %v6619_v44  ;;  %v8018_v20 = vmul.f32 %v972_v15, %v6621_v33 }
 0x7cd   :  { %10451 = vst [vmem:[#allocation240_spill] sm:$0xff] %v8000_v3  ;;  %10453 = vst [vmem:[#allocation241_spill] sm:$0xff] %v8005_v31  ;;  %v1406_v38 = vstv %s7924_s13  ;;  %v1510_v9 = vstv %s7927_s14  ;;  %v1675_v1 = vstv %s7934_s15  ;;  %v8031_v22 = vmul.f32 %v1137_v51, %v6621_v33  ;;  %s8242_s13 = sld [smem:[#allocation10 + $0xb86]]  ;;  %s8250_s15 = sld [smem:[#allocation7 + $0x7]]  ;;  %3648 = vperm.xlu0 %5191, %v3554_v0  }
 0x7ce   :  { %10454 = vst [vmem:[#allocation242_spill] sm:$0xff] %v8010_v13  ;;  %10455 = vst [vmem:[#allocation243_spill] sm:$0xff] %v8018_v20  ;;  %v1242_v18 = vmul.f32 %v1241_v49, %v6619_v44  ;;  %v8035_v15 = vmul.f32 %v1241_v49, %v6621_v33  ;;  %v1779_v12 = vstv %s7942_s16  ;;  %v873_v53 = vrot.slane %v869_v43, 1  ;;  %s8248_s14 = sld [smem:[#allocation10 + $0x706]] }
 0x7cf   :  { %10456 = vst [vmem:[#allocation244_spill] sm:$0xff] %v8031_v22  ;;  %v1407_v30 = vmul.f32 %v1406_v38, %v6619_v44  ;;  %v8043_v63 = vmul.f32 %v1406_v38, %v6621_v33  ;;  %v977_v6 = vrot.slane %v973_v36, 2  ;;  %v1511_v31 = vmul.f32 %v1510_v9, %v6619_v44 }
 0x7d0   :  { %10457 = vst [vmem:[#allocation245_spill] sm:$0xff] %v8035_v15  ;;  %v8050_v49 = vmul.f32 %v1510_v9, %v6621_v33  ;;  %v1142_v43 = vrot.slane %v1138_v28, 1  ;;  %v1676_v3 = vmul.f32 %v1675_v1, %v6619_v44  ;;  %v8054_v41 = vmul.f32 %v1675_v1, %v6621_v33 }
 0x7d1   :  { %10458 = vst [vmem:[#allocation246_spill] sm:$0xff] %v8043_v63  ;;  %v1780_v38 = vmul.f32 %v1779_v12, %v6619_v44  ;;  %v1246_v39 = vrot.slane %v1242_v18, 2  ;;  %v8062_v32 = vmul.f32 %v1779_v12, %v6621_v33  ;;  %v1411_v9 = vrot.slane %v1407_v30, 1 }
 0x7d2   :  { %10459 = vst [vmem:[#allocation247_spill] sm:$0xff] %v8050_v49  ;;  %10460 = vst [vmem:[#allocation248_spill] sm:$0xff] %v8054_v41  ;;  %v10462_v1 = vrot.slane %v7955_v4, 2  ;;  %v1944_v36 = vstv %s8014_s4  ;;  %v10464_v51 = vrot.slane %v8010_v13, 1  ;;  %v1515_v30 = vrot.slane %v1511_v31, 2  ;;  %s8457_s4 = sld [smem:[#allocation10 + $0x307]] }
 0x7d3   :  { %10461 = vst [vmem:[#allocation249_spill] sm:$0xff] %v8062_v32  ;;  %v10466_v28 = vrot.slane %v7994_v23, 1  ;;  %v8095_v12 = vmul.f32 %v1944_v36, %v6619_v44  ;;  %v10471_v23 = vrot.slane %v8031_v22, 1  ;;  %v10473_v4 = vrot.slane %v8035_v15, 2 }
 0x7d4   :  { %v8072_v18 = vsel %vm141_vm1, %v1771_v47, %v10462_v1  ;;  %v8078_v57 = vsel %vm127_vm0, %v873_v53, %v10464_v51  ;;  %v881_v47 = vstv %s8022_s20  ;;  %v1680_v1 = vrot.slane %v1676_v3, 1  ;;  %s8471_s20 = sld [smem:[#allocation11 + $0x3]] }
 0x7d5   :  { %10463 = vst [vmem:[#allocation250_spill] sm:$0xff] %v8072_v18  ;;  %10465 = vst [vmem:[#allocation251_spill] sm:$0xff] %v8078_v57  ;;  %v8086_v2 = vsel %vm127_vm0, %v1936_v56, %v10466_v28  ;;  %v1784_v53 = vrot.slane %v1780_v38, 2  ;;  %v985_v51 = vstv %s8028_s21  ;;  %v8098_v18 = vmul.f32 %v1944_v36, %v6621_v33  ;;  %s8427_s21 = sld [smem:[#allocation10 + $0x287]] }
 0x7d6   :  { %10467 = vst [vmem:[#allocation252_spill] sm:$0xff] %v8086_v2  ;;  %v10469_v56 = vrot.slane %v8018_v20, 2  ;;  %v8108_v3 = vsel %vm127_vm0, %v1142_v43, %v10471_v23  ;;  %v1150_v38 = vstv %s8039_s22  ;;  %v8114_v31 = vsel %vm141_vm1, %v1246_v39, %v10473_v4  ;;  %s8283_s22 = sld [smem:[#allocation10 + $0xa07]] }
 0x7d7   :  { %10468 = vst [vmem:[#allocation253_spill] sm:$0xff] %v8098_v18  ;;  %10472 = vst [vmem:[#allocation255_spill] sm:$0xff] %v8108_v3  ;;  %v8117_v44 = vmul.f32 %v881_v47, %v6910_v29  ;;  %v1254_v33 = vstv %s8046_s23  ;;  %v10477_v43 = vrot.slane %v8050_v49, 2  ;;  %v8135_v4 = vmul.f32 %v881_v47, %v6912_v17  ;;  %s8285_s23 = sld [smem:[#allocation10 + $0x87]] }
 0x7d8   :  { %v8103_v28 = vsel %vm141_vm1, %v977_v6, %v10469_v56  ;;  %10474 = vst [vmem:[#allocation256_spill] sm:$0xff] %v8114_v31  ;;  %v10475_v6 = vrot.slane %v8043_v63, 1  ;;  %v8138_v36 = vmul.f32 %v985_v51, %v6910_v29  ;;  %v8141_v56 = vmul.f32 %v985_v51, %v6912_v17 }
 0x7d9   :  { %10470 = vst [vmem:[#allocation254_spill] sm:$0xff] %v8103_v28  ;;  %v8132_v39 = vsel %vm141_vm1, %v1515_v30, %v10477_v43  ;;  %v8149_v2 = vmul.f32 %v1150_v38, %v6910_v29  ;;  %v10482_v30 = vrot.slane %v8062_v32, 2  ;;  %v8161_v49 = vmul.f32 %v1150_v38, %v6912_v17 }
 0x7da   :  { %v8127_v23 = vsel %vm127_vm0, %v1411_v9, %v10475_v6  ;;  %10478 = vst [vmem:[#allocation258_spill] sm:$0xff] %v8132_v39  ;;  %10479 = vst [vmem:[#allocation259_spill] sm:$0xff] %v8141_v56  ;;  %v10480_v9 = vrot.slane %v8054_v41, 1  ;;  %v1523_v39 = vstv %s8065_s25  ;;  %v1688_v41 = vstv %s8067_s26  ;;  %s8304_s25 = sld [smem:[#allocation10 + $0xa87]] }
 0x7db   :  { %10476 = vst [vmem:[#allocation257_spill] sm:$0xff] %v8127_v23  ;;  %v8156_v47 = vsel %vm141_vm1, %v1784_v53, %v10482_v30  ;;  %10484 = vst [vmem:[#allocation262_spill] sm:$0xff] %v8161_v49  ;;  %v1957_v32 = vstv %s8088_s28  ;;  %v8176_v38 = vmul.f32 %v1254_v33, %v6912_v17  ;;  %v8190_v30 = vmul.f32 %v1523_v39, %v6910_v29  ;;  %s8317_s26 = sld [smem:[#allocation10 + $0x107]] }
 0x7dc   :  { %v8146_v6 = vsel %vm127_vm0, %v1680_v1, %v10480_v9  ;;  %10483 = vst [vmem:[#allocation261_spill] sm:$0xff] %v8156_v47  ;;  %v8164_v1 = vmul.f32 %v1254_v33, %v6910_v29  ;;  %v1419_v9 = vstv %s8059_s24  ;;  %v8197_v51 = vmul.f32 %v1523_v39, %v6912_v17  ;;  %v3577_v33 = vld [vmem:[%s9950_s9 + $0xf0] sm:$0xff]  ;;  %s8302_s24 = sld [smem:[#allocation10 + $0x587]] }
 0x7dd   :  { %10481 = vst [vmem:[#allocation260_spill] sm:$0xff] %v8146_v6  ;;  %v1792_v6 = vstv %s8081_s27  ;;  %10485 = vst [vmem:[#allocation263_spill] sm:$0xff] %v8176_v38  ;;  %v8182_v15 = vmul.f32 %v1419_v9, %v6910_v29  ;;  %v8185_v47 = vmul.f32 %v1419_v9, %v6912_v17  ;;  %v8200_v53 = vmul.f32 %v1688_v41, %v6910_v29  ;;  %s8319_s27 = sld [smem:[#allocation10 + $0x607]] }
 0x7de   :  { %10486 = vst [vmem:[#allocation264_spill] sm:$0xff] %v8197_v51  ;;  %v894_v9 = vstv %s8119_s29  ;;  %v998_v31 = vstv %s8121_s6  ;;  %v8205_v20 = vmul.f32 %v1688_v41, %v6912_v17  ;;  %v8210_v28 = vmul.f32 %v1792_v6, %v6910_v29  ;;  %3763 = vperm.xlu1 %5192, %v3577_v33   ;;  %s8334_s28 = sld [smem:[#allocation10 + $0xb07]] }
 0x7df   :  { %v8214_v43 = vmul.f32 %v1792_v6, %v6912_v17  ;;  %v8217_v39 = vmul.f32 %v1957_v32, %v6910_v29  ;;  %v8220_v63 = vmul.f32 %v1957_v32, %v6912_v17  ;;  %v1163_v24 = vstv %s8151_s7  ;;  %s8336_s29 = sld [smem:[#allocation10 + $0x187]] }
 0x7e0   :  { %v8227_v61 = vmul.f32 %v894_v9, %v7181_v55  ;;  %v8230_v6 = vmul.f32 %v894_v9, %v7183_v7  ;;  %v8233_v29 = vmul.f32 %v998_v31, %v7181_v55  ;;  %v8236_v17 = vmul.f32 %v998_v31, %v7183_v7  ;;  %s8341_s6 = sld [smem:[#allocation10 + $0x687]] }
 0x7e1   :  { %10487 = vst [vmem:[#allocation265_spill] sm:$0xff] %v8214_v43  ;;  %10488 = vst [vmem:[#allocation266_spill] sm:$0xff] %v8220_v63  ;;  %v1267_v9 = vstv %s8178_s3  ;;  %v8253_v31 = vmul.f32 %v1163_v24, %v7181_v55  ;;  %v8256_v41 = vmul.f32 %v1163_v24, %v7183_v7  ;;  %v1432_v23 = vstv %s8187_s0  ;;  %s8343_s7 = sld [smem:[#allocation10 + $0xb87]]  ;;  %s8346_s3 = sld [smem:[#allocation11]] }
 0x7e2   :  { %v1536_v22 = vstv %s8192_s5  ;;  %v8271_v24 = vmul.f32 %v1267_v9, %v7181_v55  ;;  %v8274_v14 = vmul.f32 %v1267_v9, %v7183_v7  ;;  %v1701_v21 = vstv %s8207_s30  ;;  %s8362_s0 = sld [smem:[#allocation11 + $0x1]]  ;;  %s8372_s5 = sld [smem:[#allocation10 + $0x207]] }
 0x7e3   :  { %v8288_v42 = vmul.f32 %v1432_v23, %v7181_v55  ;;  %v8291_v9 = vmul.f32 %v1432_v23, %v7183_v7  ;;  %v10490_v3 = vrot.slane %v8098_v18, 1  ;;  %v10491_v10 = vrot.slane %v8095_v12, 1  ;;  %s8374_s30 = sld [smem:[#allocation10 + $0x707]] }
 0x7e4   :  { %10489 = vst [vmem:[#allocation267_spill] sm:$0xff] %v8274_v14  ;;  %v1537_v23 = vmul.f32 %v1536_v22, %v7181_v55  ;;  %v8308_v18 = vmul.f32 %v1536_v22, %v7183_v7  ;;  %v10495_v0 = vrot.slane %v8117_v44, 1  ;;  %v1702_v33 = vmul.f32 %v1701_v21, %v7181_v55 }
 0x7e5   :  { %v8298_v13 = vsel %vm127_vm0, %v10491_v10, %v10490_v3  ;;  %v10494_v10 = vrot.slane %v8135_v4, 1  ;;  %v10497_v22 = vrot.slane %v8141_v56, 2  ;;  %v1272_v44 = vrot.slane %v8271_v24, 2 }
 0x7e6   :  { %10492 = vst [vmem:[#allocation268_spill] sm:$0xff] %v8298_v13  ;;  %10493 = vst [vmem:[#allocation269_spill] sm:$0xff] %v8308_v18  ;;  %v10500_v24 = vrot.slane %v8161_v49, 1  ;;  %v10515_v56 = vrot.slane %v8217_v39, 1  ;;  %v10520_v39 = vrot.slane %v8233_v29, 2  ;;  %v10523_v29 = vrot.slane %v8291_v9, 1 }
 0x7e7   :  { %v8315_v3 = vsel %vm127_vm0, %v10495_v0, %v10494_v10  ;;  %v1805_v0 = vstv %s8242_s13  ;;  %v1541_v10 = vrot.slane %v1537_v23, 2  ;;  %s8390_s13 = sld [smem:[#allocation11 + $0x2]] }
 0x7eb   :  { %s5179_s16 = spop %5178 }
 0x7ec   :  { %v740_v5 = vstv %s5179_s16  ;;  %s8429_s16 = sld [smem:[#allocation10 + $0x787]] }
 0x7ed   :  { %v741_v32 = vmul.f32 0.035714287, %v740_v5  ;;  %v1168_v5 = vrot.slane %v8253_v31, 1  ;;  %v8323_v31 = vmul.f32 %v1701_v21, %v7183_v7  ;;  %v1437_v21 = vrot.slane %v8288_v42, 1 }
 0x7ee   :  { %v10503_v42 = vrot.slane %v8164_v1, 2  ;;  %v10504_v1 = vrot.slane %v8185_v47, 1 }
 0x7ef   :  { %v743_v12 = vadd.f32 1e-05, %v741_v32  ;;  %10496 = vst [vmem:[#allocation270_spill] sm:$0xff] %v8323_v31  ;;  %v10498_v32 = vrot.slane %v8138_v36, 2  ;;  %v1970_v36 = vstv %s8248_s14  ;;  %s8398_s14 = sld [smem:[#allocation10 + $0xc07]] }
 0x7f0   :  { %v8396_v49 = vmul.f32 %v1970_v36, %v7183_v7 }
 0x7f1   :  { %v8330_v57 = vsel %vm141_vm1, %v10498_v32, %v10497_v22  ;;  %5240 = vrsqrt.f32 %v743_v12  ;;  %v10501_v22 = vrot.slane %v8149_v2, 1  ;;  %v10502_v12 = vrot.slane %v8176_v38, 2 }
 0x7f2   :  { %10499 = vst [vmem:[#allocation271_spill] sm:$0xff] %v8330_v57  ;;  %v1706_v57 = vrot.slane %v1702_v33, 1  ;;  %v8367_v2 = vmul.f32 %v1805_v0, %v7181_v55  ;;  %v10506_v33 = vrot.slane %v8197_v51, 2 }
 0x7f3   :  { %v8353_v32 = vsel %vm127_vm0, %v10501_v22, %v10500_v24  ;;  %v8360_v13 = vsel %vm141_vm1, %v10503_v42, %v10502_v12  ;;  %v8370_v24 = vmul.f32 %v1805_v0, %v7183_v7  ;;  %v10505_v22 = vrot.slane %v8182_v15, 1  ;;  %v3572_v15 = vld [vmem:[%s9950_s9 + $0xc8] sm:$0xff] }
 0x7f4   :  { %v10507_v12 = vrot.slane %v8190_v30, 2  ;;  %v8393_v0 = vmul.f32 %v1970_v36, %v7181_v55  ;;  %v3561_v30 = vld [vmem:[%s9950_s9 + $0x70] sm:$0xff]  ;;  %v10511_v7 = vrot.slane %v8214_v43, 2  ;;  %v10512_v36 = vrot.slane %v8210_v28, 2  ;;  %3738 = vperm.xlu0 %5191, %v3572_v15  }
 0x7f5   :  { %v8381_v23 = vsel %vm127_vm0, %v10505_v22, %v10504_v1  ;;  %v10509_v1 = vrot.slane %v8205_v20, 1  ;;  %v10510_v22 = vrot.slane %v8200_v53, 1  ;;  %3683 = vperm.xlu1 %5192, %v3561_v30   ;;  %v10517_v53 = vrot.slane %v8230_v6, 1 }
 0x7f6   :  { %v8388_v42 = vsel %vm141_vm1, %v10507_v12, %v10506_v33  ;;  %v8418_v33 = vsel %vm141_vm1, %v10512_v36, %v10511_v7  ;;  %v10514_v12 = vrot.slane %v8220_v63, 1  ;;  %v10518_v28 = vrot.slane %v8227_v61, 1 }
 0x7f7   :  { %10508 = vst [vmem:[#allocation272_spill] sm:$0xff] %v8388_v42  ;;  %v8411_v55 = vsel %vm127_vm0, %v10510_v22, %v10509_v1  ;;  %10513 = vst [vmem:[#allocation273_spill] sm:$0xff] %v8418_v33  ;;  %v10519_v22 = vrot.slane %v8236_v17, 2  ;;  %v10521_v7 = vrot.slane %v8256_v41, 1  ;;  %v10522_v15 = vrot.slane %v8274_v14, 2 }
 0x7f8   :  { %v8425_v51 = vsel %vm127_vm0, %v10515_v56, %v10514_v12  ;;  %v8436_v1 = vsel %vm127_vm0, %v10518_v28, %v10517_v53  ;;  %v8462_v30 = vsel %vm127_vm0, %v1437_v21, %v10523_v29  ;;  %v745_v28 = vstv %s8250_s15  ;;  %s8491_s15 = sld [smem:[#allocation11 + $0x4]] }
 0x7f9   :  { %10516 = vst [vmem:[#allocation274_spill] sm:$0xff] %v8425_v51  ;;  %v8443_v56 = vsel %vm141_vm1, %v10520_v39, %v10519_v22  ;;  %v8448_v36 = vsel %vm127_vm0, %v1168_v5, %v10521_v7  ;;  %v8453_v61 = vsel %vm141_vm1, %v1272_v44, %v10522_v15  ;;  %v10524_v5 = vrot.slane %v8308_v18, 2 }
 0x7fa   :  { %v1810_v44 = vrot.slane %v8367_v2, 2  ;;  %v10526_v21 = vrot.slane %v8323_v31, 1  ;;  %v750_v39 = vstv %s8260_s17  ;;  %v810_v7 = vstv %s8266_s18 }
 0x7fb   :  { %v8467_v12 = vsel %vm141_vm1, %v1541_v10, %v10524_v5  ;;  %v1975_v10 = vrot.slane %v8393_v0, 1  ;;  %v907_v15 = vstv %s8268_s19  ;;  %v1176_v29 = vstv %s8302_s24  ;;  %v5241_v2 = vpop.eup %5240  ;;  %s9465_s24 = sld [smem:[#allocation10 + $0xe07]] }
 0x7fc   :  { %10525 = vst [vmem:[#allocation275_spill] sm:$0xff] %v8467_v12  ;;  %v8479_v22 = vsel %vm127_vm0, %v1706_v57, %v10526_v21  ;;  %v1011_v57 = vstv %s8283_s22  ;;  %v1280_v5 = vstv %s8304_s25  ;;  %v746_v33 = vmul.f32 %v5241_v2, %v745_v28  ;;  %s10659_s22 = sld [smem:[#allocation277_spill]]  ;;  %s11019_s19 = sld [smem:[#allocation280_spill]] }
 0x7fd   :  { %10527 = vst [vmem:[#allocation276_spill] sm:$0xff] %v8479_v22  ;;  %v1024_v18 = vstv %s8346_s3  ;;  %v2155_v51 = vstv %s8427_s21  ;;  %v10528_v38 = vrot.slane %v8370_v24, 2  ;;  %v10530_v28 = vstv %s8285_s23  ;;  %s8822_s3 = sld [smem:[#allocation10 + $0xd87]]  ;;  %s10868_s21 = sld [smem:[#allocation279_spill]] }
 0x7fe   :  { %v747_v53 = vmul.f32 %v746_v33, %v7165_v60  ;;  %v748_v63 = vmul.f32 %v746_v33, %v7169_v58  ;;  %v10529_v60 = vrot.slane %v8396_v49, 1 }
 0x7ff   :  { %v8527_v14 = vsel %vm141_vm1, %v1810_v44, %v10528_v38 }
 0x800   :  { %v8518_v12 = vadd.f32 %v750_v39, %v747_v53  ;;  %v8520_v0 = vadd.f32 %v750_v39, %v748_v63  ;;  %v8532_v58 = vsel %vm127_vm0, %v1975_v10, %v10529_v60  ;;  %v3556_v63 = vld [vmem:[%s9950_s9 + $0x48] sm:$0xff]  ;;  %v3595_v53 = vld [vmem:[%s9950_s9 + $0x180] sm:$0xff] }
 0x801   :  { %3658 = vperm.xlu0 %5191, %v3556_v63   ;;  %3853 = vperm.xlu1 %5192, %v3595_v53   ;;  %v10531_v53 = vrot.slane %v7494_v11, 1  ;;  %v10532_v11 = vrot.slane %v7598_v48, 1  ;;  %v10535_v48 = vrot.slane %v7733_v59, 1  ;;  %v10538_v59 = vrot.slane %v7884_v52, 1  ;;  %v10541_v52 = vld [vmem:[#allocation242_spill] sm:$0xff] }
 0x802   :  { %v811_v39 = vmul.f32 %v810_v7, %v8518_v12  ;;  %v812_v38 = vmul.f32 %v810_v7, %v8520_v0  ;;  %v908_v44 = vmul.f32 %v907_v15, %v8518_v12  ;;  %v8546_v21 = vmul.f32 %v907_v15, %v8520_v0 }
 0x803   :  { %v1012_v10 = vmul.f32 %v1011_v57, %v8518_v12  ;;  %v8550_v60 = vmul.f32 %v1011_v57, %v8520_v0  ;;  %v1080_v33 = vmul.f32 %v10530_v28, %v8518_v12  ;;  %v1177_v42 = vmul.f32 %v1176_v29, %v8518_v12 }
 0x804   :  { %v813_v2 = vadd.f32 %v811_v39, %v7197_v50  ;;  %v814_v7 = vadd.f32 %v812_v38, %v7200_v25  ;;  %v912_v43 = vrot.slane %v908_v44, 1  ;;  %v913_v15 = vrot.slane %v8546_v21, 1 }
 0x805   :  { %v1016_v63 = vrot.slane %v1012_v10, 2  ;;  %v1017_v22 = vrot.slane %v8550_v60, 2  ;;  %v1082_v57 = vadd.f32 %v1080_v33, %v7208_v62  ;;  %v8562_v31 = vmul.f32 %v1176_v29, %v8520_v0 }
 0x806   :  { %v826_v28 = vadd.f32 %v7543_v54, %v813_v2  ;;  %v827_v50 = vadd.f32 %v10531_v53, %v814_v7  ;;  %v914_v25 = vsel %vm127_vm0, %v912_v43, %v913_v15  ;;  %v1181_v39 = vrot.slane %v1177_v42, 1 }
 0x807   :  { %v8571_v21 = vsel %vm141_vm1, %v1016_v63, %v1017_v22  ;;  %v1095_v38 = vadd.f32 %v7568_v45, %v1082_v57  ;;  %v1182_v62 = vrot.slane %v8562_v31, 1  ;;  %v1281_v29 = vmul.f32 %v1280_v5, %v8518_v12  ;;  %v8714_v31 = vld [vmem:[%s9942_s1] sm:$0xff] }
 0x808   :  { %v839_v54 = vadd.f32 %v7677_v27, %v826_v28  ;;  %v840_v2 = vadd.f32 %v10532_v11, %v827_v50  ;;  %v8580_v43 = vmul.f32 %v1280_v5, %v8520_v0  ;;  %v10533_v42 = vstv %s8285_s23 }
 0x809   :  { %v1081_v33 = vmul.f32 %v10533_v42, %v8520_v0  ;;  %v1108_v44 = vadd.f32 %v7696_v26, %v1095_v38  ;;  %v1183_v45 = vsel %vm127_vm0, %v1181_v39, %v1182_v62  ;;  %v1285_v10 = vrot.slane %v1281_v29, 2 }
 0x80a   :  { %v10534_v7 = vstv %s8317_s26  ;;  %v852_v27 = vadd.f32 %v7825_v34, %v839_v54  ;;  %v853_v57 = vadd.f32 %v10535_v48, %v840_v2  ;;  %v1286_v5 = vrot.slane %v8580_v43, 2  ;;  %v8849_v43 = vld [vmem:[%s9942_s1 + $0x28] sm:$0xf] }
 0x80b   :  { %v1349_v63 = vmul.f32 %v10534_v7, %v8518_v12  ;;  %v1083_v28 = vadd.f32 %v1081_v33, %v7230_v35  ;;  %v1121_v26 = vadd.f32 %v7845_v46, %v1108_v44  ;;  %v10536_v50 = vstv %s8319_s27  ;;  %v10540_v44 = vld [vmem:[#allocation251_spill] sm:$0xff] }
 0x80c   :  { %v1446_v39 = vmul.f32 %v10536_v50, %v8518_v12  ;;  %v10537_v38 = vmov %v10536_v50  ;;  %v865_v34 = vadd.f32 %v7947_v19, %v852_v27  ;;  %v866_v54 = vadd.f32 %v10538_v59, %v853_v57  ;;  %v10543_v27 = vld [vmem:[#allocation196_spill] sm:$0xff] }
 0x80d   :  { %v1351_v53 = vadd.f32 %v1349_v63, %v7233_v16  ;;  %v8605_v29 = vmul.f32 %v10537_v38, %v8520_v0  ;;  %v8613_v35 = vsel %vm141_vm1, %v1285_v10, %v1286_v5  ;;  %v10539_v16 = vrot.slane %v7506_v8, 1 }
 0x80e   :  { %v1134_v11 = vadd.f32 %v7971_v40, %v1121_v26  ;;  %v1450_v42 = vrot.slane %v1446_v39, 1  ;;  %v878_v19 = vadd.f32 %v10540_v44, %v865_v34  ;;  %v10542_v7 = vrot.slane %v10541_v52, 1  ;;  %v10547_v26 = vld [vmem:[#allocation214_spill] sm:$0xff] }
 0x80f   :  { %v1096_v46 = vadd.f32 %v10539_v16, %v1083_v28  ;;  %v1364_v2 = vadd.f32 %v7622_v37, %v1351_v53  ;;  %v1451_v33 = vrot.slane %v8605_v29, 1  ;;  %v10544_v48 = vrot.slane %v10543_v27, 1  ;;  %v10546_v28 = vld [vmem:[#allocation255_spill] sm:$0xff] }
 0x810   :  { %v879_v63 = vadd.f32 %v10542_v7, %v866_v54  ;;  %v10545_v57 = vstv %s8334_s28  ;;  %v1147_v40 = vadd.f32 %v10546_v28, %v1134_v11  ;;  %v891_v38 = vadd.f32 %v8315_v3, %v878_v19  ;;  %v10550_v54 = vld [vmem:[#allocation210_spill] sm:$0xff]  ;;  %v10555_v19 = vld [vmem:[#allocation227_spill] sm:$0xff] }
 0x811   :  { %v1109_v10 = vadd.f32 %v10544_v48, %v1096_v46  ;;  %v1550_v8 = vmul.f32 %v10545_v57, %v8518_v12  ;;  %v1377_v37 = vadd.f32 %v10547_v26, %v1364_v2  ;;  %v1452_v53 = vsel %vm127_vm0, %v1450_v42, %v1451_v33  ;;  %v10552_v2 = vld [vmem:[#allocation223_spill] sm:$0xff]  ;;  %v10558_v28 = vld [vmem:[#allocation238_spill] sm:$0xff] }
 0x812   :  { %v10548_v50 = vmov %v10545_v57  ;;  %v10549_v34 = vrot.slane %v8135_v4, 1  ;;  %v10551_v16 = vrot.slane %v10550_v54, 1  ;;  %v1160_v11 = vadd.f32 %v8353_v32, %v1147_v40 }
 0x813   :  { %v8636_v39 = vmul.f32 %v10548_v50, %v8520_v0  ;;  %v1554_v44 = vrot.slane %v1550_v8, 2  ;;  %v1390_v52 = vadd.f32 %v10552_v2, %v1377_v37  ;;  %v10553_v7 = vstv %s8317_s26  ;;  %v10559_v37 = vld [vmem:[#allocation149_spill] sm:$0xff]  ;;  %s8893_s26 = sld [smem:[#allocation10 + $0x407]] }
 0x814   :  { %v892_v59 = vadd.f32 %v10549_v34, %v879_v63  ;;  %v1122_v46 = vadd.f32 %v10551_v16, %v1109_v10  ;;  %v1350_v27 = vmul.f32 %v10553_v7, %v8520_v0  ;;  %v904_v48 = vadd.f32 %v8436_v1, %v891_v38  ;;  %v10560_v38 = vld [vmem:[#allocation244_spill] sm:$0xff]  ;;  %v10563_v2 = vld [vmem:[#allocation257_spill] sm:$0xff] }
 0x815   :  { %v1555_v42 = vrot.slane %v8636_v39, 2  ;;  %v10554_v3 = vrot.slane %v8230_v6, 1  ;;  %v10556_v63 = vrot.slane %v10555_v19, 1  ;;  %v10557_v10 = vstv %s8336_s29  ;;  %v8950_v39 = vld [vmem:[%s9942_s1 + $0x38] sm:$0xf]  ;;  %s9228_s29 = sld [smem:[#allocation11 + $0x6]] }
 0x816   :  { %v1618_v8 = vmul.f32 %v10557_v10, %v8518_v12  ;;  %v1173_v32 = vadd.f32 %v8448_v36, %v1160_v11  ;;  %v1403_v40 = vadd.f32 %v10558_v28, %v1390_v52  ;;  %v1352_v1 = vadd.f32 %v1350_v27, %v10559_v37  ;;  %v10564_v11 = vld [vmem:[#allocation188_spill] sm:$0xff] }
 0x817   :  { %v905_v4 = vadd.f32 %v10554_v3, %v892_v59  ;;  %v1135_v57 = vadd.f32 %v10556_v63, %v1122_v46  ;;  %v8662_v26 = vsel %vm141_vm1, %v1554_v44, %v1555_v42  ;;  %v917_v50 = vadd.f32 %v914_v25, %v904_v48  ;;  %v10566_v3 = vld [vmem:[#allocation150_spill] sm:$0xff]  ;;  %v10567_v44 = vld [vmem:[#allocation189_spill] sm:$0xff]  ;;  %v10573_v37 = vld [vmem:[#allocation192_spill] sm:$0xff] }
 0x818   :  { %v10561_v34 = vrot.slane %v10560_v38, 1  ;;  %v10562_v54 = vmov %v10557_v10  ;;  %v1186_v46 = vadd.f32 %v1183_v45, %v1173_v32  ;;  %v1416_v36 = vadd.f32 %v10563_v2, %v1403_v40  ;;  %v10568_v10 = vld [vmem:[#allocation186_spill] sm:$0xff]  ;;  %v10574_v32 = vld [vmem:[#allocation201_spill] sm:$0xff] }
 0x819   :  { %v918_v6 = vadd.f32 %v913_v15, %v905_v4  ;;  %v1619_v16 = vmul.f32 %v10562_v54, %v8520_v0  ;;  %v10565_v52 = vrot.slane %v10564_v11, 1  ;;  %v1620_v19 = vadd.f32 %v1618_v8, %v10566_v3  ;;  %v10570_v15 = vld [vmem:[#allocation262_spill] sm:$0xff]  ;;  %v10577_v8 = vld [vmem:[#allocation204_spill] sm:$0xff] }
 0x81a   :  { %v1148_v59 = vadd.f32 %v10561_v34, %v1135_v57  ;;  %v930_v63 = vadd.f32 %v10567_v44, %v917_v50  ;;  %v10569_v27 = vrot.slane %v10568_v10, 2  ;;  %v10571_v48 = vrot.slane %v10570_v15, 1  ;;  %v10572_v57 = vld [vmem:[#allocation151_spill] sm:$0xff]  ;;  %v10583_v10 = vld [vmem:[#allocation205_spill] sm:$0xff]  ;;  %v10586_v15 = vld [vmem:[#allocation216_spill] sm:$0xff] }
 0x81b   :  { %v1365_v7 = vadd.f32 %v10565_v52, %v1352_v1  ;;  %v1621_v28 = vadd.f32 %v1619_v16, %v10572_v57  ;;  %v1199_v38 = vadd.f32 %v10573_v37, %v1186_v46  ;;  %v1429_v45 = vadd.f32 %v8381_v23, %v1416_v36  ;;  %v10576_v1 = vld [vmem:[#allocation199_spill] sm:$0xff]  ;;  %v10584_v36 = vld [vmem:[#allocation212_spill] sm:$0xff]  ;;  %v10588_v57 = vld [vmem:[#allocation209_spill] sm:$0xff] }
 0x81c   :  { %v931_v25 = vadd.f32 %v10569_v27, %v918_v6  ;;  %v1161_v4 = vadd.f32 %v10571_v48, %v1148_v59  ;;  %v10575_v40 = vrot.slane %v10574_v32, 1  ;;  %v1633_v54 = vadd.f32 %v10576_v1, %v1620_v19  ;;  %v10578_v50 = vld [vmem:[#allocation195_spill] sm:$0xff]  ;;  %v10587_v48 = vld [vmem:[#allocation221_spill] sm:$0xff] }
 0x81d   :  { %v943_v2 = vadd.f32 %v10577_v8, %v930_v63  ;;  %v10579_v11 = vrot.slane %v10578_v50, 2  ;;  %v10580_v6 = vrot.slane %v8256_v41, 1  ;;  %v10581_v59 = vld [vmem:[#allocation191_spill] sm:$0xff]  ;;  %v1212_v46 = vadd.f32 %v10583_v10, %v1199_v38 }
 0x81e   :  { %v1378_v34 = vadd.f32 %v10575_v40, %v1365_v7  ;;  %v10582_v44 = vrot.slane %v10581_v59, 1  ;;  %v1442_v23 = vadd.f32 %v8462_v30, %v1429_v45  ;;  %v10585_v27 = vrot.slane %v10584_v36, 1  ;;  %v10592_v40 = vld [vmem:[#allocation222_spill] sm:$0xff]  ;;  %v10593_v30 = vld [vmem:[#allocation229_spill] sm:$0xff]  ;;  %v8729_v36 = vld [vmem:[%s9942_s1 + $0x10] sm:$0xff] }
 0x81f   :  { %v944_v52 = vadd.f32 %v10579_v11, %v931_v25  ;;  %v1174_v3 = vadd.f32 %v10580_v6, %v1161_v4  ;;  %v1646_v19 = vadd.f32 %v10586_v15, %v1633_v54  ;;  %v956_v63 = vadd.f32 %v10587_v48, %v943_v2  ;;  %v10590_v4 = vld [vmem:[#allocation206_spill] sm:$0xff]  ;;  %v10596_v54 = vld [vmem:[#allocation236_spill] sm:$0xff] }
 0x820   :  { %v1634_v16 = vadd.f32 %v10582_v44, %v1621_v28  ;;  %v1391_v7 = vadd.f32 %v10585_v27, %v1378_v34  ;;  %v10589_v37 = vrot.slane %v10588_v57, 2  ;;  %v10591_v32 = vrot.slane %v10590_v4, 1  ;;  %v10595_v34 = vld [vmem:[#allocation232_spill] sm:$0xff]  ;;  %v10597_v2 = vld [vmem:[#allocation226_spill] sm:$0xff]  ;;  %v10601_v44 = vld [vmem:[#allocation217_spill] sm:$0xff] }
 0x821   :  { %v1187_v41 = vadd.f32 %v1182_v62, %v1174_v3  ;;  %v1225_v38 = vadd.f32 %v10592_v40, %v1212_v46  ;;  %v1455_v1 = vadd.f32 %v1452_v53, %v1442_v23  ;;  %v10594_v45 = vrot.slane %v10593_v30, 1  ;;  %v8719_v62 = vld [vmem:[%s9942_s1 + $0x8] sm:$0xf]  ;;  %v10599_v53 = vld [vmem:[#allocation187_spill] sm:$0xff]  ;;  %v10603_v46 = vld [vmem:[#allocation237_spill] sm:$0xff] }
 0x822   :  { %v957_v25 = vadd.f32 %v10589_v37, %v944_v52  ;;  %v1647_v28 = vadd.f32 %v10591_v32, %v1634_v16  ;;  %v1659_v50 = vadd.f32 %v10595_v34, %v1646_v19  ;;  %v969_v11 = vadd.f32 %v10596_v54, %v956_v63  ;;  %v10604_v27 = vld [vmem:[#allocation198_spill] sm:$0xff]  ;;  %v10607_v63 = vld [vmem:[#allocation241_spill] sm:$0xff]  ;;  %v10613_v30 = vld [vmem:[#allocation231_spill] sm:$0xff] }
 0x823   :  { %v1404_v8 = vadd.f32 %v10594_v45, %v1391_v7  ;;  %v10598_v6 = vrot.slane %v10597_v2, 2  ;;  %v10600_v52 = vrot.slane %v10599_v53, 2  ;;  %v10602_v16 = vrot.slane %v10601_v44, 1  ;;  %v10605_v15 = vld [vmem:[#allocation246_spill] sm:$0xff]  ;;  %v10620_v44 = vld [vmem:[#allocation259_spill] sm:$0xff] }
 0x824   :  { %v1238_v23 = vadd.f32 %v10603_v46, %v1225_v38  ;;  %v1468_v7 = vadd.f32 %v10604_v27, %v1455_v1  ;;  %v10606_v19 = vrot.slane %v10605_v15, 1  ;;  %v1672_v57 = vadd.f32 %v10607_v63, %v1659_v50  ;;  %v10608_v37 = vld [vmem:[#allocation254_spill] sm:$0xff]  ;;  %v10615_v1 = vld [vmem:[#allocation256_spill] sm:$0xff] }
 0x825   :  { %v970_v59 = vadd.f32 %v10598_v6, %v957_v25  ;;  %v1200_v3 = vadd.f32 %v10600_v52, %v1187_v41  ;;  %v1660_v10 = vadd.f32 %v10602_v16, %v1647_v28  ;;  %v982_v25 = vadd.f32 %v10608_v37, %v969_v11  ;;  %v10609_v41 = vld [vmem:[#allocation243_spill] sm:$0xff]  ;;  %v10611_v28 = vld [vmem:[#allocation197_spill] sm:$0xff]  ;;  %v10618_v6 = vld [vmem:[#allocation260_spill] sm:$0xff] }
 0x826   :  { %v1417_v48 = vadd.f32 %v10606_v19, %v1404_v8  ;;  %v10610_v4 = vrot.slane %v10609_v41, 2  ;;  %v10612_v40 = vrot.slane %v10611_v28, 2  ;;  %v10614_v45 = vrot.slane %v10613_v30, 1  ;;  %v10616_v8 = vld [vmem:[#allocation215_spill] sm:$0xff]  ;;  %v10624_v15 = vld [vmem:[#allocation248_spill] sm:$0xff] }
 0x827   :  { %vm1031_vm4 = vcmp.ge.u32.totalorder %v8714_v31, 429496730  ;;  %vm1032_vm5 = vcmp.ge.u32.totalorder %v8719_v62, 429496730  ;;  %v1251_v54 = vadd.f32 %v10615_v1, %v1238_v23  ;;  %v1481_v2 = vadd.f32 %v10616_v8, %v1468_v7  ;;  %v10633_v1 = vld [vmem:[#allocation276_spill] sm:$0xff] }
 0x828   :  { %v983_v32 = vadd.f32 %v10610_v4, %v970_v59  ;;  %v1213_v38 = vadd.f32 %v10612_v40, %v1200_v3  ;;  %v1673_v34 = vadd.f32 %v10614_v45, %v1660_v10  ;;  %v10617_v50 = vrot.slane %v8185_v47, 1  ;;  %v10619_v59 = vld [vmem:[#allocation271_spill] sm:$0xff]  ;;  %v10626_v47 = vld [vmem:[#allocation224_spill] sm:$0xff] }
 0x829   :  { %v1685_v53 = vadd.f32 %v10618_v6, %v1672_v57  ;;  %v995_v52 = vadd.f32 %v10619_v59, %v982_v25  ;;  %v10621_v3 = vrot.slane %v10620_v44, 2  ;;  %vm1301_vm7 = vcmp.ge.u32.totalorder %v8729_v36, 429496730  ;;  %v10622_v10 = vld [vmem:[#allocation211_spill] sm:$0xff]  ;;  %v10636_v6 = vld [vmem:[#allocation270_spill] sm:$0xff] }
 0x82a   :  { %v1430_v11 = vadd.f32 %v10617_v50, %v1417_v48  ;;  %v10623_v46 = vrot.slane %v10622_v10, 2  ;;  %v10625_v23 = vrot.slane %v10624_v15, 1  ;;  %v1264_v7 = vadd.f32 %v8360_v13, %v1251_v54  ;;  %v10639_v44 = vld [vmem:[#allocation190_spill] sm:$0xff]  ;;  %v3597_v36 = vld [vmem:[%s9950_s9 + $0x190] sm:$0xff] }
 0x82b   :  { %v996_v16 = vadd.f32 %v10621_v3, %v983_v32  ;;  %v1494_v48 = vadd.f32 %v10626_v47, %v1481_v2  ;;  %v10627_v63 = vrot.slane %v8291_v9, 1  ;;  %v1698_v37 = vadd.f32 %v8411_v55, %v1685_v53  ;;  %v10629_v32 = vld [vmem:[#allocation228_spill] sm:$0xff]  ;;  %v10634_v2 = vld [vmem:[#allocation245_spill] sm:$0xff] }
 0x82c   :  { %v1226_v27 = vadd.f32 %v10623_v46, %v1213_v38  ;;  %v1686_v19 = vadd.f32 %v10625_v23, %v1673_v34  ;;  %v1008_v25 = vadd.f32 %v8443_v56, %v995_v52  ;;  %v10628_v41 = vrot.slane %v8236_v17, 2  ;;  %v8770_v38 = vld [vmem:[%s9942_s1 + $0x18] sm:$0xf]  ;;  %v3579_v17 = vld [vmem:[%s9950_s9 + $0x100] sm:$0xff]  ;;  %v10642_v46 = vld [vmem:[#allocation263_spill] sm:$0xff] }
 0x82d   :  { %v1443_v57 = vadd.f32 %v10627_v63, %v1430_v11  ;;  %v10630_v28 = vrot.slane %v10629_v32, 2  ;;  %v10631_v13 = vrot.slane %v8205_v20, 1  ;;  %v3574_v9 = vld [vmem:[%s9950_s9 + $0xd8] sm:$0xff]  ;;  %v1277_v55 = vadd.f32 %v8453_v61, %v1264_v7  ;;  %v8785_v20 = vld [vmem:[%s9942_s1 + $0x20] sm:$0xff]  ;;  %3773 = vperm.xlu1 %5192, %v3579_v17   ;;  %v10647_v63 = vld [vmem:[#allocation203_spill] sm:$0xff] }
 0x82e   :  { %v1009_v4 = vadd.f32 %v10628_v41, %v996_v16  ;;  %v10632_v56 = vld [vmem:[#allocation240_spill] sm:$0xff]  ;;  %v1711_v54 = vadd.f32 %v10633_v1, %v1698_v37  ;;  %3748 = vperm.xlu0 %5191, %v3574_v9   ;;  %v1021_v8 = vadd.f32 %v8571_v21, %v1008_v25  ;;  %v10635_v50 = vrot.slane %v10634_v2, 2  ;;  %v10652_v17 = vld [vmem:[#allocation213_spill] sm:$0xff] }
 0x82f   :  { %v1239_v40 = vadd.f32 %v10630_v28, %v1226_v27  ;;  %v1699_v30 = vadd.f32 %v10631_v13, %v1686_v19  ;;  %v1507_v45 = vadd.f32 %v10632_v56, %v1494_v48  ;;  %v1456_v34 = vadd.f32 %v1451_v33, %v1443_v57  ;;  %v10638_v33 = vld [vmem:[#allocation258_spill] sm:$0xff]  ;;  %v10646_v47 = vld [vmem:[#allocation272_spill] sm:$0xff] }
 0x830   :  { %v1022_v61 = vadd.f32 %v1017_v22, %v1009_v4  ;;  %v10637_v53 = vrot.slane %v10636_v6, 1  ;;  %v1290_v29 = vadd.f32 %v8613_v35, %v1277_v55  ;;  %vm1302_vm8 = vcmp.ge.u32.totalorder %v8770_v38, 429496730 }
 0x831   :  { %v1252_v11 = vadd.f32 %v10635_v50, %v1239_v40  ;;  %v1520_v52 = vadd.f32 %v10638_v33, %v1507_v45  ;;  %v10640_v3 = vrot.slane %v10639_v44, 2  ;;  %v10641_v21 = vstv %s8341_s6  ;;  %3863 = vperm.xlu1 %5192, %v3597_v36  }
 0x832   :  { %v1712_v59 = vadd.f32 %v10637_v53, %v1699_v30  ;;  %v1715_v60 = vmul.f32 %v10641_v21, %v8518_v12  ;;  %v1025_v22 = vadd.f32 %v1024_v18, %v1021_v8  ;;  %v1026_v10 = vadd.f32 %v1024_v18, %v1022_v61  ;;  %v10649_v18 = vld [vmem:[#allocation267_spill] sm:$0xff]  ;;  %v3558_v53 = vld [vmem:[%s9950_s9 + $0x58] sm:$0xff] }
 0x833   :  { %v1469_v16 = vadd.f32 %v10640_v3, %v1456_v34  ;;  %v10643_v27 = vrot.slane %v10642_v46, 2  ;;  %vm1570_vm9 = vcmp.ge.u32.totalorder %v8785_v20, 429496730  ;;  %v10644_v35 = vmov %v10641_v21  ;;  %v10651_v30 = vld [vmem:[#allocation275_spill] sm:$0xff]  ;;  %3668 = vperm.xlu0 %5191, %v3558_v53   ;;  %v5193_v3 = vld [vmem:[%s10659_s22] sm:$0xff]   ;;  %v10663_v46 = vld [vmem:[#allocation200_spill] sm:$0xff] }
 0x834   :  { %v1716_v23 = vmul.f32 %v10644_v35, %v8520_v0  ;;  %v10645_v19 = vstv %s8362_s0  ;;  %v1533_v48 = vadd.f32 %v10646_v47, %v1520_v52  ;;  %v10648_v57 = vrot.slane %v10647_v63, 2  ;;  %v10665_v47 = vld [vmem:[#allocation193_spill] sm:$0xff]  ;;  %5068 = vmatprep.mubr.bf16.mxu0 %v5193_v3  ;;  %v10679_v20 = vld [vmem:[#allocation219_spill] sm:$0xff] }
 0x835   :  { %v1265_v15 = vadd.f32 %v10643_v27, %v1252_v11  ;;  %v1294_v7 = vadd.f32 %v10645_v19, %v1290_v29  ;;  %v1719_v25 = vrot.slane %v1715_v60, 1  ;;  %v1027_v41 = vmax.f32 %v1025_v22, 0.0  ;;  %v10655_v11 = vld [vmem:[#allocation230_spill] sm:$0xff] }
 0x836   :  { %v1482_v37 = vadd.f32 %v10648_v57, %v1469_v16  ;;  %v1028_v4 = vmax.f32 %v1026_v10, 0.0  ;;  %v10650_v32 = vrot.slane %v10649_v18, 2  ;;  %v1720_v40 = vrot.slane %v1716_v23, 1  ;;  %v5194_v16 = vld [vmem:[%s10659_s22 + $0xb0] sm:$0xff]   ;;  %v3576_v23 = vld [vmem:[%s9950_s9 + $0xe8] sm:$0xff] }
 0x837   :  { %v1296_v13 = vmax.f32 %v1294_v7, 0.0  ;;  %v1546_v9 = vadd.f32 %v10651_v30, %v1533_v48  ;;  %v10653_v55 = vrot.slane %v10652_v17, 2  ;;  %v10654_v45 = vstv %s8343_s7  ;;  %5112 = vmatprep.mubr.bf16.mxu1 %v5194_v16  ;;  %v10672_v17 = vld [vmem:[#allocation207_spill] sm:$0xff]  ;;  %3758 = vperm.xlu0 %5191, %v3576_v23  }
 0x838   :  { %v1278_v28 = vadd.f32 %v10650_v32, %v1265_v15  ;;  %v8830_v34 = vmul.f32 %v10654_v45, %v8518_v12  ;;  %v1033_v1 = vsel %vm1031_vm4, %v1027_v41, 0.0  ;;  %v1034_v8 = vsel %vm1032_vm5, %v1028_v4, 0.0  ;;  %v10668_v4 = vld [vmem:[#allocation264_spill] sm:$0xff] }
 0x839   :  { %v1495_v56 = vadd.f32 %v10653_v55, %v1482_v37  ;;  %v1721_v2 = vsel %vm127_vm0, %v1719_v25, %v1720_v40  ;;  %1035 = vst.msk [vmem:[#allocation2] sm:$0xff] %vm155_vm3, %v1033_v1  ;;  %v1303_v50 = vsel %vm1301_vm7, %v1296_v13, 0.0  ;;  %v1559_v31 = vadd.f32 %v8662_v26, %v1546_v9  ;;  %v10671_v13 = vld [vmem:[#allocation152_spill] sm:$0xff] }
 0x83a   :  { %v1291_v61 = vadd.f32 %v1286_v5, %v1278_v28  ;;  %1037 = vst.msk [vmem:[#allocation2 + $0x8] sm:$0xf] %vm1036_vm6, %v1034_v8  ;;  %v10656_v6 = vrot.slane %v10655_v11, 2  ;;  %v1724_v5 = vadd.f32 %v1721_v2, %v1711_v54  ;;  %v10657_v26 = vmov %v10645_v19  ;;  %v3581_v19 = vld [vmem:[%s9950_s9 + $0x110] sm:$0xff]  ;;  %v10670_v28 = vld [vmem:[#allocation218_spill] sm:$0xff] }
 0x83b   :  { %1305 = vst.msk [vmem:[#allocation2 + $0xc] sm:$0xff] %vm155_vm3, %v1303_v50  ;;  %v1725_v33 = vadd.f32 %v1720_v40, %v1712_v59  ;;  %v10658_v52 = vmov %v10654_v45  ;;  %v1823_v54 = vrot.slane %v8830_v34, 2  ;;  %v10660_v21 = vstv %s8390_s13  ;;  %v10661_v59 = vld [vmem:[#allocation247_spill] sm:$0xff]  ;;  %v10674_v45 = vld [vmem:[#allocation153_spill] sm:$0xff]  ;;  %3783 = vperm.xlu1 %5192, %v3581_v19   ;;  %v10678_v11 = vld [vmem:[#allocation202_spill] sm:$0xff] }
 0x83c   :  { %v1508_v62 = vadd.f32 %v10656_v6, %v1495_v56  ;;  %v1295_v29 = vadd.f32 %v10657_v26, %v1291_v61  ;;  %v8863_v44 = vmul.f32 %v10658_v52, %v8520_v0  ;;  %v1563_v60 = vadd.f32 %v10660_v21, %v1559_v31  ;;  %v10675_v61 = vld [vmem:[#allocation269_spill] sm:$0xff] }
 0x83d   :  { %v10662_v22 = vrot.slane %v10661_v59, 2  ;;  %v1737_v27 = vadd.f32 %v10663_v46, %v1724_v5  ;;  %v10664_v15 = vstv %s8372_s5  ;;  %vm1571_vm10 = vcmp.ge.u32.totalorder %v8849_v43, 429496730  ;;  %s8904_s5 = sld [smem:[#allocation11 + $0x5]]  ;;  %v10677_v50 = vld [vmem:[#allocation233_spill] sm:$0xff] }
 0x83e   :  { %v1887_v35 = vmul.f32 %v10664_v15, %v8518_v12  ;;  %v1297_v7 = vmax.f32 %v1295_v29, 0.0  ;;  %v10666_v48 = vrot.slane %v10665_v47, 2  ;;  %v1824_v57 = vrot.slane %v8863_v44, 2  ;;  %v3599_v5 = vld [vmem:[%s9950_s9 + $0x1a0] sm:$0xff]  ;;  %v10681_v29 = vld [vmem:[#allocation194_spill] sm:$0xff] }
 0x83f   :  { %v1521_v10 = vadd.f32 %v10662_v22, %v1508_v62  ;;  %v10667_v37 = vmov %v10664_v15  ;;  %v1565_v41 = vmax.f32 %v1563_v60, 0.0  ;;  %v10669_v18 = vrot.slane %v10668_v4, 2  ;;  %v3560_v62 = vld [vmem:[%s9950_s9 + $0x68] sm:$0xff]  ;;  %v8942_v15 = vld [vmem:[%s9942_s1 + $0x30] sm:$0xff]  ;;  %3873 = vperm.xlu1 %5192, %v3599_v5   ;;  %v10692_v4 = vld [vmem:[#allocation261_spill] sm:$0xff] }
 0x840   :  { %v1738_v63 = vadd.f32 %v10666_v48, %v1725_v33  ;;  %v1888_v25 = vmul.f32 %v10667_v37, %v8520_v0  ;;  %v1750_v40 = vadd.f32 %v10670_v28, %v1737_v27  ;;  %v1889_v30 = vadd.f32 %v1887_v35, %v10671_v13  ;;  %v3459_v53 = vld [vmem:[#allocation2] sm:$0xff]  ;;  %v10686_v35 = vld [vmem:[#allocation220_spill] sm:$0xff]  ;;  %3678 = vperm.xlu0 %5191, %v3560_v62  }
 0x841   :  { %v1534_v32 = vadd.f32 %v10669_v18, %v1521_v10  ;;  %v1304_v9 = vsel %vm1302_vm8, %v1297_v7, 0.0  ;;  %v10673_v55 = vrot.slane %v10672_v17, 2  ;;  %v2894_v1 = vstv %s8822_s3  ;;  %v10685_v10 = vld [vmem:[#allocation250_spill] sm:$0xff]  ;;  %v3578_v13 = vld [vmem:[%s9950_s9 + $0xf8] sm:$0xff]  ;;  %s9372_s3 = sld [smem:[#allocation10 + $0x487]] }
 0x842   :  { %v1890_v34 = vadd.f32 %v1888_v25, %v10674_v45  ;;  %1306 = vst.msk [vmem:[#allocation2 + $0x14] sm:$0xf] %vm1036_vm6, %v1304_v9  ;;  %v1572_v8 = vsel %vm1570_vm9, %v1565_v41, 0.0  ;;  %v10676_v38 = vrot.slane %v10675_v61, 2  ;;  %v1763_v31 = vadd.f32 %v10677_v50, %v1750_v40  ;;  %v3460_v59 = vld [vmem:[#allocation2 + $0x8] sm:$0xff]  ;;  %v10694_v9 = vld [vmem:[#allocation249_spill] sm:$0xff] }
 0x843   :  { %v1751_v56 = vadd.f32 %v10673_v55, %v1738_v63  ;;  %v1902_v6 = vadd.f32 %v10678_v11, %v1889_v30  ;;  %1574 = vst.msk [vmem:[#allocation2 + $0x18] sm:$0xff] %vm155_vm3, %v1572_v8  ;;  %v10680_v36 = vrot.slane %v10679_v20, 2  ;;  %v10682_v33 = vrot.slane %v10681_v29, 1  ;;  %v10687_v7 = vld [vmem:[#allocation234_spill] sm:$0xff]  ;;  %v3583_v30 = vld [vmem:[%s9950_s9 + $0x120] sm:$0xff]  ;;  %v10700_v11 = vld [vmem:[#allocation252_spill] sm:$0xff] }
 0x844   :  { %v1547_v2 = vadd.f32 %v10676_v38, %v1534_v32  ;;  %v10683_v3 = vstv %s8374_s30  ;;  %v1776_v46 = vadd.f32 %v10685_v10, %v1763_v31  ;;  %v1825_v27 = vsel %vm141_vm1, %v1823_v54, %v1824_v57  ;;  %v10693_v32 = vld [vmem:[#allocation235_spill] sm:$0xff]  ;;  %v10699_v50 = vld [vmem:[#allocation273_spill] sm:$0xff]  ;;  %3768 = vperm.xlu0 %5191, %v3578_v13   ;;  %3793 = vperm.xlu1 %5192, %v3583_v30   ;;  %v10706_v10 = vld [vmem:[#allocation268_spill] sm:$0xff]  ;;  %s9450_s30 = sld [smem:[#allocation10 + $0x987]] }
 0x845   :  { %v1764_v26 = vadd.f32 %v10680_v36, %v1751_v56  ;;  %v1903_v52 = vadd.f32 %v10682_v33, %v1890_v34  ;;  %v1984_v16 = vmul.f32 %v10683_v3, %v8518_v12  ;;  %v10684_v21 = vmov %v10683_v3  ;;  %v10696_v56 = vld [vmem:[#allocation225_spill] sm:$0xff]  ;;  %v10704_v29 = vld [vmem:[#allocation239_spill] sm:$0xff] }
 0x846   :  { %v8931_v60 = vmul.f32 %v10684_v21, %v8520_v0  ;;  %v1560_v22 = vadd.f32 %v1555_v42, %v1547_v2  ;;  %v1915_v23 = vadd.f32 %v10686_v35, %v1902_v6  ;;  %v3475_v19 = vpack.c.bf16 %v3460_v59, %v3459_v53  ;;  %v10689_v42 = vld [vmem:[#allocation208_spill] sm:$0xff]  ;;  %v10702_v20 = vld [vmem:[#allocation265_spill] sm:$0xff] }
 0x847   :  { %v10688_v47 = vrot.slane %v10687_v7, 2  ;;  %v10690_v63 = vrot.slane %v10689_v42, 1  ;;  %v1988_v37 = vrot.slane %v1984_v16, 1  ;;  %v10691_v25 = vstv %s8390_s13 }
 0x848   :  { %v1564_v41 = vadd.f32 %v10691_v25, %v1560_v22  ;;  %v1789_v18 = vadd.f32 %v10692_v4, %v1776_v46  ;;  %v1928_v28 = vadd.f32 %v10693_v32, %v1915_v23  ;;  %v1989_v40 = vrot.slane %v8931_v60, 1  ;;  %5052 = vmatprep.subr.bf16.mxu0 %v3475_v19  ;;  %5132 = vmatprep.subr.bf16.mxu1 %v3475_v19  ;;  %v3601_v32 = vld [vmem:[%s9950_s9 + $0x1b0] sm:$0xff]  ;;  %v10726_v60 = vld [vmem:[#allocation17_spill] sm:$0xff] }
 0x849   :  { %v1777_v48 = vadd.f32 %v10688_v47, %v1764_v26  ;;  %v1916_v54 = vadd.f32 %v10690_v63, %v1903_v52  ;;  %v10695_v17 = vrot.slane %v10694_v9, 2  ;;  %vm1839_vm11 = vcmp.ge.u32.totalorder %v8942_v15, 429496730  ;;  %5053 = vmatpush3.bf16.msra.mxu0 %v3475_v19  ;;  %5140 = vmatpush3.bf16.msra.mxu1 %v3475_v19  ;;  %v3461_v53 = vld [vmem:[#allocation2 + $0x10] sm:$0xff]  ;;  %v10708_v47 = vld [vmem:[#allocation253_spill] sm:$0xff] }
 0x84a   :  { %v10697_v45 = vrot.slane %v10696_v56, 1  ;;  %v10698_v8 = vstv %s8398_s14  ;;  %v2962_v38 = vstv %s8893_s26  ;;  %v1566_v2 = vmax.f32 %v1564_v41, 0.0  ;;  %v3462_v21 = vld [vmem:[#allocation2 + $0x18] sm:$0xff]  ;;  %3883 = vperm.xlu1 %5192, %v3601_v32   ;;  %s9380_s26 = sld [smem:[#allocation11 + $0x7]] }
 0x84b   :  { %v1790_v55 = vadd.f32 %v10695_v17, %v1777_v48  ;;  %v8973_v61 = vmul.f32 %v10698_v8, %v8518_v12  ;;  %v1802_v31 = vadd.f32 %v10699_v50, %v1789_v18  ;;  %vm1840_vm12 = vcmp.ge.u32.totalorder %v8950_v39, 429496730  ;;  %v10712_v41 = vld [vmem:[#allocation156_spill] sm:$0xff] }
 0x84c   :  { %v1929_v34 = vadd.f32 %v10697_v45, %v1916_v54  ;;  %v1941_v6 = vadd.f32 %v10700_v11, %v1928_v28  ;;  %v10701_v62 = vmov %v10698_v8  ;;  %v10703_v36 = vrot.slane %v10702_v20, 2  ;;  %v10711_v54 = vld [vmem:[#allocation274_spill] sm:$0xff]  ;;  %v10722_v20 = vld [vmem:[#allocation43_spill] sm:$0xff]  ;;  %v10731_v39 = vld [vmem:[#allocation164_spill] sm:$0xff] }
 0x84d   :  { %v8982_v5 = vmul.f32 %v10701_v62, %v8520_v0  ;;  %v10705_v33 = vrot.slane %v10704_v29, 1  ;;  %v2156_v3 = vmul.f32 %v2155_v51, %v8518_v12  ;;  %v2369_v16 = vstv %s8904_s5  ;;  %v10714_v28 = vld [vmem:[#allocation266_spill] sm:$0xff]  ;;  %s9566_s5 = sld [smem:[#allocation11 + $0x9]] }
 0x84e   :  { %v1803_v26 = vadd.f32 %v10703_v36, %v1790_v55  ;;  %v1573_v59 = vsel %vm1571_vm10, %v1566_v2, 0.0  ;;  %v1815_v22 = vadd.f32 %v8527_v14, %v1802_v31  ;;  %v1954_v46 = vadd.f32 %v10706_v10, %v1941_v6  ;;  %v10718_v2 = vld [vmem:[#allocation23_spill] sm:$0xff]  ;;  %v3596_v29 = vld [vmem:[%s9950_s9 + $0x188] sm:$0xff] }
 0x84f   :  { %v1942_v52 = vadd.f32 %v10705_v33, %v1929_v34  ;;  %v1990_v35 = vsel %vm127_vm0, %v1988_v37, %v1989_v40  ;;  %v3476_v23 = vpack.c.bf16 %v3462_v21, %v3461_v53  ;;  %1575 = vst.msk [vmem:[#allocation2 + $0x20] sm:$0xf] %vm1036_vm6, %v1573_v59  ;;  %v10707_v19 = vrot.slane %v8370_v24, 2  ;;  %v3562_v24 = vld [vmem:[%s9950_s9 + $0x78] sm:$0xff] }
 0x850   :  { %v10709_v48 = vrot.slane %v10708_v47, 1  ;;  %v10710_v43 = vstv %s8429_s16  ;;  %v1828_v63 = vadd.f32 %v1825_v27, %v1815_v22  ;;  %v1967_v25 = vadd.f32 %v10711_v54, %v1954_v46  ;;  %3688 = vperm.xlu0 %5191, %v3562_v24   ;;  %v10723_v22 = vld [vmem:[#allocation20_spill] sm:$0xff]  ;;  %v10724_v46 = vld [vmem:[#allocation65_spill] sm:$0xff]  ;;  %v10728_v47 = vld [vmem:[#allocation159_spill] sm:$0xff] }
 0x851   :  { %v1816_v7 = vadd.f32 %v10707_v19, %v1803_v26  ;;  %v2253_v14 = vmul.f32 %v10710_v43, %v8518_v12  ;;  %v2158_v4 = vadd.f32 %v2156_v3, %v10712_v41  ;;  %v10713_v37 = vmov %v10710_v43  ;;  %5054 = vmatprep.subr.bf16.mxu0 %v3476_v23  ;;  %v10733_v24 = vld [vmem:[#allocation39_spill] sm:$0xff] }
 0x852   :  { %v1955_v42 = vadd.f32 %v10709_v48, %v1942_v52  ;;  %v9012_v18 = vmul.f32 %v10713_v37, %v8520_v0  ;;  %5133 = vmatprep.subr.bf16.mxu1 %v3476_v23  ;;  %v10715_v13 = vrot.slane %v10714_v28, 1  ;;  %v2092_v9 = vrot.slane %v8973_v61, 2  ;;  %5055 = vmatpush3.bf16.msra.mxu0 %v3476_v23  ;;  %v3603_v37 = vld [vmem:[%s9950_s9 + $0x1c0] sm:$0xff] }
 0x853   :  { %v1829_v27 = vadd.f32 %v1824_v57, %v1816_v7  ;;  %v10716_v17 = vstv %s8455_s2  ;;  %5141 = vmatpush3.bf16.msra.mxu1 %v3476_v23  ;;  %v10717_v56 = vstv %s8471_s20  ;;  %v1980_v34 = vadd.f32 %v8532_v58, %v1967_v25 }
 0x854   :  { %v1968_v30 = vadd.f32 %v10715_v13, %v1955_v42  ;;  %v2357_v55 = vmul.f32 %v10716_v17, %v8518_v12  ;;  %v1832_v45 = vadd.f32 %v10717_v56, %v1828_v63  ;;  %v2093_v8 = vrot.slane %v8982_v5, 2  ;;  %3858 = vperm.xlu0 %5191, %v3596_v29   ;;  %v10729_v42 = vld [vmem:[#allocation42_spill] sm:$0xff] }
 0x855   :  { %v2171_v50 = vadd.f32 %v10718_v2, %v2158_v4  ;;  %v10719_v44 = vmov %v10717_v56  ;;  %v10720_v31 = vrot.slane %v8396_v49, 1  ;;  %v2257_v61 = vrot.slane %v2253_v14, 1  ;;  %v3585_v49 = vld [vmem:[%s9950_s9 + $0x130] sm:$0xff]  ;;  %v3580_v4 = vld [vmem:[%s9950_s9 + $0x108] sm:$0xff]  ;;  %v10739_v2 = vld [vmem:[#allocation109_spill] sm:$0xff] }
 0x856   :  { %v1833_v57 = vadd.f32 %v10719_v44, %v1829_v27  ;;  %v10721_v6 = vmov %v10716_v17  ;;  %v1834_v53 = vmax.f32 %v1832_v45, 0.0  ;;  %v1993_v58 = vadd.f32 %v1990_v35, %v1980_v34  ;;  %3803 = vperm.xlu1 %5192, %v3585_v49   ;;  %v10730_v14 = vld [vmem:[#allocation87_spill] sm:$0xff]  ;;  %v10735_v13 = vld [vmem:[#allocation18_spill] sm:$0xff]  ;;  %v10738_v45 = vld [vmem:[#allocation64_spill] sm:$0xff] }
 0x857   :  { %v1981_v11 = vadd.f32 %v10720_v31, %v1968_v30  ;;  %v9040_v62 = vmul.f32 %v10721_v6, %v8520_v0  ;;  %v2184_v36 = vadd.f32 %v10722_v20, %v2171_v50  ;;  %v2258_v26 = vrot.slane %v9012_v18, 1  ;;  %v10745_v49 = vld [vmem:[#allocation86_spill] sm:$0xff] }
 0x858   :  { %v1835_v33 = vmax.f32 %v1833_v57, 0.0  ;;  %v2361_v3 = vrot.slane %v2357_v55, 2  ;;  %v2157_v21 = vmul.f32 %v2155_v51, %v8520_v0  ;;  %v1841_v59 = vsel %vm1839_vm11, %v1834_v53, 0.0  ;;  %v10740_v57 = vld [vmem:[#allocation26_spill] sm:$0xff]  ;;  %v10743_v53 = vld [vmem:[#allocation40_spill] sm:$0xff]  ;;  %3778 = vperm.xlu0 %5191, %v3580_v4  }
 0x859   :  { %v1994_v52 = vadd.f32 %v1989_v40, %v1981_v11  ;;  %v2006_v10 = vadd.f32 %v10723_v22, %v1993_v58  ;;  %v2197_v35 = vadd.f32 %v10724_v46, %v2184_v36  ;;  %v10725_v23 = vstv %s8457_s4  ;;  %1843 = vst.msk [vmem:[#allocation2 + $0x24] sm:$0xff] %vm155_vm3, %v1841_v59  ;;  %v10741_v11 = vld [vmem:[#allocation61_spill] sm:$0xff]  ;;  %v10747_v22 = vld [vmem:[#allocation48_spill] sm:$0xff] }
 0x85a   :  { %v2425_v19 = vmul.f32 %v10725_v23, %v8518_v12  ;;  %v1842_v7 = vsel %vm1840_vm12, %v1835_v33, 0.0  ;;  %v10727_v40 = vrot.slane %v10726_v60, 2  ;;  %v2362_v15 = vrot.slane %v9040_v62, 2  ;;  %3893 = vperm.xlu1 %5192, %v3603_v37   ;;  %v3598_v46 = vld [vmem:[%s9950_s9 + $0x198] sm:$0xff]  ;;  %v10750_v60 = vld [vmem:[#allocation62_spill] sm:$0xff] }
 0x85b   :  { %v2159_v48 = vadd.f32 %v2157_v21, %v10728_v47  ;;  %1844 = vst.msk [vmem:[#allocation2 + $0x2c] sm:$0xf] %vm1036_vm6, %v1842_v7  ;;  %v2019_v43 = vadd.f32 %v10729_v42, %v2006_v10  ;;  %v2210_v63 = vadd.f32 %v10730_v14, %v2197_v35  ;;  %v10732_v25 = vstv %s8473_s12  ;;  %v10748_v35 = vld [vmem:[#allocation83_spill] sm:$0xff]  ;;  %v9126_v7 = vld [vmem:[%s9942_s1 + $0x48] sm:$0xf] }
 0x85c   :  { %v2007_v51 = vadd.f32 %v10727_v40, %v1994_v52  ;;  %v2427_v54 = vadd.f32 %v2425_v19, %v10731_v39  ;;  %v2522_v41 = vmul.f32 %v10732_v25, %v8518_v12  ;;  %v10734_v32 = vrot.slane %v10733_v24, 2  ;;  %v10746_v52 = vld [vmem:[#allocation131_spill] sm:$0xff]  ;;  %3868 = vperm.xlu0 %5191, %v3598_v46  }
 0x85d   :  { %v2094_v28 = vsel %vm141_vm1, %v2092_v9, %v2093_v8  ;;  %v10736_v30 = vrot.slane %v10735_v13, 1  ;;  %v10737_v55 = vmov %v10732_v25  ;;  %v2032_v34 = vadd.f32 %v10738_v45, %v2019_v43  ;;  %v3587_v43 = vld [vmem:[%s9950_s9 + $0x140] sm:$0xff] }
 0x85e   :  { %v2020_v27 = vadd.f32 %v10734_v32, %v2007_v51  ;;  %v9092_v56 = vmul.f32 %v10737_v55, %v8520_v0  ;;  %v2223_v50 = vadd.f32 %v10739_v2, %v2210_v63  ;;  %v2259_v44 = vsel %vm127_vm0, %v2257_v61, %v2258_v26  ;;  %v9109_v61 = vld [vmem:[%s9942_s1 + $0x40] sm:$0xff]  ;;  %v10754_v63 = vld [vmem:[#allocation108_spill] sm:$0xff]  ;;  %3813 = vperm.xlu1 %5192, %v3587_v43   ;;  %v10774_v43 = vld [vmem:[#allocation154_spill] sm:$0xff] }
 0x85f   :  { %v2172_v17 = vadd.f32 %v10736_v30, %v2159_v48  ;;  %v2440_v31 = vadd.f32 %v10740_v57, %v2427_v54  ;;  %v10742_v6 = vrot.slane %v10741_v11, 2  ;;  %v10744_v58 = vrot.slane %v10743_v53, 1  ;;  %v10755_v54 = vld [vmem:[#allocation160_spill] sm:$0xff] }
 0x860   :  { %v2526_v36 = vrot.slane %v2522_v41, 1  ;;  %v2527_v29 = vrot.slane %v9092_v56, 1  ;;  %v2045_v33 = vadd.f32 %v10745_v49, %v2032_v34  ;;  %v2236_v21 = vadd.f32 %v10746_v52, %v2223_v50  ;;  %v3463_v14 = vld [vmem:[#allocation2 + $0x20] sm:$0xff]  ;;  %v10756_v41 = vld [vmem:[#allocation70_spill] sm:$0xff] }
 0x861   :  { %v2033_v9 = vadd.f32 %v10742_v6, %v2020_v27  ;;  %v2185_v20 = vadd.f32 %v10744_v58, %v2172_v17  ;;  %v9115_v59 = vsel %vm141_vm1, %v2361_v3, %v2362_v15  ;;  %v2453_v10 = vadd.f32 %v10747_v22, %v2440_v31  ;;  %v10758_v27 = vld [vmem:[#allocation105_spill] sm:$0xff]  ;;  %v10760_v17 = vld [vmem:[#allocation84_spill] sm:$0xff]  ;;  %v10763_v31 = vld [vmem:[#allocation130_spill] sm:$0xff] }
 0x862   :  { %v10749_v23 = vrot.slane %v10748_v35, 2  ;;  %v10751_v40 = vrot.slane %v10750_v60, 1  ;;  %v10752_v3 = vstv %s8483_s10  ;;  %v2058_v39 = vadd.f32 %v10754_v63, %v2045_v33  ;;  %v3464_v32 = vld [vmem:[#allocation2 + $0x28] sm:$0xff]  ;;  %v10765_v58 = vld [vmem:[#allocation127_spill] sm:$0xff]  ;;  %v3582_v35 = vld [vmem:[%s9950_s9 + $0x118] sm:$0xff] }
 0x863   :  { %v9133_v47 = vmul.f32 %v10752_v3, %v8518_v12  ;;  %v10753_v48 = vmov %v10752_v3  ;;  %v2249_v25 = vadd.f32 %v10755_v54, %v2236_v21  ;;  %v2466_v4 = vadd.f32 %v10756_v41, %v2453_v10  ;;  %v10767_v33 = vld [vmem:[#allocation106_spill] sm:$0xff]  ;;  %3788 = vperm.xlu0 %5191, %v3582_v35  }
 0x864   :  { %v2046_v19 = vadd.f32 %v10749_v23, %v2033_v9  ;;  %v2198_v51 = vadd.f32 %v10751_v40, %v2185_v20  ;;  %v9138_v42 = vmul.f32 %v10753_v48, %v8520_v0  ;;  %v10757_v37 = vstv %s8457_s4  ;;  %v10764_v9 = vld [vmem:[#allocation92_spill] sm:$0xff]  ;;  %v10773_v40 = vld [vmem:[#allocation114_spill] sm:$0xff]  ;;  %v3605_v48 = vld [vmem:[%s9950_s9 + $0x1d0] sm:$0xff] }
 0x865   :  { %v2426_v24 = vmul.f32 %v10757_v37, %v8520_v0  ;;  %v10759_v13 = vrot.slane %v10758_v27, 2  ;;  %vm2108_vm13 = vcmp.ge.u32.totalorder %v9109_v61, 429496730  ;;  %v10761_v55 = vrot.slane %v10760_v17, 1  ;;  %v10780_v27 = vld [vmem:[#allocation45_spill] sm:$0xff]  ;;  %3903 = vperm.xlu1 %5192, %v3605_v48  }
 0x866   :  { %v2528_v34 = vsel %vm127_vm0, %v2526_v36, %v2527_v29  ;;  %v10762_v2 = vstv %s8485_s11  ;;  %v3477_v57 = vpack.c.bf16 %v3464_v32, %v3463_v14  ;;  %v2071_v11 = vadd.f32 %v10763_v31, %v2058_v39  ;;  %v10769_v36 = vld [vmem:[#allocation165_spill] sm:$0xff]  ;;  %v10776_v39 = vld [vmem:[#allocation128_spill] sm:$0xff]  ;;  %s9515_s11 = sld [smem:[#allocation11 + $0x8]] }
 0x867   :  { %v2059_v30 = vadd.f32 %v10759_v13, %v2046_v19  ;;  %v2211_v45 = vadd.f32 %v10761_v55, %v2198_v51  ;;  %v2694_v50 = vmul.f32 %v10762_v2, %v8518_v12  ;;  %vm2109_vm14 = vcmp.ge.u32.totalorder %v9126_v7, 429496730  ;;  %v10772_v19 = vld [vmem:[#allocation24_spill] sm:$0xff]  ;;  %v10782_v55 = vld [vmem:[#allocation169_spill] sm:$0xff] }
 0x868   :  { %v2262_v6 = vadd.f32 %v2259_v44, %v2249_v25  ;;  %v2479_v53 = vadd.f32 %v10764_v9, %v2466_v4  ;;  %v10766_v20 = vrot.slane %v10765_v58, 2  ;;  %v10768_v52 = vrot.slane %v10767_v33, 1  ;;  %5056 = vmatprep.subr.bf16.mxu0 %v3477_v57  ;;  %5134 = vmatprep.subr.bf16.mxu1 %v3477_v57  ;;  %v10771_v44 = vld [vmem:[#allocation158_spill] sm:$0xff]  ;;  %v10778_v4 = vld [vmem:[#allocation21_spill] sm:$0xff] }
 0x869   :  { %v2428_v22 = vadd.f32 %v2426_v24, %v10769_v36  ;;  %v10770_v10 = vmov %v10762_v2  ;;  %v2084_v23 = vadd.f32 %v10771_v44, %v2071_v11  ;;  %v2630_v3 = vrot.slane %v9133_v47, 2  ;;  %5057 = vmatpush3.bf16.msra.mxu0 %v3477_v57  ;;  %5142 = vmatpush3.bf16.msra.mxu1 %v3477_v57  ;;  %v10783_v57 = vld [vmem:[#allocation155_spill] sm:$0xff]  ;;  %v10787_v58 = vld [vmem:[#allocation170_spill] sm:$0xff]  ;;  %v10808_v61 = vld [vmem:[#allocation41_spill] sm:$0xff] }
 0x86a   :  { %v2072_v49 = vadd.f32 %v10766_v20, %v2059_v30  ;;  %v2224_v21 = vadd.f32 %v10768_v52, %v2211_v45  ;;  %v2695_v46 = vmul.f32 %v10770_v10, %v8520_v0  ;;  %v2275_v60 = vadd.f32 %v10772_v19, %v2262_v6  ;;  %v10781_v30 = vld [vmem:[#allocation136_spill] sm:$0xff]  ;;  %v10793_v44 = vld [vmem:[#allocation66_spill] sm:$0xff]  ;;  %v10815_v7 = vld [vmem:[#allocation49_spill] sm:$0xff] }
 0x86b   :  { %v2492_v51 = vadd.f32 %v10773_v40, %v2479_v53  ;;  %v10775_v14 = vrot.slane %v10774_v43, 2  ;;  %v10777_v54 = vrot.slane %v10776_v39, 1  ;;  %v2631_v41 = vrot.slane %v9138_v42, 2  ;;  %v10785_v6 = vld [vmem:[#allocation44_spill] sm:$0xff]  ;;  %v10797_v43 = vld [vmem:[#allocation89_spill] sm:$0xff] }
 0x86c   :  { %v10779_v37 = vrot.slane %v10778_v4, 1  ;;  %v2097_v32 = vadd.f32 %v2094_v28, %v2084_v23  ;;  %v2288_v13 = vadd.f32 %v10780_v27, %v2275_v60  ;;  %v2696_v45 = vadd.f32 %v2694_v50, %v10782_v55  ;;  %v3600_v28 = vld [vmem:[%s9950_s9 + $0x1a8] sm:$0xff]  ;;  %v10789_v50 = vld [vmem:[#allocation67_spill] sm:$0xff]  ;;  %v10795_v60 = vld [vmem:[#allocation25_spill] sm:$0xff] }
 0x86d   :  { %v2085_v63 = vadd.f32 %v10775_v14, %v2072_v49  ;;  %v2237_v25 = vadd.f32 %v10777_v54, %v2224_v21  ;;  %v2505_v17 = vadd.f32 %v10781_v30, %v2492_v51  ;;  %v10784_v31 = vrot.slane %v10783_v57, 1  ;;  %v10790_v21 = vld [vmem:[#allocation167_spill] sm:$0xff]  ;;  %3878 = vperm.xlu0 %5191, %v3600_v28   ;;  %v10810_v28 = vld [vmem:[#allocation110_spill] sm:$0xff]  ;;  %v10897_v42 = vld [vmem:[#allocation177_spill] sm:$0xff] }
 0x86e   :  { %v2441_v24 = vadd.f32 %v10779_v37, %v2428_v22  ;;  %v10786_v9 = vrot.slane %v10785_v6, 1  ;;  %v2697_v20 = vadd.f32 %v2695_v46, %v10787_v58  ;;  %v10788_v49 = vstv %s8491_s15  ;;  %v3589_v22 = vld [vmem:[%s9950_s9 + $0x150] sm:$0xff]  ;;  %s9224_s15 = sld [smem:[#allocation10 + $0x907]] }
 0x86f   :  { %v2098_v2 = vadd.f32 %v2093_v8, %v2085_v63  ;;  %v2250_v11 = vadd.f32 %v10784_v31, %v2237_v25  ;;  %v2101_v33 = vadd.f32 %v10788_v49, %v2097_v32  ;;  %v2301_v52 = vadd.f32 %v10789_v50, %v2288_v13  ;;  %v10791_v8 = vld [vmem:[#allocation30_spill] sm:$0xff]  ;;  %v9221_v63 = vld [vmem:[%s9942_s1 + $0x50] sm:$0xff]  ;;  %3823 = vperm.xlu1 %5192, %v3589_v22   ;;  %v10812_v50 = vld [vmem:[#allocation69_spill] sm:$0xff] }
 0x870   :  { %v2454_v53 = vadd.f32 %v10786_v9, %v2441_v24  ;;  %v2518_v5 = vadd.f32 %v10790_v21, %v2505_v17  ;;  %v2709_v36 = vadd.f32 %v10791_v8, %v2696_v45  ;;  %v10792_v10 = vmov %v10788_v49  ;;  %v10798_v54 = vld [vmem:[#allocation51_spill] sm:$0xff]  ;;  %v10801_v24 = vld [vmem:[#allocation88_spill] sm:$0xff]  ;;  %v3607_v9 = vld [vmem:[%s9950_s9 + $0x1e0] sm:$0xff] }
 0x871   :  { %v2102_v35 = vadd.f32 %v10792_v10, %v2098_v2  ;;  %v2263_v46 = vadd.f32 %v2258_v26, %v2250_v11  ;;  %v10794_v23 = vrot.slane %v10793_v44, 1  ;;  %v10796_v40 = vrot.slane %v10795_v60, 1  ;;  %v10799_v26 = vld [vmem:[#allocation19_spill] sm:$0xff]  ;;  %v10807_v11 = vld [vmem:[#allocation73_spill] sm:$0xff]  ;;  %v10820_v60 = vld [vmem:[#allocation132_spill] sm:$0xff] }
 0x872   :  { %v2103_v48 = vmax.f32 %v2101_v33, 0.0  ;;  %v2314_v14 = vadd.f32 %v10797_v43, %v2301_v52  ;;  %v2531_v39 = vadd.f32 %v2528_v34, %v2518_v5  ;;  %v2722_v25 = vadd.f32 %v10798_v54, %v2709_v36  ;;  %v10803_v13 = vld [vmem:[#allocation47_spill] sm:$0xff]  ;;  %v3584_v34 = vld [vmem:[%s9950_s9 + $0x128] sm:$0xff]  ;;  %v10814_v5 = vld [vmem:[#allocation133_spill] sm:$0xff] }
 0x873   :  { %v2467_v19 = vadd.f32 %v10794_v23, %v2454_v53  ;;  %v2710_v51 = vadd.f32 %v10796_v40, %v2697_v20  ;;  %v2104_v18 = vmax.f32 %v2102_v35, 0.0  ;;  %v10800_v4 = vrot.slane %v10799_v26, 2  ;;  %v10805_v45 = vld [vmem:[#allocation111_spill] sm:$0xff]  ;;  %3798 = vperm.xlu0 %5191, %v3584_v34   ;;  %3913 = vperm.xlu1 %5192, %v3607_v9  }
 0x874   :  { %v10802_v32 = vrot.slane %v10801_v24, 1  ;;  %v10804_v30 = vrot.slane %v10803_v13, 1  ;;  %v2110_v55 = vsel %vm2108_vm13, %v2103_v48, 0.0  ;;  %v2327_v2 = vadd.f32 %v10805_v45, %v2314_v14  ;;  %v10806_v57 = vld [vmem:[#allocation27_spill] sm:$0xff]  ;;  %v10827_v24 = vld [vmem:[#allocation117_spill] sm:$0xff] }
 0x875   :  { %v2276_v37 = vadd.f32 %v10800_v4, %v2263_v46  ;;  %v2544_v31 = vadd.f32 %v10806_v57, %v2531_v39  ;;  %v2735_v6 = vadd.f32 %v10807_v11, %v2722_v25  ;;  %v2111_v53 = vsel %vm2109_vm14, %v2104_v18, 0.0  ;;  %2112 = vst.msk [vmem:[#allocation2 + $0x30] sm:$0xff] %vm155_vm3, %v2110_v55  ;;  %v10816_v22 = vld [vmem:[#allocation95_spill] sm:$0xff]  ;;  %v3602_v25 = vld [vmem:[%s9950_s9 + $0x1b8] sm:$0xff]  ;;  %v3591_v13 = vld [vmem:[%s9950_s9 + $0x160] sm:$0xff] }
 0x876   :  { %v2480_v27 = vadd.f32 %v10802_v32, %v2467_v19  ;;  %v2723_v17 = vadd.f32 %v10804_v30, %v2710_v51  ;;  %vm2377_vm15 = vcmp.ge.u32.totalorder %v9221_v63, 429496730  ;;  %v10809_v58 = vrot.slane %v10808_v61, 2  ;;  %2113 = vst.msk [vmem:[#allocation2 + $0x38] sm:$0xf] %vm1036_vm6, %v2111_v53  ;;  %v10818_v44 = vld [vmem:[#allocation63_spill] sm:$0xff] }
 0x877   :  { %v10811_v49 = vrot.slane %v10810_v28, 1  ;;  %v10813_v52 = vrot.slane %v10812_v50, 1  ;;  %v2340_v8 = vadd.f32 %v10814_v5, %v2327_v2  ;;  %v2557_v36 = vadd.f32 %v10815_v7, %v2544_v31  ;;  %v10822_v48 = vld [vmem:[#allocation91_spill] sm:$0xff]  ;;  %v10828_v30 = vld [vmem:[#allocation85_spill] sm:$0xff]  ;;  %v9285_v55 = vld [vmem:[%s9942_s1 + $0x58] sm:$0xf]  ;;  %3888 = vperm.xlu0 %5191, %v3602_v25   ;;  %3833 = vperm.xlu1 %5192, %v3591_v13  }
 0x878   :  { %v2289_v20 = vadd.f32 %v10809_v58, %v2276_v37  ;;  %v2748_v10 = vadd.f32 %v10816_v22, %v2735_v6  ;;  %v10817_v35 = vstv %s8493_s8  ;;  %v10819_v23 = vrot.slane %v10818_v44, 2  ;;  %v10825_v18 = vld [vmem:[#allocation163_spill] sm:$0xff]  ;;  %v10830_v45 = vld [vmem:[#allocation161_spill] sm:$0xff]  ;;  %v3586_v22 = vld [vmem:[%s9950_s9 + $0x138] sm:$0xff] }
 0x879   :  { %v2493_v33 = vadd.f32 %v10811_v49, %v2480_v27  ;;  %v2736_v21 = vadd.f32 %v10813_v52, %v2723_v17  ;;  %v2791_v46 = vmul.f32 %v10817_v35, %v8518_v12  ;;  %v10821_v40 = vrot.slane %v10820_v60, 1  ;;  %v10826_v4 = vld [vmem:[#allocation71_spill] sm:$0xff]  ;;  %v10832_v31 = vld [vmem:[#allocation113_spill] sm:$0xff]  ;;  %v10851_v13 = vld [vmem:[#allocation46_spill] sm:$0xff] }
 0x87a   :  { %v2302_v19 = vadd.f32 %v10819_v23, %v2289_v20  ;;  %v10823_v43 = vrot.slane %v10822_v48, 1  ;;  %v10824_v39 = vmov %v10817_v35  ;;  %v2353_v26 = vadd.f32 %v10825_v18, %v2340_v8  ;;  %v10834_v61 = vld [vmem:[#allocation93_spill] sm:$0xff]  ;;  %v10835_v28 = vld [vmem:[#allocation139_spill] sm:$0xff]  ;;  %v10855_v63 = vld [vmem:[#allocation68_spill] sm:$0xff] }
 0x87b   :  { %v2506_v51 = vadd.f32 %v10821_v40, %v2493_v33  ;;  %v2792_v54 = vmul.f32 %v10824_v39, %v8520_v0  ;;  %v2570_v37 = vadd.f32 %v10826_v4, %v2557_v36  ;;  %v2761_v32 = vadd.f32 %v10827_v24, %v2748_v10  ;;  %v9296_v20 = vld [vmem:[%s9942_s1 + $0x60] sm:$0xff]  ;;  %v10836_v50 = vld [vmem:[#allocation107_spill] sm:$0xff]  ;;  %3808 = vperm.xlu0 %5191, %v3586_v22  }
 0x87c   :  { %v2749_v14 = vadd.f32 %v10823_v43, %v2736_v21  ;;  %v2795_v27 = vrot.slane %v2791_v46, 1  ;;  %v10829_v17 = vrot.slane %v10828_v30, 2  ;;  %v10831_v2 = vrot.slane %v10830_v45, 1  ;;  %v10838_v7 = vld [vmem:[#allocation135_spill] sm:$0xff]  ;;  %v10848_v25 = vld [vmem:[#allocation137_spill] sm:$0xff]  ;;  %v3604_v45 = vld [vmem:[%s9950_s9 + $0x1c8] sm:$0xff] }
 0x87d   :  { %v10833_v11 = vrot.slane %v10832_v31, 1  ;;  %v2796_v9 = vrot.slane %v2792_v54, 1  ;;  %v2366_v53 = vadd.f32 %v9115_v59, %v2353_v26  ;;  %v2583_v58 = vadd.f32 %v10834_v61, %v2570_v37  ;;  %v10840_v35 = vld [vmem:[#allocation115_spill] sm:$0xff]  ;;  %v10849_v37 = vld [vmem:[#allocation157_spill] sm:$0xff] }
 0x87e   :  { %v2315_v34 = vadd.f32 %v10829_v17, %v2302_v19  ;;  %v2519_v57 = vadd.f32 %v10831_v2, %v2506_v51  ;;  %v2774_v49 = vadd.f32 %v10835_v28, %v2761_v32  ;;  %v3059_v33 = vstv %s9224_s15  ;;  %v3609_v23 = vld [vmem:[%s9950_s9 + $0x1f0] sm:$0xff]  ;;  %v10842_v19 = vld [vmem:[#allocation129_spill] sm:$0xff]  ;;  %v10844_v51 = vld [vmem:[#allocation22_spill] sm:$0xff] }
 0x87f   :  { %v2762_v6 = vadd.f32 %v10833_v11, %v2749_v14  ;;  %v10837_v52 = vrot.slane %v10836_v50, 2  ;;  %v2638_v5 = vstv %s9228_s29  ;;  %v10839_v59 = vrot.slane %v10838_v7, 1  ;;  %v10846_v14 = vld [vmem:[#allocation166_spill] sm:$0xff]  ;;  %3923 = vperm.xlu1 %5192, %v3609_v23   ;;  %v10854_v11 = vld [vmem:[#allocation32_spill] sm:$0xff]  ;;  %3898 = vperm.xlu0 %5191, %v3604_v45  }
 0x880   :  { %v2532_v8 = vadd.f32 %v2527_v29, %v2519_v57  ;;  %v2370_v10 = vadd.f32 %v2369_v16, %v2366_v53  ;;  %vm2378_vm2 = vcmp.ge.u32.totalorder %v9285_v55, 429496730  ;;  %v2596_v46 = vadd.f32 %v10840_v35, %v2583_v58  ;;  %v10841_v29 = vld [vmem:[#allocation172_spill] sm:$0xff]  ;;  %v3588_v23 = vld [vmem:[%s9950_s9 + $0x148] sm:$0xff] }
 0x881   :  { %v2328_v21 = vadd.f32 %v10837_v52, %v2315_v34  ;;  %v2775_v36 = vadd.f32 %v10839_v59, %v2762_v6  ;;  %v2632_v56 = vsel %vm141_vm1, %v2630_v3, %v2631_v41  ;;  %v2787_v44 = vadd.f32 %v10841_v29, %v2774_v49  ;;  %v10853_v57 = vld [vmem:[#allocation168_spill] sm:$0xff] }
 0x882   :  { %v10843_v60 = vrot.slane %v10842_v19, 2  ;;  %vm2646_vm4 = vcmp.ge.u32.totalorder %v9296_v20, 429496730  ;;  %v10845_v48 = vrot.slane %v10844_v51, 2  ;;  %v10847_v39 = vrot.slane %v10846_v14, 1  ;;  %v10857_v49 = vld [vmem:[#allocation28_spill] sm:$0xff] }
 0x883   :  { %v2797_v3 = vsel %vm127_vm0, %v2795_v27, %v2796_v9  ;;  %v2372_v54 = vmax.f32 %v2370_v10, 0.0  ;;  %v2609_v18 = vadd.f32 %v10848_v25, %v2596_v46  ;;  %v9335_v4 = vmul.f32 %v2894_v1, %v8518_v12  ;;  %v10863_v46 = vld [vmem:[#allocation50_spill] sm:$0xff]  ;;  %3818 = vperm.xlu0 %5191, %v3588_v23  }
 0x884   :  { %v2341_v40 = vadd.f32 %v10843_v60, %v2328_v21  ;;  %v2545_v43 = vadd.f32 %v10845_v48, %v2532_v8  ;;  %v2788_v47 = vadd.f32 %v10847_v39, %v2775_v36  ;;  %v2800_v26 = vadd.f32 %v2797_v3, %v2787_v44  ;;  %v10859_v8 = vld [vmem:[#allocation54_spill] sm:$0xff]  ;;  %v10866_v60 = vld [vmem:[#allocation76_spill] sm:$0xff] }
 0x885   :  { %v10850_v24 = vrot.slane %v10849_v37, 2  ;;  %v10852_v30 = vrot.slane %v10851_v13, 2  ;;  %v2963_v27 = vmul.f32 %v2962_v38, %v8518_v12  ;;  %v2379_v2 = vsel %vm2377_vm15, %v2372_v54, 0.0  ;;  %v10860_v36 = vld [vmem:[#allocation174_spill] sm:$0xff]  ;;  %v10869_v39 = vld [vmem:[#allocation112_spill] sm:$0xff] }
 0x886   :  { %v2801_v34 = vadd.f32 %v2796_v9, %v2788_v47  ;;  %v2622_v31 = vadd.f32 %v10853_v57, %v2609_v18  ;;  %v2813_v6 = vadd.f32 %v10854_v11, %v2800_v26  ;;  %v9354_v53 = vmul.f32 %v2894_v1, %v8520_v0  ;;  %v3593_v9 = vld [vmem:[%s9950_s9 + $0x170] sm:$0xff]  ;;  %2381 = vst.msk [vmem:[#allocation2 + $0x3c] sm:$0xff] %vm155_vm3, %v2379_v2  ;;  %v10867_v51 = vld [vmem:[#allocation34_spill] sm:$0xff]  ;;  %v10871_v54 = vld [vmem:[#allocation72_spill] sm:$0xff] }
 0x887   :  { %v2354_v32 = vadd.f32 %v10850_v24, %v2341_v40  ;;  %v2558_v17 = vadd.f32 %v10852_v30, %v2545_v43  ;;  %v10856_v58 = vrot.slane %v10855_v63, 2  ;;  %v10858_v50 = vrot.slane %v10857_v49, 2  ;;  %3843 = vperm.xlu1 %5192, %v3593_v9   ;;  %v4509_v43 = vld [vmem:[%s10868_s21] sm:$0xf]  ;;  %v3465_v24 = vld [vmem:[#allocation2 + $0x30] sm:$0xff]  ;;  %v10875_v13 = vld [vmem:[#allocation98_spill] sm:$0xff] }
 0x888   :  { %v2964_v1 = vmul.f32 %v2962_v38, %v8520_v0  ;;  %v2635_v21 = vadd.f32 %v2632_v56, %v2622_v31  ;;  %v2826_v7 = vadd.f32 %v10859_v8, %v2813_v6  ;;  %v2899_v59 = vrot.slane %v9335_v4, 2  ;;  %v10865_v38 = vld [vmem:[#allocation175_spill] sm:$0xff]  ;;  %v10873_v26 = vld [vmem:[#allocation29_spill] sm:$0xff]  ;;  %v10877_v2 = vld [vmem:[#allocation134_spill] sm:$0xff] }
 0x889   :  { %v2367_v61 = vadd.f32 %v2362_v15, %v2354_v32  ;;  %v2571_v28 = vadd.f32 %v10856_v58, %v2558_v17  ;;  %v2814_v52 = vadd.f32 %v10858_v50, %v2801_v34  ;;  %v2965_v22 = vadd.f32 %v2963_v27, %v10860_v36  ;;  %v10861_v15 = vld [vmem:[#allocation90_spill] sm:$0xff]  ;;  %v10876_v17 = vld [vmem:[#allocation56_spill] sm:$0xff] }
 0x88a   :  { %v10862_v10 = vrot.slane %v10861_v15, 2  ;;  %v10864_v29 = vrot.slane %v10863_v46, 2  ;;  %v2966_v56 = vadd.f32 %v2964_v1, %v10865_v38  ;;  %v2639_v19 = vadd.f32 %v2638_v5, %v2635_v21  ;;  %v10879_v11 = vld [vmem:[#allocation94_spill] sm:$0xff]  ;;  %v10881_v9 = vld [vmem:[#allocation52_spill] sm:$0xff] }
 0x88b   :  { %v2371_v62 = vadd.f32 %v2369_v16, %v2367_v61  ;;  %v2839_v16 = vadd.f32 %v10866_v60, %v2826_v7  ;;  %v2900_v40 = vrot.slane %v9354_v53, 2  ;;  %v2978_v48 = vadd.f32 %v10867_v51, %v2965_v22  ;;  %4512 = vperm.xlu1 %5192, %v4509_v43   ;;  %v3606_v58 = vld [vmem:[%s9950_s9 + $0x1d8] sm:$0xff]  ;;  %v10885_v7 = vld [vmem:[#allocation162_spill] sm:$0xff] }
 0x88c   :  { %v2584_v35 = vadd.f32 %v10862_v10, %v2571_v28  ;;  %v2827_v44 = vadd.f32 %v10864_v29, %v2814_v52  ;;  %v10870_v47 = vrot.slane %v10869_v39, 2  ;;  %v10872_v25 = vrot.slane %v10871_v54, 2  ;;  %v10883_v49 = vld [vmem:[#allocation120_spill] sm:$0xff]  ;;  %v10884_v52 = vld [vmem:[#allocation78_spill] sm:$0xff]  ;;  %3908 = vperm.xlu0 %5191, %v3606_v58  }
 0x88d   :  { %v2373_v14 = vmax.f32 %v2371_v62, 0.0  ;;  %v10874_v4 = vrot.slane %v10873_v26, 1  ;;  %v2641_v32 = vmax.f32 %v2639_v19, 0.0  ;;  %v2852_v30 = vadd.f32 %v10875_v13, %v2839_v16  ;;  %v3466_v28 = vld [vmem:[#allocation2 + $0x38] sm:$0xff]  ;;  %v10891_v29 = vld [vmem:[#allocation142_spill] sm:$0xff] }
 0x88e   :  { %v2597_v3 = vadd.f32 %v10870_v47, %v2584_v35  ;;  %v2840_v18 = vadd.f32 %v10872_v25, %v2827_v44  ;;  %v2991_v34 = vadd.f32 %v10876_v17, %v2978_v48  ;;  %v3060_v27 = vmul.f32 %v3059_v33, %v8518_v12  ;;  %v10887_v62 = vld [vmem:[#allocation116_spill] sm:$0xff]  ;;  %v10889_v35 = vld [vmem:[#allocation74_spill] sm:$0xff] }
 0x88f   :  { %v2979_v37 = vadd.f32 %v10874_v4, %v2966_v56  ;;  %v2380_v45 = vsel %vm2378_vm2, %v2373_v14, 0.0  ;;  %v10878_v57 = vrot.slane %v10877_v2, 2  ;;  %v10880_v6 = vrot.slane %v10879_v11, 2  ;;  %v10892_v56 = vld [vmem:[#allocation100_spill] sm:$0xff]  ;;  %v4854_v60 = vld [vmem:[%s9942_s1 + $0x68] sm:$0xf] }
 0x890   :  { %v10882_v61 = vrot.slane %v10881_v9, 1  ;;  %2382 = vst.msk [vmem:[#allocation2 + $0x44] sm:$0xf] %vm1036_vm6, %v2380_v45  ;;  %v2648_v55 = vsel %vm2646_vm4, %v2641_v32, 0.0  ;;  %v2865_v50 = vadd.f32 %v10883_v49, %v2852_v30  ;;  %v3004_v1 = vadd.f32 %v10884_v52, %v2991_v34  ;;  %v10893_v16 = vld [vmem:[#allocation138_spill] sm:$0xff]  ;;  %v3590_v47 = vld [vmem:[%s9950_s9 + $0x158] sm:$0xff] }
 0x891   :  { %v2610_v31 = vadd.f32 %v10878_v57, %v2597_v3  ;;  %v2853_v53 = vadd.f32 %v10880_v6, %v2840_v18  ;;  %v3061_v21 = vmul.f32 %v3059_v33, %v8520_v0  ;;  %v3478_v8 = vpack.c.bf16 %v3466_v28, %v3465_v24  ;;  %2650 = vst.msk [vmem:[#allocation2 + $0x48] sm:$0xff] %vm155_vm3, %v2648_v55  ;;  %v10898_v3 = vld [vmem:[#allocation122_spill] sm:$0xff]  ;;  %v10899_v4 = vld [vmem:[#allocation171_spill] sm:$0xff]  ;;  %v10903_v45 = vld [vmem:[#allocation144_spill] sm:$0xff] }
 0x892   :  { %v2992_v63 = vadd.f32 %v10882_v61, %v2979_v37  ;;  %v10886_v36 = vrot.slane %v10885_v7, 2  ;;  %v10888_v15 = vrot.slane %v10887_v62, 2  ;;  %v10890_v20 = vrot.slane %v10889_v35, 1  ;;  %v4880_v32 = vld [vmem:[%s9942_s1 + $0x70] sm:$0xff]  ;;  %v10901_v13 = vld [vmem:[#allocation118_spill] sm:$0xff]  ;;  %3828 = vperm.xlu0 %5191, %v3590_v47   ;;  %v10904_v6 = vld [vmem:[#allocation140_spill] sm:$0xff] }
 0x893   :  { %v2878_v44 = vadd.f32 %v10891_v29, %v2865_v50  ;;  %v2901_v38 = vsel %vm141_vm1, %v2899_v59, %v2900_v40  ;;  %v3017_v23 = vadd.f32 %v10892_v56, %v3004_v1  ;;  %v3231_v33 = vstv %s9372_s3  ;;  %5058 = vmatprep.subr.bf16.mxu0 %v3478_v8  ;;  %5135 = vmatprep.subr.bf16.mxu1 %v3478_v8  ;;  %v10895_v59 = vld [vmem:[#allocation96_spill] sm:$0xff]  ;;  %v3608_v58 = vld [vmem:[%s9950_s9 + $0x1e8] sm:$0xff]  ;;  %v10907_v49 = vld [vmem:[#allocation179_spill] sm:$0xff]  ;;  %s9530_s3 = sld [smem:[#allocation10 + $0xe87]] }
 0x894   :  { %v2623_v22 = vadd.f32 %v10886_v36, %v2610_v31  ;;  %v2866_v10 = vadd.f32 %v10888_v15, %v2853_v53  ;;  %v3005_v46 = vadd.f32 %v10890_v20, %v2992_v63  ;;  %v10894_v51 = vrot.slane %v10893_v16, 2  ;;  %5059 = vmatpush3.bf16.msra.mxu0 %v3478_v8  ;;  %5143 = vmatpush3.bf16.msra.mxu1 %v3478_v8  ;;  %v4881_v11 = vld [vmem:[%s9942_s1 + $0x78] sm:$0xf]  ;;  %v10908_v8 = vld [vmem:[#allocation173_spill] sm:$0xff]  ;;  %v10912_v56 = vld [vmem:[#allocation59_spill] sm:$0xff] }
 0x895   :  { %v2907_v43 = vstv %s9380_s26  ;;  %v10896_v14 = vrot.slane %v10895_v59, 1  ;;  %v3030_v54 = vadd.f32 %v10898_v3, %v3017_v23  ;;  %v3064_v25 = vrot.slane %v3060_v27, 1  ;;  %v10906_v61 = vld [vmem:[#allocation180_spill] sm:$0xff]  ;;  %v10910_v15 = vld [vmem:[#allocation37_spill] sm:$0xff]  ;;  %v10913_v16 = vld [vmem:[#allocation31_spill] sm:$0xff] }
 0x896   :  { %v2636_v19 = vadd.f32 %v2631_v41, %v2623_v22  ;;  %v2879_v48 = vadd.f32 %v10894_v51, %v2866_v10  ;;  %v2891_v41 = vadd.f32 %v10897_v42, %v2878_v44  ;;  %v3065_v18 = vrot.slane %v3061_v21, 1  ;;  %3918 = vperm.xlu0 %5191, %v3608_v58   ;;  %v10911_v44 = vld [vmem:[#allocation36_spill] sm:$0xff]  ;;  %v10917_v42 = vld [vmem:[#allocation53_spill] sm:$0xff] }
 0x897   :  { %v3018_v39 = vadd.f32 %v10896_v14, %v3005_v46  ;;  %v10900_v37 = vrot.slane %v10899_v4, 2  ;;  %v10902_v30 = vrot.slane %v10901_v13, 1  ;;  %v3232_v34 = vmul.f32 %v3231_v33, %v8518_v12  ;;  %v3592_v46 = vld [vmem:[%s9950_s9 + $0x168] sm:$0xff]  ;;  %v10919_v4 = vld [vmem:[#allocation80_spill] sm:$0xff]  ;;  %v10921_v13 = vld [vmem:[#allocation75_spill] sm:$0xff] }
 0x898   :  { %v2640_v26 = vadd.f32 %v2638_v5, %v2636_v19  ;;  %vm2647_vm5 = vcmp.ge.u32.totalorder %v4854_v60, 429496730  ;;  %v2904_v27 = vadd.f32 %v2901_v38, %v2891_v41  ;;  %v3043_v2 = vadd.f32 %v10903_v45, %v3030_v54  ;;  %v3467_v5 = vld [vmem:[#allocation2 + $0x40] sm:$0xff]  ;;  %v3468_v28 = vld [vmem:[#allocation2 + $0x48] sm:$0xff]  ;;  %v10923_v45 = vld [vmem:[#allocation183_spill] sm:$0xff] }
 0x899   :  { %v2892_v24 = vadd.f32 %v10900_v37, %v2879_v48  ;;  %v3031_v17 = vadd.f32 %v10902_v30, %v3018_v39  ;;  %v10905_v53 = vrot.slane %v10904_v6, 1  ;;  %v3234_v63 = vadd.f32 %v3232_v34, %v10906_v61  ;;  %v10916_v39 = vld [vmem:[#allocation81_spill] sm:$0xff] }
 0x89a   :  { %v2642_v57 = vmax.f32 %v2640_v26, 0.0  ;;  %v2908_v55 = vadd.f32 %v2907_v43, %v2904_v27  ;;  %vm2915_vm7 = vcmp.ge.u32.totalorder %v4880_v32, 429496730  ;;  %v3056_v50 = vadd.f32 %v10907_v49, %v3043_v2  ;;  %3838 = vperm.xlu0 %5191, %v3592_v46   ;;  %v3610_v26 = vld [vmem:[%s9950_s9 + $0x1f8] sm:$0xff]  ;;  %v10936_v46 = vld [vmem:[#allocation146_spill] sm:$0xff] }
 0x89b   :  { %v2905_v31 = vadd.f32 %v2900_v40, %v2892_v24  ;;  %v3044_v9 = vadd.f32 %v10905_v53, %v3031_v17  ;;  %v3066_v40 = vsel %vm127_vm0, %v3064_v25, %v3065_v18  ;;  %v3479_v52 = vpack.c.bf16 %v3468_v28, %v3467_v5  ;;  %v10920_v24 = vld [vmem:[#allocation103_spill] sm:$0xff] }
 0x89c   :  { %v2649_v1 = vsel %vm2647_vm5, %v2642_v57, 0.0  ;;  %v10909_v7 = vrot.slane %v10908_v8, 1  ;;  %v2910_v22 = vmax.f32 %v2908_v55, 0.0  ;;  %vm2916_vm8 = vcmp.ge.u32.totalorder %v4881_v11, 429496730  ;;  %v10925_v57 = vld [vmem:[#allocation125_spill] sm:$0xff] }
 0x89d   :  { %v2909_v21 = vadd.f32 %v2907_v43, %v2905_v31  ;;  %2651 = vst.msk [vmem:[#allocation2 + $0x50] sm:$0xf] %vm1036_vm6, %v2649_v1  ;;  %v3069_v62 = vadd.f32 %v3066_v40, %v3056_v50  ;;  %v3247_v10 = vadd.f32 %v10910_v15, %v3234_v63  ;;  %5060 = vmatprep.subr.bf16.mxu0 %v3479_v52  ;;  %v3328_v19 = vstv %s9450_s30  ;;  %v10915_v43 = vld [vmem:[#allocation58_spill] sm:$0xff]  ;;  %v10926_v11 = vld [vmem:[#allocation97_spill] sm:$0xff]  ;;  %v3594_v55 = vld [vmem:[%s9950_s9 + $0x178] sm:$0xff] }
 0x89e   :  { %v3057_v36 = vadd.f32 %v10909_v7, %v3044_v9  ;;  %5136 = vmatprep.subr.bf16.mxu1 %v3479_v52  ;;  %5061 = vmatpush3.bf16.msra.mxu0 %v3479_v52  ;;  %v2917_v29 = vsel %vm2915_vm7, %v2910_v22, 0.0  ;;  %v10914_v51 = vrot.slane %v10913_v16, 2  ;;  %v3163_v14 = vstv %s9465_s24  ;;  %v10928_v63 = vld [vmem:[#allocation33_spill] sm:$0xff]  ;;  %v10930_v50 = vld [vmem:[#allocation124_spill] sm:$0xff]  ;;  %v10932_v8 = vld [vmem:[#allocation119_spill] sm:$0xff] }
 0x89f   :  { %v2911_v35 = vmax.f32 %v2909_v21, 0.0  ;;  %5144 = vmatpush3.bf16.msra.mxu1 %v3479_v52  ;;  %v3082_v38 = vadd.f32 %v10911_v44, %v3069_v62  ;;  %v3260_v23 = vadd.f32 %v10912_v56, %v3247_v10  ;;  %2919 = vst.msk [vmem:[#allocation2 + $0x54] sm:$0xff] %vm155_vm3, %v2917_v29  ;;  %v10918_v41 = vrot.slane %v10917_v42, 2  ;;  %3928 = vperm.xlu0 %5191, %v3610_v26   ;;  %v10931_v52 = vld [vmem:[#allocation147_spill] sm:$0xff]  ;;  %v10937_v44 = vld [vmem:[#allocation184_spill] sm:$0xff]  ;;  %v10938_v56 = vld [vmem:[#allocation141_spill] sm:$0xff] }
 0x8a0   :  { %v3070_v20 = vadd.f32 %v3065_v18, %v3057_v36  ;;  %v3329_v54 = vmul.f32 %v3328_v19, %v8518_v12  ;;  %v9501_v25 = vmul.f32 %v3328_v19, %v8520_v0  ;;  %v3233_v18 = vmul.f32 %v3231_v33, %v8520_v0  ;;  %v10924_v33 = vld [vmem:[#allocation102_spill] sm:$0xff]  ;;  %v10934_v15 = vld [vmem:[#allocation55_spill] sm:$0xff]  ;;  %v10940_v16 = vld [vmem:[#allocation77_spill] sm:$0xff] }
 0x8a1   :  { %v2918_v60 = vsel %vm2916_vm8, %v2911_v35, 0.0  ;;  %v3095_v59 = vadd.f32 %v10915_v43, %v3082_v38  ;;  %v3273_v47 = vadd.f32 %v10916_v39, %v3260_v23  ;;  %v10922_v30 = vrot.slane %v10921_v13, 2  ;;  %v10942_v43 = vld [vmem:[#allocation182_spill] sm:$0xff]  ;;  %v10943_v39 = vld [vmem:[#allocation176_spill] sm:$0xff] }
 0x8a2   :  { %v3083_v48 = vadd.f32 %v10914_v51, %v3070_v20  ;;  %2920 = vst.msk [vmem:[#allocation2 + $0x5c] sm:$0xf] %vm1036_vm6, %v2918_v60  ;;  %v3164_v34 = vmul.f32 %v3163_v14, %v8518_v12  ;;  %v3165_v27 = vmul.f32 %v3163_v14, %v8520_v0  ;;  %v3235_v2 = vadd.f32 %v3233_v18, %v10923_v45  ;;  %v4908_v13 = vld [vmem:[%s9942_s1 + $0x88] sm:$0xf]  ;;  %v10950_v45 = vld [vmem:[#allocation60_spill] sm:$0xff] }
 0x8a3   :  { %v3108_v37 = vadd.f32 %v10919_v4, %v3095_v59  ;;  %v3286_v32 = vadd.f32 %v10920_v24, %v3273_v47  ;;  %v10927_v6 = vrot.slane %v10926_v11, 2  ;;  %v3333_v9 = vrot.slane %v3329_v54, 1  ;;  %3848 = vperm.xlu0 %5191, %v3594_v55   ;;  %v10945_v54 = vld [vmem:[#allocation99_spill] sm:$0xff]  ;;  %v4907_v4 = vld [vmem:[%s9942_s1 + $0x80] sm:$0xff]  ;;  %v10954_v55 = vld [vmem:[#allocation178_spill] sm:$0xff] }
 0x8a4   :  { %v3096_v3 = vadd.f32 %v10918_v41, %v3083_v48  ;;  %v3334_v61 = vrot.slane %v9501_v25, 1  ;;  %v10929_v58 = vrot.slane %v10928_v63, 1  ;;  %v10933_v7 = vrot.slane %v10932_v8, 2 }
 0x8a5   :  { %v3121_v5 = vadd.f32 %v10924_v33, %v3108_v37  ;;  %v3299_v31 = vadd.f32 %v10925_v57, %v3286_v32  ;;  %v3168_v22 = vrot.slane %v3164_v34, 2  ;;  %v3169_v62 = vrot.slane %v3165_v27, 2  ;;  %v10947_v37 = vld [vmem:[#allocation38_spill] sm:$0xff]  ;;  %v10951_v57 = vld [vmem:[#allocation143_spill] sm:$0xff] }
 0x8a6   :  { %v3109_v17 = vadd.f32 %v10922_v30, %v3096_v3  ;;  %v3248_v28 = vadd.f32 %v10929_v58, %v3235_v2  ;;  %v3469_v49 = vld [vmem:[#allocation2 + $0x50] sm:$0xff]  ;;  %v10935_v10 = vrot.slane %v10934_v15, 1  ;;  %v10939_v23 = vrot.slane %v10938_v56, 2  ;;  %v10948_v30 = vld [vmem:[#allocation121_spill] sm:$0xff] }
 0x8a7   :  { %v3134_v40 = vadd.f32 %v10930_v50, %v3121_v5  ;;  %v3312_v1 = vadd.f32 %v10931_v52, %v3299_v31  ;;  %v3335_v60 = vsel %vm127_vm0, %v3333_v9, %v3334_v61  ;;  %v10941_v51 = vrot.slane %v10940_v16, 1  ;;  %v10956_v52 = vld [vmem:[#allocation104_spill] sm:$0xff] }
 0x8a8   :  { %v3122_v53 = vadd.f32 %v10927_v6, %v3109_v17  ;;  %v3261_v35 = vadd.f32 %v10935_v10, %v3248_v28  ;;  %v10944_v47 = vrot.slane %v10943_v39, 2  ;;  %v3170_v41 = vsel %vm141_vm1, %v3168_v22, %v3169_v62  ;;  %v10960_v10 = vld [vmem:[#allocation148_spill] sm:$0xff]  ;;  %v10968_v39 = vld [vmem:[#allocation123_spill] sm:$0xff] }
 0x8a9   :  { %v3470_v21 = vld [vmem:[#allocation2 + $0x58] sm:$0xff]  ;;  %v3147_v29 = vadd.f32 %v10936_v46, %v3134_v40  ;;  %v3325_v38 = vadd.f32 %v10937_v44, %v3312_v1  ;;  %v3176_v3 = vstv %s9515_s11  ;;  %v10946_v25 = vrot.slane %v10945_v54, 1  ;;  %v10963_v44 = vld [vmem:[#allocation185_spill] sm:$0xff] }
 0x8aa   :  { %v3135_v36 = vadd.f32 %v10933_v7, %v3122_v53  ;;  %v3480_v20 = vpack.c.bf16 %v3470_v21, %v3469_v49  ;;  %v3274_v48 = vadd.f32 %v10941_v51, %v3261_v35  ;;  %v10949_v17 = vrot.slane %v10948_v30, 1  ;;  %v10953_v53 = vld [vmem:[#allocation82_spill] sm:$0xff]  ;;  %v4934_v51 = vld [vmem:[%s9942_s1 + $0x90] sm:$0xff] }
 0x8ab   :  { %v3160_v59 = vadd.f32 %v10942_v43, %v3147_v29  ;;  %v3338_v14 = vadd.f32 %v3335_v60, %v3325_v38  ;;  %v3432_v33 = vstv %s9530_s3  ;;  %vm3184_vm0 = vcmp.ge.u32.totalorder %v4907_v4, 429496730  ;;  %v10957_v7 = vld [vmem:[#allocation126_spill] sm:$0xff] }
 0x8ac   :  { %v3148_v19 = vadd.f32 %v10939_v23, %v3135_v36  ;;  %5062 = vmatprep.subr.bf16.mxu0 %v3480_v20  ;;  %5137 = vmatprep.subr.bf16.mxu1 %v3480_v20  ;;  %v3287_v18 = vadd.f32 %v10946_v25, %v3274_v48  ;;  %v10952_v31 = vrot.slane %v10951_v57, 1  ;;  %vm3185_vm9 = vcmp.ge.u32.totalorder %v4908_v13, 429496730  ;;  %v10966_v48 = vld [vmem:[#allocation101_spill] sm:$0xff]  ;;  %v5195_v57 = vld [vmem:[%s10659_s22 + $0x8] sm:$0xff]  }
 0x8ad   :  { %5063 = vmatpush3.bf16.msra.mxu0 %v3480_v20  ;;  %5145 = vmatpush3.bf16.msra.mxu1 %v3480_v20  ;;  %v3173_v26 = vadd.f32 %v3170_v41, %v3160_v59  ;;  %v3351_v24 = vadd.f32 %v10947_v37, %v3338_v14  ;;  %v3433_v58 = vmul.f32 %v3432_v33, %v8518_v12  ;;  %v10955_v49 = vrot.slane %v10954_v55, 1  ;;  %v10961_v20 = vld [vmem:[#allocation57_spill] sm:$0xff]  ;;  %v5203_v55 = vld [vmem:[%s10659_s22 + $0x28] sm:$0xff]  }
 0x8ae   :  { %v3161_v42 = vadd.f32 %v10944_v47, %v3148_v19  ;;  %v3300_v34 = vadd.f32 %v10949_v17, %v3287_v18  ;;  %v3434_v28 = vmul.f32 %v3432_v33, %v8520_v0  ;;  %v10958_v0 = vld [vmem:[#allocation35_spill] sm:$0xff]  ;;  %v10962_v46 = vrot.slane %v10961_v20, 2  ;;  %v5215_v20 = vld [vmem:[%s10659_s22 + $0x60] sm:$0xff]  }
 0x8af   :  { %v3177_v27 = vadd.f32 %v3176_v3, %v3173_v26  ;;  %v3364_v2 = vadd.f32 %v10950_v45, %v3351_v24  ;;  %v3437_v12 = vrot.slane %v3433_v58, 2  ;;  %v3445_v23 = vstv %s9566_s5  ;;  %v10972_v26 = vld [vmem:[#allocation181_spill] sm:$0xff]  ;;  %v5202_v58 = vld [vmem:[%s10659_s22 + $0xd0] sm:$0xff]  }
 0x8b0   :  { %v3174_v32 = vadd.f32 %v3169_v62, %v3161_v42  ;;  %v3313_v11 = vadd.f32 %v10952_v31, %v3300_v34  ;;  %v3438_v22 = vrot.slane %v3434_v28, 2  ;;  %v10959_v62 = vrot.slane %v10958_v0, 2  ;;  %v5196_v31 = vld [vmem:[%s10659_s22 + $0xb8] sm:$0xff]   ;;  %v9624_v28 = vpop.permute.xlu1 %3698 }
 0x8b1   :  { %v3179_v6 = vmax.f32 %v3177_v27, 0.0  ;;  %v3377_v9 = vadd.f32 %v10953_v53, %v3364_v2  ;;  %v10967_v43 = vrot.slane %v10966_v48, 2  ;;  %vm3453_vm10 = vcmp.ge.u32.totalorder %v4934_v51, 429496730  ;;  %v3474_v2 = vld [vmem:[#allocation2 + $0x78] sm:$0xff]  ;;  %v5220_v51 = vld [vmem:[%s10659_s22 + $0x88] sm:$0xff]  }
 0x8b2   :  { %v3178_v5 = vadd.f32 %v3176_v3, %v3174_v32  ;;  %v3326_v50 = vadd.f32 %v10955_v49, %v3313_v11  ;;  %v3439_v56 = vsel %vm141_vm1, %v3437_v12, %v3438_v22  ;;  %v10969_v47 = vrot.slane %v10968_v39, 2  ;;  %v10970_v3 = vld [vmem:[#allocation145_spill] sm:$0xff]  ;;  %v4935_v32 = vld [vmem:[%s9942_s1 + $0x98] sm:$0xf]  ;;  %v5197_v11 = vld [vmem:[%s10659_s22 + $0x10] sm:$0xff]   ;;  %s10990_s1 = sld [smem:[#allocation278_spill]] }
 0x8b3   :  { %v3186_v40 = vsel %vm3184_vm0, %v3179_v6, 0.0  ;;  %v3390_v1 = vadd.f32 %v10956_v52, %v3377_v9  ;;  %v10971_v54 = vrot.slane %v10970_v3, 2  ;;  %v10973_v4 = vrot.slane %v10972_v26, 2  ;;  %v5198_v6 = vld [vmem:[%s10659_s22 + $0xc0] sm:$0xff]   ;;  %v5199_v53 = vld [vmem:[%s10659_s22 + $0x18] sm:$0xff]   ;;  %v5200_v9 = vld [vmem:[%s10659_s22 + $0xc8] sm:$0xff]  }
 0x8b4   :  { %v3180_v63 = vmax.f32 %v3178_v5, 0.0  ;;  %3188 = vst.msk [vmem:[#allocation2 + $0x60] sm:$0xff] %vm155_vm3, %v3186_v40  ;;  %v3339_v8 = vadd.f32 %v3334_v61, %v3326_v50  ;;  %v10964_v61 = vld [vmem:[#allocation79_spill] sm:$0xff]  ;;  %vm3454_vm1 = vcmp.ge.u32.totalorder %v4935_v32, 429496730  ;;  %v5204_v49 = vld [vmem:[%s10659_s22 + $0xd8] sm:$0xff]   ;;  %v9632_v50 = vpop.permute.xlu1 %3613 }
 0x8b5   :  { %v3403_v36 = vadd.f32 %v10957_v7, %v3390_v1  ;;  %v10965_v19 = vrot.slane %v10964_v61, 2  ;;  %v5205_v40 = vld [vmem:[%s10659_s22 + $0x30] sm:$0xff]   ;;  %v5206_v52 = vld [vmem:[%s10659_s22 + $0xe0] sm:$0xff]   ;;  %v5212_v0 = vld [vmem:[%s10659_s22 + $0xf8] sm:$0xff]  }
 0x8b6   :  { %v3187_v21 = vsel %vm3185_vm9, %v3180_v63, 0.0  ;;  %v3352_v15 = vadd.f32 %v10959_v62, %v3339_v8  ;;  %v5201_v63 = vld [vmem:[%s10659_s22 + $0x20] sm:$0xff]   ;;  %v5208_v8 = vld [vmem:[%s10659_s22 + $0xe8] sm:$0xff]   ;;  %v5213_v62 = vld [vmem:[%s10659_s22 + $0x50] sm:$0xff]  }
 0x8b7   :  { %3189 = vst.msk [vmem:[#allocation2 + $0x68] sm:$0xf] %vm1036_vm6, %v3187_v21  ;;  %v3416_v35 = vadd.f32 %v10960_v10, %v3403_v36  ;;  %v5207_v21 = vld [vmem:[%s10659_s22 + $0x38] sm:$0xff]   ;;  %v5209_v7 = vld [vmem:[%s10659_s22 + $0x40] sm:$0xff]   ;;  %v5210_v36 = vld [vmem:[%s10659_s22 + $0xf0] sm:$0xff]  }
 0x8b8   :  { %v3365_v29 = vadd.f32 %v10962_v46, %v3352_v15  ;;  %v9640_v1 = vpop.permute.xlu1 %3618  ;;  %v5214_v10 = vld [vmem:[%s10659_s22 + $0x58] sm:$0xff]  }
 0x8b9   :  { %v3429_v38 = vadd.f32 %v10963_v44, %v3416_v35  ;;  %v5216_v44 = vld [vmem:[%s10659_s22 + $0x68] sm:$0xff]   ;;  %v5218_v61 = vld [vmem:[%s10659_s22 + $0x78] sm:$0xff]  }
 0x8ba   :  { %v3378_v60 = vadd.f32 %v10965_v19, %v3365_v29  ;;  %v9677_v29 = vpop.permute.xlu0 %3693  ;;  %v5219_v19 = vld [vmem:[%s10659_s22 + $0x80] sm:$0xff]  }
 0x8bb   :  { %v3442_v16 = vadd.f32 %v3439_v56, %v3429_v38  ;;  %v3471_v30 = vld [vmem:[#allocation2 + $0x60] sm:$0xff]  ;;  %v5217_v38 = vld [vmem:[%s10659_s22 + $0x70] sm:$0xff]  }
 0x8bc   :  { %v3391_v59 = vadd.f32 %v10967_v43, %v3378_v60  ;;  %v9654_v12 = vpop.permute.xlu1 %3703 }
 0x8bd   :  { %v3446_v14 = vadd.f32 %v3445_v23, %v3442_v16 }
 0x8be   :  { %v3404_v42 = vadd.f32 %v10969_v47, %v3391_v59  ;;  %v5221_v59 = vld [vmem:[%s10659_s22 + $0x90] sm:$0xff]   ;;  %v5222_v47 = vld [vmem:[%s10659_s22 + $0x98] sm:$0xff]  }
 0x8bf   :  { %v3448_v41 = vmax.f32 %v3446_v14, 0.0 }
 0x8c0   :  { %v3417_v25 = vadd.f32 %v10971_v54, %v3404_v42  ;;  %v9665_v15 = vpop.permute.xlu1 %3708  ;;  %v5223_v42 = vld [vmem:[%s10659_s22 + $0xa0] sm:$0xff]   ;;  %v5224_v54 = vld [vmem:[%s10659_s22 + $0xa8] sm:$0xff]  }
 0x8c1   :  { %v3455_v18 = vsel %vm3453_vm10, %v3448_v41, 0.0 }
 0x8c2   :  { %3457 = vst.msk [vmem:[#allocation2 + $0x6c] sm:$0xff] %vm155_vm3, %v3455_v18  ;;  %v3430_v37 = vadd.f32 %v10973_v4, %v3417_v25 }
 0x8c4   :  { %v3443_v24 = vadd.f32 %v3438_v22, %v3430_v37  ;;  %v5211_v22 = vld [vmem:[%s10659_s22 + $0x48] sm:$0xff]   ;;  %v9670_v35 = vpop.permute.xlu1 %3623 }
 0x8c6   :  { %v3447_v13 = vadd.f32 %v3445_v23, %v3443_v24  ;;  %v9687_v23 = vpop.permute.xlu0 %3718 }
 0x8c8   :  { %v3449_v17 = vmax.f32 %v3447_v13, 0.0  ;;  %v9675_v46 = vpop.permute.xlu1 %3628 }
 0x8c9   :  { %v3472_v34 = vld [vmem:[#allocation2 + $0x68] sm:$0xff] }
 0x8ca   :  { %v3481_v27 = vpack.c.bf16 %v3472_v34, %v3471_v30  ;;  %v3456_v45 = vsel %vm3454_vm1, %v3449_v17, 0.0  ;;  %v9697_v16 = vpop.permute.xlu0 %3638 }
 0x8cb   :  { %3458 = vst.msk [vmem:[#allocation2 + $0x74] sm:$0xf] %vm1036_vm6, %v3456_v45 }
 0x8cc   :  { %5064 = vmatprep.subr.bf16.mxu0 %v3481_v27  ;;  %5138 = vmatprep.subr.bf16.mxu1 %v3481_v27  ;;  %v9685_v56 = vpop.permute.xlu1 %3713 }
 0x8cd   :  { %5065 = vmatpush3.bf16.msra.mxu0 %v3481_v27  ;;  %5146 = vmatpush3.bf16.msra.mxu1 %v3481_v27 }
 0x8ce   :  { %v9704_v43 = vpop.permute.xlu0 %3728 }
 0x8d0   :  { %v9695_v60 = vpop.permute.xlu1 %3633 }
 0x8d2   :  { %v3473_v33 = vld [vmem:[#allocation2 + $0x70] sm:$0xff]  ;;  %v9711_v39 = vpop.permute.xlu0 %3648 }
 0x8d3   :  { %v3482_v5 = vpack.c.bf16 %v3474_v2, %v3473_v33 }
 0x8d4   :  { %v9702_v48 = vpop.permute.xlu1 %3723 }
 0x8d5   :  { %5066 = vmatprep.subr.bf16.mxu0 %v3482_v5  ;;  %5139 = vmatprep.subr.bf16.mxu1 %v3482_v5 }
 0x8d6   :  { %5067 = vmatpush3.bf16.msra.mxu0 %v3482_v5  ;;  %5147 = vmatpush3.bf16.msra.mxu1 %v3482_v5  ;;  %v9721_v3 = vpop.permute.xlu0 %3738 }
 0x8d7   :  { %10975 = vst [vmem:[#allocation242_spill] sm:$0xff] %v9721_v3 }
 0x8d8   :  { %v9709_v14 = vpop.permute.xlu1 %3643 }
 0x8d9   :  { %5069 = vmatmul.mubr.bf16.vlgmr.msra.gmra.mrb[0].mxu0 %v5195_v57  ;;  %5113 = vmatmul.mubr.bf16.vlgmr.msra.gmra.mrb[0].mxu1 %v5196_v31 }
 0x8da   :  { %5072 = vmatprep.mubr.bf16.mxu0 %v5197_v11  ;;  %5116 = vmatprep.mubr.bf16.mxu1 %v5198_v6  ;;  %v9728_v18 = vpop.permute.xlu0 %3658 }
 0x8dc   :  { %v9719_v41 = vpop.permute.xlu1 %3733 }
 0x8dd   :  { %10974 = vst [vmem:[#allocation251_spill] sm:$0xff] %v9719_v41 }
 0x8de   :  { %v9732_v4 = vpop.permute.xlu0 %3748 }
 0x8df   :  { %10977 = vst [vmem:[#allocation255_spill] sm:$0xff] %v9732_v4 }
 0x8e0   :  { %v9726_v25 = vpop.permute.xlu1 %3653 }
 0x8e1   :  { %5073 = vmatmul.mubr.bf16.gmra.mrb[4].mxu0 %v5199_v53  ;;  %5117 = vmatmul.mubr.bf16.gmra.mrb[4].mxu1 %v5200_v9 }
 0x8e2   :  { %5076 = vmatprep.mubr.bf16.mxu0 %v5201_v63  ;;  %5120 = vmatprep.mubr.bf16.mxu1 %v5202_v58  ;;  %v9736_v24 = vpop.permute.xlu0 %3668 }
 0x8e4   :  { %v9730_v26 = vpop.permute.xlu1 %3743 }
 0x8e5   :  { %10976 = vst [vmem:[#allocation196_spill] sm:$0xff] %v9730_v26 }
 0x8e6   :  { %v9740_v13 = vpop.permute.xlu0 %3758 }
 0x8e7   :  { %10979 = vst [vmem:[#allocation210_spill] sm:$0xff] %v9740_v13 }
 0x8e8   :  { %v9734_v37 = vpop.permute.xlu1 %3663 }
 0x8e9   :  { %5077 = vmatmul.mubr.bf16.gmra.mrb[8].mxu0 %v5203_v55  ;;  %5121 = vmatmul.mubr.bf16.gmra.mrb[8].mxu1 %v5204_v49 }
 0x8ea   :  { %5080 = vmatprep.mubr.bf16.mxu0 %v5205_v40  ;;  %5124 = vmatprep.mubr.bf16.mxu1 %v5206_v52  ;;  %v9744_v17 = vpop.permute.xlu0 %3678 }
 0x8ec   :  { %v9738_v32 = vpop.permute.xlu1 %3753 }
 0x8ed   :  { %10978 = vst [vmem:[#allocation214_spill] sm:$0xff] %v9738_v32 }
 0x8ee   :  { %v9748_v27 = vpop.permute.xlu0 %3768 }
 0x8ef   :  { %10981 = vst [vmem:[#allocation227_spill] sm:$0xff] %v9748_v27 }
 0x8f0   :  { %v9742_v30 = vpop.permute.xlu1 %3673 }
 0x8f1   :  { %5081 = vmatmul.mubr.bf16.gmra.mrb[12].mxu0 %v5207_v21  ;;  %5125 = vmatmul.mubr.bf16.gmra.mrb[12].mxu1 %v5208_v8  ;;  %v4520_v21 = vlaneseq  ;;  %v5336_v8 = vmov 1983009808  }
 0x8f2   :  { %5084 = vmatprep.mubr.bf16.mxu0 %v5209_v7  ;;  %5128 = vmatprep.mubr.bf16.mxu1 %v5210_v36  ;;  %v9752_v2 = vpop.permute.xlu0 %3688  ;;  %v4518_v7 = vunpack.c.l.s4 %v5336_v8 }
 0x8f3   :  { %v4521_v36 = vshrl.u32 %v4520_v21, 7 }
 0x8f4   :  { %v9746_v34 = vpop.permute.xlu1 %3763 }
 0x8f5   :  { %10980 = vst [vmem:[#allocation223_spill] sm:$0xff] %v9746_v34 }
 0x8f6   :  { %v9756_v5 = vpop.permute.xlu0 %3858 }
 0x8f8   :  { %v9750_v45 = vpop.permute.xlu1 %3683 }
 0x8f9   :  { %5085 = vmatmul.mubr.bf16.gmra.mrb[16].mxu0 %v5211_v22  ;;  %5129 = vmatmul.mubr.bf16.gmra.mrb[16].mxu1 %v5212_v0 }
 0x8fa   :  { %5088 = vmatprep.mubr.bf16.mxu0 %v5213_v62  ;;  %v9760_v31 = vpop.permute.xlu0 %3778  ;;  %v4519_v62 = vunpack.c.0.s8 %v4518_v7 }
 0x8fb   :  { %10983 = vst [vmem:[#allocation149_spill] sm:$0xff] %v9760_v31 }
 0x8fc   :  { %v9754_v33 = vpop.permute.xlu1 %3853 }
 0x8fe   :  { %v9764_v6 = vpop.permute.xlu0 %3868 }
 0x900   :  { %v9758_v57 = vpop.permute.xlu1 %3773 }
 0x901   :  { %5089 = vmatmul.mubr.bf16.gmra.mrb[20].mxu0 %v5214_v10  ;;  %10982 = vst [vmem:[#allocation238_spill] sm:$0xff] %v9758_v57  ;;  %v4476_v10 = vld [vmem:[%s10990_s1] sm:$0xff] }
 0x902   :  { %5092 = vmatprep.mubr.bf16.mxu0 %v5215_v20  ;;  %v9768_v9 = vpop.permute.xlu0 %3788  ;;  %v4522_v20 = vsub.s32 %v4519_v62, %v4521_v36  ;;  %v4516_v8 = vcombine.high %v4476_v10, %v4476_v10 }
 0x903   :  { %10985 = vst [vmem:[#allocation257_spill] sm:$0xff] %v9768_v9 }
 0x904   :  { %v9762_v11 = vpop.permute.xlu1 %3863  ;;  %v9809_v7 = vrot.slane %v4516_v8, %v4522_v20 }
 0x906   :  { %v9772_v58 = vpop.permute.xlu0 %3878  ;;  %10996 = vst [vmem:[#allocation204_spill] sm:$0xff] %v9809_v7 }
 0x908   :  { %v9766_v53 = vpop.permute.xlu1 %3783 }
 0x909   :  { %5093 = vmatmul.mubr.bf16.gmra.mrb[24].mxu0 %v5216_v44  ;;  %10984 = vst [vmem:[#allocation244_spill] sm:$0xff] %v9766_v53  ;;  %v9789_v44 = vrot.slane %v4476_v10, %v4522_v20 }
 0x90a   :  { %5096 = vmatprep.mubr.bf16.mxu0 %v5217_v38  ;;  %v9776_v49 = vpop.permute.xlu0 %3798 }
 0x90b   :  { %10987 = vst [vmem:[#allocation150_spill] sm:$0xff] %v9776_v49  ;;  %10991 = vst [vmem:[#allocation262_spill] sm:$0xff] %v9789_v44 }
 0x90c   :  { %v9770_v63 = vpop.permute.xlu1 %3873 }
 0x90e   :  { %v9780_v52 = vpop.permute.xlu0 %3888 }
 0x910   :  { %v9774_v55 = vpop.permute.xlu1 %3793 }
 0x911   :  { %5097 = vmatmul.mubr.bf16.gmra.mrb[28].mxu0 %v5218_v61  ;;  %10986 = vst [vmem:[#allocation188_spill] sm:$0xff] %v9774_v55 }
 0x912   :  { %5100 = vmatprep.mubr.bf16.mxu0 %v5219_v19  ;;  %v9784_v0 = vpop.permute.xlu0 %3808  ;;  %v4531_v19 = vcombine.high %v9789_v44, %v9789_v44 }
 0x913   :  { %10989 = vst [vmem:[#allocation186_spill] sm:$0xff] %v9784_v0 }
 0x914   :  { %v9778_v40 = vpop.permute.xlu1 %3883  ;;  %4569 = vmatprep.mubr.bf16.mxu1 %v4531_v19 }
 0x916   :  { %v9793_v61 = vpop.permute.xlu0 %3898 }
 0x918   :  { %v9782_v22 = vpop.permute.xlu1 %3803 }
 0x919   :  { %5101 = vmatmul.mubr.bf16.gmra.mrb[32].mxu0 %v5220_v51  ;;  %10988 = vst [vmem:[#allocation189_spill] sm:$0xff] %v9782_v22 }
 0x91a   :  { %5104 = vmatprep.mubr.bf16.mxu0 %v5221_v59  ;;  %v9799_v59 = vpop.permute.xlu0 %3818 }
 0x91b   :  { %10993 = vst [vmem:[#allocation192_spill] sm:$0xff] %v9799_v59 }
 0x91c   :  { %v9791_v38 = vpop.permute.xlu1 %3893 }
 0x920   :  { %v9797_v51 = vpop.permute.xlu1 %3813 }
 0x921   :  { %5105 = vmatmul.mubr.bf16.gmra.mrb[36].mxu0 %v5222_v47  ;;  %10992 = vst [vmem:[#allocation151_spill] sm:$0xff] %v9797_v51 }
 0x922   :  { %5108 = vmatprep.mubr.bf16.mxu0 %v5223_v42  ;;  %v9803_v42 = vpop.permute.xlu0 %3908 }
 0x924   :  { %v9801_v47 = vpop.permute.xlu1 %3903 }
 0x926   :  { %v9807_v21 = vpop.permute.xlu0 %3828 }
 0x927   :  { %10995 = vst [vmem:[#allocation199_spill] sm:$0xff] %v9807_v21 }
 0x929   :  { %5109 = vmatmul.mubr.bf16.gmra.mrb[40].mxu0 %v5224_v54  ;;  %v9805_v54 = vpop.permute.xlu1 %3823 }
 0x92a   :  { %10994 = vst [vmem:[#allocation201_spill] sm:$0xff] %v9805_v54  ;;  %v9813_v62 = vpop.permute.xlu0 %3918 }
 0x92d   :  { %v9811_v36 = vpop.permute.xlu1 %3913 }
 0x92e   :  { %v3839_v49 = vpop.permute.xlu0 %3838 }
 0x931   :  { %v3834_v19 = vpop.permute.xlu1 %3833 }
 0x932   :  { %v9817_v59 = vpop.permute.xlu0 %3928 }
 0x935   :  { %v9815_v51 = vpop.permute.xlu1 %3923 }
 0x936   :  { %v3849_v44 = vpop.permute.xlu0 %3848 }
 0x939   :  { %v3844_v0 = vpop.permute.xlu1 %3843 }
 0x9ac   :  { %v5070_v55 = vpop.f32.mrb[0].mxu0  ;;  %v5114_v22 = vpop.f32.mrb[0].mxu1 }
 0x9ad   :  { %v4166_v54 = vadd.f32 %v5070_v55, %v9670_v35  ;;  %v4342_v21 = vadd.f32 %v5114_v22, %v3844_v0  ;;  %v4157_v10 = vpop.f32.mrb[1].mxu0  ;;  %v4333_v20 = vpop.f32.mrb[1].mxu1 }
 0x9ae   :  { %v4158_v8 = vadd.f32 %v4157_v10, %v9632_v50  ;;  %v4334_v7 = vadd.f32 %v4333_v20, %v3834_v19  ;;  %v5071_v31 = vpop.f32.mrb[2].mxu0  ;;  %v5115_v9 = vpop.f32.mrb[2].mxu1 }
 0x9af   :  { %v4169_v57 = vadd.f32 %v5071_v31, %v9675_v46  ;;  %v4345_v53 = vadd.f32 %v5115_v9, %v3849_v44  ;;  %v4160_v13 = vpop.f32.mrb[3].mxu0  ;;  %v4336_v27 = vpop.f32.mrb[3].mxu1  ;;  %v4414_v3 = vmax.f32 %v4166_v54, 0.0  ;;  %v4458_v4 = vmax.f32 %v4342_v21, 0.0 }
 0x9b0   :  { %v4161_v32 = vadd.f32 %v4160_v13, %v9640_v1  ;;  %v4337_v34 = vadd.f32 %v4336_v27, %v3839_v49  ;;  %v4412_v55 = vmax.f32 %v4158_v8, 0.0  ;;  %v4456_v22 = vmax.f32 %v4334_v7, 0.0 }
 0x9b1   :  { %v4415_v41 = vmax.f32 %v4169_v57, 0.0  ;;  %v4459_v35 = vmax.f32 %v4345_v53, 0.0 }
 0x9b2   :  { %v4413_v0 = vmax.f32 %v4161_v32, 0.0  ;;  %v4457_v26 = vmax.f32 %v4337_v34, 0.0 }
 0x9b3   :  { %v9823_v50 = vpack.c.bf16 %v4415_v41, %v4414_v3  ;;  %v9825_v19 = vpack.c.bf16 %v4459_v35, %v4458_v4 }
 0x9b4   :  { %v9827_v10 = vpack.c.bf16 %v4413_v0, %v4412_v55  ;;  %v9829_v46 = vpack.c.bf16 %v4457_v26, %v4456_v22  ;;  %v5074_v31 = vpop.f32.mrb[4].mxu0  ;;  %v5118_v9 = vpop.f32.mrb[4].mxu1 }
 0x9b5   :  { %v4182_v1 = vadd.f32 %v5074_v31, %v9709_v14  ;;  %v4358_v13 = vadd.f32 %v5118_v9, %v9762_v11  ;;  %v4173_v27 = vpop.f32.mrb[5].mxu0  ;;  %v4349_v57 = vpop.f32.mrb[5].mxu1 }
 0x9b6   :  { %v4174_v53 = vadd.f32 %v4173_v27, %v9695_v60  ;;  %v4350_v32 = vadd.f32 %v4349_v57, %v9754_v33  ;;  %v5075_v41 = vpop.f32.mrb[6].mxu0  ;;  %v5119_v3 = vpop.f32.mrb[6].mxu1 }
 0x9b7   :  { %v4185_v4 = vadd.f32 %v5075_v41, %v9711_v39  ;;  %v4361_v34 = vadd.f32 %v5119_v3, %v9764_v6  ;;  %v4176_v26 = vpop.f32.mrb[7].mxu0  ;;  %v4352_v49 = vpop.f32.mrb[7].mxu1  ;;  %v4418_v54 = vmax.f32 %v4182_v1, 0.0  ;;  %v4462_v11 = vmax.f32 %v4358_v13, 0.0 }
 0x9b8   :  { %v4177_v44 = vadd.f32 %v4176_v26, %v9697_v16  ;;  %v4353_v14 = vadd.f32 %v4352_v49, %v9756_v5  ;;  %v4416_v20 = vmax.f32 %v4174_v53, 0.0  ;;  %v4460_v60 = vmax.f32 %v4350_v32, 0.0 }
 0x9b9   :  { %v4419_v21 = vmax.f32 %v4185_v4, 0.0  ;;  %v4463_v7 = vmax.f32 %v4361_v34, 0.0 }
 0x9ba   :  { %v4417_v8 = vmax.f32 %v4177_v44, 0.0  ;;  %v4461_v33 = vmax.f32 %v4353_v14, 0.0 }
 0x9bb   :  { %v9839_v35 = vpack.c.bf16 %v4419_v21, %v4418_v54  ;;  %v9841_v55 = vpack.c.bf16 %v4463_v7, %v4462_v11 }
 0x9bc   :  { %v9843_v39 = vpack.c.bf16 %v4417_v8, %v4416_v20  ;;  %v9845_v6 = vpack.c.bf16 %v4461_v33, %v4460_v60  ;;  %v5078_v22 = vpop.f32.mrb[8].mxu0  ;;  %v5122_v16 = vpop.f32.mrb[8].mxu1 }
 0x9bd   :  { %v4198_v5 = vadd.f32 %v5078_v22, %v9734_v37  ;;  %v4374_v0 = vadd.f32 %v5122_v16, %v9778_v40  ;;  %v4189_v31 = vpop.f32.mrb[9].mxu0  ;;  %v4365_v9 = vpop.f32.mrb[9].mxu1 }
 0x9be   :  { %v4190_v1 = vadd.f32 %v4189_v31, %v9726_v25  ;;  %v4366_v13 = vadd.f32 %v4365_v9, %v9770_v63  ;;  %v5079_v27 = vpop.f32.mrb[10].mxu0  ;;  %v5123_v57 = vpop.f32.mrb[10].mxu1 }
 0x9bf   :  { %v4201_v53 = vadd.f32 %v5079_v27, %v9736_v24  ;;  %v4377_v32 = vadd.f32 %v5123_v57, %v9780_v52  ;;  %v4192_v41 = vpop.f32.mrb[11].mxu0  ;;  %v4368_v3 = vpop.f32.mrb[11].mxu1  ;;  %v4422_v34 = vmax.f32 %v4198_v5, 0.0  ;;  %v4466_v40 = vmax.f32 %v4374_v0, 0.0 }
 0x9c0   :  { %v4193_v4 = vadd.f32 %v4192_v41, %v9728_v18  ;;  %v4369_v37 = vadd.f32 %v4368_v3, %v9772_v58  ;;  %v4420_v44 = vmax.f32 %v4190_v1, 0.0  ;;  %v4464_v25 = vmax.f32 %v4366_v13, 0.0 }
 0x9c1   :  { %v4423_v26 = vmax.f32 %v4201_v53, 0.0  ;;  %v4467_v49 = vmax.f32 %v4377_v32, 0.0 }
 0x9c2   :  { %v4421_v14 = vmax.f32 %v4193_v4, 0.0  ;;  %v4465_v63 = vmax.f32 %v4369_v37, 0.0 }
 0x9c3   :  { %v9855_v54 = vpack.c.bf16 %v4423_v26, %v4422_v34  ;;  %v9857_v11 = vpack.c.bf16 %v4467_v49, %v4466_v40 }
 0x9c4   :  { %v9859_v24 = vpack.c.bf16 %v4421_v14, %v4420_v44  ;;  %v9861_v52 = vpack.c.bf16 %v4465_v63, %v4464_v25  ;;  %v5082_v21 = vpop.f32.mrb[12].mxu0  ;;  %v5126_v18 = vpop.f32.mrb[12].mxu1 }
 0x9c5   :  { %v4214_v58 = vadd.f32 %v5082_v21, %v9750_v45  ;;  %v4390_v7 = vadd.f32 %v5126_v18, %v9801_v47  ;;  %v4205_v20 = vpop.f32.mrb[13].mxu0  ;;  %v4381_v60 = vpop.f32.mrb[13].mxu1 }
 0x9c6   :  { %v4206_v8 = vadd.f32 %v4205_v20, %v9742_v30  ;;  %v4382_v33 = vadd.f32 %v4381_v60, %v9791_v38  ;;  %v5083_v22 = vpop.f32.mrb[14].mxu0  ;;  %v5127_v16 = vpop.f32.mrb[14].mxu1 }
 0x9c7   :  { %v4217_v5 = vadd.f32 %v5083_v22, %v9752_v2  ;;  %v4393_v0 = vadd.f32 %v5127_v16, %v9803_v42  ;;  %v4208_v31 = vpop.f32.mrb[15].mxu0  ;;  %v4384_v9 = vpop.f32.mrb[15].mxu1  ;;  %v4426_v13 = vmax.f32 %v4214_v58, 0.0  ;;  %v4470_v47 = vmax.f32 %v4390_v7, 0.0 }
 0x9c8   :  { %v4209_v1 = vadd.f32 %v4208_v31, %v9744_v17  ;;  %v4385_v45 = vadd.f32 %v4384_v9, %v9793_v61  ;;  %v4424_v53 = vmax.f32 %v4206_v8, 0.0  ;;  %v4468_v30 = vmax.f32 %v4382_v33, 0.0 }
 0x9c9   :  { %v4427_v27 = vmax.f32 %v4217_v5, 0.0  ;;  %v4471_v57 = vmax.f32 %v4393_v0, 0.0 }
 0x9ca   :  { %v4425_v32 = vmax.f32 %v4209_v1, 0.0  ;;  %v4469_v38 = vmax.f32 %v4385_v45, 0.0 }
 0x9cb   :  { %v9871_v41 = vpack.c.bf16 %v4427_v27, %v4426_v13  ;;  %v9873_v3 = vpack.c.bf16 %v4471_v57, %v4470_v47 }
 0x9cc   :  { %v9875_v2 = vpack.c.bf16 %v4425_v32, %v4424_v53  ;;  %v9877_v42 = vpack.c.bf16 %v4469_v38, %v4468_v30  ;;  %v5086_v4 = vpop.f32.mrb[16].mxu0  ;;  %v5130_v17 = vpop.f32.mrb[16].mxu1 }
 0x9cd   :  { %v4230_v61 = vadd.f32 %v5086_v4, %v9654_v12  ;;  %v4406_v37 = vadd.f32 %v5130_v17, %v9815_v51  ;;  %v4221_v34 = vpop.f32.mrb[17].mxu0  ;;  %v4397_v40 = vpop.f32.mrb[17].mxu1  ;;  %v10998_v4 = vld [vmem:[#allocation251_spill] sm:$0xff] }
 0x9ce   :  { %v4222_v26 = vadd.f32 %v4221_v34, %v9677_v29  ;;  %v4398_v49 = vadd.f32 %v4397_v40, %v9811_v36  ;;  %v5087_v44 = vpop.f32.mrb[18].mxu0  ;;  %v5131_v25 = vpop.f32.mrb[18].mxu1 }
 0x9cf   :  { %v4233_v14 = vadd.f32 %v5087_v44, %v9665_v15  ;;  %v4409_v63 = vadd.f32 %v5131_v25, %v9817_v59  ;;  %v4224_v21 = vpop.f32.mrb[19].mxu0  ;;  %v4400_v18 = vpop.f32.mrb[19].mxu1  ;;  %v4430_v7 = vmax.f32 %v4230_v61, 0.0  ;;  %v4474_v51 = vmax.f32 %v4406_v37, 0.0  ;;  %v11000_v37 = vld [vmem:[#allocation242_spill] sm:$0xff] }
 0x9d0   :  { %v4225_v58 = vadd.f32 %v4224_v21, %v9624_v28  ;;  %v4401_v12 = vadd.f32 %v4400_v18, %v9813_v62  ;;  %v4428_v8 = vmax.f32 %v4222_v26, 0.0  ;;  %v4472_v29 = vmax.f32 %v4398_v49, 0.0 }
 0x9d1   :  { %v4431_v20 = vmax.f32 %v4233_v14, 0.0  ;;  %v4475_v60 = vmax.f32 %v4409_v63, 0.0  ;;  %v11001_v63 = vld [vmem:[#allocation223_spill] sm:$0xff] }
 0x9d2   :  { %v4429_v33 = vmax.f32 %v4225_v58, 0.0  ;;  %v4473_v36 = vmax.f32 %v4401_v12, 0.0  ;;  %v11002_v58 = vld [vmem:[#allocation214_spill] sm:$0xff] }
 0x9d3   :  { %v4486_v22 = vpack.c.bf16 %v4431_v20, %v4430_v7  ;;  %v9887_v16 = vpack.c.bf16 %v4475_v60, %v4474_v51  ;;  %v11004_v60 = vld [vmem:[#allocation210_spill] sm:$0xff] }
 0x9d4   :  { %v4485_v15 = vpack.c.bf16 %v4429_v33, %v4428_v8  ;;  %v9889_v5 = vpack.c.bf16 %v4473_v36, %v4472_v29  ;;  %v5090_v59 = vpop.f32.mrb[20].mxu0 }
 0x9d5   :  { %v4246_v0 = vadd.f32 %v5090_v59, %v9702_v48  ;;  %v4237_v28 = vpop.f32.mrb[21].mxu0 }
 0x9d6   :  { %v4238_v62 = vadd.f32 %v4237_v28, %v9685_v56  ;;  %v5091_v31 = vpop.f32.mrb[22].mxu0  ;;  %5008 = vmatprep.subr.bf16.mxu1 %v4485_v15  ;;  %v10997_v56 = vld [vmem:[#allocation196_spill] sm:$0xff] }
 0x9d7   :  { %v4249_v9 = vadd.f32 %v5091_v31, %v9704_v43  ;;  %v4240_v1 = vpop.f32.mrb[23].mxu0  ;;  %5009 = vmatpush3.bf16.msra.mxu1 %v9827_v10  ;;  %v4434_v13 = vmax.f32 %v4246_v0, 0.0  ;;  %v10999_v10 = vld [vmem:[#allocation255_spill] sm:$0xff]  ;;  %v11005_v0 = vld [vmem:[#allocation244_spill] sm:$0xff]  ;;  %v11006_v31 = vld [vmem:[#allocation238_spill] sm:$0xff] }
 0x9d8   :  { %v4241_v45 = vadd.f32 %v4240_v1, %v9687_v23  ;;  %5010 = vmatprep.subr.bf16.mxu1 %v4486_v22  ;;  %v4432_v27 = vmax.f32 %v4238_v62, 0.0 }
 0x9d9   :  { %v4435_v47 = vmax.f32 %v4249_v9, 0.0 }
 0x9da   :  { %v4433_v57 = vmax.f32 %v4241_v45, 0.0 }
 0x9db   :  { %v4488_v53 = vpack.c.bf16 %v4435_v47, %v4434_v13  ;;  %5011 = vmatpush3.bf16.msra.mxu1 %v9823_v50  ;;  %v11008_v47 = vld [vmem:[#allocation149_spill] sm:$0xff] }
 0x9dc   :  { %v4487_v48 = vpack.c.bf16 %v4433_v57, %v4432_v27  ;;  %v5094_v30 = vpop.f32.mrb[24].mxu0 }
 0x9dd   :  { %v4262_v32 = vadd.f32 %v5094_v30, %v10997_v56  ;;  %v4253_v38 = vpop.f32.mrb[25].mxu0  ;;  %v11009_v56 = vld [vmem:[#allocation204_spill] sm:$0xff] }
 0x9de   :  { %v4254_v43 = vadd.f32 %v4253_v38, %v10998_v4  ;;  %v5095_v17 = vpop.f32.mrb[26].mxu0  ;;  %5012 = vmatprep.subr.bf16.mxu1 %v4487_v48 }
 0x9df   :  { %v4265_v61 = vadd.f32 %v5095_v17, %v10999_v10  ;;  %v4256_v23 = vpop.f32.mrb[27].mxu0  ;;  %5013 = vmatpush3.bf16.msra.mxu1 %v9843_v39  ;;  %v4438_v40 = vmax.f32 %v4262_v32, 0.0  ;;  %v11003_v39 = vld [vmem:[#allocation227_spill] sm:$0xff]  ;;  %v4532_v32 = vcombine.high %v11009_v56, %v11009_v56  ;;  %v11011_v10 = vld [vmem:[#allocation188_spill] sm:$0xff] }
 0x9e0   :  { %v4257_v34 = vadd.f32 %v4256_v23, %v11000_v37  ;;  %5014 = vmatprep.subr.bf16.mxu1 %v4488_v53  ;;  %v4436_v50 = vmax.f32 %v4254_v43, 0.0  ;;  %v11010_v43 = vld [vmem:[#allocation189_spill] sm:$0xff]  ;;  %v11012_v37 = vld [vmem:[#allocation262_spill] sm:$0xff] }
 0x9e1   :  { %v4439_v26 = vmax.f32 %v4265_v61, 0.0 }
 0x9e2   :  { %v4437_v49 = vmax.f32 %v4257_v34, 0.0  ;;  %v11013_v34 = vld [vmem:[#allocation186_spill] sm:$0xff] }
 0x9e3   :  { %v4490_v44 = vpack.c.bf16 %v4439_v26, %v4438_v40  ;;  %5015 = vmatpush3.bf16.msra.mxu1 %v9839_v35 }
 0x9e4   :  { %v4489_v25 = vpack.c.bf16 %v4437_v49, %v4436_v50  ;;  %v5098_v14 = vpop.f32.mrb[28].mxu0 }
 0x9e5   :  { %v4278_v21 = vadd.f32 %v5098_v14, %v11001_v63  ;;  %v4269_v18 = vpop.f32.mrb[29].mxu0 }
 0x9e6   :  { %v4270_v12 = vadd.f32 %v4269_v18, %v11002_v58  ;;  %v5099_v7 = vpop.f32.mrb[30].mxu0  ;;  %5016 = vmatprep.subr.bf16.mxu1 %v4489_v25  ;;  %v11015_v18 = vld [vmem:[#allocation201_spill] sm:$0xff] }
 0x9e7   :  { %v4281_v51 = vadd.f32 %v5099_v7, %v11003_v39  ;;  %v4272_v20 = vpop.f32.mrb[31].mxu0  ;;  %5017 = vmatpush3.bf16.msra.mxu1 %v9859_v24  ;;  %v4442_v29 = vmax.f32 %v4278_v21, 0.0  ;;  %v11007_v24 = vld [vmem:[#allocation257_spill] sm:$0xff]  ;;  %v11016_v7 = vld [vmem:[#allocation151_spill] sm:$0xff] }
 0x9e8   :  { %v4273_v8 = vadd.f32 %v4272_v20, %v11004_v60  ;;  %5018 = vmatprep.subr.bf16.mxu1 %v4490_v44  ;;  %v4440_v35 = vmax.f32 %v4270_v12, 0.0  ;;  %v11017_v20 = vld [vmem:[#allocation199_spill] sm:$0xff] }
 0x9e9   :  { %v4443_v33 = vmax.f32 %v4281_v51, 0.0 }
 0x9ea   :  { %v4441_v36 = vmax.f32 %v4273_v8, 0.0 }
 0x9eb   :  { %v4492_v22 = vpack.c.bf16 %v4443_v33, %v4442_v29  ;;  %5019 = vmatpush3.bf16.msra.mxu1 %v9855_v54 }
 0x9ec   :  { %v4491_v15 = vpack.c.bf16 %v4441_v36, %v4440_v35  ;;  %v5102_v59 = vpop.f32.mrb[32].mxu0 }
 0x9ed   :  { %v4294_v28 = vadd.f32 %v5102_v59, %v11005_v0  ;;  %v4285_v62 = vpop.f32.mrb[33].mxu0 }
 0x9ee   :  { %v4286_v9 = vadd.f32 %v4285_v62, %v11006_v31  ;;  %v5103_v1 = vpop.f32.mrb[34].mxu0  ;;  %5020 = vmatprep.subr.bf16.mxu1 %v4491_v15  ;;  %v4513_v31 = vpop.permute.xlu1 %4512 }
 0x9ef   :  { %v4297_v45 = vadd.f32 %v5103_v1, %v11007_v24  ;;  %v4288_v13 = vpop.f32.mrb[35].mxu0  ;;  %5021 = vmatpush3.bf16.msra.mxu1 %v9875_v2  ;;  %v4446_v57 = vmax.f32 %v4294_v28, 0.0 }
 0x9f0   :  { %v4289_v27 = vadd.f32 %v4288_v13, %v11008_v47  ;;  %5022 = vmatprep.subr.bf16.mxu1 %v4492_v22  ;;  %v4444_v54 = vmax.f32 %v4286_v9, 0.0 }
 0x9f1   :  { %v4447_v53 = vmax.f32 %v4297_v45, 0.0 }
 0x9f2   :  { %v4445_v48 = vmax.f32 %v4289_v27, 0.0 }
 0x9f3   :  { %v4494_v30 = vpack.c.bf16 %v4447_v53, %v4446_v57  ;;  %5023 = vmatpush3.bf16.msra.mxu1 %v9871_v41  ;;  %v11014_v41 = vld [vmem:[#allocation150_spill] sm:$0xff] }
 0x9f4   :  { %v4493_v38 = vpack.c.bf16 %v4445_v48, %v4444_v54  ;;  %v5106_v4 = vpop.f32.mrb[36].mxu0  ;;  %5030 = vmatprep.subr.bf16.mxu1 %v9845_v6 }
 0x9f5   :  { %v4310_v17 = vadd.f32 %v5106_v4, %v11010_v43  ;;  %v4301_v2 = vpop.f32.mrb[37].mxu0 }
 0x9f6   :  { %v4302_v61 = vadd.f32 %v4301_v2, %v11011_v10  ;;  %v5107_v23 = vpop.f32.mrb[38].mxu0  ;;  %4570 = vmatmul.mubr.bf16.vlgmr.msra.gmra.mrb[20].mxu1 %v11012_v37 }
 0x9f7   :  { %v4313_v40 = vadd.f32 %v5107_v23, %v11013_v34  ;;  %v4304_v26 = vpop.f32.mrb[39].mxu0  ;;  %5031 = vmatpush3.bf16.msra.mxu1 %v4493_v38  ;;  %4609 = vmatprep.mubr.bf16.mxu1 %v4532_v32  ;;  %v4450_v49 = vmax.f32 %v4310_v17, 0.0 }
 0x9f8   :  { %v4305_v50 = vadd.f32 %v4304_v26, %v11014_v41  ;;  %5032 = vmatprep.subr.bf16.mxu1 %v9841_v55  ;;  %v4448_v6 = vmax.f32 %v4302_v61, 0.0  ;;  %v11018_v55 = vld [vmem:[#allocation192_spill] sm:$0xff] }
 0x9f9   :  { %v4451_v44 = vmax.f32 %v4313_v40, 0.0 }
 0x9fa   :  { %v4449_v25 = vmax.f32 %v4305_v50, 0.0 }
 0x9fb   :  { %v4496_v14 = vpack.c.bf16 %v4451_v44, %v4450_v49  ;;  %5033 = vmatpush3.bf16.msra.mxu1 %v4494_v30 }
 0x9fc   :  { %v4495_v63 = vpack.c.bf16 %v4449_v25, %v4448_v6  ;;  %v5110_v21 = vpop.f32.mrb[40].mxu0  ;;  %5034 = vmatprep.subr.bf16.mxu1 %v9861_v52 }
 0x9fd   :  { %v4326_v58 = vadd.f32 %v5110_v21, %v11015_v18  ;;  %v4317_v12 = vpop.f32.mrb[41].mxu0 }
 0x9fe   :  { %v4318_v39 = vadd.f32 %v4317_v12, %v11016_v7  ;;  %v5111_v51 = vpop.f32.mrb[42].mxu0 }
 0x9ff   :  { %v4329_v60 = vadd.f32 %v5111_v51, %v11017_v20  ;;  %v4320_v8 = vpop.f32.mrb[43].mxu0  ;;  %5035 = vmatpush3.bf16.msra.mxu1 %v4495_v63  ;;  %v4454_v33 = vmax.f32 %v4326_v58, 0.0 }
 0xa00   :  { %v4321_v29 = vadd.f32 %v4320_v8, %v11018_v55  ;;  %5036 = vmatprep.subr.bf16.mxu1 %v9857_v11  ;;  %v4452_v36 = vmax.f32 %v4318_v39, 0.0 }
 0xa01   :  { %v4455_v35 = vmax.f32 %v4329_v60, 0.0 }
 0xa02   :  { %v4453_v22 = vmax.f32 %v4321_v29, 0.0 }
 0xa03   :  { %v4498_v15 = vpack.c.bf16 %v4455_v35, %v4454_v33  ;;  %5037 = vmatpush3.bf16.msra.mxu1 %v4496_v14 }
 0xa04   :  { %v4497_v52 = vpack.c.bf16 %v4453_v22, %v4452_v36  ;;  %5038 = vmatprep.subr.bf16.mxu1 %v9877_v42 }
 0xa07   :  { %5039 = vmatpush3.bf16.msra.mxu1 %v4497_v52 }
 0xa08   :  { %5040 = vmatprep.subr.bf16.mxu1 %v9873_v3 }
 0xa0b   :  { %5041 = vmatpush3.bf16.msra.mxu1 %v4498_v15 }
 0xa0c   :  { %5042 = vmatprep.subr.bf16.mxu1 %v9889_v5 }
 0xa0f   :  { %5043 = vmatpush3.bf16.msra.mxu1 %v9829_v46 }
 0xa10   :  { %5044 = vmatprep.subr.bf16.mxu1 %v9887_v16 }
 0xa13   :  { %5045 = vmatpush3.bf16.msra.mxu1 %v9825_v19 }
 0xa16   :  { %4610 = vmatmul.mubr.bf16.vlgmr.msra.gmra.mrb[24].mxu1 %v11009_v56 }
 0xac9   :  { %v5024_v11 = vpop.f32.mrb[20].mxu1 }
 0xaca   :  { %v5025_v59 = vpop.f32.mrb[21].mxu1 }
 0xacb   :  { %v5026_v0 = vadd.f32 %v5025_v59, %v5024_v11  ;;  %v5027_v28 = vpop.f32.mrb[22].mxu1 }
 0xacc   :  { %v5028_v62 = vpop.f32.mrb[23].mxu1 }
 0xacd   :  { %v4572_v3 = vadd.f32 %v5026_v0, %v4513_v31 }
 0xae9   :  { %v5046_v42 = vpop.f32.mrb[24].mxu1 }
 0xaea   :  { %v5047_v9 = vpop.f32.mrb[25].mxu1 }
 0xaeb   :  { %v5048_v1 = vadd.f32 %v5047_v9, %v5046_v42  ;;  %v5049_v24 = vpop.f32.mrb[26].mxu1 }
 0xaec   :  { %v5050_v5 = vpop.f32.mrb[27].mxu1 }
 0xaed   :  { %v4612_v45 = vadd.f32 %v5048_v1, %v4572_v3 }
 0xaef   :  { %4617 = vst.msk [vmem:[%s11019_s19] sm:$0xf] %vm1036_vm6, %v4612_v45 }
 0xaf0   :  { %4622 = vsyncpa [#allocation4], 1 }
 0xaf1   :  { %4623 = vsyncpa [#allocation6], 1 }
 0xaf2   :  { %4624 = vsyncpa [#allocation9], 1 }
 0xaf3   :  { %4625 = vsyncpa [#allocation12], 1 }

</bundles_post_ra>
